<compile_context>
chip_gen: v6e
topology: v6e:2x2x1
jax: 0.10.0
libtpu: 0.0.40
codegen_flags: <defaults>
</compile_context>

<pallas_src>
import functools

import jax
import jax.numpy as jnp
from jax import lax
from jax.experimental import pallas as pl
from jax.experimental.pallas import tpu as pltpu

LANE = 128  # TPU lane width; all channel dims are zero-padded to this.


def _round_up(x, m):
    return ((x + m - 1) // m) * m


# ----------------------------------------------------------------------------
# Fused decoder kernel: runs all L ConvBnReLU layers for one batch element.
# ----------------------------------------------------------------------------
def _fused_decoder_kernel(x_ref, w_ref, sb_ref, mask_ref, o_ref,
                          buf0, buf1, acc_ref, *, H, W, L, R8):
    # x_ref:    (H, W, LANE)        channel-padded input image
    # w_ref:    (L*9, LANE, LANE)   per-layer, per-tap weights (t = dy*3+dx)
    # sb_ref:   (2*L, LANE)         row 2l = BN scale, row 2l+1 = BN bias
    # mask_ref: (R8, LANE)          1.0 for valid output rows, 0.0 for junk/halo
    # o_ref:    (FLAT, LANE)        final layer output in padded-slab layout
    # buf0/1:   (FLAT, LANE)        VMEM ping-pong activation slabs
    # acc_ref:  (R8, LANE) f32      conv accumulator
    Wp = W + 2

    # --- init: zero slabs (halo rows/cols must be zero) ----------------------
    buf0[...] = jnp.zeros_like(buf0)
    buf1[...] = jnp.zeros_like(buf1)
    o_ref[...] = jnp.zeros_like(o_ref)

    # --- in-kernel spatial zero-padding: copy input into buf0 interior -------
    for i in range(H):
        r0 = (i + 1) * Wp + 1
        buf0[r0:r0 + W, :] = x_ref[i]

    mask = mask_ref[...]  # hoisted out of the layer loop

    bufs = (buf0, buf1)
    src = 0
    for l in range(L):
        src_ref = bufs[src]
        dst_ref = o_ref if l == L - 1 else bufs[1 - src]

        # 3x3 conv as 9 contiguous-slice matmuls (lane-dense, K = LANE each),
        # accumulated into the VMEM scratch accumulator.
        for t in range(9):
            dy, dx = t // 3, t % 3
            off = dy * Wp + dx
            prod = jnp.dot(src_ref[off:off + R8, :], w_ref[l * 9 + t],
                           preferred_element_type=jnp.float32)
            if t == 0:
                acc_ref[...] = prod
            else:
                acc_ref[...] += prod

        # folded BatchNorm + ReLU, then zero the junk rows (so halo columns of
        # the next layer's slab stay zero).
        scale = sb_ref[2 * l:2 * l + 1, :]
        bias = sb_ref[2 * l + 1:2 * l + 2, :]
        y = jnp.maximum(acc_ref[...] * scale + bias, 0.0) * mask

        # contiguous, lane-dense store: output pixel (i, j) lives at slab row
        # (i+1)*(W+2) + (j+1) = r + (W+3) for accumulator row r = i*(W+2)+j.
        dst_ref[W + 3:W + 3 + R8, :] = y.astype(dst_ref.dtype)
        src = 1 - src


# ----------------------------------------------------------------------------
# Deterministic parameter construction (matches module __init__ shapes)
# ----------------------------------------------------------------------------
def make_segnet_decoder_params(in_channels, out_channels, num_layers, key):
    """List of dicts {'w': (3,3,Cin,Cout), 'scale': (Cout,), 'bias': (Cout,)}."""
    mid = in_channels // 2
    channel_plan = [(in_channels, mid)]
    channel_plan += [(mid, mid)] * (num_layers - 1)
    channel_plan += [(mid, out_channels)]

    eps = 1e-5
    params = []
    for (cin, cout) in channel_plan:
        key, kw, kg, kb, km, kv = jax.random.split(key, 6)
        fan_in = cin * 9
        w = jax.random.normal(kw, (3, 3, cin, cout), jnp.float32) * (fan_in ** -0.5)
        gamma = 1.0 + 0.1 * jax.random.normal(kg, (cout,), jnp.float32)
        beta = 0.1 * jax.random.normal(kb, (cout,), jnp.float32)
        mean = 0.1 * jax.random.normal(km, (cout,), jnp.float32)
        var = jnp.abs(1.0 + 0.1 * jax.random.normal(kv, (cout,), jnp.float32))
        scale = gamma * lax.rsqrt(var + eps)
        bias = beta - mean * scale
        params.append({"w": w, "scale": scale, "bias": bias})
    return params


def _pack_params(params):
    """Zero-pad all layers' weights / BN params to LANE channels and stack."""
    L = len(params)
    w_all = jnp.zeros((L, 3, 3, LANE, LANE), jnp.float32)
    sb_all = jnp.zeros((2 * L, LANE), jnp.float32)
    for l, p in enumerate(params):
        cin, cout = p["w"].shape[2], p["w"].shape[3]
        assert cin <= LANE and cout <= LANE
        w_all = w_all.at[l, :, :, :cin, :cout].set(p["w"])
        sb_all = sb_all.at[2 * l, :cout].set(p["scale"])
        sb_all = sb_all.at[2 * l + 1, :cout].set(p["bias"])
    return w_all.reshape(L * 9, LANE, LANE), sb_all


# ----------------------------------------------------------------------------
# Full decoder forward (wrapper: NCHW in/out, like PyTorch)
# ----------------------------------------------------------------------------
def segnet_decoder_forward(x_nchw, params):
    B, Cin, H, W = x_nchw.shape
    assert Cin <= LANE
    L = len(params)
    Cout = params[-1]["w"].shape[-1]

    Wp = W + 2
    R = (H - 1) * Wp + W                     # accumulator rows (incl. junk cols)
    R8 = _round_up(R, 8)
    # slab rows: must hold the padded image and allow off_max + R8 reads.
    FLAT = _round_up(max((H + 2) * Wp, 2 * Wp + 2 + R8, W + 3 + R8), 8)

    w_all, sb_all = _pack_params(params)

    # Valid-row mask (1.0 where accumulator row r is a real output pixel).
    r = jnp.arange(R8)
    mask = ((r % Wp) < W) & (r < R)
    mask_arr = jnp.broadcast_to(mask[:, None], (R8, LANE)).astype(jnp.float32)

    # NCHW -> NHWC, channels zero-padded to the lane width (lane-dense).
    x = jnp.transpose(x_nchw, (0, 2, 3, 1)).astype(jnp.float32)
    x = jnp.pad(x, ((0, 0), (0, 0), (0, 0), (0, LANE - Cin)))

    kernel = functools.partial(_fused_decoder_kernel, H=H, W=W, L=L, R8=R8)
    out_flat = pl.pallas_call(
        kernel,
        out_shape=jax.ShapeDtypeStruct((B, FLAT, LANE), jnp.float32),
        grid_spec=pltpu.PrefetchScalarGridSpec(
            num_scalar_prefetch=0,
            grid=(B,),
            in_specs=[
                pl.BlockSpec((None, H, W, LANE), lambda b: (b, 0, 0, 0)),
                pl.BlockSpec((L * 9, LANE, LANE), lambda b: (0, 0, 0)),
                pl.BlockSpec((2 * L, LANE), lambda b: (0, 0)),
                pl.BlockSpec((R8, LANE), lambda b: (0, 0)),
            ],
            out_specs=pl.BlockSpec((None, FLAT, LANE), lambda b: (b, 0, 0)),
            scratch_shapes=[
                pltpu.VMEM((FLAT, LANE), jnp.float32),   # activation slab A
                pltpu.VMEM((FLAT, LANE), jnp.float32),   # activation slab B
                pltpu.VMEM((R8, LANE), jnp.float32),     # conv accumulator
            ],
        ),
        compiler_params=pltpu.CompilerParams(
            dimension_semantics=("parallel",)),
    )(x, w_all, sb_all, mask_arr)

    # padded slab -> NHWC interior -> real channels -> NCHW
    out = out_flat[:, :(H + 2) * Wp, :].reshape(B, H + 2, Wp, LANE)
    out = out[:, 1:H + 1, 1:W + 1, :Cout]
    return jnp.transpose(out, (0, 3, 1, 2))


# ----------------------------------------------------------------------------
# Pure-JAX reference (for verification)
# ----------------------------------------------------------------------------
def segnet_decoder_reference(x_nchw, params):
    x = jnp.transpose(x_nchw, (0, 2, 3, 1)).astype(jnp.float32)
    for p in params:
        y = lax.conv_general_dilated(
            x, p["w"], window_strides=(1, 1), padding="SAME",
            dimension_numbers=("NHWC", "HWIO", "NHWC"),
        )
        y = y * p["scale"][None, None, None, :] + p["bias"][None, None, None, :]
        x = jnp.maximum(y, 0.0)
    return jnp.transpose(x, (0, 3, 1, 2))


if __name__ == "__main__":
    key = jax.random.PRNGKey(0)
    k_x, k_p = jax.random.split(key)

    # Small shapes consistent with the module: SegNetDecoder(4, 4, 2)
    B, Cin, H, W = 2, 4, 16, 16
    out_channels, num_layers = 4, 2

    x = jax.random.normal(k_x, (B, Cin, H, W), jnp.float32)
    params = make_segnet_decoder_params(Cin, out_channels, num_layers, k_p)

    out = segnet_decoder_forward(x, params)
    out = jax.block_until_ready(out)

    ref = segnet_decoder_reference(x, params)
    assert out.shape == (B, out_channels, H, W), out.shape
    assert jnp.allclose(out, ref, atol=1e-4, rtol=1e-4), "mismatch vs reference"

    print("KERNEL_OK")
</pallas_src>

<mosaic_0001>
module attributes {stable_mosaic.version = 11 : i64} {
  func.func @_fused_decoder_kernel(%arg0: i32, %arg1: memref<1x16x16x128xf32, #tpu.memory_space<vmem>>, %arg2: memref<27x128x128xf32, #tpu.memory_space<vmem>>, %arg3: memref<6x128xf32, #tpu.memory_space<vmem>>, %arg4: memref<288x128xf32, #tpu.memory_space<vmem>>, %arg5: memref<1x328x128xf32, #tpu.memory_space<vmem>>, %arg6: memref<328x128xf32, #tpu.memory_space<vmem>>, %arg7: memref<328x128xf32, #tpu.memory_space<vmem>>, %arg8: memref<288x128xf32, #tpu.memory_space<vmem>>) attributes {dimension_semantics = [#tpu.dimension_semantics<parallel>], iteration_bounds = array<i64: 2>, scalar_prefetch = 0 : i64, scratch_operands = 3 : i64, tpu.core_type = #tpu.core_type<tc>, window_params = [{transform_indices = @transform_0, window_bounds = array<i64: 1, 16, 16, 128>}, {pipeline_mode = #tpu.pipeline_mode<synchronous>, transform_indices = @transform_1, window_bounds = array<i64: 27, 128, 128>}, {pipeline_mode = #tpu.pipeline_mode<synchronous>, transform_indices = @transform_2, window_bounds = array<i64: 6, 128>}, {pipeline_mode = #tpu.pipeline_mode<synchronous>, transform_indices = @transform_3, window_bounds = array<i64: 288, 128>}, {transform_indices = @transform_4, window_bounds = array<i64: 1, 328, 128>}]} {
    %cst = arith.constant 0.000000e+00 : f32
    %0 = vector.broadcast %cst : f32 to vector<328x128xf32>
    %c0 = arith.constant 0 : index
    %c0_0 = arith.constant 0 : index
    %1 = vector.load %arg6[%c0, %c0_0] : memref<328x128xf32, #tpu.memory_space<vmem>>, vector<328x128xf32>
    tpu.vector_store %arg6[%c0, %c0_0], %0 {strides = array<i32>} : memref<328x128xf32, #tpu.memory_space<vmem>>, vector<328x128xf32>,
    %cst_1 = arith.constant 0.000000e+00 : f32
    %2 = vector.broadcast %cst_1 : f32 to vector<328x128xf32>
    %c0_2 = arith.constant 0 : index
    %c0_3 = arith.constant 0 : index
    %3 = vector.load %arg7[%c0_2, %c0_3] : memref<328x128xf32, #tpu.memory_space<vmem>>, vector<328x128xf32>
    tpu.vector_store %arg7[%c0_2, %c0_3], %2 {strides = array<i32>} : memref<328x128xf32, #tpu.memory_space<vmem>>, vector<328x128xf32>,
    %cst_4 = arith.constant 0.000000e+00 : f32
    %4 = vector.broadcast %cst_4 : f32 to vector<328x128xf32>
    %c0_5 = arith.constant 0 : index
    %c0_6 = arith.constant 0 : index
    %c0_7 = arith.constant 0 : index
    %5 = vector.load %arg5[%c0_5, %c0_6, %c0_7] : memref<1x328x128xf32, #tpu.memory_space<vmem>>, vector<1x328x128xf32>
    %6 = vector.shape_cast %5 : vector<1x328x128xf32> to vector<328x128xf32>
    %7 = vector.shape_cast %4 : vector<328x128xf32> to vector<1x328x128xf32>
    tpu.vector_store %arg5[%c0_5, %c0_6, %c0_7], %7 {strides = array<i32>} : memref<1x328x128xf32, #tpu.memory_space<vmem>>, vector<1x328x128xf32>,
    %c0_8 = arith.constant 0 : index
    %c0_9 = arith.constant 0 : index
    %c0_10 = arith.constant 0 : index
    %c0_11 = arith.constant 0 : index
    %8 = vector.load %arg1[%c0_8, %c0_9, %c0_10, %c0_11] : memref<1x16x16x128xf32, #tpu.memory_space<vmem>>, vector<1x1x16x128xf32>
    %9 = vector.shape_cast %8 : vector<1x1x16x128xf32> to vector<16x128xf32>
    %c19 = arith.constant 19 : index
    %c0_12 = arith.constant 0 : index
    %10 = vector.load %arg6[%c19, %c0_12] : memref<328x128xf32, #tpu.memory_space<vmem>>, vector<16x128xf32>
    tpu.vector_store %arg6[%c19, %c0_12], %9 {strides = array<i32>} : memref<328x128xf32, #tpu.memory_space<vmem>>, vector<16x128xf32>,
    %c0_13 = arith.constant 0 : index
    %c1 = arith.constant 1 : index
    %c0_14 = arith.constant 0 : index
    %c0_15 = arith.constant 0 : index
    %11 = vector.load %arg1[%c0_13, %c1, %c0_14, %c0_15] : memref<1x16x16x128xf32, #tpu.memory_space<vmem>>, vector<1x1x16x128xf32>
    %12 = vector.shape_cast %11 : vector<1x1x16x128xf32> to vector<16x128xf32>
    %c37 = arith.constant 37 : index
    %c0_16 = arith.constant 0 : index
    %13 = vector.load %arg6[%c37, %c0_16] : memref<328x128xf32, #tpu.memory_space<vmem>>, vector<16x128xf32>
    tpu.vector_store %arg6[%c37, %c0_16], %12 {strides = array<i32>} : memref<328x128xf32, #tpu.memory_space<vmem>>, vector<16x128xf32>,
    %c0_17 = arith.constant 0 : index
    %c2 = arith.constant 2 : index
    %c0_18 = arith.constant 0 : index
    %c0_19 = arith.constant 0 : index
    %14 = vector.load %arg1[%c0_17, %c2, %c0_18, %c0_19] : memref<1x16x16x128xf32, #tpu.memory_space<vmem>>, vector<1x1x16x128xf32>
    %15 = vector.shape_cast %14 : vector<1x1x16x128xf32> to vector<16x128xf32>
    %c55 = arith.constant 55 : index
    %c0_20 = arith.constant 0 : index
    %16 = vector.load %arg6[%c55, %c0_20] : memref<328x128xf32, #tpu.memory_space<vmem>>, vector<16x128xf32>
    tpu.vector_store %arg6[%c55, %c0_20], %15 {strides = array<i32>} : memref<328x128xf32, #tpu.memory_space<vmem>>, vector<16x128xf32>,
    %c0_21 = arith.constant 0 : index
    %c3 = arith.constant 3 : index
    %c0_22 = arith.constant 0 : index
    %c0_23 = arith.constant 0 : index
    %17 = vector.load %arg1[%c0_21, %c3, %c0_22, %c0_23] : memref<1x16x16x128xf32, #tpu.memory_space<vmem>>, vector<1x1x16x128xf32>
    %18 = vector.shape_cast %17 : vector<1x1x16x128xf32> to vector<16x128xf32>
    %c73 = arith.constant 73 : index
    %c0_24 = arith.constant 0 : index
    %19 = vector.load %arg6[%c73, %c0_24] : memref<328x128xf32, #tpu.memory_space<vmem>>, vector<16x128xf32>
    tpu.vector_store %arg6[%c73, %c0_24], %18 {strides = array<i32>} : memref<328x128xf32, #tpu.memory_space<vmem>>, vector<16x128xf32>,
    %c0_25 = arith.constant 0 : index
    %c4 = arith.constant 4 : index
    %c0_26 = arith.constant 0 : index
    %c0_27 = arith.constant 0 : index
    %20 = vector.load %arg1[%c0_25, %c4, %c0_26, %c0_27] : memref<1x16x16x128xf32, #tpu.memory_space<vmem>>, vector<1x1x16x128xf32>
    %21 = vector.shape_cast %20 : vector<1x1x16x128xf32> to vector<16x128xf32>
    %c91 = arith.constant 91 : index
    %c0_28 = arith.constant 0 : index
    %22 = vector.load %arg6[%c91, %c0_28] : memref<328x128xf32, #tpu.memory_space<vmem>>, vector<16x128xf32>
    tpu.vector_store %arg6[%c91, %c0_28], %21 {strides = array<i32>} : memref<328x128xf32, #tpu.memory_space<vmem>>, vector<16x128xf32>,
    %c0_29 = arith.constant 0 : index
    %c5 = arith.constant 5 : index
    %c0_30 = arith.constant 0 : index
    %c0_31 = arith.constant 0 : index
    %23 = vector.load %arg1[%c0_29, %c5, %c0_30, %c0_31] : memref<1x16x16x128xf32, #tpu.memory_space<vmem>>, vector<1x1x16x128xf32>
    %24 = vector.shape_cast %23 : vector<1x1x16x128xf32> to vector<16x128xf32>
    %c109 = arith.constant 109 : index
    %c0_32 = arith.constant 0 : index
    %25 = vector.load %arg6[%c109, %c0_32] : memref<328x128xf32, #tpu.memory_space<vmem>>, vector<16x128xf32>
    tpu.vector_store %arg6[%c109, %c0_32], %24 {strides = array<i32>} : memref<328x128xf32, #tpu.memory_space<vmem>>, vector<16x128xf32>,
    %c0_33 = arith.constant 0 : index
    %c6 = arith.constant 6 : index
    %c0_34 = arith.constant 0 : index
    %c0_35 = arith.constant 0 : index
    %26 = vector.load %arg1[%c0_33, %c6, %c0_34, %c0_35] : memref<1x16x16x128xf32, #tpu.memory_space<vmem>>, vector<1x1x16x128xf32>
    %27 = vector.shape_cast %26 : vector<1x1x16x128xf32> to vector<16x128xf32>
    %c127 = arith.constant 127 : index
    %c0_36 = arith.constant 0 : index
    %28 = vector.load %arg6[%c127, %c0_36] : memref<328x128xf32, #tpu.memory_space<vmem>>, vector<16x128xf32>
    tpu.vector_store %arg6[%c127, %c0_36], %27 {strides = array<i32>} : memref<328x128xf32, #tpu.memory_space<vmem>>, vector<16x128xf32>,
    %c0_37 = arith.constant 0 : index
    %c7 = arith.constant 7 : index
    %c0_38 = arith.constant 0 : index
    %c0_39 = arith.constant 0 : index
    %29 = vector.load %arg1[%c0_37, %c7, %c0_38, %c0_39] : memref<1x16x16x128xf32, #tpu.memory_space<vmem>>, vector<1x1x16x128xf32>
    %30 = vector.shape_cast %29 : vector<1x1x16x128xf32> to vector<16x128xf32>
    %c145 = arith.constant 145 : index
    %c0_40 = arith.constant 0 : index
    %31 = vector.load %arg6[%c145, %c0_40] : memref<328x128xf32, #tpu.memory_space<vmem>>, vector<16x128xf32>
    tpu.vector_store %arg6[%c145, %c0_40], %30 {strides = array<i32>} : memref<328x128xf32, #tpu.memory_space<vmem>>, vector<16x128xf32>,
    %c0_41 = arith.constant 0 : index
    %c8 = arith.constant 8 : index
    %c0_42 = arith.constant 0 : index
    %c0_43 = arith.constant 0 : index
    %32 = vector.load %arg1[%c0_41, %c8, %c0_42, %c0_43] : memref<1x16x16x128xf32, #tpu.memory_space<vmem>>, vector<1x1x16x128xf32>
    %33 = vector.shape_cast %32 : vector<1x1x16x128xf32> to vector<16x128xf32>
    %c163 = arith.constant 163 : index
    %c0_44 = arith.constant 0 : index
    %34 = vector.load %arg6[%c163, %c0_44] : memref<328x128xf32, #tpu.memory_space<vmem>>, vector<16x128xf32>
    tpu.vector_store %arg6[%c163, %c0_44], %33 {strides = array<i32>} : memref<328x128xf32, #tpu.memory_space<vmem>>, vector<16x128xf32>,
    %c0_45 = arith.constant 0 : index
    %c9 = arith.constant 9 : index
    %c0_46 = arith.constant 0 : index
    %c0_47 = arith.constant 0 : index
    %35 = vector.load %arg1[%c0_45, %c9, %c0_46, %c0_47] : memref<1x16x16x128xf32, #tpu.memory_space<vmem>>, vector<1x1x16x128xf32>
    %36 = vector.shape_cast %35 : vector<1x1x16x128xf32> to vector<16x128xf32>
    %c181 = arith.constant 181 : index
    %c0_48 = arith.constant 0 : index
    %37 = vector.load %arg6[%c181, %c0_48] : memref<328x128xf32, #tpu.memory_space<vmem>>, vector<16x128xf32>
    tpu.vector_store %arg6[%c181, %c0_48], %36 {strides = array<i32>} : memref<328x128xf32, #tpu.memory_space<vmem>>, vector<16x128xf32>,
    %c0_49 = arith.constant 0 : index
    %c10 = arith.constant 10 : index
    %c0_50 = arith.constant 0 : index
    %c0_51 = arith.constant 0 : index
    %38 = vector.load %arg1[%c0_49, %c10, %c0_50, %c0_51] : memref<1x16x16x128xf32, #tpu.memory_space<vmem>>, vector<1x1x16x128xf32>
    %39 = vector.shape_cast %38 : vector<1x1x16x128xf32> to vector<16x128xf32>
    %c199 = arith.constant 199 : index
    %c0_52 = arith.constant 0 : index
    %40 = vector.load %arg6[%c199, %c0_52] : memref<328x128xf32, #tpu.memory_space<vmem>>, vector<16x128xf32>
    tpu.vector_store %arg6[%c199, %c0_52], %39 {strides = array<i32>} : memref<328x128xf32, #tpu.memory_space<vmem>>, vector<16x128xf32>,
    %c0_53 = arith.constant 0 : index
    %c11 = arith.constant 11 : index
    %c0_54 = arith.constant 0 : index
    %c0_55 = arith.constant 0 : index
    %41 = vector.load %arg1[%c0_53, %c11, %c0_54, %c0_55] : memref<1x16x16x128xf32, #tpu.memory_space<vmem>>, vector<1x1x16x128xf32>
    %42 = vector.shape_cast %41 : vector<1x1x16x128xf32> to vector<16x128xf32>
    %c217 = arith.constant 217 : index
    %c0_56 = arith.constant 0 : index
    %43 = vector.load %arg6[%c217, %c0_56] : memref<328x128xf32, #tpu.memory_space<vmem>>, vector<16x128xf32>
    tpu.vector_store %arg6[%c217, %c0_56], %42 {strides = array<i32>} : memref<328x128xf32, #tpu.memory_space<vmem>>, vector<16x128xf32>,
    %c0_57 = arith.constant 0 : index
    %c12 = arith.constant 12 : index
    %c0_58 = arith.constant 0 : index
    %c0_59 = arith.constant 0 : index
    %44 = vector.load %arg1[%c0_57, %c12, %c0_58, %c0_59] : memref<1x16x16x128xf32, #tpu.memory_space<vmem>>, vector<1x1x16x128xf32>
    %45 = vector.shape_cast %44 : vector<1x1x16x128xf32> to vector<16x128xf32>
    %c235 = arith.constant 235 : index
    %c0_60 = arith.constant 0 : index
    %46 = vector.load %arg6[%c235, %c0_60] : memref<328x128xf32, #tpu.memory_space<vmem>>, vector<16x128xf32>
    tpu.vector_store %arg6[%c235, %c0_60], %45 {strides = array<i32>} : memref<328x128xf32, #tpu.memory_space<vmem>>, vector<16x128xf32>,
    %c0_61 = arith.constant 0 : index
    %c13 = arith.constant 13 : index
    %c0_62 = arith.constant 0 : index
    %c0_63 = arith.constant 0 : index
    %47 = vector.load %arg1[%c0_61, %c13, %c0_62, %c0_63] : memref<1x16x16x128xf32, #tpu.memory_space<vmem>>, vector<1x1x16x128xf32>
    %48 = vector.shape_cast %47 : vector<1x1x16x128xf32> to vector<16x128xf32>
    %c253 = arith.constant 253 : index
    %c0_64 = arith.constant 0 : index
    %49 = vector.load %arg6[%c253, %c0_64] : memref<328x128xf32, #tpu.memory_space<vmem>>, vector<16x128xf32>
    tpu.vector_store %arg6[%c253, %c0_64], %48 {strides = array<i32>} : memref<328x128xf32, #tpu.memory_space<vmem>>, vector<16x128xf32>,
    %c0_65 = arith.constant 0 : index
    %c14 = arith.constant 14 : index
    %c0_66 = arith.constant 0 : index
    %c0_67 = arith.constant 0 : index
    %50 = vector.load %arg1[%c0_65, %c14, %c0_66, %c0_67] : memref<1x16x16x128xf32, #tpu.memory_space<vmem>>, vector<1x1x16x128xf32>
    %51 = vector.shape_cast %50 : vector<1x1x16x128xf32> to vector<16x128xf32>
    %c271 = arith.constant 271 : index
    %c0_68 = arith.constant 0 : index
    %52 = vector.load %arg6[%c271, %c0_68] : memref<328x128xf32, #tpu.memory_space<vmem>>, vector<16x128xf32>
    tpu.vector_store %arg6[%c271, %c0_68], %51 {strides = array<i32>} : memref<328x128xf32, #tpu.memory_space<vmem>>, vector<16x128xf32>,
    %c0_69 = arith.constant 0 : index
    %c15 = arith.constant 15 : index
    %c0_70 = arith.constant 0 : index
    %c0_71 = arith.constant 0 : index
    %53 = vector.load %arg1[%c0_69, %c15, %c0_70, %c0_71] : memref<1x16x16x128xf32, #tpu.memory_space<vmem>>, vector<1x1x16x128xf32>
    %54 = vector.shape_cast %53 : vector<1x1x16x128xf32> to vector<16x128xf32>
    %c289 = arith.constant 289 : index
    %c0_72 = arith.constant 0 : index
    %55 = vector.load %arg6[%c289, %c0_72] : memref<328x128xf32, #tpu.memory_space<vmem>>, vector<16x128xf32>
    tpu.vector_store %arg6[%c289, %c0_72], %54 {strides = array<i32>} : memref<328x128xf32, #tpu.memory_space<vmem>>, vector<16x128xf32>,
    %c0_73 = arith.constant 0 : index
    %c0_74 = arith.constant 0 : index
    %56 = vector.load %arg4[%c0_73, %c0_74] : memref<288x128xf32, #tpu.memory_space<vmem>>, vector<288x128xf32>
    %c0_75 = arith.constant 0 : index
    %c0_76 = arith.constant 0 : index
    %57 = vector.load %arg6[%c0_75, %c0_76] : memref<328x128xf32, #tpu.memory_space<vmem>>, vector<288x128xf32>
    %c0_77 = arith.constant 0 : index
    %c0_78 = arith.constant 0 : index
    %c0_79 = arith.constant 0 : index
    %58 = vector.load %arg2[%c0_77, %c0_78, %c0_79] : memref<27x128x128xf32, #tpu.memory_space<vmem>>, vector<1x128x128xf32>
    %59 = vector.shape_cast %58 : vector<1x128x128xf32> to vector<128x128xf32>
    %cst_80 = arith.constant dense<0.000000e+00> : vector<288x128xf32>
    %60 = tpu.matmul %57, %59, %cst_80 {dimension_numbers = #tpu.dot_dimension_numbers<[1], [0], [0], [1], [0, 0, 1, 1], [], []>} : vector<288x128xf32>, vector<128x128xf32>, vector<288x128xf32> -> vector<288x128xf32>
    %c0_81 = arith.constant 0 : index
    %c0_82 = arith.constant 0 : index
    %61 = vector.load %arg8[%c0_81, %c0_82] : memref<288x128xf32, #tpu.memory_space<vmem>>, vector<288x128xf32>
    tpu.vector_store %arg8[%c0_81, %c0_82], %60 {strides = array<i32>} : memref<288x128xf32, #tpu.memory_space<vmem>>, vector<288x128xf32>,
    %c1_83 = arith.constant 1 : index
    %c0_84 = arith.constant 0 : index
    %62 = vector.load %arg6[%c1_83, %c0_84] : memref<328x128xf32, #tpu.memory_space<vmem>>, vector<288x128xf32>
    %c1_85 = arith.constant 1 : index
    %c0_86 = arith.constant 0 : index
    %c0_87 = arith.constant 0 : index
    %63 = vector.load %arg2[%c1_85, %c0_86, %c0_87] : memref<27x128x128xf32, #tpu.memory_space<vmem>>, vector<1x128x128xf32>
    %64 = vector.shape_cast %63 : vector<1x128x128xf32> to vector<128x128xf32>
    %cst_88 = arith.constant dense<0.000000e+00> : vector<288x128xf32>
    %65 = tpu.matmul %62, %64, %cst_88 {dimension_numbers = #tpu.dot_dimension_numbers<[1], [0], [0], [1], [0, 0, 1, 1], [], []>} : vector<288x128xf32>, vector<128x128xf32>, vector<288x128xf32> -> vector<288x128xf32>
    %c0_89 = arith.constant 0 : index
    %c0_90 = arith.constant 0 : index
    %66 = vector.load %arg8[%c0_89, %c0_90] : memref<288x128xf32, #tpu.memory_space<vmem>>, vector<288x128xf32>
    %67 = arith.addf %66, %65 : vector<288x128xf32>
    %c0_91 = arith.constant 0 : index
    %c0_92 = arith.constant 0 : index
    %68 = vector.load %arg8[%c0_91, %c0_92] : memref<288x128xf32, #tpu.memory_space<vmem>>, vector<288x128xf32>
    tpu.vector_store %arg8[%c0_91, %c0_92], %67 {strides = array<i32>} : memref<288x128xf32, #tpu.memory_space<vmem>>, vector<288x128xf32>,
    %c2_93 = arith.constant 2 : index
    %c0_94 = arith.constant 0 : index
    %69 = vector.load %arg6[%c2_93, %c0_94] : memref<328x128xf32, #tpu.memory_space<vmem>>, vector<288x128xf32>
    %c2_95 = arith.constant 2 : index
    %c0_96 = arith.constant 0 : index
    %c0_97 = arith.constant 0 : index
    %70 = vector.load %arg2[%c2_95, %c0_96, %c0_97] : memref<27x128x128xf32, #tpu.memory_space<vmem>>, vector<1x128x128xf32>
    %71 = vector.shape_cast %70 : vector<1x128x128xf32> to vector<128x128xf32>
    %cst_98 = arith.constant dense<0.000000e+00> : vector<288x128xf32>
    %72 = tpu.matmul %69, %71, %cst_98 {dimension_numbers = #tpu.dot_dimension_numbers<[1], [0], [0], [1], [0, 0, 1, 1], [], []>} : vector<288x128xf32>, vector<128x128xf32>, vector<288x128xf32> -> vector<288x128xf32>
    %c0_99 = arith.constant 0 : index
    %c0_100 = arith.constant 0 : index
    %73 = vector.load %arg8[%c0_99, %c0_100] : memref<288x128xf32, #tpu.memory_space<vmem>>, vector<288x128xf32>
    %74 = arith.addf %73, %72 : vector<288x128xf32>
    %c0_101 = arith.constant 0 : index
    %c0_102 = arith.constant 0 : index
    %75 = vector.load %arg8[%c0_101, %c0_102] : memref<288x128xf32, #tpu.memory_space<vmem>>, vector<288x128xf32>
    tpu.vector_store %arg8[%c0_101, %c0_102], %74 {strides = array<i32>} : memref<288x128xf32, #tpu.memory_space<vmem>>, vector<288x128xf32>,
    %c18 = arith.constant 18 : index
    %c0_103 = arith.constant 0 : index
    %76 = vector.load %arg6[%c18, %c0_103] : memref<328x128xf32, #tpu.memory_space<vmem>>, vector<288x128xf32>
    %c3_104 = arith.constant 3 : index
    %c0_105 = arith.constant 0 : index
    %c0_106 = arith.constant 0 : index
    %77 = vector.load %arg2[%c3_104, %c0_105, %c0_106] : memref<27x128x128xf32, #tpu.memory_space<vmem>>, vector<1x128x128xf32>
    %78 = vector.shape_cast %77 : vector<1x128x128xf32> to vector<128x128xf32>
    %cst_107 = arith.constant dense<0.000000e+00> : vector<288x128xf32>
    %79 = tpu.matmul %76, %78, %cst_107 {dimension_numbers = #tpu.dot_dimension_numbers<[1], [0], [0], [1], [0, 0, 1, 1], [], []>} : vector<288x128xf32>, vector<128x128xf32>, vector<288x128xf32> -> vector<288x128xf32>
    %c0_108 = arith.constant 0 : index
    %c0_109 = arith.constant 0 : index
    %80 = vector.load %arg8[%c0_108, %c0_109] : memref<288x128xf32, #tpu.memory_space<vmem>>, vector<288x128xf32>
    %81 = arith.addf %80, %79 : vector<288x128xf32>
    %c0_110 = arith.constant 0 : index
    %c0_111 = arith.constant 0 : index
    %82 = vector.load %arg8[%c0_110, %c0_111] : memref<288x128xf32, #tpu.memory_space<vmem>>, vector<288x128xf32>
    tpu.vector_store %arg8[%c0_110, %c0_111], %81 {strides = array<i32>} : memref<288x128xf32, #tpu.memory_space<vmem>>, vector<288x128xf32>,
    %c19_112 = arith.constant 19 : index
    %c0_113 = arith.constant 0 : index
    %83 = vector.load %arg6[%c19_112, %c0_113] : memref<328x128xf32, #tpu.memory_space<vmem>>, vector<288x128xf32>
    %c4_114 = arith.constant 4 : index
    %c0_115 = arith.constant 0 : index
    %c0_116 = arith.constant 0 : index
    %84 = vector.load %arg2[%c4_114, %c0_115, %c0_116] : memref<27x128x128xf32, #tpu.memory_space<vmem>>, vector<1x128x128xf32>
    %85 = vector.shape_cast %84 : vector<1x128x128xf32> to vector<128x128xf32>
    %cst_117 = arith.constant dense<0.000000e+00> : vector<288x128xf32>
    %86 = tpu.matmul %83, %85, %cst_117 {dimension_numbers = #tpu.dot_dimension_numbers<[1], [0], [0], [1], [0, 0, 1, 1], [], []>} : vector<288x128xf32>, vector<128x128xf32>, vector<288x128xf32> -> vector<288x128xf32>
    %c0_118 = arith.constant 0 : index
    %c0_119 = arith.constant 0 : index
    %87 = vector.load %arg8[%c0_118, %c0_119] : memref<288x128xf32, #tpu.memory_space<vmem>>, vector<288x128xf32>
    %88 = arith.addf %87, %86 : vector<288x128xf32>
    %c0_120 = arith.constant 0 : index
    %c0_121 = arith.constant 0 : index
    %89 = vector.load %arg8[%c0_120, %c0_121] : memref<288x128xf32, #tpu.memory_space<vmem>>, vector<288x128xf32>
    tpu.vector_store %arg8[%c0_120, %c0_121], %88 {strides = array<i32>} : memref<288x128xf32, #tpu.memory_space<vmem>>, vector<288x128xf32>,
    %c20 = arith.constant 20 : index
    %c0_122 = arith.constant 0 : index
    %90 = vector.load %arg6[%c20, %c0_122] : memref<328x128xf32, #tpu.memory_space<vmem>>, vector<288x128xf32>
    %c5_123 = arith.constant 5 : index
    %c0_124 = arith.constant 0 : index
    %c0_125 = arith.constant 0 : index
    %91 = vector.load %arg2[%c5_123, %c0_124, %c0_125] : memref<27x128x128xf32, #tpu.memory_space<vmem>>, vector<1x128x128xf32>
    %92 = vector.shape_cast %91 : vector<1x128x128xf32> to vector<128x128xf32>
    %cst_126 = arith.constant dense<0.000000e+00> : vector<288x128xf32>
    %93 = tpu.matmul %90, %92, %cst_126 {dimension_numbers = #tpu.dot_dimension_numbers<[1], [0], [0], [1], [0, 0, 1, 1], [], []>} : vector<288x128xf32>, vector<128x128xf32>, vector<288x128xf32> -> vector<288x128xf32>
    %c0_127 = arith.constant 0 : index
    %c0_128 = arith.constant 0 : index
    %94 = vector.load %arg8[%c0_127, %c0_128] : memref<288x128xf32, #tpu.memory_space<vmem>>, vector<288x128xf32>
    %95 = arith.addf %94, %93 : vector<288x128xf32>
    %c0_129 = arith.constant 0 : index
    %c0_130 = arith.constant 0 : index
    %96 = vector.load %arg8[%c0_129, %c0_130] : memref<288x128xf32, #tpu.memory_space<vmem>>, vector<288x128xf32>
    tpu.vector_store %arg8[%c0_129, %c0_130], %95 {strides = array<i32>} : memref<288x128xf32, #tpu.memory_space<vmem>>, vector<288x128xf32>,
    %c36 = arith.constant 36 : index
    %c0_131 = arith.constant 0 : index
    %97 = vector.load %arg6[%c36, %c0_131] : memref<328x128xf32, #tpu.memory_space<vmem>>, vector<288x128xf32>
    %c6_132 = arith.constant 6 : index
    %c0_133 = arith.constant 0 : index
    %c0_134 = arith.constant 0 : index
    %98 = vector.load %arg2[%c6_132, %c0_133, %c0_134] : memref<27x128x128xf32, #tpu.memory_space<vmem>>, vector<1x128x128xf32>
    %99 = vector.shape_cast %98 : vector<1x128x128xf32> to vector<128x128xf32>
    %cst_135 = arith.constant dense<0.000000e+00> : vector<288x128xf32>
    %100 = tpu.matmul %97, %99, %cst_135 {dimension_numbers = #tpu.dot_dimension_numbers<[1], [0], [0], [1], [0, 0, 1, 1], [], []>} : vector<288x128xf32>, vector<128x128xf32>, vector<288x128xf32> -> vector<288x128xf32>
    %c0_136 = arith.constant 0 : index
    %c0_137 = arith.constant 0 : index
    %101 = vector.load %arg8[%c0_136, %c0_137] : memref<288x128xf32, #tpu.memory_space<vmem>>, vector<288x128xf32>
    %102 = arith.addf %101, %100 : vector<288x128xf32>
    %c0_138 = arith.constant 0 : index
    %c0_139 = arith.constant 0 : index
    %103 = vector.load %arg8[%c0_138, %c0_139] : memref<288x128xf32, #tpu.memory_space<vmem>>, vector<288x128xf32>
    tpu.vector_store %arg8[%c0_138, %c0_139], %102 {strides = array<i32>} : memref<288x128xf32, #tpu.memory_space<vmem>>, vector<288x128xf32>,
    %c37_140 = arith.constant 37 : index
    %c0_141 = arith.constant 0 : index
    %104 = vector.load %arg6[%c37_140, %c0_141] : memref<328x128xf32, #tpu.memory_space<vmem>>, vector<288x128xf32>
    %c7_142 = arith.constant 7 : index
    %c0_143 = arith.constant 0 : index
    %c0_144 = arith.constant 0 : index
    %105 = vector.load %arg2[%c7_142, %c0_143, %c0_144] : memref<27x128x128xf32, #tpu.memory_space<vmem>>, vector<1x128x128xf32>
    %106 = vector.shape_cast %105 : vector<1x128x128xf32> to vector<128x128xf32>
    %cst_145 = arith.constant dense<0.000000e+00> : vector<288x128xf32>
    %107 = tpu.matmul %104, %106, %cst_145 {dimension_numbers = #tpu.dot_dimension_numbers<[1], [0], [0], [1], [0, 0, 1, 1], [], []>} : vector<288x128xf32>, vector<128x128xf32>, vector<288x128xf32> -> vector<288x128xf32>
    %c0_146 = arith.constant 0 : index
    %c0_147 = arith.constant 0 : index
    %108 = vector.load %arg8[%c0_146, %c0_147] : memref<288x128xf32, #tpu.memory_space<vmem>>, vector<288x128xf32>
    %109 = arith.addf %108, %107 : vector<288x128xf32>
    %c0_148 = arith.constant 0 : index
    %c0_149 = arith.constant 0 : index
    %110 = vector.load %arg8[%c0_148, %c0_149] : memref<288x128xf32, #tpu.memory_space<vmem>>, vector<288x128xf32>
    tpu.vector_store %arg8[%c0_148, %c0_149], %109 {strides = array<i32>} : memref<288x128xf32, #tpu.memory_space<vmem>>, vector<288x128xf32>,
    %c38 = arith.constant 38 : index
    %c0_150 = arith.constant 0 : index
    %111 = vector.load %arg6[%c38, %c0_150] : memref<328x128xf32, #tpu.memory_space<vmem>>, vector<288x128xf32>
    %c8_151 = arith.constant 8 : index
    %c0_152 = arith.constant 0 : index
    %c0_153 = arith.constant 0 : index
    %112 = vector.load %arg2[%c8_151, %c0_152, %c0_153] : memref<27x128x128xf32, #tpu.memory_space<vmem>>, vector<1x128x128xf32>
    %113 = vector.shape_cast %112 : vector<1x128x128xf32> to vector<128x128xf32>
    %cst_154 = arith.constant dense<0.000000e+00> : vector<288x128xf32>
    %114 = tpu.matmul %111, %113, %cst_154 {dimension_numbers = #tpu.dot_dimension_numbers<[1], [0], [0], [1], [0, 0, 1, 1], [], []>} : vector<288x128xf32>, vector<128x128xf32>, vector<288x128xf32> -> vector<288x128xf32>
    %c0_155 = arith.constant 0 : index
    %c0_156 = arith.constant 0 : index
    %115 = vector.load %arg8[%c0_155, %c0_156] : memref<288x128xf32, #tpu.memory_space<vmem>>, vector<288x128xf32>
    %116 = arith.addf %115, %114 : vector<288x128xf32>
    %c0_157 = arith.constant 0 : index
    %c0_158 = arith.constant 0 : index
    %117 = vector.load %arg8[%c0_157, %c0_158] : memref<288x128xf32, #tpu.memory_space<vmem>>, vector<288x128xf32>
    tpu.vector_store %arg8[%c0_157, %c0_158], %116 {strides = array<i32>} : memref<288x128xf32, #tpu.memory_space<vmem>>, vector<288x128xf32>,
    %c0_159 = arith.constant 0 : index
    %c0_160 = arith.constant 0 : index
    %118 = vector.load %arg3[%c0_159, %c0_160] : memref<6x128xf32, #tpu.memory_space<vmem>>, vector<1x128xf32>
    %c1_161 = arith.constant 1 : index
    %c0_162 = arith.constant 0 : index
    %119 = vector.load %arg3[%c1_161, %c0_162] : memref<6x128xf32, #tpu.memory_space<vmem>>, vector<1x128xf32>
    %c0_163 = arith.constant 0 : index
    %c0_164 = arith.constant 0 : index
    %120 = vector.load %arg8[%c0_163, %c0_164] : memref<288x128xf32, #tpu.memory_space<vmem>>, vector<288x128xf32>
    %121 = vector.broadcast %118 : vector<1x128xf32> to vector<288x128xf32>
    %122 = arith.mulf %120, %121 : vector<288x128xf32>
    %123 = vector.broadcast %119 : vector<1x128xf32> to vector<288x128xf32>
    %124 = arith.addf %122, %123 : vector<288x128xf32>
    %cst_165 = arith.constant 0.000000e+00 : f32
    %125 = vector.broadcast %cst_165 : f32 to vector<288x128xf32>
    %126 = arith.maximumf %124, %125 : vector<288x128xf32>
    %127 = arith.mulf %126, %56 : vector<288x128xf32>
    %c19_166 = arith.constant 19 : index
    %c0_167 = arith.constant 0 : index
    %128 = vector.load %arg7[%c19_166, %c0_167] : memref<328x128xf32, #tpu.memory_space<vmem>>, vector<288x128xf32>
    tpu.vector_store %arg7[%c19_166, %c0_167], %127 {strides = array<i32>} : memref<328x128xf32, #tpu.memory_space<vmem>>, vector<288x128xf32>,
    %c0_168 = arith.constant 0 : index
    %c0_169 = arith.constant 0 : index
    %129 = vector.load %arg7[%c0_168, %c0_169] : memref<328x128xf32, #tpu.memory_space<vmem>>, vector<288x128xf32>
    %c9_170 = arith.constant 9 : index
    %c0_171 = arith.constant 0 : index
    %c0_172 = arith.constant 0 : index
    %130 = vector.load %arg2[%c9_170, %c0_171, %c0_172] : memref<27x128x128xf32, #tpu.memory_space<vmem>>, vector<1x128x128xf32>
    %131 = vector.shape_cast %130 : vector<1x128x128xf32> to vector<128x128xf32>
    %cst_173 = arith.constant dense<0.000000e+00> : vector<288x128xf32>
    %132 = tpu.matmul %129, %131, %cst_173 {dimension_numbers = #tpu.dot_dimension_numbers<[1], [0], [0], [1], [0, 0, 1, 1], [], []>} : vector<288x128xf32>, vector<128x128xf32>, vector<288x128xf32> -> vector<288x128xf32>
    %c0_174 = arith.constant 0 : index
    %c0_175 = arith.constant 0 : index
    %133 = vector.load %arg8[%c0_174, %c0_175] : memref<288x128xf32, #tpu.memory_space<vmem>>, vector<288x128xf32>
    tpu.vector_store %arg8[%c0_174, %c0_175], %132 {strides = array<i32>} : memref<288x128xf32, #tpu.memory_space<vmem>>, vector<288x128xf32>,
    %c1_176 = arith.constant 1 : index
    %c0_177 = arith.constant 0 : index
    %134 = vector.load %arg7[%c1_176, %c0_177] : memref<328x128xf32, #tpu.memory_space<vmem>>, vector<288x128xf32>
    %c10_178 = arith.constant 10 : index
    %c0_179 = arith.constant 0 : index
    %c0_180 = arith.constant 0 : index
    %135 = vector.load %arg2[%c10_178, %c0_179, %c0_180] : memref<27x128x128xf32, #tpu.memory_space<vmem>>, vector<1x128x128xf32>
    %136 = vector.shape_cast %135 : vector<1x128x128xf32> to vector<128x128xf32>
    %cst_181 = arith.constant dense<0.000000e+00> : vector<288x128xf32>
    %137 = tpu.matmul %134, %136, %cst_181 {dimension_numbers = #tpu.dot_dimension_numbers<[1], [0], [0], [1], [0, 0, 1, 1], [], []>} : vector<288x128xf32>, vector<128x128xf32>, vector<288x128xf32> -> vector<288x128xf32>
    %c0_182 = arith.constant 0 : index
    %c0_183 = arith.constant 0 : index
    %138 = vector.load %arg8[%c0_182, %c0_183] : memref<288x128xf32, #tpu.memory_space<vmem>>, vector<288x128xf32>
    %139 = arith.addf %138, %137 : vector<288x128xf32>
    %c0_184 = arith.constant 0 : index
    %c0_185 = arith.constant 0 : index
    %140 = vector.load %arg8[%c0_184, %c0_185] : memref<288x128xf32, #tpu.memory_space<vmem>>, vector<288x128xf32>
    tpu.vector_store %arg8[%c0_184, %c0_185], %139 {strides = array<i32>} : memref<288x128xf32, #tpu.memory_space<vmem>>, vector<288x128xf32>,
    %c2_186 = arith.constant 2 : index
    %c0_187 = arith.constant 0 : index
    %141 = vector.load %arg7[%c2_186, %c0_187] : memref<328x128xf32, #tpu.memory_space<vmem>>, vector<288x128xf32>
    %c11_188 = arith.constant 11 : index
    %c0_189 = arith.constant 0 : index
    %c0_190 = arith.constant 0 : index
    %142 = vector.load %arg2[%c11_188, %c0_189, %c0_190] : memref<27x128x128xf32, #tpu.memory_space<vmem>>, vector<1x128x128xf32>
    %143 = vector.shape_cast %142 : vector<1x128x128xf32> to vector<128x128xf32>
    %cst_191 = arith.constant dense<0.000000e+00> : vector<288x128xf32>
    %144 = tpu.matmul %141, %143, %cst_191 {dimension_numbers = #tpu.dot_dimension_numbers<[1], [0], [0], [1], [0, 0, 1, 1], [], []>} : vector<288x128xf32>, vector<128x128xf32>, vector<288x128xf32> -> vector<288x128xf32>
    %c0_192 = arith.constant 0 : index
    %c0_193 = arith.constant 0 : index
    %145 = vector.load %arg8[%c0_192, %c0_193] : memref<288x128xf32, #tpu.memory_space<vmem>>, vector<288x128xf32>
    %146 = arith.addf %145, %144 : vector<288x128xf32>
    %c0_194 = arith.constant 0 : index
    %c0_195 = arith.constant 0 : index
    %147 = vector.load %arg8[%c0_194, %c0_195] : memref<288x128xf32, #tpu.memory_space<vmem>>, vector<288x128xf32>
    tpu.vector_store %arg8[%c0_194, %c0_195], %146 {strides = array<i32>} : memref<288x128xf32, #tpu.memory_space<vmem>>, vector<288x128xf32>,
    %c18_196 = arith.constant 18 : index
    %c0_197 = arith.constant 0 : index
    %148 = vector.load %arg7[%c18_196, %c0_197] : memref<328x128xf32, #tpu.memory_space<vmem>>, vector<288x128xf32>
    %c12_198 = arith.constant 12 : index
    %c0_199 = arith.constant 0 : index
    %c0_200 = arith.constant 0 : index
    %149 = vector.load %arg2[%c12_198, %c0_199, %c0_200] : memref<27x128x128xf32, #tpu.memory_space<vmem>>, vector<1x128x128xf32>
    %150 = vector.shape_cast %149 : vector<1x128x128xf32> to vector<128x128xf32>
    %cst_201 = arith.constant dense<0.000000e+00> : vector<288x128xf32>
    %151 = tpu.matmul %148, %150, %cst_201 {dimension_numbers = #tpu.dot_dimension_numbers<[1], [0], [0], [1], [0, 0, 1, 1], [], []>} : vector<288x128xf32>, vector<128x128xf32>, vector<288x128xf32> -> vector<288x128xf32>
    %c0_202 = arith.constant 0 : index
    %c0_203 = arith.constant 0 : index
    %152 = vector.load %arg8[%c0_202, %c0_203] : memref<288x128xf32, #tpu.memory_space<vmem>>, vector<288x128xf32>
    %153 = arith.addf %152, %151 : vector<288x128xf32>
    %c0_204 = arith.constant 0 : index
    %c0_205 = arith.constant 0 : index
    %154 = vector.load %arg8[%c0_204, %c0_205] : memref<288x128xf32, #tpu.memory_space<vmem>>, vector<288x128xf32>
    tpu.vector_store %arg8[%c0_204, %c0_205], %153 {strides = array<i32>} : memref<288x128xf32, #tpu.memory_space<vmem>>, vector<288x128xf32>,
    %c19_206 = arith.constant 19 : index
    %c0_207 = arith.constant 0 : index
    %155 = vector.load %arg7[%c19_206, %c0_207] : memref<328x128xf32, #tpu.memory_space<vmem>>, vector<288x128xf32>
    %c13_208 = arith.constant 13 : index
    %c0_209 = arith.constant 0 : index
    %c0_210 = arith.constant 0 : index
    %156 = vector.load %arg2[%c13_208, %c0_209, %c0_210] : memref<27x128x128xf32, #tpu.memory_space<vmem>>, vector<1x128x128xf32>
    %157 = vector.shape_cast %156 : vector<1x128x128xf32> to vector<128x128xf32>
    %cst_211 = arith.constant dense<0.000000e+00> : vector<288x128xf32>
    %158 = tpu.matmul %155, %157, %cst_211 {dimension_numbers = #tpu.dot_dimension_numbers<[1], [0], [0], [1], [0, 0, 1, 1], [], []>} : vector<288x128xf32>, vector<128x128xf32>, vector<288x128xf32> -> vector<288x128xf32>
    %c0_212 = arith.constant 0 : index
    %c0_213 = arith.constant 0 : index
    %159 = vector.load %arg8[%c0_212, %c0_213] : memref<288x128xf32, #tpu.memory_space<vmem>>, vector<288x128xf32>
    %160 = arith.addf %159, %158 : vector<288x128xf32>
    %c0_214 = arith.constant 0 : index
    %c0_215 = arith.constant 0 : index
    %161 = vector.load %arg8[%c0_214, %c0_215] : memref<288x128xf32, #tpu.memory_space<vmem>>, vector<288x128xf32>
    tpu.vector_store %arg8[%c0_214, %c0_215], %160 {strides = array<i32>} : memref<288x128xf32, #tpu.memory_space<vmem>>, vector<288x128xf32>,
    %c20_216 = arith.constant 20 : index
    %c0_217 = arith.constant 0 : index
    %162 = vector.load %arg7[%c20_216, %c0_217] : memref<328x128xf32, #tpu.memory_space<vmem>>, vector<288x128xf32>
    %c14_218 = arith.constant 14 : index
    %c0_219 = arith.constant 0 : index
    %c0_220 = arith.constant 0 : index
    %163 = vector.load %arg2[%c14_218, %c0_219, %c0_220] : memref<27x128x128xf32, #tpu.memory_space<vmem>>, vector<1x128x128xf32>
    %164 = vector.shape_cast %163 : vector<1x128x128xf32> to vector<128x128xf32>
    %cst_221 = arith.constant dense<0.000000e+00> : vector<288x128xf32>
    %165 = tpu.matmul %162, %164, %cst_221 {dimension_numbers = #tpu.dot_dimension_numbers<[1], [0], [0], [1], [0, 0, 1, 1], [], []>} : vector<288x128xf32>, vector<128x128xf32>, vector<288x128xf32> -> vector<288x128xf32>
    %c0_222 = arith.constant 0 : index
    %c0_223 = arith.constant 0 : index
    %166 = vector.load %arg8[%c0_222, %c0_223] : memref<288x128xf32, #tpu.memory_space<vmem>>, vector<288x128xf32>
    %167 = arith.addf %166, %165 : vector<288x128xf32>
    %c0_224 = arith.constant 0 : index
    %c0_225 = arith.constant 0 : index
    %168 = vector.load %arg8[%c0_224, %c0_225] : memref<288x128xf32, #tpu.memory_space<vmem>>, vector<288x128xf32>
    tpu.vector_store %arg8[%c0_224, %c0_225], %167 {strides = array<i32>} : memref<288x128xf32, #tpu.memory_space<vmem>>, vector<288x128xf32>,
    %c36_226 = arith.constant 36 : index
    %c0_227 = arith.constant 0 : index
    %169 = vector.load %arg7[%c36_226, %c0_227] : memref<328x128xf32, #tpu.memory_space<vmem>>, vector<288x128xf32>
    %c15_228 = arith.constant 15 : index
    %c0_229 = arith.constant 0 : index
    %c0_230 = arith.constant 0 : index
    %170 = vector.load %arg2[%c15_228, %c0_229, %c0_230] : memref<27x128x128xf32, #tpu.memory_space<vmem>>, vector<1x128x128xf32>
    %171 = vector.shape_cast %170 : vector<1x128x128xf32> to vector<128x128xf32>
    %cst_231 = arith.constant dense<0.000000e+00> : vector<288x128xf32>
    %172 = tpu.matmul %169, %171, %cst_231 {dimension_numbers = #tpu.dot_dimension_numbers<[1], [0], [0], [1], [0, 0, 1, 1], [], []>} : vector<288x128xf32>, vector<128x128xf32>, vector<288x128xf32> -> vector<288x128xf32>
    %c0_232 = arith.constant 0 : index
    %c0_233 = arith.constant 0 : index
    %173 = vector.load %arg8[%c0_232, %c0_233] : memref<288x128xf32, #tpu.memory_space<vmem>>, vector<288x128xf32>
    %174 = arith.addf %173, %172 : vector<288x128xf32>
    %c0_234 = arith.constant 0 : index
    %c0_235 = arith.constant 0 : index
    %175 = vector.load %arg8[%c0_234, %c0_235] : memref<288x128xf32, #tpu.memory_space<vmem>>, vector<288x128xf32>
    tpu.vector_store %arg8[%c0_234, %c0_235], %174 {strides = array<i32>} : memref<288x128xf32, #tpu.memory_space<vmem>>, vector<288x128xf32>,
    %c37_236 = arith.constant 37 : index
    %c0_237 = arith.constant 0 : index
    %176 = vector.load %arg7[%c37_236, %c0_237] : memref<328x128xf32, #tpu.memory_space<vmem>>, vector<288x128xf32>
    %c16 = arith.constant 16 : index
    %c0_238 = arith.constant 0 : index
    %c0_239 = arith.constant 0 : index
    %177 = vector.load %arg2[%c16, %c0_238, %c0_239] : memref<27x128x128xf32, #tpu.memory_space<vmem>>, vector<1x128x128xf32>
    %178 = vector.shape_cast %177 : vector<1x128x128xf32> to vector<128x128xf32>
    %cst_240 = arith.constant dense<0.000000e+00> : vector<288x128xf32>
    %179 = tpu.matmul %176, %178, %cst_240 {dimension_numbers = #tpu.dot_dimension_numbers<[1], [0], [0], [1], [0, 0, 1, 1], [], []>} : vector<288x128xf32>, vector<128x128xf32>, vector<288x128xf32> -> vector<288x128xf32>
    %c0_241 = arith.constant 0 : index
    %c0_242 = arith.constant 0 : index
    %180 = vector.load %arg8[%c0_241, %c0_242] : memref<288x128xf32, #tpu.memory_space<vmem>>, vector<288x128xf32>
    %181 = arith.addf %180, %179 : vector<288x128xf32>
    %c0_243 = arith.constant 0 : index
    %c0_244 = arith.constant 0 : index
    %182 = vector.load %arg8[%c0_243, %c0_244] : memref<288x128xf32, #tpu.memory_space<vmem>>, vector<288x128xf32>
    tpu.vector_store %arg8[%c0_243, %c0_244], %181 {strides = array<i32>} : memref<288x128xf32, #tpu.memory_space<vmem>>, vector<288x128xf32>,
    %c38_245 = arith.constant 38 : index
    %c0_246 = arith.constant 0 : index
    %183 = vector.load %arg7[%c38_245, %c0_246] : memref<328x128xf32, #tpu.memory_space<vmem>>, vector<288x128xf32>
    %c17 = arith.constant 17 : index
    %c0_247 = arith.constant 0 : index
    %c0_248 = arith.constant 0 : index
    %184 = vector.load %arg2[%c17, %c0_247, %c0_248] : memref<27x128x128xf32, #tpu.memory_space<vmem>>, vector<1x128x128xf32>
    %185 = vector.shape_cast %184 : vector<1x128x128xf32> to vector<128x128xf32>
    %cst_249 = arith.constant dense<0.000000e+00> : vector<288x128xf32>
    %186 = tpu.matmul %183, %185, %cst_249 {dimension_numbers = #tpu.dot_dimension_numbers<[1], [0], [0], [1], [0, 0, 1, 1], [], []>} : vector<288x128xf32>, vector<128x128xf32>, vector<288x128xf32> -> vector<288x128xf32>
    %c0_250 = arith.constant 0 : index
    %c0_251 = arith.constant 0 : index
    %187 = vector.load %arg8[%c0_250, %c0_251] : memref<288x128xf32, #tpu.memory_space<vmem>>, vector<288x128xf32>
    %188 = arith.addf %187, %186 : vector<288x128xf32>
    %c0_252 = arith.constant 0 : index
    %c0_253 = arith.constant 0 : index
    %189 = vector.load %arg8[%c0_252, %c0_253] : memref<288x128xf32, #tpu.memory_space<vmem>>, vector<288x128xf32>
    tpu.vector_store %arg8[%c0_252, %c0_253], %188 {strides = array<i32>} : memref<288x128xf32, #tpu.memory_space<vmem>>, vector<288x128xf32>,
    %c2_254 = arith.constant 2 : index
    %c0_255 = arith.constant 0 : index
    %190 = vector.load %arg3[%c2_254, %c0_255] : memref<6x128xf32, #tpu.memory_space<vmem>>, vector<1x128xf32>
    %c3_256 = arith.constant 3 : index
    %c0_257 = arith.constant 0 : index
    %191 = vector.load %arg3[%c3_256, %c0_257] : memref<6x128xf32, #tpu.memory_space<vmem>>, vector<1x128xf32>
    %c0_258 = arith.constant 0 : index
    %c0_259 = arith.constant 0 : index
    %192 = vector.load %arg8[%c0_258, %c0_259] : memref<288x128xf32, #tpu.memory_space<vmem>>, vector<288x128xf32>
    %193 = vector.broadcast %190 : vector<1x128xf32> to vector<288x128xf32>
    %194 = arith.mulf %192, %193 : vector<288x128xf32>
    %195 = vector.broadcast %191 : vector<1x128xf32> to vector<288x128xf32>
    %196 = arith.addf %194, %195 : vector<288x128xf32>
    %cst_260 = arith.constant 0.000000e+00 : f32
    %197 = vector.broadcast %cst_260 : f32 to vector<288x128xf32>
    %198 = arith.maximumf %196, %197 : vector<288x128xf32>
    %199 = arith.mulf %198, %56 : vector<288x128xf32>
    %c19_261 = arith.constant 19 : index
    %c0_262 = arith.constant 0 : index
    %200 = vector.load %arg6[%c19_261, %c0_262] : memref<328x128xf32, #tpu.memory_space<vmem>>, vector<288x128xf32>
    tpu.vector_store %arg6[%c19_261, %c0_262], %199 {strides = array<i32>} : memref<328x128xf32, #tpu.memory_space<vmem>>, vector<288x128xf32>,
    %c0_263 = arith.constant 0 : index
    %c0_264 = arith.constant 0 : index
    %201 = vector.load %arg6[%c0_263, %c0_264] : memref<328x128xf32, #tpu.memory_space<vmem>>, vector<288x128xf32>
    %c18_265 = arith.constant 18 : index
    %c0_266 = arith.constant 0 : index
    %c0_267 = arith.constant 0 : index
    %202 = vector.load %arg2[%c18_265, %c0_266, %c0_267] : memref<27x128x128xf32, #tpu.memory_space<vmem>>, vector<1x128x128xf32>
    %203 = vector.shape_cast %202 : vector<1x128x128xf32> to vector<128x128xf32>
    %cst_268 = arith.constant dense<0.000000e+00> : vector<288x128xf32>
    %204 = tpu.matmul %201, %203, %cst_268 {dimension_numbers = #tpu.dot_dimension_numbers<[1], [0], [0], [1], [0, 0, 1, 1], [], []>} : vector<288x128xf32>, vector<128x128xf32>, vector<288x128xf32> -> vector<288x128xf32>
    %c0_269 = arith.constant 0 : index
    %c0_270 = arith.constant 0 : index
    %205 = vector.load %arg8[%c0_269, %c0_270] : memref<288x128xf32, #tpu.memory_space<vmem>>, vector<288x128xf32>
    tpu.vector_store %arg8[%c0_269, %c0_270], %204 {strides = array<i32>} : memref<288x128xf32, #tpu.memory_space<vmem>>, vector<288x128xf32>,
    %c1_271 = arith.constant 1 : index
    %c0_272 = arith.constant 0 : index
    %206 = vector.load %arg6[%c1_271, %c0_272] : memref<328x128xf32, #tpu.memory_space<vmem>>, vector<288x128xf32>
    %c19_273 = arith.constant 19 : index
    %c0_274 = arith.constant 0 : index
    %c0_275 = arith.constant 0 : index
    %207 = vector.load %arg2[%c19_273, %c0_274, %c0_275] : memref<27x128x128xf32, #tpu.memory_space<vmem>>, vector<1x128x128xf32>
    %208 = vector.shape_cast %207 : vector<1x128x128xf32> to vector<128x128xf32>
    %cst_276 = arith.constant dense<0.000000e+00> : vector<288x128xf32>
    %209 = tpu.matmul %206, %208, %cst_276 {dimension_numbers = #tpu.dot_dimension_numbers<[1], [0], [0], [1], [0, 0, 1, 1], [], []>} : vector<288x128xf32>, vector<128x128xf32>, vector<288x128xf32> -> vector<288x128xf32>
    %c0_277 = arith.constant 0 : index
    %c0_278 = arith.constant 0 : index
    %210 = vector.load %arg8[%c0_277, %c0_278] : memref<288x128xf32, #tpu.memory_space<vmem>>, vector<288x128xf32>
    %211 = arith.addf %210, %209 : vector<288x128xf32>
    %c0_279 = arith.constant 0 : index
    %c0_280 = arith.constant 0 : index
    %212 = vector.load %arg8[%c0_279, %c0_280] : memref<288x128xf32, #tpu.memory_space<vmem>>, vector<288x128xf32>
    tpu.vector_store %arg8[%c0_279, %c0_280], %211 {strides = array<i32>} : memref<288x128xf32, #tpu.memory_space<vmem>>, vector<288x128xf32>,
    %c2_281 = arith.constant 2 : index
    %c0_282 = arith.constant 0 : index
    %213 = vector.load %arg6[%c2_281, %c0_282] : memref<328x128xf32, #tpu.memory_space<vmem>>, vector<288x128xf32>
    %c20_283 = arith.constant 20 : index
    %c0_284 = arith.constant 0 : index
    %c0_285 = arith.constant 0 : index
    %214 = vector.load %arg2[%c20_283, %c0_284, %c0_285] : memref<27x128x128xf32, #tpu.memory_space<vmem>>, vector<1x128x128xf32>
    %215 = vector.shape_cast %214 : vector<1x128x128xf32> to vector<128x128xf32>
    %cst_286 = arith.constant dense<0.000000e+00> : vector<288x128xf32>
    %216 = tpu.matmul %213, %215, %cst_286 {dimension_numbers = #tpu.dot_dimension_numbers<[1], [0], [0], [1], [0, 0, 1, 1], [], []>} : vector<288x128xf32>, vector<128x128xf32>, vector<288x128xf32> -> vector<288x128xf32>
    %c0_287 = arith.constant 0 : index
    %c0_288 = arith.constant 0 : index
    %217 = vector.load %arg8[%c0_287, %c0_288] : memref<288x128xf32, #tpu.memory_space<vmem>>, vector<288x128xf32>
    %218 = arith.addf %217, %216 : vector<288x128xf32>
    %c0_289 = arith.constant 0 : index
    %c0_290 = arith.constant 0 : index
    %219 = vector.load %arg8[%c0_289, %c0_290] : memref<288x128xf32, #tpu.memory_space<vmem>>, vector<288x128xf32>
    tpu.vector_store %arg8[%c0_289, %c0_290], %218 {strides = array<i32>} : memref<288x128xf32, #tpu.memory_space<vmem>>, vector<288x128xf32>,
    %c18_291 = arith.constant 18 : index
    %c0_292 = arith.constant 0 : index
    %220 = vector.load %arg6[%c18_291, %c0_292] : memref<328x128xf32, #tpu.memory_space<vmem>>, vector<288x128xf32>
    %c21 = arith.constant 21 : index
    %c0_293 = arith.constant 0 : index
    %c0_294 = arith.constant 0 : index
    %221 = vector.load %arg2[%c21, %c0_293, %c0_294] : memref<27x128x128xf32, #tpu.memory_space<vmem>>, vector<1x128x128xf32>
    %222 = vector.shape_cast %221 : vector<1x128x128xf32> to vector<128x128xf32>
    %cst_295 = arith.constant dense<0.000000e+00> : vector<288x128xf32>
    %223 = tpu.matmul %220, %222, %cst_295 {dimension_numbers = #tpu.dot_dimension_numbers<[1], [0], [0], [1], [0, 0, 1, 1], [], []>} : vector<288x128xf32>, vector<128x128xf32>, vector<288x128xf32> -> vector<288x128xf32>
    %c0_296 = arith.constant 0 : index
    %c0_297 = arith.constant 0 : index
    %224 = vector.load %arg8[%c0_296, %c0_297] : memref<288x128xf32, #tpu.memory_space<vmem>>, vector<288x128xf32>
    %225 = arith.addf %224, %223 : vector<288x128xf32>
    %c0_298 = arith.constant 0 : index
    %c0_299 = arith.constant 0 : index
    %226 = vector.load %arg8[%c0_298, %c0_299] : memref<288x128xf32, #tpu.memory_space<vmem>>, vector<288x128xf32>
    tpu.vector_store %arg8[%c0_298, %c0_299], %225 {strides = array<i32>} : memref<288x128xf32, #tpu.memory_space<vmem>>, vector<288x128xf32>,
    %c19_300 = arith.constant 19 : index
    %c0_301 = arith.constant 0 : index
    %227 = vector.load %arg6[%c19_300, %c0_301] : memref<328x128xf32, #tpu.memory_space<vmem>>, vector<288x128xf32>
    %c22 = arith.constant 22 : index
    %c0_302 = arith.constant 0 : index
    %c0_303 = arith.constant 0 : index
    %228 = vector.load %arg2[%c22, %c0_302, %c0_303] : memref<27x128x128xf32, #tpu.memory_space<vmem>>, vector<1x128x128xf32>
    %229 = vector.shape_cast %228 : vector<1x128x128xf32> to vector<128x128xf32>
    %cst_304 = arith.constant dense<0.000000e+00> : vector<288x128xf32>
    %230 = tpu.matmul %227, %229, %cst_304 {dimension_numbers = #tpu.dot_dimension_numbers<[1], [0], [0], [1], [0, 0, 1, 1], [], []>} : vector<288x128xf32>, vector<128x128xf32>, vector<288x128xf32> -> vector<288x128xf32>
    %c0_305 = arith.constant 0 : index
    %c0_306 = arith.constant 0 : index
    %231 = vector.load %arg8[%c0_305, %c0_306] : memref<288x128xf32, #tpu.memory_space<vmem>>, vector<288x128xf32>
    %232 = arith.addf %231, %230 : vector<288x128xf32>
    %c0_307 = arith.constant 0 : index
    %c0_308 = arith.constant 0 : index
    %233 = vector.load %arg8[%c0_307, %c0_308] : memref<288x128xf32, #tpu.memory_space<vmem>>, vector<288x128xf32>
    tpu.vector_store %arg8[%c0_307, %c0_308], %232 {strides = array<i32>} : memref<288x128xf32, #tpu.memory_space<vmem>>, vector<288x128xf32>,
    %c20_309 = arith.constant 20 : index
    %c0_310 = arith.constant 0 : index
    %234 = vector.load %arg6[%c20_309, %c0_310] : memref<328x128xf32, #tpu.memory_space<vmem>>, vector<288x128xf32>
    %c23 = arith.constant 23 : index
    %c0_311 = arith.constant 0 : index
    %c0_312 = arith.constant 0 : index
    %235 = vector.load %arg2[%c23, %c0_311, %c0_312] : memref<27x128x128xf32, #tpu.memory_space<vmem>>, vector<1x128x128xf32>
    %236 = vector.shape_cast %235 : vector<1x128x128xf32> to vector<128x128xf32>
    %cst_313 = arith.constant dense<0.000000e+00> : vector<288x128xf32>
    %237 = tpu.matmul %234, %236, %cst_313 {dimension_numbers = #tpu.dot_dimension_numbers<[1], [0], [0], [1], [0, 0, 1, 1], [], []>} : vector<288x128xf32>, vector<128x128xf32>, vector<288x128xf32> -> vector<288x128xf32>
    %c0_314 = arith.constant 0 : index
    %c0_315 = arith.constant 0 : index
    %238 = vector.load %arg8[%c0_314, %c0_315] : memref<288x128xf32, #tpu.memory_space<vmem>>, vector<288x128xf32>
    %239 = arith.addf %238, %237 : vector<288x128xf32>
    %c0_316 = arith.constant 0 : index
    %c0_317 = arith.constant 0 : index
    %240 = vector.load %arg8[%c0_316, %c0_317] : memref<288x128xf32, #tpu.memory_space<vmem>>, vector<288x128xf32>
    tpu.vector_store %arg8[%c0_316, %c0_317], %239 {strides = array<i32>} : memref<288x128xf32, #tpu.memory_space<vmem>>, vector<288x128xf32>,
    %c36_318 = arith.constant 36 : index
    %c0_319 = arith.constant 0 : index
    %241 = vector.load %arg6[%c36_318, %c0_319] : memref<328x128xf32, #tpu.memory_space<vmem>>, vector<288x128xf32>
    %c24 = arith.constant 24 : index
    %c0_320 = arith.constant 0 : index
    %c0_321 = arith.constant 0 : index
    %242 = vector.load %arg2[%c24, %c0_320, %c0_321] : memref<27x128x128xf32, #tpu.memory_space<vmem>>, vector<1x128x128xf32>
    %243 = vector.shape_cast %242 : vector<1x128x128xf32> to vector<128x128xf32>
    %cst_322 = arith.constant dense<0.000000e+00> : vector<288x128xf32>
    %244 = tpu.matmul %241, %243, %cst_322 {dimension_numbers = #tpu.dot_dimension_numbers<[1], [0], [0], [1], [0, 0, 1, 1], [], []>} : vector<288x128xf32>, vector<128x128xf32>, vector<288x128xf32> -> vector<288x128xf32>
    %c0_323 = arith.constant 0 : index
    %c0_324 = arith.constant 0 : index
    %245 = vector.load %arg8[%c0_323, %c0_324] : memref<288x128xf32, #tpu.memory_space<vmem>>, vector<288x128xf32>
    %246 = arith.addf %245, %244 : vector<288x128xf32>
    %c0_325 = arith.constant 0 : index
    %c0_326 = arith.constant 0 : index
    %247 = vector.load %arg8[%c0_325, %c0_326] : memref<288x128xf32, #tpu.memory_space<vmem>>, vector<288x128xf32>
    tpu.vector_store %arg8[%c0_325, %c0_326], %246 {strides = array<i32>} : memref<288x128xf32, #tpu.memory_space<vmem>>, vector<288x128xf32>,
    %c37_327 = arith.constant 37 : index
    %c0_328 = arith.constant 0 : index
    %248 = vector.load %arg6[%c37_327, %c0_328] : memref<328x128xf32, #tpu.memory_space<vmem>>, vector<288x128xf32>
    %c25 = arith.constant 25 : index
    %c0_329 = arith.constant 0 : index
    %c0_330 = arith.constant 0 : index
    %249 = vector.load %arg2[%c25, %c0_329, %c0_330] : memref<27x128x128xf32, #tpu.memory_space<vmem>>, vector<1x128x128xf32>
    %250 = vector.shape_cast %249 : vector<1x128x128xf32> to vector<128x128xf32>
    %cst_331 = arith.constant dense<0.000000e+00> : vector<288x128xf32>
    %251 = tpu.matmul %248, %250, %cst_331 {dimension_numbers = #tpu.dot_dimension_numbers<[1], [0], [0], [1], [0, 0, 1, 1], [], []>} : vector<288x128xf32>, vector<128x128xf32>, vector<288x128xf32> -> vector<288x128xf32>
    %c0_332 = arith.constant 0 : index
    %c0_333 = arith.constant 0 : index
    %252 = vector.load %arg8[%c0_332, %c0_333] : memref<288x128xf32, #tpu.memory_space<vmem>>, vector<288x128xf32>
    %253 = arith.addf %252, %251 : vector<288x128xf32>
    %c0_334 = arith.constant 0 : index
    %c0_335 = arith.constant 0 : index
    %254 = vector.load %arg8[%c0_334, %c0_335] : memref<288x128xf32, #tpu.memory_space<vmem>>, vector<288x128xf32>
    tpu.vector_store %arg8[%c0_334, %c0_335], %253 {strides = array<i32>} : memref<288x128xf32, #tpu.memory_space<vmem>>, vector<288x128xf32>,
    %c38_336 = arith.constant 38 : index
    %c0_337 = arith.constant 0 : index
    %255 = vector.load %arg6[%c38_336, %c0_337] : memref<328x128xf32, #tpu.memory_space<vmem>>, vector<288x128xf32>
    %c26 = arith.constant 26 : index
    %c0_338 = arith.constant 0 : index
    %c0_339 = arith.constant 0 : index
    %256 = vector.load %arg2[%c26, %c0_338, %c0_339] : memref<27x128x128xf32, #tpu.memory_space<vmem>>, vector<1x128x128xf32>
    %257 = vector.shape_cast %256 : vector<1x128x128xf32> to vector<128x128xf32>
    %cst_340 = arith.constant dense<0.000000e+00> : vector<288x128xf32>
    %258 = tpu.matmul %255, %257, %cst_340 {dimension_numbers = #tpu.dot_dimension_numbers<[1], [0], [0], [1], [0, 0, 1, 1], [], []>} : vector<288x128xf32>, vector<128x128xf32>, vector<288x128xf32> -> vector<288x128xf32>
    %c0_341 = arith.constant 0 : index
    %c0_342 = arith.constant 0 : index
    %259 = vector.load %arg8[%c0_341, %c0_342] : memref<288x128xf32, #tpu.memory_space<vmem>>, vector<288x128xf32>
    %260 = arith.addf %259, %258 : vector<288x128xf32>
    %c0_343 = arith.constant 0 : index
    %c0_344 = arith.constant 0 : index
    %261 = vector.load %arg8[%c0_343, %c0_344] : memref<288x128xf32, #tpu.memory_space<vmem>>, vector<288x128xf32>
    tpu.vector_store %arg8[%c0_343, %c0_344], %260 {strides = array<i32>} : memref<288x128xf32, #tpu.memory_space<vmem>>, vector<288x128xf32>,
    %c4_345 = arith.constant 4 : index
    %c0_346 = arith.constant 0 : index
    %262 = vector.load %arg3[%c4_345, %c0_346] : memref<6x128xf32, #tpu.memory_space<vmem>>, vector<1x128xf32>
    %c5_347 = arith.constant 5 : index
    %c0_348 = arith.constant 0 : index
    %263 = vector.load %arg3[%c5_347, %c0_348] : memref<6x128xf32, #tpu.memory_space<vmem>>, vector<1x128xf32>
    %c0_349 = arith.constant 0 : index
    %c0_350 = arith.constant 0 : index
    %264 = vector.load %arg8[%c0_349, %c0_350] : memref<288x128xf32, #tpu.memory_space<vmem>>, vector<288x128xf32>
    %265 = vector.broadcast %262 : vector<1x128xf32> to vector<288x128xf32>
    %266 = arith.mulf %264, %265 : vector<288x128xf32>
    %267 = vector.broadcast %263 : vector<1x128xf32> to vector<288x128xf32>
    %268 = arith.addf %266, %267 : vector<288x128xf32>
    %cst_351 = arith.constant 0.000000e+00 : f32
    %269 = vector.broadcast %cst_351 : f32 to vector<288x128xf32>
    %270 = arith.maximumf %268, %269 : vector<288x128xf32>
    %271 = arith.mulf %270, %56 : vector<288x128xf32>
    %c0_352 = arith.constant 0 : index
    %c19_353 = arith.constant 19 : index
    %c0_354 = arith.constant 0 : index
    %272 = vector.load %arg5[%c0_352, %c19_353, %c0_354] : memref<1x328x128xf32, #tpu.memory_space<vmem>>, vector<1x288x128xf32>
    %273 = vector.shape_cast %272 : vector<1x288x128xf32> to vector<288x128xf32>
    %274 = vector.shape_cast %271 : vector<288x128xf32> to vector<1x288x128xf32>
    tpu.vector_store %arg5[%c0_352, %c19_353, %c0_354], %274 {strides = array<i32>} : memref<1x328x128xf32, #tpu.memory_space<vmem>>, vector<1x288x128xf32>,
    return
  }
  func.func @transform_0(%arg0: i32) -> (i32, i32, i32, i32) {
    %c0_i32 = arith.constant 0 : i32
    %c0_i32_0 = arith.constant 0 : i32
    %c0_i32_1 = arith.constant 0 : i32
    %c0_i32_2 = arith.constant 0 : i32
    return %arg0, %c0_i32, %c0_i32_0, %c0_i32_1 : i32, i32, i32, i32
  }
  func.func @transform_1(%arg0: i32) -> (i32, i32, i32) {
    %c0_i32 = arith.constant 0 : i32
    %c0_i32_0 = arith.constant 0 : i32
    %c0_i32_1 = arith.constant 0 : i32
    %c0_i32_2 = arith.constant 0 : i32
    return %c0_i32, %c0_i32_0, %c0_i32_1 : i32, i32, i32
  }
  func.func @transform_2(%arg0: i32) -> (i32, i32) {
    %c0_i32 = arith.constant 0 : i32
    %c0_i32_0 = arith.constant 0 : i32
    %c0_i32_1 = arith.constant 0 : i32
    return %c0_i32, %c0_i32_0 : i32, i32
  }
  func.func @transform_3(%arg0: i32) -> (i32, i32) {
    %c0_i32 = arith.constant 0 : i32
    %c0_i32_0 = arith.constant 0 : i32
    %c0_i32_1 = arith.constant 0 : i32
    return %c0_i32, %c0_i32_0 : i32, i32
  }
  func.func @transform_4(%arg0: i32) -> (i32, i32, i32) {
    %c0_i32 = arith.constant 0 : i32
    %c0_i32_0 = arith.constant 0 : i32
    %c0_i32_1 = arith.constant 0 : i32
    return %arg0, %c0_i32, %c0_i32_0 : i32, i32, i32
  }
}

</mosaic_0001>

<bundles_post_ra>
// kernel: tpu_custom_call.1
= control target key start
LH: loop header
LB: loop body
LE: loop exit
PB: predicated region body
PF: predicated region fallthrough
CT: control target
= control target key end

     0   :  { %9 = vsyncpa [#allocation6], 0  ;;  %s19058_s0 = inlined_call_operand.hbm [shape: f32[2,16,16,128], index: 0, kind: input, shape index: {}]   ;;  %s19059_s1 = inlined_call_operand.hbm [shape: f32[27,128,128], index: 1, kind: input, shape index: {}]   ;;  %s19060_s2 = inlined_call_operand.hbm [shape: f32[6,128], index: 2, kind: input, shape index: {}]   ;;  %s19061_s3 = inlined_call_operand.hbm [shape: f32[288,128], index: 3, kind: input, shape index: {}]   ;;  %s19062_s4 = inlined_call_operand.hbm [shape: f32[2,328,128], index: 4, kind: output, shape index: {}]  }
   0x1   :  { %11 = vsyncpa [#allocation6 + $0x1], 0 }
   0x2   :  { %12 = vsyncpa [#allocation9], 0 }
   0x3   :  { %13 = vsyncpa [#allocation12], 0 }
   0x4   :  { %14 = vsyncpa [#allocation7], 0 }
   0x5   :  { %16 = vsyncpa [#allocation7 + $0x1], 0  ;;  %s16228_s15 = smov 0   ;;  %s16230_s16 = smov 0  }
   0x6   :  { %s16232_s17 = smov 0   ;;  %s16234_s18 = smov 0  }
   0x7 LB: > { %s16249_s19 = sadd.s32 4294967295, %s16191_s18   ;;  %s12035_s20 = sadd.s32 4294967294, %s16191_s18   ;;  %s16191_s18 = sphi %s16234_s18, %s19342_s18   ;;  %s16187_s17 = sphi %s16232_s17, %s19341_s17   ;;  %s16183_s16 = sphi %s16230_s16, %s19340_s16   ;;  %s16179_s15 = sphi %s16228_s15, %s19339_s15  }
   0x8   : > { %p42_p0 = scmp.ne.s32.totalorder %s16183_s16, %s16179_s15  ;;  %p19063_p1 = scmp.eq.s32.totalorder %s16249_s19, 0 }
   0x9   : > { %p135_p3 = scmp.eq.s32.totalorder %s12035_s20, 1  ;;  %p12036_p5 = scmp.ge.s32.totalorder %s16191_s18, 1 }
   0xa   : > { %p16258_p4 = por %p19063_p1, %p42_p0  ;;  %p142_p7 = scmp.lt.s32.totalorder %s16191_s18, 3 }
   0xb   : > { %p16263_p6 = por %p135_p3, %p42_p0  ;;  %s16193_s24 = smov [#allocation8]  }
   0xc   : > { %s19067_s21 = scalar_select %p16258_p4, 1, 0 }
   0xd   : > { %s19068_s22 = scalar_select %p16263_p6, 1, 0 }
   0xe   : > { %p16268_p8 = pnand %p12036_p5, %p142_p7  ;;  %s154_s25 = sshll.u32 %s16193_s24, 4  ;;  %s155_s25 = int_to_ptr.vmem [resolvable:$true] %s154_s25 }
   0xf   : > { %s16194_s27 = smov [#allocation10]   ;;  %s16195_s29 = smov [#allocation11]  }
  0x10   : > { %s19069_s23 = scalar_select %p16268_p8, 1, 0 }
  0x11   : > { %p15865_p9 = pneg %p16268_p8  ;;  %s168_s28 = sshll.u32 %s16194_s27, 4  ;;  %s169_s28 = int_to_ptr.vmem [resolvable:$true] %s168_s28 }
  0x12   : > { %s178_s30 = sshll.u32 %s16195_s29, 4  ;;  %s16024_s5 = scalar_lea.vmem %s155_s25, 55296  ;;  %s179_s30 = int_to_ptr.vmem [resolvable:$true] %s178_s30 }
  0x13   : > { %p16277_p11 = pnand %p15865_p9, %p19063_p1  ;;  %p16025_p13 = scmp.ne.s32.totalorder %s155_s25, %s16024_s5 }
  0x14   : > { %p16032_p5 = scmp.lt.s32.totalorder %s155_s25, %s155_s25  ;;  %p16033_p7 = scmp.lt.s32.totalorder %s16024_s5, %s16024_s5 }
  0x15   : > { %p16015_p12 = pneg %p16277_p11 }
  0x16   : > { %p16034_p9 = por %p16033_p7, %p16032_p5 }
  0x17   : > { %p16027_p0 = pnand %p16025_p13, %p16015_p12 }
  0x19   : > { %p16028_p3 = pneg %p16027_p0 }
  0x1b   : > { %p16035_p10 = pnand %p16034_p9, %p16028_p3 }
  0x1d   : > { %16038 = shalt.err (!%p16035_p10)
}
  0x1e   : > { %s16196_s6 = smov 128   ;;  %s16197_s7 = smov 8  }
  0x1f   : > { %15868 = dma.hbm_to_vmem [thread:$0]  (!%p16277_p11), %s19059_s1, 55296, %s155_s25, [#allocation9], %s16196_s6, %s16196_s6, %s16197_s7  }
  0x20   : > { %s16050_s10 = scalar_lea.vmem %s169_s28, 128  ;;  %p16058_p3 = scmp.lt.s32.totalorder %s169_s28, %s169_s28 }
  0x21   : > { %p16051_p13 = scmp.ne.s32.totalorder %s169_s28, %s16050_s10  ;;  %p16059_p10 = scmp.lt.s32.totalorder %s16050_s10, %s16050_s10 }
  0x23   : > { %p16053_p0 = pnand %p16051_p13, %p16015_p12  ;;  %p16060_p7 = por %p16059_p10, %p16058_p3 }
  0x25   : > { %p16054_p5 = pneg %p16053_p0 }
  0x27   : > { %p16061_p9 = pnand %p16060_p7, %p16054_p5 }
  0x29   : > { %16064 = shalt.err (!%p16061_p9)
}
  0x2a   : > { %15871 = dma.hbm_to_vmem [thread:$0]  (!%p16277_p11), %s19060_s2, 128, %s169_s28, [#allocation9]  }
  0x2b   : > { %s16076_s13 = scalar_lea.vmem %s179_s30, 4608  ;;  %p16084_p0 = scmp.lt.s32.totalorder %s179_s30, %s179_s30 }
  0x2c   : > { %p16077_p1 = scmp.ne.s32.totalorder %s179_s30, %s16076_s13  ;;  %p16085_p6 = scmp.lt.s32.totalorder %s16076_s13, %s16076_s13 }
  0x2e   : > { %p16079_p2 = pnand %p16077_p1, %p16015_p12  ;;  %p16086_p4 = por %p16085_p6, %p16084_p0 }
  0x30   : > { %p16080_p13 = pneg %p16079_p2 }
  0x32   : > { %p16087_p3 = pnand %p16086_p4, %p16080_p13 }
  0x34   : > { %16090 = shalt.err (!%p16087_p3)
}
  0x35   : > { %15874 = dma.hbm_to_vmem [thread:$0]  (!%p16277_p11), %s19061_s3, 4608, %s179_s30, [#allocation12], %s16196_s6, %s16196_s6, %s16197_s7  }
  0x36   : > { %s16314_s24 = sadd.s32 1, %s16191_s18   ;;  %s29_s26 = sadd.s32 1, %s16187_s17 }
  0x37   : > { %s26_s25 = ssub.s32 %s16191_s18, %s16314_s24  ;;  %p36_p2 = scmp.ne.s32.totalorder %s16187_s17, %s16183_s16 }
  0x38   : > { %p27_p1 = scmp.eq.s32.totalorder %s26_s25, 0  ;;  %p37_p4 = scmp.eq.s32.totalorder %s16191_s18, 0 }
  0x39   : > { %p15886_p6 = scmp.lt.s32.totalorder %s16191_s18, 2  ;;  %p19071_p5 = scmp.eq.s32.totalorder %s16249_s19, 1 }
  0x3a   : > { %s16324_s27 = scalar_select %p27_p1, %s16187_s17, %s29_s26  }
  0x3b   : > { %p38_p12 = por %p37_p4, %p36_p2  ;;  %p16328_p10 = por %p19071_p5, %p36_p2 }
  0x3c   : > { %s192_s29 = sand.u32 1, %s16187_s17   ;;  %s12088_s5 = sshll.u32 %s16191_s18, 12 }
  0x3d   : > { %s19072_s28 = scalar_select %p16328_p10, 1, 0 }
  0x3e   : > { %s12041_s30 = sshll.u32 %s192_s29, 8  ;;  %s16337_s10 = scalar_lea.hbm %s19058_s0, %s12088_s5 }
  0x3f   : > { %s196_s11 = scalar_lea.vmem [#allocation5], %s12041_s30  ;;  %p16339_p11 = pnand %p15886_p6, %p38_p12 }
  0x40   : > { %s203_s12 = sshll.u32 %s196_s11, 4  ;;  %s16345_s14 = scalar_lea.sflag [#allocation6], %s192_s29  ;;  %s16343_s12 = int_to_ptr.vmem [resolvable:$true] %s203_s12 }
  0x41   : > { %s16091_s20 = scalar_lea.hbm %s16337_s10, 4096  ;;  %p16093_p9 = pneg %p16339_p11 }
  0x42   : > { %p16092_p7 = scmp.ne.s32.totalorder %s16337_s10, %s16091_s20  ;;  %s16096_s5 = scalar_lea.hbm %s19058_s0, 8192 }
  0x43   : > { %p16097_p3 = scmp.lt.s32.totalorder %s16337_s10, %s19058_s0  ;;  %p16098_p1 = scmp.lt.s32.totalorder %s16096_s5, %s16091_s20 }
  0x44   : > { %p16094_p13 = pnand %p16093_p9, %p16092_p7 }
  0x45   : > { %p16099_p2 = por %p16098_p1, %p16097_p3 }
  0x46   : > { %p16095_p0 = pneg %p16094_p13 }
  0x48   : > { %p16100_p4 = pnand %p16099_p2, %p16095_p0 }
  0x4a   : > { %16103 = shalt.err (!%p16100_p4)
}
  0x4b   : > { %s16104_s29 = scalar_lea.vmem %s16343_s12, 4096  ;;  %s16198_s9 = smov [#allocation5]  }
  0x4c   : > { %p16105_p6 = scmp.ne.s32.totalorder %s16343_s12, %s16104_s29  ;;  %s16109_s11 = sshll.u32 %s16198_s9, 4  ;;  %s16110_s11 = int_to_ptr.vmem [resolvable:$false] %s16109_s11 }
  0x4d   : > { %s16111_s25 = scalar_lea.vmem %s16110_s11, 8192  ;;  %p16112_p7 = scmp.lt.s32.totalorder %s16343_s12, %s16110_s11 }
  0x4e   : > { %p16107_p12 = pnand %p16105_p6, %p16093_p9  ;;  %p16113_p13 = scmp.lt.s32.totalorder %s16111_s25, %s16104_s29 }
  0x50   : > { %p16108_p5 = pneg %p16107_p12  ;;  %p16114_p10 = por %p16113_p13, %p16112_p7 }
  0x52   : > { %p16115_p8 = pnand %p16114_p10, %p16108_p5 }
  0x54   : > { %16118 = shalt.err (!%p16115_p8)
}
  0x55   : > { %15878 = dma.hbm_to_vmem [thread:$0]  (!%p16339_p11), %s16337_s10, 4096, %s16343_s12, %s16345_s14, %s16196_s6, %s16196_s6, %s16197_s7  }
  0x56   : > { %p19074_p9 = scmp.ne.s32.totalorder %s19069_s23, 0 }
  0x58   : > { %215 = sbr.rel (%p19074_p9) target bundleno = 1701 (0x6a5), region = 36 }
  0x5d   : > { %s16372_s20 = sand.u32 1, %s16183_s16   ;;  %p19075_p8 = scmp.ne.s32.totalorder %s19067_s21, 0 }
  0x5e   : > { %s12045_s26 = sshll.u32 %s16372_s20, 8  ;;  %s218_s5 = scalar_lea.sflag [#allocation6], %s16372_s20 }
  0x5f   : > { %s16376_s30 = scalar_lea.vmem [#allocation5], %s12045_s26 }
  0x60   : > { %16162 = dma.done.wait (%p19075_p8), %s218_s5, 4096  }
  0x61   : > { %16164 = vsyncadd (%p19075_p8), %s218_s5, 4294963200  ;;  %p19076_p10 = scmp.eq.s32.totalorder %s16249_s19, 0 }
  0x63   : > { %16166 = dma.done.wait (%p19076_p10), [#allocation9], 55424   ;;  %p19077_p11 = pmov %p19076_p10 }
  0x64   : > { %p19078_p0 = pmov %p19076_p10 }
  0x65   : > { %16168 = vsyncadd (%p19077_p11), [#allocation9], 4294911872 }
  0x66   : > { %16170 = dma.done.wait (%p19078_p0), [#allocation12], 4608   ;;  %p19079_p3 = pmov %p19078_p0 }
  0x67   : > { %v16199_v0 = vmov 0.0   ;;  %v547_v1 = vld [vmem:[#allocation8 + $0x78] sm:$0xff]  ;;  %v546_v2 = vld [vmem:[#allocation8 + $0x70] sm:$0xff]  ;;  %v545_v3 = vld [vmem:[#allocation8 + $0x68] sm:$0xff]  ;;  %s15847_s21 = smul.u32 328, %s16372_s20  ;;  %p19336_p2 = scmp.ne.s32.totalorder %s19072_s28, 0 }
  0x68   : > { %16172 = vsyncadd (%p19079_p3), [#allocation12], 4294962688  ;;  %276 = vst [vmem:[#allocation2 + $0x90] sm:$0xff] %v16199_v0  ;;  %13525 = vmatprep.mubr.f32.mxu0 %v16199_v0  ;;  %15815 = vmatprep.subr.mxu1 %v547_v1  ;;  %v544_v4 = vld [vmem:[#allocation8 + $0x60] sm:$0xff]  ;;  %v16474_v5 = vld [vmem:[%s16376_s30 + $0x70] sm:$0xff]  ;;  %s15848_s6 = smul.u32 5248, %s16249_s19 }
  0x69   : > { %277 = vst [vmem:[#allocation2 + $0x98] sm:$0xff] %v16199_v0  ;;  %258 = vst [vmem:[#allocation2] sm:$0xff] %v16199_v0  ;;  %13493 = vmatprep.subr.mxu0 %v547_v1  ;;  %15831 = vmatpush3.msra.mxu1 %v547_v1  ;;  %v16477_v6 = vld [vmem:[%s16376_s30 + $0x78] sm:$0xff]  ;;  %v12063_v8 = vld [vmem:[%s16376_s30 + $0x80] sm:$0xff]  ;;  %s18539_s23 = scalar_lea.vmem [#allocation13], %s15847_s21  ;;  %s11920_s19 = scalar_lea.sflag [#allocation7], %s16372_s20 }
  0x6a   : > { %259 = vst [vmem:[#allocation2 + $0x8] sm:$0xff] %v16199_v0  ;;  %260 = vst [vmem:[#allocation2 + $0x10] sm:$0xff] %v16199_v0  ;;  %13494 = vmatpush3.msra.mxu0 %v547_v1  ;;  %15816 = vmatprep.subr.mxu1 %v546_v2  ;;  %v543_v7 = vld [vmem:[#allocation8 + $0x58] sm:$0xff]  ;;  %v381_v9 = vld [vmem:[%s16376_s30] sm:$0xff]  ;;  %s11933_s7 = sshll.u32 %s18539_s23, 4  ;;  %s19011_s13 = scalar_lea.hbm %s19062_s4, %s15848_s6  ;;  %s19013_s7 = int_to_ptr.vmem [resolvable:$true] %s11933_s7 }
  0x6b   : > { %261 = vst [vmem:[#allocation2 + $0x18] sm:$0xff] %v16199_v0  ;;  %262 = vst [vmem:[#allocation2 + $0x20] sm:$0xff] %v16199_v0  ;;  %13495 = vmatprep.subr.mxu0 %v546_v2  ;;  %15832 = vmatpush3.msra.mxu1 %v546_v2  ;;  %v12064_v10 = vld [vmem:[%s16376_s30 + $0x88] sm:$0xff]  ;;  %v542_v11 = vld [vmem:[#allocation8 + $0x50] sm:$0xff]  ;;  %s16119_s14 = scalar_lea.vmem %s19013_s7, 5248  ;;  %s16200_s8 = smov [#allocation13]  }
  0x6c   : > { %263 = vst [vmem:[#allocation2 + $0x28] sm:$0xff] %v16199_v0  ;;  %264 = vst [vmem:[#allocation2 + $0x30] sm:$0xff] %v16199_v0  ;;  %13496 = vmatpush3.msra.mxu0 %v546_v2  ;;  %15817 = vmatprep.subr.mxu1 %v545_v3  ;;  %v382_v12 = vld [vmem:[%s16376_s30 + $0x8] sm:$0xff]  ;;  %v12065_v14 = vld [vmem:[%s16376_s30 + $0x90] sm:$0xff]  ;;  %p16120_p1 = scmp.ne.s32.totalorder %s19013_s7, %s16119_s14  ;;  %s16123_s29 = sshll.u32 %s16200_s8, 4  ;;  %s16124_s29 = int_to_ptr.vmem [resolvable:$false] %s16123_s29 }
  0x6d   : > { %265 = vst [vmem:[#allocation2 + $0x38] sm:$0xff] %v16199_v0  ;;  %266 = vst [vmem:[#allocation2 + $0x40] sm:$0xff] %v16199_v0  ;;  %13497 = vmatprep.subr.mxu0 %v545_v3  ;;  %15833 = vmatpush3.msra.mxu1 %v545_v3  ;;  %v541_v13 = vld [vmem:[#allocation8 + $0x48] sm:$0xff]  ;;  %v12049_v15 = vld [vmem:[%s16376_s30 + $0x10] sm:$0xff]  ;;  %s16125_s9 = scalar_lea.vmem %s16124_s29, 10496  ;;  %p16126_p12 = scmp.lt.s32.totalorder %s19013_s7, %s16124_s29 }
  0x6e   : > { %267 = vst [vmem:[#allocation2 + $0x48] sm:$0xff] %v16199_v0  ;;  %268 = vst [vmem:[#allocation2 + $0x50] sm:$0xff] %v16199_v0  ;;  %13498 = vmatpush3.msra.mxu0 %v545_v3  ;;  %15818 = vmatprep.subr.mxu1 %v544_v4  ;;  %v12066_v16 = vld [vmem:[%s16376_s30 + $0x98] sm:$0xff]  ;;  %v12067_v18 = vld [vmem:[%s16376_s30 + $0xa0] sm:$0xff]  ;;  %p16121_p4 = pnand %p16120_p1, %p19336_p2  ;;  %p16127_p5 = scmp.lt.s32.totalorder %s16125_s9, %s16119_s14 }
  0x6f   : > { %269 = vst [vmem:[#allocation2 + $0x58] sm:$0xff] %v16199_v0  ;;  %270 = vst [vmem:[#allocation2 + $0x60] sm:$0xff] %v16199_v0  ;;  %13499 = vmatprep.subr.mxu0 %v544_v4  ;;  %15834 = vmatpush3.msra.mxu1 %v544_v4  ;;  %v12050_v17 = vld [vmem:[%s16376_s30 + $0x18] sm:$0xff]  ;;  %v540_v19 = vld [vmem:[#allocation8 + $0x40] sm:$0xff] }
  0x70   : > { %271 = vst [vmem:[#allocation2 + $0x68] sm:$0xff] %v16199_v0  ;;  %272 = vst [vmem:[#allocation2 + $0x70] sm:$0xff] %v16199_v0  ;;  %13500 = vmatpush3.msra.mxu0 %v544_v4  ;;  %15819 = vmatprep.subr.mxu1 %v543_v7  ;;  %v12051_v20 = vld [vmem:[%s16376_s30 + $0x20] sm:$0xff]  ;;  %v12068_v21 = vld [vmem:[%s16376_s30 + $0xa8] sm:$0xff]  ;;  %p16122_p6 = pneg %p16121_p4  ;;  %p16128_p7 = por %p16127_p5, %p16126_p12 }
  0x71   : > { %273 = vst [vmem:[#allocation2 + $0x78] sm:$0xff] %v16199_v0  ;;  %274 = vst [vmem:[#allocation2 + $0x80] sm:$0xff] %v16199_v0  ;;  %13501 = vmatprep.subr.mxu0 %v543_v7  ;;  %15835 = vmatpush3.msra.mxu1 %v543_v7  ;;  %v539_v22 = vld [vmem:[#allocation8 + $0x38] sm:$0xff]  ;;  %v12052_v23 = vld [vmem:[%s16376_s30 + $0x28] sm:$0xff] }
  0x72   : > { %275 = vst [vmem:[#allocation2 + $0x88] sm:$0xff] %v16199_v0  ;;  %278 = vst [vmem:[#allocation2 + $0xa0] sm:$0xff] %v16199_v0  ;;  %13502 = vmatpush3.msra.mxu0 %v543_v7  ;;  %15820 = vmatprep.subr.mxu1 %v542_v11  ;;  %v538_v24 = vld [vmem:[#allocation8 + $0x30] sm:$0xff]  ;;  %v537_v27 = vld [vmem:[#allocation8 + $0x28] sm:$0xff]  ;;  %p16129_p13 = pnand %p16128_p7, %p16122_p6 }
  0x73   : > { %279 = vst [vmem:[#allocation2 + $0xa8] sm:$0xff] %v16199_v0  ;;  %280 = vst [vmem:[#allocation2 + $0xb0] sm:$0xff] %v16199_v0  ;;  %13503 = vmatprep.subr.mxu0 %v542_v11  ;;  %15836 = vmatpush3.msra.mxu1 %v542_v11  ;;  %v16494_v25 = vld [vmem:[%s16376_s30 + $0xb0] sm:$0xff]  ;;  %v536_v28 = vld [vmem:[#allocation8 + $0x20] sm:$0xff] }
  0x74   : > { %281 = vst [vmem:[#allocation2 + $0xb8] sm:$0xff] %v16199_v0  ;;  %282 = vst [vmem:[#allocation2 + $0xc0] sm:$0xff] %v16199_v0  ;;  %13504 = vmatpush3.msra.mxu0 %v542_v11  ;;  %15821 = vmatprep.subr.mxu1 %v541_v13  ;;  %v16498_v26 = vld [vmem:[%s16376_s30 + $0x30] sm:$0xff]  ;;  %v16502_v29 = vld [vmem:[%s16376_s30 + $0xb8] sm:$0xff] }
  0x75   : > { %283 = vst [vmem:[#allocation2 + $0xc8] sm:$0xff] %v16199_v0  ;;  %284 = vst [vmem:[#allocation2 + $0xd0] sm:$0xff] %v16199_v0  ;;  %13505 = vmatprep.subr.mxu0 %v541_v13  ;;  %15837 = vmatpush3.msra.mxu1 %v541_v13  ;;  %v16505_v30 = vld [vmem:[%s16376_s30 + $0x38] sm:$0xff]  ;;  %v12071_v31 = vld [vmem:[%s16376_s30 + $0xc0] sm:$0xff] }
  0x76   : > { %285 = vst [vmem:[#allocation2 + $0xd8] sm:$0xff] %v16199_v0  ;;  %286 = vst [vmem:[#allocation2 + $0xe0] sm:$0xff] %v16199_v0  ;;  %13506 = vmatpush3.msra.mxu0 %v541_v13  ;;  %15822 = vmatprep.subr.mxu1 %v540_v19  ;;  %v535_v32 = vld [vmem:[#allocation8 + $0x18] sm:$0xff]  ;;  %v16511_v33 = vld [vmem:[%s16376_s30 + $0x40] sm:$0xff] }
  0x77   : > { %287 = vst [vmem:[#allocation2 + $0xe8] sm:$0xff] %v16199_v0  ;;  %288 = vst [vmem:[#allocation2 + $0xf0] sm:$0xff] %v16199_v0  ;;  %13507 = vmatprep.subr.mxu0 %v540_v19  ;;  %15838 = vmatpush3.msra.mxu1 %v540_v19  ;;  %v12072_v34 = vld [vmem:[%s16376_s30 + $0xc8] sm:$0xff]  ;;  %v534_v35 = vld [vmem:[#allocation8 + $0x10] sm:$0xff] }
  0x78   : > { %289 = vst [vmem:[#allocation2 + $0xf8] sm:$0xff] %v16199_v0  ;;  %290 = vst [vmem:[#allocation2 + $0x100] sm:$0xff] %v16199_v0  ;;  %13508 = vmatpush3.msra.mxu0 %v540_v19  ;;  %15823 = vmatprep.subr.mxu1 %v539_v22  ;;  %v16516_v36 = vld [vmem:[%s16376_s30 + $0x48] sm:$0xff]  ;;  %v12073_v37 = vld [vmem:[%s16376_s30 + $0xd0] sm:$0xff] }
  0x79   : > { %291 = vst [vmem:[#allocation2 + $0x108] sm:$0xff] %v16199_v0  ;;  %292 = vst [vmem:[#allocation2 + $0x110] sm:$0xff] %v16199_v0  ;;  %13509 = vmatprep.subr.mxu0 %v539_v22  ;;  %15839 = vmatpush3.msra.mxu1 %v539_v22  ;;  %v533_v38 = vld [vmem:[#allocation8 + $0x8] sm:$0xff]  ;;  %v12057_v39 = vld [vmem:[%s16376_s30 + $0x50] sm:$0xff] }
  0x7a   : > { %293 = vst [vmem:[#allocation2 + $0x118] sm:$0xff] %v16199_v0  ;;  %294 = vst [vmem:[#allocation2 + $0x120] sm:$0xff] %v16199_v0  ;;  %13510 = vmatpush3.msra.mxu0 %v539_v22  ;;  %15824 = vmatprep.subr.mxu1 %v538_v24  ;;  %v532_v40 = vld [vmem:[#allocation8] sm:$0xff]  ;;  %v12074_v41 = vld [vmem:[%s16376_s30 + $0xd8] sm:$0xff] }
  0x7b   : > { %295 = vst [vmem:[#allocation2 + $0x128] sm:$0xff] %v16199_v0  ;;  %296 = vst [vmem:[#allocation2 + $0x130] sm:$0xff] %v16199_v0  ;;  %13511 = vmatprep.subr.mxu0 %v538_v24  ;;  %15840 = vmatpush3.msra.mxu1 %v538_v24  ;;  %v12058_v42 = vld [vmem:[%s16376_s30 + $0x58] sm:$0xff]  ;;  %v12075_v43 = vld [vmem:[%s16376_s30 + $0xe0] sm:$0xff] }
  0x7c   : > { %297 = vst [vmem:[#allocation2 + $0x138] sm:$0xff] %v16199_v0  ;;  %298 = vst [vmem:[#allocation2 + $0x140] sm:$0xff] %v16199_v0  ;;  %13512 = vmatpush3.msra.mxu0 %v538_v24  ;;  %15825 = vmatprep.subr.mxu1 %v537_v27  ;;  %v12059_v44 = vld [vmem:[%s16376_s30 + $0x60] sm:$0xff]  ;;  %v12076_v47 = vld [vmem:[%s16376_s30 + $0xe8] sm:$0xff] }
  0x7d   : > { %299 = vst [vmem:[#allocation3] sm:$0xff] %v16199_v0  ;;  %300 = vst [vmem:[#allocation3 + $0x8] sm:$0xff] %v16199_v0  ;;  %13513 = vmatprep.subr.mxu0 %v537_v27  ;;  %15841 = vmatpush3.msra.mxu1 %v537_v27  ;;  %v881_v48 = vld [vmem:[#allocation8 + $0xf8] sm:$0xff]  ;;  %v12060_v50 = vld [vmem:[%s16376_s30 + $0x68] sm:$0xff] }
  0x7e   : > { %301 = vst [vmem:[#allocation3 + $0x10] sm:$0xff] %v16199_v0  ;;  %302 = vst [vmem:[#allocation3 + $0x18] sm:$0xff] %v16199_v0  ;;  %13514 = vmatpush3.msra.mxu0 %v537_v27  ;;  %15826 = vmatprep.subr.mxu1 %v536_v28  ;;  %v1287_v49 = vld [vmem:[#allocation8 + $0x178] sm:$0xff]  ;;  %v880_v52 = vld [vmem:[#allocation8 + $0xf0] sm:$0xff] }
  0x7f   : > { %303 = vst [vmem:[#allocation3 + $0x20] sm:$0xff] %v16199_v0  ;;  %304 = vst [vmem:[#allocation3 + $0x28] sm:$0xff] %v16199_v0  ;;  %13515 = vmatprep.subr.mxu0 %v536_v28  ;;  %15842 = vmatpush3.msra.mxu1 %v536_v28  ;;  %v1286_v56 = vld [vmem:[#allocation8 + $0x170] sm:$0xff]  ;;  %v879_v57 = vld [vmem:[#allocation8 + $0xe8] sm:$0xff] }
  0x80   : > { %305 = vst [vmem:[#allocation3 + $0x30] sm:$0xff] %v16199_v0  ;;  %306 = vst [vmem:[#allocation3 + $0x38] sm:$0xff] %v16199_v0  ;;  %13516 = vmatpush3.msra.mxu0 %v536_v28  ;;  %15827 = vmatprep.subr.mxu1 %v535_v32  ;;  %v878_v59 = vld [vmem:[#allocation8 + $0xe0] sm:$0xff]  ;;  %v1285_v60 = vld [vmem:[#allocation8 + $0x168] sm:$0xff] }
  0x81   : > { %307 = vst [vmem:[#allocation3 + $0x40] sm:$0xff] %v16199_v0  ;;  %308 = vst [vmem:[#allocation3 + $0x48] sm:$0xff] %v16199_v0  ;;  %13517 = vmatprep.subr.mxu0 %v535_v32  ;;  %15843 = vmatpush3.msra.mxu1 %v535_v32  ;;  %v1284_v1 = vld [vmem:[#allocation8 + $0x160] sm:$0xff]  ;;  %v1283_v3 = vld [vmem:[#allocation8 + $0x158] sm:$0xff] }
  0x82   : > { %309 = vst [vmem:[#allocation3 + $0x50] sm:$0xff] %v16199_v0  ;;  %310 = vst [vmem:[#allocation3 + $0x58] sm:$0xff] %v16199_v0  ;;  %13518 = vmatpush3.msra.mxu0 %v535_v32  ;;  %15828 = vmatprep.subr.mxu1 %v534_v35  ;;  %v1282_v11 = vld [vmem:[#allocation8 + $0x150] sm:$0xff]  ;;  %v1280_v19 = vld [vmem:[#allocation8 + $0x140] sm:$0xff] }
  0x83   : > { %311 = vst [vmem:[#allocation3 + $0x60] sm:$0xff] %v16199_v0  ;;  %312 = vst [vmem:[#allocation3 + $0x68] sm:$0xff] %v16199_v0  ;;  %13519 = vmatprep.subr.mxu0 %v534_v35  ;;  %15844 = vmatpush3.msra.mxu1 %v534_v35  ;;  %v872_v27 = vld [vmem:[#allocation8 + $0xb0] sm:$0xff] }
  0x84   : > { %313 = vst [vmem:[#allocation3 + $0x70] sm:$0xff] %v16199_v0  ;;  %314 = vst [vmem:[#allocation3 + $0x78] sm:$0xff] %v16199_v0  ;;  %13520 = vmatpush3.msra.mxu0 %v534_v35  ;;  %15829 = vmatprep.subr.mxu1 %v533_v38  ;;  %v1278_v32 = vld [vmem:[#allocation8 + $0x130] sm:$0xff] }
  0x85   : > { %315 = vst [vmem:[#allocation3 + $0x80] sm:$0xff] %v16199_v0  ;;  %316 = vst [vmem:[#allocation3 + $0x88] sm:$0xff] %v16199_v0  ;;  %13521 = vmatprep.subr.mxu0 %v533_v38  ;;  %15845 = vmatpush3.msra.mxu1 %v533_v38 }
  0x86   : > { %317 = vst [vmem:[#allocation3 + $0x90] sm:$0xff] %v16199_v0  ;;  %318 = vst [vmem:[#allocation3 + $0x98] sm:$0xff] %v16199_v0  ;;  %13522 = vmatpush3.msra.mxu0 %v533_v38  ;;  %15830 = vmatprep.subr.mxu1 %v532_v40  ;;  %v870_v38 = vld [vmem:[#allocation8 + $0xa0] sm:$0xff] }
  0x87   : > { %319 = vst [vmem:[#allocation3 + $0xa0] sm:$0xff] %v16199_v0  ;;  %320 = vst [vmem:[#allocation3 + $0xa8] sm:$0xff] %v16199_v0  ;;  %13523 = vmatprep.subr.mxu0 %v532_v40  ;;  %15846 = vmatpush3.msra.mxu1 %v532_v40 }
  0x88   : > { %321 = vst [vmem:[#allocation3 + $0xb0] sm:$0xff] %v16199_v0  ;;  %322 = vst [vmem:[#allocation3 + $0xb8] sm:$0xff] %v16199_v0  ;;  %13524 = vmatpush3.msra.mxu0 %v532_v40  ;;  %13579 = vmatprep.subr.mxu1 %v881_v48 }
  0x89   : > { %323 = vst [vmem:[#allocation3 + $0xc0] sm:$0xff] %v16199_v0  ;;  %324 = vst [vmem:[#allocation3 + $0xc8] sm:$0xff] %v16199_v0  ;;  %13526 = vmatmul.mubr.f32.vlgmr.msra.gmra.mxu0 %v16199_v0  ;;  %13665 = vmatprep.subr.mxu0 %v1287_v49 }
  0x8a   : > { %325 = vst [vmem:[#allocation3 + $0xd0] sm:$0xff] %v16199_v0  ;;  %326 = vst [vmem:[#allocation3 + $0xd8] sm:$0xff] %v16199_v0  ;;  %13666 = vmatpush3.msra.mxu0 %v1287_v49 }
  0x8b   : > { %327 = vst [vmem:[#allocation3 + $0xe0] sm:$0xff] %v16199_v0  ;;  %328 = vst [vmem:[#allocation3 + $0xe8] sm:$0xff] %v16199_v0  ;;  %13667 = vmatprep.subr.mxu0 %v1286_v56 }
  0x8c   : > { %329 = vst [vmem:[#allocation3 + $0xf0] sm:$0xff] %v16199_v0  ;;  %330 = vst [vmem:[#allocation3 + $0xf8] sm:$0xff] %v16199_v0  ;;  %13668 = vmatpush3.msra.mxu0 %v1286_v56  ;;  %v866_v56 = vld [vmem:[#allocation8 + $0x80] sm:$0xff] }
  0x8d   : > { %331 = vst [vmem:[#allocation3 + $0x100] sm:$0xff] %v16199_v0  ;;  %332 = vst [vmem:[#allocation3 + $0x108] sm:$0xff] %v16199_v0  ;;  %13669 = vmatprep.subr.mxu0 %v1285_v60 }
  0x8e   : > { %333 = vst [vmem:[#allocation3 + $0x110] sm:$0xff] %v16199_v0  ;;  %334 = vst [vmem:[#allocation3 + $0x118] sm:$0xff] %v16199_v0  ;;  %13670 = vmatpush3.msra.mxu0 %v1285_v60  ;;  %v1235_v60 = vld [vmem:[#allocation2 + $0x2] sm:$0xff] }
  0x8f   : > { %335 = vst [vmem:[#allocation3 + $0x120] sm:$0xff] %v16199_v0  ;;  %336 = vst [vmem:[#allocation3 + $0x128] sm:$0xff] %v16199_v0  ;;  %13671 = vmatprep.subr.mxu0 %v1284_v1 }
  0x90   : > { %337 = vst [vmem:[#allocation3 + $0x130] sm:$0xff] %v16199_v0  ;;  %338 = vst [vmem:[#allocation3 + $0x138] sm:$0xff] %v16199_v0  ;;  %13672 = vmatpush3.msra.mxu0 %v1284_v1 }
  0x91   : > { %339 = vst [vmem:[#allocation3 + $0x140] sm:$0xff] %v16199_v0  ;;  %418 = vst [vmem:[#allocation2 + $0x91] sm:$0xff] %v16474_v5  ;;  %v877_v0 = vld [vmem:[#allocation8 + $0xd8] sm:$0xff]  ;;  %13673 = vmatprep.subr.mxu0 %v1283_v3 }
  0x92   : > { %419 = vst [vmem:[#allocation2 + $0x99] sm:$0xff] %v16477_v6  ;;  %423 = vst [vmem:[#allocation2 + $0xa3] sm:$0xff] %v12063_v8  ;;  %v876_v8 = vld [vmem:[#allocation8 + $0xd0] sm:$0xff]  ;;  %13674 = vmatpush3.msra.mxu0 %v1283_v3 }
  0x93   : > { %383 = vst [vmem:[#allocation2 + $0x13] sm:$0xff] %v381_v9  ;;  %424 = vst [vmem:[#allocation2 + $0xab] sm:$0xff] %v12064_v10  ;;  %v875_v10 = vld [vmem:[#allocation8 + $0xc8] sm:$0xff]  ;;  %13675 = vmatprep.subr.mxu0 %v1282_v11 }
  0x94   : > { %384 = vst [vmem:[#allocation2 + $0x1b] sm:$0xff] %v382_v12  ;;  %428 = vst [vmem:[#allocation2 + $0xb5] sm:$0xff] %v12065_v14  ;;  %13676 = vmatpush3.msra.mxu0 %v1282_v11 }
  0x95   : > { %388 = vst [vmem:[#allocation2 + $0x25] sm:$0xff] %v12049_v15  ;;  %429 = vst [vmem:[#allocation2 + $0xbd] sm:$0xff] %v12066_v16  ;;  %v874_v15 = vld [vmem:[#allocation8 + $0xc0] sm:$0xff]  ;;  %v1281_v16 = vld [vmem:[#allocation8 + $0x148] sm:$0xff] }
  0x96   : > { %389 = vst [vmem:[#allocation2 + $0x2d] sm:$0xff] %v12050_v17  ;;  %433 = vst [vmem:[#allocation2 + $0xc7] sm:$0xff] %v12067_v18  ;;  %v873_v18 = vld [vmem:[#allocation8 + $0xb8] sm:$0xff]  ;;  %13677 = vmatprep.subr.mxu0 %v1281_v16 }
  0x97   : > { %393 = vst [vmem:[#allocation2 + $0x37] sm:$0xff] %v12051_v20  ;;  %434 = vst [vmem:[#allocation2 + $0xcf] sm:$0xff] %v12068_v21  ;;  %13678 = vmatpush3.msra.mxu0 %v1281_v16 }
  0x98   : > { %394 = vst [vmem:[#allocation2 + $0x3f] sm:$0xff] %v12052_v23  ;;  %438 = vst [vmem:[#allocation2 + $0xd9] sm:$0xff] %v16494_v25  ;;  %v514_v45 = vld [vmem:[#allocation2 + $0x90] sm:$0xff]  ;;  %13679 = vmatprep.subr.mxu0 %v1280_v19  ;;  %v1279_v23 = vld [vmem:[#allocation8 + $0x138] sm:$0xff] }
  0x99   : > { %398 = vst [vmem:[#allocation2 + $0x49] sm:$0xff] %v16498_v26  ;;  %439 = vst [vmem:[#allocation2 + $0xe1] sm:$0xff] %v16502_v29  ;;  %v515_v46 = vld [vmem:[#allocation2 + $0x98] sm:$0xff]  ;;  %13552 = vmatprep.mubr.f32.mxu1 %v514_v45  ;;  %v516_v51 = vld [vmem:[#allocation2 + $0xa0] sm:$0xff]  ;;  %13680 = vmatpush3.msra.mxu0 %v1280_v19 }
  0x9a   : > { %399 = vst [vmem:[#allocation2 + $0x51] sm:$0xff] %v16505_v30  ;;  %443 = vst [vmem:[#allocation2 + $0xeb] sm:$0xff] %v12071_v31  ;;  %13553 = vmatmul.mubr.f32.vlgmr.msra.gmra.mxu1 %v515_v46  ;;  %v498_v53 = vld [vmem:[#allocation2 + $0x10] sm:$0xff]  ;;  %v517_v54 = vld [vmem:[#allocation2 + $0xa8] sm:$0xff]  ;;  %13681 = vmatprep.subr.mxu0 %v1279_v23 }
  0x9b   : > { %403 = vst [vmem:[#allocation2 + $0x5b] sm:$0xff] %v16511_v33  ;;  %444 = vst [vmem:[#allocation2 + $0xf3] sm:$0xff] %v12072_v34  ;;  %13580 = vmatpush3.msra.mxu1 %v881_v48  ;;  %v499_v55 = vld [vmem:[#allocation2 + $0x18] sm:$0xff]  ;;  %13555 = vmatprep.mubr.f32.mxu1 %v516_v51  ;;  %v518_v58 = vld [vmem:[#allocation2 + $0xb0] sm:$0xff] }
  0x9c   : > { %404 = vst [vmem:[#allocation2 + $0x63] sm:$0xff] %v16516_v36  ;;  %448 = vst [vmem:[#allocation2 + $0xfd] sm:$0xff] %v12073_v37  ;;  %13581 = vmatprep.subr.mxu1 %v880_v52  ;;  %13528 = vmatprep.mubr.f32.mxu0 %v498_v53  ;;  %v500_v61 = vld [vmem:[#allocation2 + $0x20] sm:$0xff]  ;;  %v519_v62 = vld [vmem:[#allocation2 + $0xb8] sm:$0xff] }
  0x9d   : > { %408 = vst [vmem:[#allocation2 + $0x6d] sm:$0xff] %v12057_v39  ;;  %449 = vst [vmem:[#allocation2 + $0x105] sm:$0xff] %v12074_v41  ;;  %13529 = vmatmul.mubr.f32.gmra.mxu0 %v499_v55  ;;  %13582 = vmatpush3.msra.mxu1 %v880_v52  ;;  %v501_v63 = vld [vmem:[#allocation2 + $0x28] sm:$0xff]  ;;  %v520_v2 = vld [vmem:[#allocation2 + $0xc0] sm:$0xff] }
  0x9e   : > { %409 = vst [vmem:[#allocation2 + $0x75] sm:$0xff] %v12058_v42  ;;  %453 = vst [vmem:[#allocation2 + $0x10f] sm:$0xff] %v12075_v43  ;;  %13556 = vmatmul.mubr.f32.gmra.mxu1 %v517_v54  ;;  %13583 = vmatprep.subr.mxu1 %v879_v57  ;;  %v502_v4 = vld [vmem:[#allocation2 + $0x30] sm:$0xff]  ;;  %v521_v7 = vld [vmem:[#allocation2 + $0xc8] sm:$0xff] }
  0x9f   : > { %413 = vst [vmem:[#allocation2 + $0x7f] sm:$0xff] %v12059_v44  ;;  %454 = vst [vmem:[#allocation2 + $0x117] sm:$0xff] %v12076_v47  ;;  %13584 = vmatpush3.msra.mxu1 %v879_v57  ;;  %13558 = vmatprep.mubr.f32.mxu1 %v518_v58  ;;  %v503_v9 = vld [vmem:[#allocation2 + $0x38] sm:$0xff]  ;;  %v522_v12 = vld [vmem:[#allocation2 + $0xd0] sm:$0xff] }
  0xa0   : > { %414 = vst [vmem:[#allocation2 + $0x87] sm:$0xff] %v12060_v50  ;;  %13585 = vmatprep.subr.mxu1 %v878_v59  ;;  %13531 = vmatprep.mubr.f32.mxu0 %v500_v61  ;;  %v504_v13 = vld [vmem:[#allocation2 + $0x40] sm:$0xff]  ;;  %v523_v14 = vld [vmem:[#allocation2 + $0xd8] sm:$0xff]  ;;  %v505_v17 = vld [vmem:[#allocation2 + $0x48] sm:$0xff] }
  0xa1   : > { %13586 = vmatpush3.msra.mxu1 %v878_v59  ;;  %13532 = vmatmul.mubr.f32.gmra.mxu0 %v501_v63  ;;  %v524_v20 = vld [vmem:[#allocation2 + $0xe0] sm:$0xff]  ;;  %v506_v21 = vld [vmem:[#allocation2 + $0x50] sm:$0xff]  ;;  %v525_v22 = vld [vmem:[#allocation2 + $0xe8] sm:$0xff] }
  0xa2   : > { %13559 = vmatmul.mubr.f32.gmra.mxu1 %v519_v62  ;;  %13587 = vmatprep.subr.mxu1 %v877_v0  ;;  %v507_v24 = vld [vmem:[#allocation2 + $0x58] sm:$0xff]  ;;  %v526_v28 = vld [vmem:[#allocation2 + $0xf0] sm:$0xff]  ;;  %v869_v41 = vld [vmem:[#allocation8 + $0x98] sm:$0xff] }
  0xa3   : > { %13588 = vmatpush3.msra.mxu1 %v877_v0  ;;  %13561 = vmatprep.mubr.f32.mxu1 %v520_v2  ;;  %v871_v31 = vld [vmem:[#allocation8 + $0xa8] sm:$0xff]  ;;  %v508_v34 = vld [vmem:[#allocation2 + $0x60] sm:$0xff]  ;;  %v1276_v42 = vld [vmem:[#allocation8 + $0x120] sm:$0xff] }
  0xa4   : > { %13534 = vmatprep.mubr.f32.mxu0 %v502_v4  ;;  %13589 = vmatprep.subr.mxu1 %v876_v8  ;;  %v527_v35 = vld [vmem:[#allocation2 + $0xf8] sm:$0xff]  ;;  %v509_v37 = vld [vmem:[#allocation2 + $0x68] sm:$0xff]  ;;  %v528_v40 = vld [vmem:[#allocation2 + $0x100] sm:$0xff] }
  0xa5   : > { %13590 = vmatpush3.msra.mxu1 %v876_v8  ;;  %13535 = vmatmul.mubr.f32.gmra.mxu0 %v503_v9  ;;  %v1277_v39 = vld [vmem:[#allocation8 + $0x128] sm:$0xff]  ;;  %v510_v43 = vld [vmem:[#allocation2 + $0x70] sm:$0xff]  ;;  %v529_v44 = vld [vmem:[#allocation2 + $0x108] sm:$0xff] }
  0xa6   : > { %13562 = vmatmul.mubr.f32.gmra.mxu1 %v521_v7  ;;  %13591 = vmatprep.subr.mxu1 %v875_v10  ;;  %v12077_v45 = vld [vmem:[%s16376_s30 + $0xf0] sm:$0xff]  ;;  %v511_v46 = vld [vmem:[#allocation2 + $0x78] sm:$0xff]  ;;  %v1275_v47 = vld [vmem:[#allocation8 + $0x118] sm:$0xff] }
  0xa7   : > { %13564 = vmatprep.mubr.f32.mxu1 %v522_v12  ;;  %13592 = vmatpush3.msra.mxu1 %v875_v10  ;;  %458 = vst [vmem:[#allocation2 + $0x121] sm:$0xff] %v12077_v45  ;;  %v868_v48 = vld [vmem:[#allocation8 + $0x90] sm:$0xff]  ;;  %v530_v49 = vld [vmem:[#allocation2 + $0x110] sm:$0xff]  ;;  %v531_v52 = vld [vmem:[#allocation2 + $0x118] sm:$0xff] }
  0xa8   : > { %13537 = vmatprep.mubr.f32.mxu0 %v504_v13  ;;  %13593 = vmatprep.subr.mxu1 %v874_v15  ;;  %v1274_v50 = vld [vmem:[#allocation8 + $0x110] sm:$0xff]  ;;  %v867_v53 = vld [vmem:[#allocation8 + $0x88] sm:$0xff]  ;;  %v513_v54 = vld [vmem:[#allocation2 + $0x88] sm:$0xff] }
  0xa9   : > { %13538 = vmatmul.mubr.f32.gmra.mxu0 %v505_v17  ;;  %13594 = vmatpush3.msra.mxu1 %v874_v15  ;;  %v512_v51 = vld [vmem:[#allocation2 + $0x80] sm:$0xff]  ;;  %v1273_v55 = vld [vmem:[#allocation8 + $0x108] sm:$0xff]  ;;  %v1272_v58 = vld [vmem:[#allocation8 + $0x100] sm:$0xff] }
  0xaa   : > { %13565 = vmatmul.mubr.f32.gmra.mxu1 %v523_v14  ;;  %13595 = vmatprep.subr.mxu1 %v873_v18  ;;  %v829_v57 = vld [vmem:[#allocation2 + $0x1] sm:$0xff]  ;;  %v830_v59 = vld [vmem:[#allocation2 + $0x9] sm:$0xff]  ;;  %v831_v0 = vld [vmem:[#allocation2 + $0x11] sm:$0xff] }
  0xab   : > { %13567 = vmatprep.mubr.f32.mxu1 %v524_v20  ;;  %13596 = vmatpush3.msra.mxu1 %v873_v18  ;;  %v1693_v61 = vld [vmem:[#allocation8 + $0x1f8] sm:$0xff]  ;;  %v832_v1 = vld [vmem:[#allocation2 + $0x19] sm:$0xff]  ;;  %v835_v14 = vld [vmem:[#allocation2 + $0x31] sm:$0xff] }
  0xac   : > { %13540 = vmatprep.mubr.f32.mxu0 %v506_v21  ;;  %13597 = vmatprep.subr.mxu1 %v872_v27  ;;  %v1236_v62 = vld [vmem:[#allocation2 + $0xa] sm:$0xff]  ;;  %v16529_v2 = vld [vmem:[#allocation2 + $0x12] sm:$0xff]  ;;  %v16531_v3 = vld [vmem:[#allocation2 + $0x1a] sm:$0xff] }
  0xad   : > { %13541 = vmatmul.mubr.f32.gmra.mxu0 %v507_v24  ;;  %13598 = vmatpush3.msra.mxu1 %v872_v27  ;;  %v2099_v63 = vld [vmem:[#allocation8 + $0x278] sm:$0xff]  ;;  %v1692_v4 = vld [vmem:[#allocation8 + $0x1f0] sm:$0xff]  ;;  %v1691_v12 = vld [vmem:[#allocation8 + $0x1e8] sm:$0xff] }
  0xae   : > { %13568 = vmatmul.mubr.f32.gmra.mxu1 %v525_v22  ;;  %13682 = vmatpush3.msra.mxu0 %v1279_v23  ;;  %v833_v7 = vld [vmem:[#allocation2 + $0x21] sm:$0xff]  ;;  %v834_v10 = vld [vmem:[#allocation2 + $0x29] sm:$0xff]  ;;  %v2097_v15 = vld [vmem:[#allocation8 + $0x268] sm:$0xff] }
  0xaf   : > { %13570 = vmatprep.mubr.f32.mxu1 %v526_v28  ;;  %13599 = vmatprep.subr.mxu1 %v871_v31  ;;  %v2098_v8 = vld [vmem:[#allocation8 + $0x270] sm:$0xff]  ;;  %v16537_v11 = vld [vmem:[#allocation2 + $0x2a] sm:$0xff]  ;;  %v16541_v16 = vld [vmem:[#allocation2 + $0x32] sm:$0xff] }
  0xb0   : > { %13683 = vmatprep.subr.mxu0 %v1278_v32  ;;  %13543 = vmatprep.mubr.f32.mxu0 %v508_v34  ;;  %v16534_v9 = vld [vmem:[#allocation2 + $0x22] sm:$0xff]  ;;  %v836_v17 = vld [vmem:[#allocation2 + $0x39] sm:$0xff]  ;;  %v1690_v19 = vld [vmem:[#allocation8 + $0x1e0] sm:$0xff] }
  0xb1   : > { %13600 = vmatpush3.msra.mxu1 %v871_v31  ;;  %13684 = vmatpush3.msra.mxu0 %v1278_v32  ;;  %v12078_v13 = vld [vmem:[%s16376_s30 + $0xf8] sm:$0xff]  ;;  %v16544_v18 = vld [vmem:[#allocation2 + $0x3a] sm:$0xff]  ;;  %v2096_v22 = vld [vmem:[#allocation8 + $0x260] sm:$0xff] }
  0xb2   : > { %13571 = vmatmul.mubr.f32.gmra.mxu1 %v527_v35  ;;  %13544 = vmatmul.mubr.f32.gmra.mxu0 %v509_v37  ;;  %459 = vst [vmem:[#allocation2 + $0x129] sm:$0xff] %v12078_v13  ;;  %v837_v20 = vld [vmem:[#allocation2 + $0x41] sm:$0xff]  ;;  %v16550_v23 = vld [vmem:[#allocation2 + $0x4a] sm:$0xff]  ;;  %v16554_v27 = vld [vmem:[#allocation2 + $0x52] sm:$0xff] }
  0xb3   : > { %13601 = vmatprep.subr.mxu1 %v870_v38  ;;  %13685 = vmatprep.subr.mxu0 %v1277_v39  ;;  %v16547_v21 = vld [vmem:[#allocation2 + $0x42] sm:$0xff]  ;;  %v840_v31 = vld [vmem:[#allocation2 + $0x59] sm:$0xff]  ;;  %v855_v13 = vld [vmem:[#allocation2 + $0xd1] sm:$0xff] }
  0xb4   : > { %13602 = vmatpush3.msra.mxu1 %v870_v38  ;;  %13686 = vmatpush3.msra.mxu0 %v1277_v39  ;;  %v1689_v24 = vld [vmem:[#allocation8 + $0x1d8] sm:$0xff]  ;;  %v16558_v32 = vld [vmem:[#allocation2 + $0x5a] sm:$0xff]  ;;  %v843_v39 = vld [vmem:[#allocation2 + $0x71] sm:$0xff] }
  0xb5   : > { %13573 = vmatprep.mubr.f32.mxu1 %v528_v40  ;;  %13603 = vmatprep.subr.mxu1 %v869_v41  ;;  %v2095_v28 = vld [vmem:[#allocation8 + $0x258] sm:$0xff]  ;;  %v1688_v35 = vld [vmem:[#allocation8 + $0x1d0] sm:$0xff]  ;;  %v1687_v40 = vld [vmem:[#allocation8 + $0x1c8] sm:$0xff] }
  0xb6   : > { %13687 = vmatprep.subr.mxu0 %v1276_v42  ;;  %13546 = vmatprep.mubr.f32.mxu0 %v510_v43  ;;  %v841_v34 = vld [vmem:[#allocation2 + $0x61] sm:$0xff]  ;;  %v842_v38 = vld [vmem:[#allocation2 + $0x69] sm:$0xff]  ;;  %v844_v43 = vld [vmem:[#allocation2 + $0x79] sm:$0xff] }
  0xb7   : > { %13574 = vmatmul.mubr.f32.gmra.mxu1 %v529_v44  ;;  %13688 = vmatpush3.msra.mxu0 %v1276_v42  ;;  %v16561_v37 = vld [vmem:[#allocation2 + $0x62] sm:$0xff]  ;;  %v2093_v42 = vld [vmem:[#allocation8 + $0x248] sm:$0xff] }
  0xb8   : > { %13604 = vmatpush3.msra.mxu1 %v869_v41  ;;  %13547 = vmatmul.mubr.f32.gmra.mxu0 %v511_v46  ;;  %v16567_v41 = vld [vmem:[#allocation2 + $0x72] sm:$0xff]  ;;  %v16571_v44 = vld [vmem:[#allocation2 + $0x7a] sm:$0xff]  ;;  %v16573_v46 = vld [vmem:[#allocation2 + $0x82] sm:$0xff] }
  0xb9   : > { %13689 = vmatprep.subr.mxu0 %v1275_v47  ;;  %13605 = vmatprep.subr.mxu1 %v868_v48  ;;  %v845_v45 = vld [vmem:[#allocation2 + $0x81] sm:$0xff] }
  0xba   : > { %13690 = vmatpush3.msra.mxu0 %v1275_v47  ;;  %13576 = vmatprep.mubr.f32.mxu1 %v530_v49  ;;  %v1686_v47 = vld [vmem:[#allocation8 + $0x1c0] sm:$0xff] }
  0xbb   : > { %13606 = vmatpush3.msra.mxu1 %v868_v48  ;;  %13691 = vmatprep.subr.mxu0 %v1274_v50  ;;  %v2092_v48 = vld [vmem:[#allocation8 + $0x240] sm:$0xff] }
  0xbc   : > { %13549 = vmatprep.mubr.f32.mxu0 %v512_v51  ;;  %13577 = vmatmul.mubr.f32.gmra.mxu1 %v531_v52  ;;  %v846_v49 = vld [vmem:[#allocation2 + $0x89] sm:$0xff]  ;;  %v16579_v51 = vld [vmem:[#allocation2 + $0x92] sm:$0xff] }
  0xbd   : > { %13607 = vmatprep.subr.mxu1 %v867_v53  ;;  %13692 = vmatpush3.msra.mxu0 %v1274_v50  ;;  %v16577_v50 = vld [vmem:[#allocation2 + $0x8a] sm:$0xff] }
  0xbe   : > { %13608 = vmatpush3.msra.mxu1 %v867_v53  ;;  %13550 = vmatmul.mubr.f32.gmra.mxu0 %v513_v54  ;;  %v1685_v52 = vld [vmem:[#allocation8 + $0x1b8] sm:$0xff]  ;;  %v16584_v54 = vld [vmem:[#allocation2 + $0x9a] sm:$0xff] }
  0xbf   : > { %13693 = vmatprep.subr.mxu0 %v1273_v55  ;;  %13609 = vmatprep.subr.mxu1 %v866_v56  ;;  %v2091_v53 = vld [vmem:[#allocation8 + $0x238] sm:$0xff] }
  0xc0   : > { %13694 = vmatpush3.msra.mxu0 %v1273_v55  ;;  %13610 = vmatpush3.msra.mxu1 %v866_v56  ;;  %v849_v55 = vld [vmem:[#allocation2 + $0xa1] sm:$0xff] }
  0xc1   : > { %13611 = vmatprep.mubr.f32.mxu1 %v829_v57  ;;  %13695 = vmatprep.subr.mxu0 %v1272_v58  ;;  %v16586_v56 = vld [vmem:[#allocation2 + $0xa2] sm:$0xff] }
  0xc2   : > { %13612 = vmatmul.mubr.f32.vlgmr.msra.gmra.mxu1 %v830_v59  ;;  %13696 = vmatpush3.msra.mxu0 %v1272_v58  ;;  %v1684_v57 = vld [vmem:[#allocation8 + $0x1b0] sm:$0xff]  ;;  %v850_v59 = vld [vmem:[#allocation2 + $0xa9] sm:$0xff] }
  0xc3   : > { %13697 = vmatprep.mubr.f32.mxu0 %v1235_v60  ;;  %13751 = vmatprep.subr.mxu1 %v1693_v61  ;;  %v2090_v58 = vld [vmem:[#allocation8 + $0x230] sm:$0xff]  ;;  %v851_v60 = vld [vmem:[#allocation2 + $0xb1] sm:$0xff] }
  0xc4   : > { %13698 = vmatmul.mubr.f32.vlgmr.msra.gmra.mxu0 %v1236_v62  ;;  %13752 = vmatpush3.msra.mxu1 %v1693_v61  ;;  %v16593_v61 = vld [vmem:[#allocation2 + $0xb2] sm:$0xff] }
  0xc5   : > { %13837 = vmatprep.subr.mxu0 %v2099_v63  ;;  %13614 = vmatprep.mubr.f32.mxu1 %v831_v0  ;;  %v1683_v62 = vld [vmem:[#allocation8 + $0x1a8] sm:$0xff] }
  0xc6   : > { %13838 = vmatpush3.msra.mxu0 %v2099_v63  ;;  %13615 = vmatmul.mubr.f32.gmra.mxu1 %v832_v1  ;;  %v852_v63 = vld [vmem:[#allocation2 + $0xb9] sm:$0xff]  ;;  %v853_v1 = vld [vmem:[#allocation2 + $0xc1] sm:$0xff] }
  0xc7   : > { %13700 = vmatprep.mubr.f32.mxu0 %v16529_v2  ;;  %13753 = vmatprep.subr.mxu1 %v1692_v4  ;;  %v16597_v0 = vld [vmem:[#allocation2 + $0xba] sm:$0xff] }
  0xc8   : > { %13701 = vmatmul.mubr.f32.gmra.mxu0 %v16531_v3  ;;  %13754 = vmatpush3.msra.mxu1 %v1692_v4  ;;  %v16599_v4 = vld [vmem:[#allocation2 + $0xc2] sm:$0xff] }
  0xc9   : > { %13617 = vmatprep.mubr.f32.mxu1 %v833_v7  ;;  %13839 = vmatprep.subr.mxu0 %v2098_v8  ;;  %v1682_v7 = vld [vmem:[#allocation8 + $0x1a0] sm:$0xff] }
  0xca   : > { %13703 = vmatprep.mubr.f32.mxu0 %v16534_v9  ;;  %13618 = vmatmul.mubr.f32.gmra.mxu1 %v834_v10  ;;  %v854_v10 = vld [vmem:[#allocation2 + $0xc9] sm:$0xff] }
  0xcb   : > { %13840 = vmatpush3.msra.mxu0 %v2098_v8  ;;  %13755 = vmatprep.subr.mxu1 %v1691_v12  ;;  %v2088_v8 = vld [vmem:[#allocation8 + $0x220] sm:$0xff] }
  0xcc   : > { %13704 = vmatmul.mubr.f32.gmra.mxu0 %v16537_v11  ;;  %13756 = vmatpush3.msra.mxu1 %v1691_v12  ;;  %v16603_v12 = vld [vmem:[#allocation2 + $0xca] sm:$0xff] }
  0xcd   : > { %13620 = vmatprep.mubr.f32.mxu1 %v835_v14  ;;  %13841 = vmatprep.subr.mxu0 %v2097_v15  ;;  %v16605_v14 = vld [vmem:[#allocation2 + $0xd2] sm:$0xff] }
  0xce   : > { %13706 = vmatprep.mubr.f32.mxu0 %v16541_v16  ;;  %13621 = vmatmul.mubr.f32.gmra.mxu1 %v836_v17  ;;  %v2087_v17 = vld [vmem:[#allocation8 + $0x218] sm:$0xff] }
  0xcf   : > { %13842 = vmatpush3.msra.mxu0 %v2097_v15  ;;  %13757 = vmatprep.subr.mxu1 %v1690_v19  ;;  %v1681_v15 = vld [vmem:[#allocation8 + $0x198] sm:$0xff] }
  0xd0   : > { %13707 = vmatmul.mubr.f32.gmra.mxu0 %v16544_v18  ;;  %13623 = vmatprep.mubr.f32.mxu1 %v837_v20  ;;  %v16611_v20 = vld [vmem:[#allocation2 + $0xe2] sm:$0xff] }
  0xd1   : > { %13758 = vmatpush3.msra.mxu1 %v1690_v19  ;;  %13709 = vmatprep.mubr.f32.mxu0 %v16547_v21  ;;  %v16609_v19 = vld [vmem:[#allocation2 + $0xda] sm:$0xff] }
  0xd2   : > { %13843 = vmatprep.subr.mxu0 %v2096_v22  ;;  %13624 = vmatmul.mubr.f32.gmra.mxu1 %v16498_v26  ;;  %v2094_v26 = vld [vmem:[#allocation8 + $0x250] sm:$0xff] }
  0xd3   : > { %13844 = vmatpush3.msra.mxu0 %v2096_v22  ;;  %13759 = vmatprep.subr.mxu1 %v1689_v24  ;;  %v1680_v22 = vld [vmem:[#allocation8 + $0x190] sm:$0xff] }
  0xd4   : > { %13710 = vmatmul.mubr.f32.gmra.mxu0 %v16550_v23  ;;  %13626 = vmatprep.mubr.f32.mxu1 %v16505_v30  ;;  %v16565_v30 = vld [vmem:[#allocation2 + $0x6a] sm:$0xff] }
  0xd5   : > { %13760 = vmatpush3.msra.mxu1 %v1689_v24  ;;  %13712 = vmatprep.mubr.f32.mxu0 %v16554_v27  ;;  %v2086_v24 = vld [vmem:[#allocation8 + $0x210] sm:$0xff] }
  0xd6   : > { %13845 = vmatprep.subr.mxu0 %v2095_v28  ;;  %13627 = vmatmul.mubr.f32.gmra.mxu1 %v840_v31  ;;  %v16617_v31 = vld [vmem:[#allocation2 + $0xea] sm:$0xff] }
  0xd7   : > { %13846 = vmatpush3.msra.mxu0 %v2095_v28  ;;  %13629 = vmatprep.mubr.f32.mxu1 %v841_v34  ;;  %v858_v28 = vld [vmem:[#allocation2 + $0xe9] sm:$0xff]  ;;  %v859_v34 = vld [vmem:[#allocation2 + $0xf1] sm:$0xff] }
  0xd8   : > { %13713 = vmatmul.mubr.f32.gmra.mxu0 %v16558_v32  ;;  %13761 = vmatprep.subr.mxu1 %v1688_v35 }
  0xd9   : > { %13715 = vmatprep.mubr.f32.mxu0 %v16561_v37  ;;  %13762 = vmatpush3.msra.mxu1 %v1688_v35  ;;  %v16619_v35 = vld [vmem:[#allocation2 + $0xf2] sm:$0xff] }
  0xda   : > { %13847 = vmatprep.subr.mxu0 %v2094_v26  ;;  %13630 = vmatmul.mubr.f32.gmra.mxu1 %v842_v38  ;;  %v860_v38 = vld [vmem:[#allocation2 + $0xf9] sm:$0xff] }
  0xdb   : > { %13848 = vmatpush3.msra.mxu0 %v2094_v26  ;;  %13632 = vmatprep.mubr.f32.mxu1 %v843_v39  ;;  %v1679_v26 = vld [vmem:[#allocation8 + $0x188] sm:$0xff]  ;;  %v861_v39 = vld [vmem:[#allocation2 + $0x101] sm:$0xff] }
  0xdc   : > { %13716 = vmatmul.mubr.f32.gmra.mxu0 %v16565_v30  ;;  %13763 = vmatprep.subr.mxu1 %v1687_v40 }
  0xdd   : > { %13718 = vmatprep.mubr.f32.mxu0 %v16567_v41  ;;  %13764 = vmatpush3.msra.mxu1 %v1687_v40  ;;  %v16625_v40 = vld [vmem:[#allocation2 + $0x102] sm:$0xff] }
  0xde   : > { %13849 = vmatprep.subr.mxu0 %v2093_v42  ;;  %13633 = vmatmul.mubr.f32.gmra.mxu1 %v844_v43  ;;  %v2084_v43 = vld [vmem:[#allocation8 + $0x200] sm:$0xff] }
  0xdf   : > { %13850 = vmatpush3.msra.mxu0 %v2093_v42  ;;  %13635 = vmatprep.mubr.f32.mxu1 %v845_v45  ;;  %v1678_v42 = vld [vmem:[#allocation8 + $0x180] sm:$0xff] }
  0xe0   : > { %13719 = vmatmul.mubr.f32.gmra.mxu0 %v16571_v44  ;;  %13765 = vmatprep.subr.mxu1 %v1686_v47  ;;  %v862_v45 = vld [vmem:[#allocation2 + $0x109] sm:$0xff] }
  0xe1   : > { %13721 = vmatprep.mubr.f32.mxu0 %v16573_v46  ;;  %13766 = vmatpush3.msra.mxu1 %v1686_v47  ;;  %v16629_v47 = vld [vmem:[#allocation2 + $0x10a] sm:$0xff] }
  0xe2   : > { %13851 = vmatprep.subr.mxu0 %v2092_v48  ;;  %13636 = vmatmul.mubr.f32.gmra.mxu1 %v846_v49  ;;  %v16631_v49 = vld [vmem:[#allocation2 + $0x112] sm:$0xff] }
  0xe3   : > { %13852 = vmatpush3.msra.mxu0 %v2092_v48  ;;  %13638 = vmatprep.mubr.f32.mxu1 %v16474_v5  ;;  %v16591_v5 = vld [vmem:[#allocation2 + $0xaa] sm:$0xff] }
  0xe4   : > { %13722 = vmatmul.mubr.f32.gmra.mxu0 %v16577_v50  ;;  %13767 = vmatprep.subr.mxu1 %v1685_v52  ;;  %v863_v48 = vld [vmem:[#allocation2 + $0x111] sm:$0xff] }
  0xe5   : > { %13724 = vmatprep.mubr.f32.mxu0 %v16579_v51  ;;  %13768 = vmatpush3.msra.mxu1 %v1685_v52  ;;  %v2505_v52 = vld [vmem:[#allocation8 + $0x2f8] sm:$0xff] }
  0xe6   : > { %13853 = vmatprep.subr.mxu0 %v2091_v53  ;;  %13639 = vmatmul.mubr.f32.gmra.mxu1 %v16477_v6  ;;  %v2089_v6 = vld [vmem:[#allocation8 + $0x228] sm:$0xff] }
  0xe7   : > { %13854 = vmatpush3.msra.mxu0 %v2091_v53  ;;  %13641 = vmatprep.mubr.f32.mxu1 %v849_v55  ;;  %v2911_v53 = vld [vmem:[#allocation8 + $0x378] sm:$0xff]  ;;  %v864_v55 = vld [vmem:[#allocation2 + $0x119] sm:$0xff] }
  0xe8   : > { %13725 = vmatmul.mubr.f32.gmra.mxu0 %v16584_v54  ;;  %13769 = vmatprep.subr.mxu1 %v1684_v57 }
  0xe9   : > { %13727 = vmatprep.mubr.f32.mxu0 %v16586_v56  ;;  %13770 = vmatpush3.msra.mxu1 %v1684_v57  ;;  %v16635_v57 = vld [vmem:[#allocation2 + $0x11a] sm:$0xff] }
  0xea   : > { %13855 = vmatprep.subr.mxu0 %v2090_v58  ;;  %13642 = vmatmul.mubr.f32.gmra.mxu1 %v850_v59  ;;  %v2049_v59 = vld [vmem:[#allocation2 + $0x23] sm:$0xff] }
  0xeb   : > { %13856 = vmatpush3.msra.mxu0 %v2090_v58  ;;  %13644 = vmatprep.mubr.f32.mxu1 %v851_v60  ;;  %v15931_v58 = vld [vmem:[#allocation2 + $0x13] sm:$0xff]  ;;  %v2504_v60 = vld [vmem:[#allocation8 + $0x2f0] sm:$0xff] }
  0xec   : > { %13728 = vmatmul.mubr.f32.gmra.mxu0 %v16591_v5  ;;  %13771 = vmatprep.subr.mxu1 %v1683_v62 }
  0xed   : > { %13730 = vmatprep.mubr.f32.mxu0 %v16593_v61  ;;  %13772 = vmatpush3.msra.mxu1 %v1683_v62  ;;  %v15932_v62 = vld [vmem:[#allocation2 + $0x1b] sm:$0xff] }
  0xee   : > { %13857 = vmatprep.subr.mxu0 %v2089_v6  ;;  %13645 = vmatmul.mubr.f32.gmra.mxu1 %v852_v63  ;;  %v2050_v63 = vld [vmem:[#allocation2 + $0x2b] sm:$0xff] }
  0xef   : > { %13858 = vmatpush3.msra.mxu0 %v2089_v6  ;;  %13647 = vmatprep.mubr.f32.mxu1 %v853_v1  ;;  %v2910_v6 = vld [vmem:[#allocation8 + $0x370] sm:$0xff]  ;;  %v2051_v1 = vld [vmem:[#allocation2 + $0x33] sm:$0xff] }
  0xf0   : > { %13731 = vmatmul.mubr.f32.gmra.mxu0 %v16597_v0  ;;  %13773 = vmatprep.subr.mxu1 %v1682_v7 }
  0xf1   : > { %13733 = vmatprep.mubr.f32.mxu0 %v16599_v4  ;;  %13774 = vmatpush3.msra.mxu1 %v1682_v7  ;;  %v2052_v7 = vld [vmem:[#allocation2 + $0x3b] sm:$0xff] }
  0xf2   : > { %13859 = vmatprep.subr.mxu0 %v2088_v8  ;;  %13648 = vmatmul.mubr.f32.gmra.mxu1 %v854_v10  ;;  %v2908_v10 = vld [vmem:[#allocation8 + $0x360] sm:$0xff] }
  0xf3   : > { %13860 = vmatpush3.msra.mxu0 %v2088_v8  ;;  %13650 = vmatprep.mubr.f32.mxu1 %v855_v13  ;;  %v2053_v8 = vld [vmem:[#allocation2 + $0x43] sm:$0xff]  ;;  %v2055_v13 = vld [vmem:[#allocation2 + $0x53] sm:$0xff] }
  0xf4   : > { %13734 = vmatmul.mubr.f32.gmra.mxu0 %v16603_v12  ;;  %13775 = vmatprep.subr.mxu1 %v1681_v15 }
  0xf5   : > { %13736 = vmatprep.mubr.f32.mxu0 %v16605_v14  ;;  %13776 = vmatpush3.msra.mxu1 %v1681_v15  ;;  %v2906_v15 = vld [vmem:[#allocation8 + $0x350] sm:$0xff] }
  0xf6   : > { %13861 = vmatprep.subr.mxu0 %v2087_v17  ;;  %13651 = vmatmul.mubr.f32.gmra.mxu1 %v16494_v25  ;;  %v2085_v25 = vld [vmem:[#allocation8 + $0x208] sm:$0xff] }
  0xf7   : > { %13862 = vmatpush3.msra.mxu0 %v2087_v17  ;;  %13653 = vmatprep.mubr.f32.mxu1 %v16502_v29  ;;  %v16623_v29 = vld [vmem:[#allocation2 + $0xfa] sm:$0xff] }
  0xf8   : > { %13737 = vmatmul.mubr.f32.gmra.mxu0 %v16609_v19  ;;  %13777 = vmatprep.subr.mxu1 %v1680_v22  ;;  %v2499_v17 = vld [vmem:[#allocation8 + $0x2c8] sm:$0xff] }
  0xf9   : > { %13739 = vmatprep.mubr.f32.mxu0 %v16611_v20  ;;  %13778 = vmatpush3.msra.mxu1 %v1680_v22  ;;  %v2062_v22 = vld [vmem:[#allocation2 + $0x8b] sm:$0xff] }
  0xfa   : > { %13863 = vmatprep.subr.mxu0 %v2086_v24  ;;  %13654 = vmatmul.mubr.f32.gmra.mxu1 %v858_v28  ;;  %v2064_v28 = vld [vmem:[#allocation2 + $0x9b] sm:$0xff] }
  0xfb   : > { %13864 = vmatpush3.msra.mxu0 %v2086_v24  ;;  %13656 = vmatprep.mubr.f32.mxu1 %v859_v34  ;;  %v2497_v24 = vld [vmem:[#allocation8 + $0x2b8] sm:$0xff]  ;;  %v2496_v34 = vld [vmem:[#allocation8 + $0x2b0] sm:$0xff] }
  0xfc   : > { %13740 = vmatmul.mubr.f32.gmra.mxu0 %v16617_v31  ;;  %13779 = vmatprep.subr.mxu1 %v1679_v26 }
  0xfd   : > { %13742 = vmatprep.mubr.f32.mxu0 %v16619_v35  ;;  %13780 = vmatpush3.msra.mxu1 %v1679_v26  ;;  %v2066_v26 = vld [vmem:[#allocation2 + $0xab] sm:$0xff] }
  0xfe   : > { %13865 = vmatprep.subr.mxu0 %v2085_v25  ;;  %13657 = vmatmul.mubr.f32.gmra.mxu1 %v860_v38  ;;  %v2068_v38 = vld [vmem:[#allocation2 + $0xbb] sm:$0xff] }
  0xff   : > { %13866 = vmatpush3.msra.mxu0 %v2085_v25  ;;  %13659 = vmatprep.mubr.f32.mxu1 %v861_v39  ;;  %v2495_v25 = vld [vmem:[#allocation8 + $0x2a8] sm:$0xff]  ;;  %v2069_v39 = vld [vmem:[#allocation2 + $0xc3] sm:$0xff] }
 0x100   : > { %13743 = vmatmul.mubr.f32.gmra.mxu0 %v16623_v29  ;;  %13781 = vmatprep.subr.mxu1 %v1678_v42 }
 0x101   : > { %13745 = vmatprep.mubr.f32.mxu0 %v16625_v40  ;;  %13782 = vmatpush3.msra.mxu1 %v1678_v42  ;;  %v2070_v42 = vld [vmem:[#allocation2 + $0xcb] sm:$0xff] }
 0x102   : > { %13867 = vmatprep.subr.mxu0 %v2084_v43  ;;  %13660 = vmatmul.mubr.f32.gmra.mxu1 %v862_v45  ;;  %v2072_v45 = vld [vmem:[#allocation2 + $0xdb] sm:$0xff] }
 0x103   : > { %13868 = vmatpush3.msra.mxu0 %v2084_v43  ;;  %13662 = vmatprep.mubr.f32.mxu1 %v863_v48  ;;  %v2071_v43 = vld [vmem:[#allocation2 + $0xd3] sm:$0xff]  ;;  %v2073_v48 = vld [vmem:[#allocation2 + $0xe3] sm:$0xff] }
 0x104   : > { %13746 = vmatmul.mubr.f32.gmra.mxu0 %v16629_v47  ;;  %13923 = vmatprep.subr.mxu1 %v2505_v52 }
 0x105   : > { %13748 = vmatprep.mubr.f32.mxu0 %v16631_v49  ;;  %14009 = vmatprep.subr.mxu0 %v2911_v53 }
 0x106   : > { %13663 = vmatmul.mubr.f32.gmra.mxu1 %v864_v55  ;;  %v2076_v55 = vld [vmem:[#allocation2 + $0xfb] sm:$0xff] }
 0x107   : > { %13783 = vmatprep.mubr.f32.mxu1 %v16529_v2  ;;  %v2503_v2 = vld [vmem:[#allocation8 + $0x2e8] sm:$0xff] }
 0x108   : > { %13749 = vmatmul.mubr.f32.gmra.mxu0 %v16635_v57 }
 0x109   : > { %13869 = vmatprep.mubr.f32.mxu0 %v15931_v58  ;;  %v2077_v58 = vld [vmem:[#allocation2 + $0x103] sm:$0xff] }
 0x10a   : > { %13784 = vmatmul.mubr.f32.vlgmr.msra.gmra.mxu1 %v16531_v3  ;;  %v2909_v3 = vld [vmem:[#allocation8 + $0x368] sm:$0xff] }
 0x10b   : > { %13924 = vmatpush3.msra.mxu1 %v2505_v52  ;;  %13786 = vmatprep.mubr.f32.mxu1 %v16534_v9  ;;  %v2502_v9 = vld [vmem:[#allocation8 + $0x2e0] sm:$0xff] }
 0x10c   : > { %13870 = vmatmul.mubr.f32.vlgmr.msra.gmra.mxu0 %v15932_v62  ;;  %13925 = vmatprep.subr.mxu1 %v2504_v60  ;;  %v2074_v52 = vld [vmem:[#allocation2 + $0xeb] sm:$0xff]  ;;  %v2080_v62 = vld [vmem:[#allocation2 + $0x11b] sm:$0xff] }
 0x10d   : > { %14010 = vmatpush3.msra.mxu0 %v2911_v53  ;;  %13872 = vmatprep.mubr.f32.mxu0 %v2049_v59  ;;  %v2075_v53 = vld [vmem:[#allocation2 + $0xf3] sm:$0xff]  ;;  %v2078_v59 = vld [vmem:[#allocation2 + $0x10b] sm:$0xff] }
 0x10e   : > { %13787 = vmatmul.mubr.f32.gmra.mxu1 %v16537_v11  ;;  %14011 = vmatprep.subr.mxu0 %v2910_v6  ;;  %v2054_v11 = vld [vmem:[#allocation2 + $0x4b] sm:$0xff] }
 0x10f   : > { %13926 = vmatpush3.msra.mxu1 %v2504_v60  ;;  %13789 = vmatprep.mubr.f32.mxu1 %v16541_v16  ;;  %v2501_v16 = vld [vmem:[#allocation8 + $0x2d8] sm:$0xff]  ;;  %v2079_v60 = vld [vmem:[#allocation2 + $0x113] sm:$0xff] }
 0x110   : > { %13873 = vmatmul.mubr.f32.gmra.mxu0 %v2050_v63  ;;  %13927 = vmatprep.subr.mxu1 %v2503_v2  ;;  %v1676_v63 = vld [vmem:[#allocation2 + $0x12a] sm:$0xff] }
 0x111   : > { %13875 = vmatprep.mubr.f32.mxu0 %v2051_v1  ;;  %14012 = vmatpush3.msra.mxu0 %v2910_v6  ;;  %v1675_v6 = vld [vmem:[#allocation2 + $0x122] sm:$0xff]  ;;  %v2453_v1 = vld [vmem:[#allocation2 + $0x14] sm:$0xff] }
 0x112   : > { %13790 = vmatmul.mubr.f32.gmra.mxu1 %v16544_v18  ;;  %14013 = vmatprep.subr.mxu0 %v2909_v3  ;;  %v2907_v18 = vld [vmem:[#allocation8 + $0x358] sm:$0xff] }
 0x113   : > { %13928 = vmatpush3.msra.mxu1 %v2503_v2  ;;  %13792 = vmatprep.mubr.f32.mxu1 %v16547_v21  ;;  %v2500_v21 = vld [vmem:[#allocation8 + $0x2d0] sm:$0xff] }
 0x114   : > { %13876 = vmatmul.mubr.f32.gmra.mxu0 %v2052_v7  ;;  %13929 = vmatprep.subr.mxu1 %v2502_v9  ;;  %v2859_v2 = vld [vmem:[#allocation2 + $0x24] sm:$0xff] }
 0x115   : > { %13878 = vmatprep.mubr.f32.mxu0 %v2053_v8  ;;  %14014 = vmatpush3.msra.mxu0 %v2909_v3  ;;  %v2860_v3 = vld [vmem:[#allocation2 + $0x2c] sm:$0xff] }
 0x116   : > { %13793 = vmatmul.mubr.f32.gmra.mxu1 %v16550_v23  ;;  %14015 = vmatprep.subr.mxu0 %v2908_v10  ;;  %v2058_v23 = vld [vmem:[#allocation2 + $0x6b] sm:$0xff] }
 0x117   : > { %13795 = vmatprep.mubr.f32.mxu1 %v16554_v27  ;;  %13930 = vmatpush3.msra.mxu1 %v2502_v9  ;;  %v2059_v27 = vld [vmem:[#allocation2 + $0x73] sm:$0xff]  ;;  %v3316_v9 = vld [vmem:[#allocation8 + $0x3f0] sm:$0xff] }
 0x118   : > { %13879 = vmatmul.mubr.f32.gmra.mxu0 %v2054_v11  ;;  %13931 = vmatprep.subr.mxu1 %v2501_v16  ;;  %v3722_v11 = vld [vmem:[#allocation8 + $0x470] sm:$0xff] }
 0x119   : > { %13881 = vmatprep.mubr.f32.mxu0 %v2055_v13  ;;  %14016 = vmatpush3.msra.mxu0 %v2908_v10 }
 0x11a   : > { %13796 = vmatmul.mubr.f32.gmra.mxu1 %v16558_v32  ;;  %14017 = vmatprep.subr.mxu0 %v2907_v18  ;;  %v2905_v32 = vld [vmem:[#allocation8 + $0x348] sm:$0xff] }
 0x11b   : > { %13798 = vmatprep.mubr.f32.mxu1 %v16561_v37  ;;  %13932 = vmatpush3.msra.mxu1 %v2501_v16  ;;  %v2061_v37 = vld [vmem:[#allocation2 + $0x83] sm:$0xff] }
 0x11c   : > { %13882 = vmatmul.mubr.f32.gmra.mxu0 %v16511_v33  ;;  %13933 = vmatprep.subr.mxu1 %v2500_v21  ;;  %v2060_v33 = vld [vmem:[#allocation2 + $0x7b] sm:$0xff] }
 0x11d   : > { %13884 = vmatprep.mubr.f32.mxu0 %v16516_v36  ;;  %14018 = vmatpush3.msra.mxu0 %v2907_v18  ;;  %v2498_v36 = vld [vmem:[#allocation8 + $0x2c0] sm:$0xff]  ;;  %v2862_v16 = vld [vmem:[#allocation2 + $0x3c] sm:$0xff]  ;;  %v2863_v18 = vld [vmem:[#allocation2 + $0x44] sm:$0xff] }
 0x11e   : > { %13799 = vmatmul.mubr.f32.gmra.mxu1 %v16565_v30  ;;  %14019 = vmatprep.subr.mxu0 %v2906_v15  ;;  %v2904_v30 = vld [vmem:[#allocation8 + $0x340] sm:$0xff] }
 0x11f   : > { %13801 = vmatprep.mubr.f32.mxu1 %v16567_v41  ;;  %13934 = vmatpush3.msra.mxu1 %v2500_v21  ;;  %v2063_v41 = vld [vmem:[#allocation2 + $0x93] sm:$0xff] }
 0x120   : > { %13885 = vmatmul.mubr.f32.gmra.mxu0 %v2058_v23  ;;  %13935 = vmatprep.subr.mxu1 %v2499_v17  ;;  %v3315_v23 = vld [vmem:[#allocation8 + $0x3e8] sm:$0xff] }
 0x121   : > { %13887 = vmatprep.mubr.f32.mxu0 %v2059_v27  ;;  %14020 = vmatpush3.msra.mxu0 %v2906_v15  ;;  %v3721_v27 = vld [vmem:[#allocation8 + $0x468] sm:$0xff] }
 0x122   : > { %13802 = vmatmul.mubr.f32.gmra.mxu1 %v16571_v44  ;;  %14021 = vmatprep.subr.mxu0 %v2905_v32  ;;  %v2903_v44 = vld [vmem:[#allocation8 + $0x338] sm:$0xff] }
 0x123   : > { %13804 = vmatprep.mubr.f32.mxu1 %v16573_v46  ;;  %13936 = vmatpush3.msra.mxu1 %v2499_v17  ;;  %v2065_v46 = vld [vmem:[#allocation2 + $0xa3] sm:$0xff] }
 0x124   : > { %13888 = vmatmul.mubr.f32.gmra.mxu0 %v2060_v33  ;;  %13937 = vmatprep.subr.mxu1 %v2498_v36 }
 0x125   : > { %13890 = vmatprep.mubr.f32.mxu0 %v2061_v37  ;;  %14022 = vmatpush3.msra.mxu0 %v2905_v32  ;;  %v2864_v32 = vld [vmem:[#allocation2 + $0x4c] sm:$0xff]  ;;  %v2865_v37 = vld [vmem:[#allocation2 + $0x54] sm:$0xff] }
 0x126   : > { %13805 = vmatmul.mubr.f32.gmra.mxu1 %v16577_v50  ;;  %14023 = vmatprep.subr.mxu0 %v2904_v30  ;;  %v2902_v50 = vld [vmem:[#allocation8 + $0x330] sm:$0xff] }
 0x127   : > { %13807 = vmatprep.mubr.f32.mxu1 %v16579_v51  ;;  %13938 = vmatpush3.msra.mxu1 %v2498_v36  ;;  %v2067_v51 = vld [vmem:[#allocation2 + $0xb3] sm:$0xff] }
 0x128   : > { %13891 = vmatmul.mubr.f32.gmra.mxu0 %v2062_v22  ;;  %13939 = vmatprep.subr.mxu1 %v2497_v24  ;;  %v3314_v36 = vld [vmem:[#allocation8 + $0x3e0] sm:$0xff] }
 0x129   : > { %13893 = vmatprep.mubr.f32.mxu0 %v2063_v41  ;;  %14024 = vmatpush3.msra.mxu0 %v2904_v30  ;;  %v3720_v22 = vld [vmem:[#allocation8 + $0x460] sm:$0xff]  ;;  %v2866_v41 = vld [vmem:[#allocation2 + $0x5c] sm:$0xff] }
 0x12a   : > { %13808 = vmatmul.mubr.f32.gmra.mxu1 %v16584_v54  ;;  %14025 = vmatprep.subr.mxu0 %v2903_v44  ;;  %v2901_v54 = vld [vmem:[#allocation8 + $0x328] sm:$0xff] }
 0x12b   : > { %13810 = vmatprep.mubr.f32.mxu1 %v16586_v56  ;;  %13940 = vmatpush3.msra.mxu1 %v2497_v24  ;;  %v2494_v56 = vld [vmem:[#allocation8 + $0x2a0] sm:$0xff] }
 0x12c   : > { %13894 = vmatmul.mubr.f32.gmra.mxu0 %v2064_v28  ;;  %13941 = vmatprep.subr.mxu1 %v2496_v34  ;;  %v2867_v28 = vld [vmem:[#allocation2 + $0x64] sm:$0xff] }
 0x12d   : > { %13896 = vmatprep.mubr.f32.mxu0 %v2065_v46  ;;  %14026 = vmatpush3.msra.mxu0 %v2903_v44  ;;  %v3313_v46 = vld [vmem:[#allocation8 + $0x3d8] sm:$0xff] }
 0x12e   : > { %13811 = vmatmul.mubr.f32.gmra.mxu1 %v16591_v5  ;;  %14027 = vmatprep.subr.mxu0 %v2902_v50  ;;  %v2900_v5 = vld [vmem:[#allocation8 + $0x320] sm:$0xff] }
 0x12f   : > { %13813 = vmatprep.mubr.f32.mxu1 %v16593_v61  ;;  %13942 = vmatpush3.msra.mxu1 %v2496_v34  ;;  %v2493_v61 = vld [vmem:[#allocation8 + $0x298] sm:$0xff] }
 0x130   : > { %13897 = vmatmul.mubr.f32.gmra.mxu0 %v2066_v26  ;;  %13943 = vmatprep.subr.mxu1 %v2495_v25  ;;  %v2868_v26 = vld [vmem:[#allocation2 + $0x6c] sm:$0xff] }
 0x131   : > { %13899 = vmatprep.mubr.f32.mxu0 %v2067_v51  ;;  %14028 = vmatpush3.msra.mxu0 %v2902_v50  ;;  %v3719_v50 = vld [vmem:[#allocation8 + $0x458] sm:$0xff] }
 0x132   : > { %13814 = vmatmul.mubr.f32.gmra.mxu1 %v16597_v0  ;;  %14029 = vmatprep.subr.mxu0 %v2901_v54  ;;  %v2899_v0 = vld [vmem:[#allocation8 + $0x318] sm:$0xff] }
 0x133   : > { %13816 = vmatprep.mubr.f32.mxu1 %v16599_v4  ;;  %13944 = vmatpush3.msra.mxu1 %v2495_v25  ;;  %v2492_v4 = vld [vmem:[#allocation8 + $0x290] sm:$0xff]  ;;  %v2869_v25 = vld [vmem:[#allocation2 + $0x74] sm:$0xff] }
 0x134   : > { %13900 = vmatmul.mubr.f32.gmra.mxu0 %v2068_v38  ;;  %13945 = vmatprep.subr.mxu1 %v2494_v56 }
 0x135   : > { %13902 = vmatprep.mubr.f32.mxu0 %v2069_v39  ;;  %14030 = vmatpush3.msra.mxu0 %v2901_v54  ;;  %v3312_v54 = vld [vmem:[#allocation8 + $0x3d0] sm:$0xff] }
 0x136   : > { %13817 = vmatmul.mubr.f32.gmra.mxu1 %v16603_v12  ;;  %14031 = vmatprep.subr.mxu0 %v2900_v5  ;;  %v2898_v12 = vld [vmem:[#allocation8 + $0x310] sm:$0xff] }
 0x137   : > { %13819 = vmatprep.mubr.f32.mxu1 %v16605_v14  ;;  %13946 = vmatpush3.msra.mxu1 %v2494_v56  ;;  %v2491_v14 = vld [vmem:[#allocation8 + $0x288] sm:$0xff]  ;;  %v3718_v56 = vld [vmem:[#allocation8 + $0x450] sm:$0xff] }
 0x138   : > { %13903 = vmatmul.mubr.f32.gmra.mxu0 %v2070_v42  ;;  %13947 = vmatprep.subr.mxu1 %v2493_v61 }
 0x139   : > { %13905 = vmatprep.mubr.f32.mxu0 %v2071_v43  ;;  %14032 = vmatpush3.msra.mxu0 %v2900_v5  ;;  %v2870_v5 = vld [vmem:[#allocation2 + $0x7c] sm:$0xff]  ;;  %v2871_v43 = vld [vmem:[#allocation2 + $0x84] sm:$0xff] }
 0x13a   : > { %13820 = vmatmul.mubr.f32.gmra.mxu1 %v16609_v19  ;;  %14033 = vmatprep.subr.mxu0 %v2899_v0  ;;  %v2897_v19 = vld [vmem:[#allocation8 + $0x308] sm:$0xff] }
 0x13b   : > { %13822 = vmatprep.mubr.f32.mxu1 %v16611_v20  ;;  %13948 = vmatpush3.msra.mxu1 %v2493_v61  ;;  %v2490_v20 = vld [vmem:[#allocation8 + $0x280] sm:$0xff] }
 0x13c   : > { %13906 = vmatmul.mubr.f32.gmra.mxu0 %v2072_v45  ;;  %13949 = vmatprep.subr.mxu1 %v2492_v4 }
 0x13d   : > { %13908 = vmatprep.mubr.f32.mxu0 %v2073_v48  ;;  %14034 = vmatpush3.msra.mxu0 %v2899_v0  ;;  %v3311_v0 = vld [vmem:[#allocation8 + $0x3c8] sm:$0xff] }
 0x13e   : > { %13823 = vmatmul.mubr.f32.gmra.mxu1 %v16617_v31  ;;  %14035 = vmatprep.subr.mxu0 %v2898_v12  ;;  %v2896_v31 = vld [vmem:[#allocation8 + $0x300] sm:$0xff]  ;;  %v3717_v48 = vld [vmem:[#allocation8 + $0x448] sm:$0xff] }
 0x13f   : > { %13825 = vmatprep.mubr.f32.mxu1 %v16619_v35  ;;  %13950 = vmatpush3.msra.mxu1 %v2492_v4  ;;  %v3317_v35 = vld [vmem:[#allocation8 + $0x3f8] sm:$0xff] }
 0x140   : > { %13909 = vmatmul.mubr.f32.gmra.mxu0 %v2074_v52  ;;  %13951 = vmatprep.subr.mxu1 %v2491_v14  ;;  %v2873_v52 = vld [vmem:[#allocation2 + $0x94] sm:$0xff] }
 0x141   : > { %13911 = vmatprep.mubr.f32.mxu0 %v2075_v53  ;;  %14036 = vmatpush3.msra.mxu0 %v2898_v12  ;;  %v2872_v12 = vld [vmem:[#allocation2 + $0x8c] sm:$0xff] }
 0x142   : > { %13826 = vmatmul.mubr.f32.gmra.mxu1 %v16623_v29  ;;  %14037 = vmatprep.subr.mxu0 %v2897_v19  ;;  %v3723_v29 = vld [vmem:[#allocation8 + $0x478] sm:$0xff] }
 0x143   : > { %13828 = vmatprep.mubr.f32.mxu1 %v16625_v40  ;;  %13952 = vmatpush3.msra.mxu1 %v2491_v14  ;;  %v2081_v40 = vld [vmem:[#allocation2 + $0x123] sm:$0xff]  ;;  %v3310_v14 = vld [vmem:[#allocation8 + $0x3c0] sm:$0xff] }
 0x144   : > { %13912 = vmatmul.mubr.f32.gmra.mxu0 %v2076_v55  ;;  %13953 = vmatprep.subr.mxu1 %v2490_v20  ;;  %v3716_v55 = vld [vmem:[#allocation8 + $0x440] sm:$0xff] }
 0x145   : > { %13914 = vmatprep.mubr.f32.mxu0 %v2077_v58  ;;  %14038 = vmatpush3.msra.mxu0 %v2897_v19  ;;  %v2874_v58 = vld [vmem:[#allocation2 + $0x9c] sm:$0xff] }
 0x146   : > { %13829 = vmatmul.mubr.f32.gmra.mxu1 %v16629_v47  ;;  %14039 = vmatprep.subr.mxu0 %v2896_v31  ;;  %v2082_v47 = vld [vmem:[#allocation2 + $0x12b] sm:$0xff] }
 0x147   : > { %13831 = vmatprep.mubr.f32.mxu1 %v16631_v49  ;;  %13954 = vmatpush3.msra.mxu1 %v2490_v20  ;;  %v2454_v49 = vld [vmem:[#allocation2 + $0x1c] sm:$0xff] }
 0x148   : > { %13915 = vmatmul.mubr.f32.gmra.mxu0 %v2078_v59  ;;  %14095 = vmatprep.subr.mxu1 %v3317_v35 }
 0x149   : > { %13917 = vmatprep.mubr.f32.mxu0 %v2079_v60  ;;  %14040 = vmatpush3.msra.mxu0 %v2896_v31  ;;  %v16676_v8 = vpop.f32.mrf.mxu0  ;;  %v2875_v31 = vld [vmem:[#allocation2 + $0xa4] sm:$0xff] }
 0x14a   : > { %13832 = vmatmul.mubr.f32.gmra.mxu1 %v16635_v57  ;;  %14181 = vmatprep.subr.mxu0 %v3723_v29  ;;  %v2861_v57 = vld [vmem:[#allocation2 + $0x34] sm:$0xff] }
 0x14b   : > { %13834 = vmatprep.mubr.f32.mxu1 %v1675_v6  ;;  %v16680_v13 = vpop.f32.mrf.mxu0 }
 0x14c   : > { %13918 = vmatmul.mubr.f32.gmra.mxu0 %v2080_v62  ;;  %v2876_v62 = vld [vmem:[#allocation2 + $0xac] sm:$0xff] }
 0x14d   : > { %13920 = vmatprep.mubr.f32.mxu0 %v2081_v40  ;;  %v2877_v40 = vld [vmem:[#allocation2 + $0xb4] sm:$0xff] }
 0x14e   : > { %13835 = vmatmul.mubr.f32.gmra.mxu1 %v1676_v63 }
 0x14f   : > { %13955 = vmatprep.mubr.f32.mxu1 %v2453_v1  ;;  %v3308_v1 = vld [vmem:[#allocation8 + $0x3b0] sm:$0xff] }
 0x150   : > { %13921 = vmatmul.mubr.f32.gmra.mxu0 %v2082_v47 }
 0x151   : > { %14041 = vmatprep.mubr.f32.mxu0 %v2859_v2 }
 0x152   : > { %13956 = vmatmul.mubr.f32.vlgmr.msra.gmra.mxu1 %v2454_v49  ;;  %v2878_v49 = vld [vmem:[#allocation2 + $0xbc] sm:$0xff] }
 0x153   : > { %14096 = vmatpush3.msra.mxu1 %v3317_v35  ;;  %13958 = vmatprep.mubr.f32.mxu1 %v2859_v2  ;;  %v3309_v35 = vld [vmem:[#allocation8 + $0x3b8] sm:$0xff]  ;;  %v3714_v2 = vld [vmem:[#allocation8 + $0x430] sm:$0xff] }
 0x154   : > { %14042 = vmatmul.mubr.f32.vlgmr.msra.gmra.mxu0 %v2860_v3  ;;  %14097 = vmatprep.subr.mxu1 %v3316_v9 }
 0x155   : > { %14182 = vmatpush3.msra.mxu0 %v3723_v29  ;;  %14044 = vmatprep.mubr.f32.mxu0 %v2861_v57  ;;  %v3715_v29 = vld [vmem:[#allocation8 + $0x438] sm:$0xff] }
 0x156   : > { %13959 = vmatmul.mubr.f32.gmra.mxu1 %v2860_v3  ;;  %14183 = vmatprep.subr.mxu0 %v3722_v11 }
 0x157   : > { %14098 = vmatpush3.msra.mxu1 %v3316_v9  ;;  %13961 = vmatprep.mubr.f32.mxu1 %v2861_v57  ;;  %v2879_v57 = vld [vmem:[#allocation2 + $0xc4] sm:$0xff] }
 0x158   : > { %14045 = vmatmul.mubr.f32.gmra.mxu0 %v2862_v16  ;;  %14099 = vmatprep.subr.mxu1 %v3315_v23 }
 0x159   : > { %14047 = vmatprep.mubr.f32.mxu0 %v2863_v18  ;;  %14184 = vmatpush3.msra.mxu0 %v3722_v11  ;;  %v3307_v11 = vld [vmem:[#allocation8 + $0x3a8] sm:$0xff] }
 0x15a   : > { %v16674_v7 = vpop.f32.mrf.mxu1  ;;  %13962 = vmatmul.mubr.f32.gmra.mxu1 %v2862_v16  ;;  %14185 = vmatprep.subr.mxu0 %v3721_v27  ;;  %v3713_v16 = vld [vmem:[#allocation8 + $0x428] sm:$0xff] }
 0x15b   : > { %14100 = vmatpush3.msra.mxu1 %v3315_v23  ;;  %13964 = vmatprep.mubr.f32.mxu1 %v2863_v18  ;;  %v2880_v23 = vld [vmem:[#allocation2 + $0xcc] sm:$0xff] }
 0x15c   : > { %v16678_v10 = vpop.f32.mrf.mxu1  ;;  %14048 = vmatmul.mubr.f32.gmra.mxu0 %v2864_v32  ;;  %14101 = vmatprep.subr.mxu1 %v3314_v36 }
 0x15d   : > { %v16684_v15 = vpop.f32.mrf.mxu0  ;;  %14050 = vmatprep.mubr.f32.mxu0 %v2865_v37  ;;  %14186 = vmatpush3.msra.mxu0 %v3721_v27 }
 0x15e   : > { %v16682_v21 = vpop.f32.mrf.mxu1  ;;  %13965 = vmatmul.mubr.f32.gmra.mxu1 %v2864_v32  ;;  %14187 = vmatprep.subr.mxu0 %v3720_v22  ;;  %v2881_v32 = vld [vmem:[#allocation2 + $0xd4] sm:$0xff] }
 0x15f   : > { %v16688_v33 = vpop.f32.mrf.mxu0  ;;  %13967 = vmatprep.mubr.f32.mxu1 %v2865_v37  ;;  %14102 = vmatpush3.msra.mxu1 %v3314_v36  ;;  %v3306_v36 = vld [vmem:[#allocation8 + $0x3a0] sm:$0xff] }
 0x160   : > { %v16686_v17 = vpop.f32.mrf.mxu1  ;;  %14051 = vmatmul.mubr.f32.gmra.mxu0 %v2866_v41  ;;  %14103 = vmatprep.subr.mxu1 %v3313_v46 }
 0x161   : > { %v16692_v24 = vpop.f32.mrf.mxu0  ;;  %14053 = vmatprep.mubr.f32.mxu0 %v2867_v28  ;;  %14188 = vmatpush3.msra.mxu0 %v3720_v22  ;;  %v3712_v22 = vld [vmem:[#allocation8 + $0x420] sm:$0xff] }
 0x162   : > { %v16690_v30 = vpop.f32.mrf.mxu1  ;;  %13968 = vmatmul.mubr.f32.gmra.mxu1 %v2866_v41  ;;  %14189 = vmatprep.subr.mxu0 %v3719_v50 }
 0x163   : > { %v16696_v34 = vpop.f32.mrf.mxu0  ;;  %13970 = vmatprep.mubr.f32.mxu1 %v2867_v28  ;;  %14104 = vmatpush3.msra.mxu1 %v3313_v46  ;;  %v2882_v28 = vld [vmem:[#allocation2 + $0xdc] sm:$0xff]  ;;  %v2883_v46 = vld [vmem:[#allocation2 + $0xe4] sm:$0xff] }
 0x164   : > { %v16694_v44 = vpop.f32.mrf.mxu1  ;;  %14054 = vmatmul.mubr.f32.gmra.mxu0 %v2868_v26  ;;  %14105 = vmatprep.subr.mxu1 %v3312_v54 }
 0x165   : > { %v16700_v38 = vpop.f32.mrf.mxu0  ;;  %14056 = vmatprep.mubr.f32.mxu0 %v2869_v25  ;;  %14190 = vmatpush3.msra.mxu0 %v3719_v50 }
 0x166   : > { %v16698_v51 = vpop.f32.mrf.mxu1  ;;  %13971 = vmatmul.mubr.f32.gmra.mxu1 %v2868_v26  ;;  %14191 = vmatprep.subr.mxu0 %v3718_v56 }
 0x167   : > { %v16704_v42 = vpop.f32.mrf.mxu0  ;;  %13973 = vmatprep.mubr.f32.mxu1 %v2869_v25  ;;  %14106 = vmatpush3.msra.mxu1 %v3312_v54  ;;  %v3305_v25 = vld [vmem:[#allocation8 + $0x398] sm:$0xff] }
 0x168   : > { %v16702_v39 = vpop.f32.mrf.mxu1  ;;  %14057 = vmatmul.mubr.f32.gmra.mxu0 %v2870_v5  ;;  %14107 = vmatprep.subr.mxu1 %v3311_v0  ;;  %v3711_v54 = vld [vmem:[#allocation8 + $0x418] sm:$0xff] }
 0x169   : > { %v16708_v45 = vpop.f32.mrf.mxu0  ;;  %14059 = vmatprep.mubr.f32.mxu0 %v2871_v43  ;;  %14192 = vmatpush3.msra.mxu0 %v3718_v56 }
 0x16a   : > { %v16706_v61 = vpop.f32.mrf.mxu1  ;;  %13974 = vmatmul.mubr.f32.gmra.mxu1 %v2870_v5  ;;  %14193 = vmatprep.subr.mxu0 %v3717_v48  ;;  %v2884_v5 = vld [vmem:[#allocation2 + $0xec] sm:$0xff] }
 0x16b   : > { %v16712_v53 = vpop.f32.mrf.mxu0  ;;  %13976 = vmatprep.mubr.f32.mxu1 %v2871_v43  ;;  %14108 = vmatpush3.msra.mxu1 %v3311_v0  ;;  %v2885_v0 = vld [vmem:[#allocation2 + $0xf4] sm:$0xff] }
 0x16c   : > { %v16710_v4 = vpop.f32.mrf.mxu1  ;;  %14060 = vmatmul.mubr.f32.gmra.mxu0 %v2872_v12  ;;  %14109 = vmatprep.subr.mxu1 %v3310_v14 }
 0x16d   : > { %14062 = vmatprep.mubr.f32.mxu0 %v2873_v52  ;;  %v16716_v20 = vpop.f32.mrf.mxu0  ;;  %14194 = vmatpush3.msra.mxu0 %v3717_v48 }
 0x16e   : > { %v16714_v19 = vpop.f32.mrf.mxu1  ;;  %13977 = vmatmul.mubr.f32.gmra.mxu1 %v2872_v12  ;;  %14195 = vmatprep.subr.mxu0 %v3716_v55  ;;  %v3304_v12 = vld [vmem:[#allocation8 + $0x390] sm:$0xff] }
 0x16f   : > { %v16720_v60 = vpop.f32.mrf.mxu0  ;;  %13979 = vmatprep.mubr.f32.mxu1 %v2873_v52  ;;  %14110 = vmatpush3.msra.mxu1 %v3310_v14 }
 0x170   : > { %v16718_v59 = vpop.f32.mrf.mxu1  ;;  %14063 = vmatmul.mubr.f32.gmra.mxu0 %v2874_v58  ;;  %14111 = vmatprep.subr.mxu1 %v3309_v35 }
 0x171   : > { %14065 = vmatprep.mubr.f32.mxu0 %v2875_v31  ;;  %14196 = vmatpush3.msra.mxu0 %v3716_v55  ;;  %v3710_v55 = vld [vmem:[#allocation8 + $0x410] sm:$0xff] }
 0x172   : > { %v16722_v6 = vpop.f32.mrf.mxu1  ;;  %13980 = vmatmul.mubr.f32.gmra.mxu1 %v2874_v58  ;;  %v16724_v63 = vpop.f32.mrf.mxu0  ;;  %14197 = vmatprep.subr.mxu0 %v3715_v29 }
 0x173   : > { %13982 = vmatprep.mubr.f32.mxu1 %v2875_v31  ;;  %14112 = vmatpush3.msra.mxu1 %v3309_v35  ;;  %v2886_v35 = vld [vmem:[#allocation2 + $0xfc] sm:$0xff] }
 0x174   : > { %v16726_v47 = vpop.f32.mrf.mxu1  ;;  %14066 = vmatmul.mubr.f32.gmra.mxu0 %v2876_v62  ;;  %v16728_v3 = vpop.f32.mrf.mxu0  ;;  %14113 = vmatprep.subr.mxu1 %v3308_v1 }
 0x175   : > { %14068 = vmatprep.mubr.f32.mxu0 %v2877_v40  ;;  %14198 = vmatpush3.msra.mxu0 %v3715_v29 }
 0x176   : > { %13983 = vmatmul.mubr.f32.gmra.mxu1 %v2876_v62  ;;  %14199 = vmatprep.subr.mxu0 %v3714_v2  ;;  %v2887_v62 = vld [vmem:[#allocation2 + $0x104] sm:$0xff] }
 0x177   : > { %v16730_v9 = vpop.f32.mrf.mxu1  ;;  %13985 = vmatprep.mubr.f32.mxu1 %v2877_v40  ;;  %14114 = vmatpush3.msra.mxu1 %v3308_v1  ;;  %v3303_v1 = vld [vmem:[#allocation8 + $0x388] sm:$0xff] }
 0x178   : > { %14069 = vmatmul.mubr.f32.gmra.mxu0 %v2878_v49  ;;  %v16732_v18 = vpop.f32.mrf.mxu0  ;;  %14115 = vmatprep.subr.mxu1 %v3307_v11 }
 0x179   : > { %14071 = vmatprep.mubr.f32.mxu0 %v2879_v57  ;;  %v16734_v27 = vpop.f32.mrf.mxu1  ;;  %14200 = vmatpush3.msra.mxu0 %v3714_v2 }
 0x17a   : > { %13986 = vmatmul.mubr.f32.gmra.mxu1 %v2878_v49  ;;  %v16736_v37 = vpop.f32.mrf.mxu0  ;;  %14201 = vmatprep.subr.mxu0 %v3713_v16 }
 0x17b   : > { %13988 = vmatprep.mubr.f32.mxu1 %v2879_v57  ;;  %14116 = vmatpush3.msra.mxu1 %v3307_v11  ;;  %v3709_v57 = vld [vmem:[#allocation8 + $0x408] sm:$0xff]  ;;  %v2888_v11 = vld [vmem:[#allocation2 + $0x10c] sm:$0xff] }
 0x17c   : > { %14072 = vmatmul.mubr.f32.gmra.mxu0 %v2880_v23  ;;  %v16738_v41 = vpop.f32.mrf.mxu1  ;;  %14117 = vmatprep.subr.mxu1 %v3306_v36 }
 0x17d   : > { %14074 = vmatprep.mubr.f32.mxu0 %v2881_v32  ;;  %14202 = vmatpush3.msra.mxu0 %v3713_v16 }
 0x17e   : > { %13989 = vmatmul.mubr.f32.gmra.mxu1 %v2880_v23  ;;  %v16740_v50 = vpop.f32.mrf.mxu0  ;;  %v16742_v26 = vpop.f32.mrf.mxu1  ;;  %14203 = vmatprep.subr.mxu0 %v3712_v22 }
 0x17f   : > { %13991 = vmatprep.mubr.f32.mxu1 %v2881_v32  ;;  %14118 = vmatpush3.msra.mxu1 %v3306_v36  ;;  %v2889_v36 = vld [vmem:[#allocation2 + $0x114] sm:$0xff] }
 0x180   : > { %14075 = vmatmul.mubr.f32.gmra.mxu0 %v2882_v28  ;;  %v16744_v56 = vpop.f32.mrf.mxu0  ;;  %14119 = vmatprep.subr.mxu1 %v3305_v25 }
 0x181   : > { %14077 = vmatprep.mubr.f32.mxu0 %v2883_v46  ;;  %14204 = vmatpush3.msra.mxu0 %v3712_v22 }
 0x182   : > { %v13613_v43 = vpop.f32.mrf.mxu1  ;;  %13992 = vmatmul.mubr.f32.gmra.mxu1 %v2882_v28  ;;  %14205 = vmatprep.subr.mxu0 %v3711_v54 }
 0x183   : > { %v1164_v48 = vadd.f32 %v13613_v43, %v16676_v8  ;;  %13994 = vmatprep.mubr.f32.mxu1 %v2883_v46  ;;  %14120 = vmatpush3.msra.mxu1 %v3305_v25  ;;  %v2890_v43 = vld [vmem:[#allocation2 + $0x11c] sm:$0xff] }
 0x184   : > { %v13699_v52 = vpop.f32.mrf.mxu0  ;;  %14078 = vmatmul.mubr.f32.gmra.mxu0 %v2884_v5  ;;  %v948_v14 = vpop.f32.mrf.mxu1  ;;  %14121 = vmatprep.subr.mxu1 %v3304_v12 }
 0x185   : > { %v16747_v58 = vadd.f32 %v13699_v52, %v1164_v48  ;;  %v1163_v31 = vadd.f32 %v948_v14, %v16680_v13  ;;  %14080 = vmatprep.mubr.f32.mxu0 %v2885_v0  ;;  %14206 = vmatpush3.msra.mxu0 %v3711_v54  ;;  %v3708_v54 = vld [vmem:[#allocation8 + $0x400] sm:$0xff] }
 0x186   : > { %v1354_v29 = vpop.f32.mrf.mxu0  ;;  %v13616_v40 = vpop.f32.mrf.mxu1  ;;  %13995 = vmatmul.mubr.f32.gmra.mxu1 %v2884_v5  ;;  %14207 = vmatprep.subr.mxu0 %v3710_v55 }
 0x187   : > { %v16750_v8 = vadd.f32 %v1354_v29, %v1163_v31  ;;  %v1166_v2 = vadd.f32 %v13616_v40, %v16684_v15  ;;  %13997 = vmatprep.mubr.f32.mxu1 %v2885_v0  ;;  %14122 = vmatpush3.msra.mxu1 %v3304_v12  ;;  %v3302_v15 = vld [vmem:[#allocation8 + $0x380] sm:$0xff]  ;;  %v2891_v12 = vld [vmem:[#allocation2 + $0x124] sm:$0xff] }
 0x188   : > { %v13702_v49 = vpop.f32.mrf.mxu0  ;;  %14081 = vmatmul.mubr.f32.gmra.mxu0 %v2886_v35  ;;  %v958_v13 = vpop.f32.mrf.mxu1  ;;  %14123 = vmatprep.subr.mxu1 %v3303_v1  ;;  %v2893_v40 = vld [vmem:[#allocation2 + $0x134] sm:$0xff] }
 0x189   : > { %14083 = vmatprep.mubr.f32.mxu0 %v2887_v62  ;;  %v16753_v16 = vadd.f32 %v13702_v49, %v1166_v2  ;;  %v1165_v23 = vadd.f32 %v958_v13, %v16688_v33  ;;  %14208 = vmatpush3.msra.mxu0 %v3710_v55  ;;  %v2894_v13 = vld [vmem:[#allocation2 + $0x13c] sm:$0xff] }
 0x18a   : > { %v1364_v32 = vpop.f32.mrf.mxu0  ;;  %v13619_v22 = vpop.f32.mrf.mxu1  ;;  %13998 = vmatmul.mubr.f32.gmra.mxu1 %v2886_v35  ;;  %14209 = vmatprep.subr.mxu0 %v3709_v57  ;;  %v2892_v35 = vld [vmem:[#allocation2 + $0x12c] sm:$0xff] }
 0x18b   : > { %v16756_v28 = vadd.f32 %v1364_v32, %v1165_v23  ;;  %v1168_v46 = vadd.f32 %v13619_v22, %v16692_v24  ;;  %14000 = vmatprep.mubr.f32.mxu1 %v2887_v62  ;;  %14124 = vmatpush3.msra.mxu1 %v3303_v1 }
 0x18c   : > { %v13705_v25 = vpop.f32.mrf.mxu0  ;;  %14084 = vmatmul.mubr.f32.gmra.mxu0 %v2888_v11  ;;  %v968_v5 = vpop.f32.mrf.mxu1  ;;  %14125 = vmatprep.subr.mxu1 %v3302_v15 }
 0x18d   : > { %14086 = vmatprep.mubr.f32.mxu0 %v2889_v36  ;;  %v16759_v33 = vadd.f32 %v13705_v25, %v1168_v46  ;;  %v1167_v0 = vadd.f32 %v968_v5, %v16696_v34  ;;  %14210 = vmatpush3.msra.mxu0 %v3709_v57  ;;  %v3266_v25 = vld [vmem:[#allocation2 + $0x2d] sm:$0xff] }
 0x18e   : > { %v1374_v48 = vpop.f32.mrf.mxu0  ;;  %v13622_v52 = vpop.f32.mrf.mxu1  ;;  %14001 = vmatmul.mubr.f32.gmra.mxu1 %v2888_v11  ;;  %14211 = vmatprep.subr.mxu0 %v3708_v54  ;;  %v3265_v11 = vld [vmem:[#allocation2 + $0x25] sm:$0xff]  ;;  %v3672_v5 = vld [vmem:[#allocation2 + $0x2e] sm:$0xff] }
 0x18f   : > { %v16762_v24 = vadd.f32 %v1374_v48, %v1167_v0  ;;  %v1170_v14 = vadd.f32 %v13622_v52, %v16700_v38  ;;  %14003 = vmatprep.mubr.f32.mxu1 %v2889_v36  ;;  %14126 = vmatpush3.msra.mxu1 %v3302_v15  ;;  %v3671_v36 = vld [vmem:[#allocation2 + $0x26] sm:$0xff] }
 0x190   : > { %v13708_v55 = vpop.f32.mrf.mxu0  ;;  %14087 = vmatmul.mubr.f32.gmra.mxu0 %v2890_v43  ;;  %v978_v31 = vpop.f32.mrf.mxu1 }
 0x191   : > { %14089 = vmatprep.mubr.f32.mxu0 %v2891_v12  ;;  %v16765_v29 = vadd.f32 %v13708_v55, %v1170_v14  ;;  %v1169_v34 = vadd.f32 %v978_v31, %v16704_v42  ;;  %14212 = vmatpush3.msra.mxu0 %v3708_v54  ;;  %v3268_v31 = vld [vmem:[#allocation2 + $0x3d] sm:$0xff] }
 0x192   : > { %v1384_v62 = vpop.f32.mrf.mxu0  ;;  %v13625_v1 = vpop.f32.mrf.mxu1  ;;  %14004 = vmatmul.mubr.f32.gmra.mxu1 %v2890_v43  ;;  %v3267_v43 = vld [vmem:[#allocation2 + $0x35] sm:$0xff] }
 0x193   : > { %v16768_v2 = vadd.f32 %v1384_v62, %v1169_v34  ;;  %v1172_v38 = vadd.f32 %v13625_v1, %v16708_v45  ;;  %14006 = vmatprep.mubr.f32.mxu1 %v2891_v12  ;;  %v3673_v12 = vld [vmem:[#allocation2 + $0x36] sm:$0xff]  ;;  %v3674_v34 = vld [vmem:[#allocation2 + $0x3e] sm:$0xff] }
 0x194   : > { %v13711_v49 = vpop.f32.mrf.mxu0  ;;  %14090 = vmatmul.mubr.f32.gmra.mxu0 %v2892_v35  ;;  %v988_v57 = vpop.f32.mrf.mxu1  ;;  %v3269_v62 = vld [vmem:[#allocation2 + $0x45] sm:$0xff] }
 0x195   : > { %14092 = vmatprep.mubr.f32.mxu0 %v2893_v40  ;;  %v16771_v23 = vadd.f32 %v13711_v49, %v1172_v38  ;;  %v1171_v42 = vadd.f32 %v988_v57, %v16712_v53  ;;  %v3675_v38 = vld [vmem:[#allocation2 + $0x46] sm:$0xff] }
 0x196   : > { %v1394_v32 = vpop.f32.mrf.mxu0  ;;  %v13628_v22 = vpop.f32.mrf.mxu1  ;;  %14007 = vmatmul.mubr.f32.gmra.mxu1 %v2892_v35 }
 0x197   : > { %v16774_v15 = vadd.f32 %v1394_v32, %v1171_v42  ;;  %v1174_v46 = vadd.f32 %v13628_v22, %v16716_v20  ;;  %14127 = vmatprep.mubr.f32.mxu1 %v3265_v11  ;;  %v3270_v11 = vld [vmem:[#allocation2 + $0x4d] sm:$0xff] }
 0x198   : > { %v13714_v45 = vpop.f32.mrf.mxu0  ;;  %14093 = vmatmul.mubr.f32.gmra.mxu0 %v2894_v13  ;;  %v998_v54 = vpop.f32.mrf.mxu1  ;;  %v3676_v32 = vld [vmem:[#allocation2 + $0x4e] sm:$0xff] }
 0x199   : > { %14213 = vmatprep.mubr.f32.mxu0 %v3671_v36  ;;  %v16777_v0 = vadd.f32 %v13714_v45, %v1174_v46  ;;  %v1173_v53 = vadd.f32 %v998_v54, %v16720_v60  ;;  %v3271_v36 = vld [vmem:[#allocation2 + $0x55] sm:$0xff] }
 0x19a   : > { %v1404_v48 = vpop.f32.mrf.mxu0  ;;  %v13631_v52 = vpop.f32.mrf.mxu1  ;;  %14128 = vmatmul.mubr.f32.vlgmr.msra.gmra.mxu1 %v3266_v25  ;;  %v3677_v45 = vld [vmem:[#allocation2 + $0x56] sm:$0xff] }
 0x19b   : > { %v16780_v14 = vadd.f32 %v1404_v48, %v1173_v53  ;;  %v1176_v20 = vadd.f32 %v13631_v52, %v16724_v63  ;;  %14130 = vmatprep.mubr.f32.mxu1 %v3267_v43  ;;  %v3272_v43 = vld [vmem:[#allocation2 + $0x5d] sm:$0xff] }
 0x19c   : > { %v13717_v55 = vpop.f32.mrf.mxu0  ;;  %14214 = vmatmul.mubr.f32.vlgmr.msra.gmra.mxu0 %v3672_v5  ;;  %v1008_v35 = vpop.f32.mrf.mxu1  ;;  %v3678_v48 = vld [vmem:[#allocation2 + $0x5e] sm:$0xff] }
 0x19d   : > { %14216 = vmatprep.mubr.f32.mxu0 %v3673_v12  ;;  %v16783_v40 = vadd.f32 %v13717_v55, %v1176_v20  ;;  %v1175_v60 = vadd.f32 %v1008_v35, %v16728_v3  ;;  %v3273_v12 = vld [vmem:[#allocation2 + $0x65] sm:$0xff] }
 0x19e   : > { %v1414_v1 = vpop.f32.mrf.mxu0  ;;  %v13634_v49 = vpop.f32.mrf.mxu1  ;;  %14131 = vmatmul.mubr.f32.gmra.mxu1 %v3268_v31  ;;  %v3679_v55 = vld [vmem:[#allocation2 + $0x66] sm:$0xff] }
 0x19f   : > { %v16786_v57 = vadd.f32 %v1414_v1, %v1175_v60  ;;  %v1178_v63 = vadd.f32 %v13634_v49, %v16732_v18  ;;  %14133 = vmatprep.mubr.f32.mxu1 %v3269_v62  ;;  %v3274_v62 = vld [vmem:[#allocation2 + $0x6d] sm:$0xff]  ;;  %v3275_v49 = vld [vmem:[#allocation2 + $0x75] sm:$0xff] }
 0x1a0   : > { %v13720_v13 = vpop.f32.mrf.mxu0  ;;  %14217 = vmatmul.mubr.f32.gmra.mxu0 %v3674_v34  ;;  %v1018_v42 = vpop.f32.mrf.mxu1  ;;  %v4355_v60 = vld [vmem:[#allocation8 + $0x4f8] sm:$0xff] }
 0x1a1   : > { %14219 = vmatprep.mubr.f32.mxu0 %v3675_v38  ;;  %v16789_v22 = vadd.f32 %v13720_v13, %v1178_v63  ;;  %v1177_v3 = vadd.f32 %v1018_v42, %v16736_v37  ;;  %v3680_v38 = vld [vmem:[#allocation2 + $0x6e] sm:$0xff]  ;;  %14267 = vmatprep.subr.mxu1 %v4355_v60 }
 0x1a2   : > { %v1424_v46 = vpop.f32.mrf.mxu0  ;;  %v13637_v25 = vpop.f32.mrf.mxu1  ;;  %14134 = vmatmul.mubr.f32.gmra.mxu1 %v3270_v11  ;;  %v3681_v11 = vld [vmem:[#allocation2 + $0x76] sm:$0xff] }
 0x1a3   : > { %v16792_v54 = vadd.f32 %v1424_v46, %v1177_v3  ;;  %v1180_v18 = vadd.f32 %v13637_v25, %v16740_v50  ;;  %14136 = vmatprep.mubr.f32.mxu1 %v3271_v36  ;;  %14268 = vmatpush3.msra.mxu1 %v4355_v60  ;;  %v3276_v3 = vld [vmem:[#allocation2 + $0x7d] sm:$0xff]  ;;  %v3277_v25 = vld [vmem:[#allocation2 + $0x85] sm:$0xff] }
 0x1a4   : > { %v13723_v5 = vpop.f32.mrf.mxu0  ;;  %14220 = vmatmul.mubr.f32.gmra.mxu0 %v3676_v32  ;;  %v1028_v53 = vpop.f32.mrf.mxu1  ;;  %v3685_v60 = vld [vmem:[#allocation2 + $0x96] sm:$0xff] }
 0x1a5   : > { %19080 = vst [vmem:[#allocation18_spill] sm:$0xff] %v16792_v54  ;;  %14222 = vmatprep.mubr.f32.mxu0 %v3677_v45  ;;  %v16795_v52 = vadd.f32 %v13723_v5, %v1180_v18  ;;  %v1179_v37 = vadd.f32 %v1028_v53, %v16744_v56  ;;  %v3682_v45 = vld [vmem:[#allocation2 + $0x7e] sm:$0xff] }
 0x1a6   : > { %v1434_v20 = vpop.f32.mrf.mxu0  ;;  %v13640_v31 = vpop.f32.mrf.mxu1  ;;  %14137 = vmatmul.mubr.f32.gmra.mxu1 %v3272_v43  ;;  %v3683_v43 = vld [vmem:[#allocation2 + $0x86] sm:$0xff] }
 0x1a7   : > { %v16798_v35 = vadd.f32 %v1434_v20, %v1179_v37  ;;  %v1182_v50 = vadd.f32 %v13640_v31, %v16674_v7  ;;  %14139 = vmatprep.mubr.f32.mxu1 %v3273_v12  ;;  %v4354_v53 = vld [vmem:[#allocation8 + $0x4f0] sm:$0xff]  ;;  %v3278_v20 = vld [vmem:[#allocation2 + $0x8d] sm:$0xff] }
 0x1a8   : > { %v13726_v34 = vpop.f32.mrf.mxu0  ;;  %14223 = vmatmul.mubr.f32.gmra.mxu0 %v3678_v48  ;;  %v1038_v1 = vpop.f32.mrf.mxu1  ;;  %14269 = vmatprep.subr.mxu1 %v4354_v53  ;;  %v3684_v31 = vld [vmem:[#allocation2 + $0x8e] sm:$0xff] }
 0x1a9   : > { %19081 = vst [vmem:[#allocation19_spill] sm:$0xff] %v16798_v35  ;;  %14225 = vmatprep.mubr.f32.mxu0 %v3679_v55  ;;  %v16801_v63 = vadd.f32 %v13726_v34, %v1182_v50  ;;  %v1181_v56 = vadd.f32 %v1038_v1, %v16678_v10  ;;  %v3279_v50 = vld [vmem:[#allocation2 + $0x95] sm:$0xff]  ;;  %14270 = vmatpush3.msra.mxu1 %v4354_v53  ;;  %v5086_v35 = vld [vmem:[#allocation8 + $0x5b0] sm:$0xff] }
 0x1aa   : > { %v1444_v13 = vpop.f32.mrf.mxu0  ;;  %v13643_v42 = vpop.f32.mrf.mxu1  ;;  %14140 = vmatmul.mubr.f32.gmra.mxu1 %v3274_v62  ;;  %v4353_v1 = vld [vmem:[#allocation8 + $0x4e8] sm:$0xff] }
 0x1ab   : > { %v16804_v7 = vadd.f32 %v1444_v13, %v1181_v56  ;;  %v1184_v32 = vadd.f32 %v13643_v42, %v16682_v21  ;;  %14142 = vmatprep.mubr.f32.mxu1 %v3275_v49  ;;  %14271 = vmatprep.subr.mxu1 %v4353_v1  ;;  %v3280_v13 = vld [vmem:[#allocation2 + $0x9d] sm:$0xff] }
 0x1ac   : > { %v13729_v36 = vpop.f32.mrf.mxu0  ;;  %14226 = vmatmul.mubr.f32.gmra.mxu0 %v3680_v38  ;;  %v1048_v46 = vpop.f32.mrf.mxu1  ;;  %v3686_v42 = vld [vmem:[#allocation2 + $0x9e] sm:$0xff]  ;;  %14272 = vmatpush3.msra.mxu1 %v4353_v1 }
 0x1ad   : > { %19082 = vst [vmem:[#allocation20_spill] sm:$0xff] %v16804_v7  ;;  %14228 = vmatprep.mubr.f32.mxu0 %v3681_v11  ;;  %v16807_v18 = vadd.f32 %v13729_v36, %v1184_v32  ;;  %v1183_v10 = vadd.f32 %v1048_v46, %v16686_v17  ;;  %v3281_v32 = vld [vmem:[#allocation2 + $0xa5] sm:$0xff] }
 0x1ae   : > { %v1454_v5 = vpop.f32.mrf.mxu0  ;;  %v13646_v48 = vpop.f32.mrf.mxu1  ;;  %14143 = vmatmul.mubr.f32.gmra.mxu1 %v3276_v3  ;;  %v3687_v46 = vld [vmem:[#allocation2 + $0xa6] sm:$0xff] }
 0x1af   : > { %v16810_v12 = vadd.f32 %v1454_v5, %v1183_v10  ;;  %v1186_v21 = vadd.f32 %v13646_v48, %v16690_v30  ;;  %14145 = vmatprep.mubr.f32.mxu1 %v3277_v25  ;;  %v3688_v48 = vld [vmem:[#allocation2 + $0xae] sm:$0xff] }
 0x1b0   : > { %v13732_v37 = vpop.f32.mrf.mxu0  ;;  %14229 = vmatmul.mubr.f32.gmra.mxu0 %v3682_v45  ;;  %v1058_v55 = vpop.f32.mrf.mxu1  ;;  %v4352_v45 = vld [vmem:[#allocation8 + $0x4e0] sm:$0xff] }
 0x1b1   : > { %19083 = vst [vmem:[#allocation21_spill] sm:$0xff] %v16810_v12  ;;  %14231 = vmatprep.mubr.f32.mxu0 %v3683_v43  ;;  %v16813_v17 = vadd.f32 %v13732_v37, %v1186_v21  ;;  %v1185_v34 = vadd.f32 %v1058_v55, %v16694_v44  ;;  %14273 = vmatprep.subr.mxu1 %v4352_v45  ;;  %v3282_v43 = vld [vmem:[#allocation2 + $0xad] sm:$0xff]  ;;  %v3283_v21 = vld [vmem:[#allocation2 + $0xb5] sm:$0xff] }
 0x1b2   : > { %v1464_v62 = vpop.f32.mrf.mxu0  ;;  %v13649_v38 = vpop.f32.mrf.mxu1  ;;  %14146 = vmatmul.mubr.f32.gmra.mxu1 %v3278_v20  ;;  %v3689_v55 = vld [vmem:[#allocation2 + $0xb6] sm:$0xff] }
 0x1b3   : > { %v16816_v30 = vadd.f32 %v1464_v62, %v1185_v34  ;;  %v1188_v49 = vadd.f32 %v13649_v38, %v16698_v51  ;;  %14148 = vmatprep.mubr.f32.mxu1 %v3279_v50  ;;  %14274 = vmatpush3.msra.mxu1 %v4352_v45  ;;  %v3690_v38 = vld [vmem:[#allocation2 + $0xbe] sm:$0xff] }
 0x1b4   : > { %v13735_v56 = vpop.f32.mrf.mxu0  ;;  %14232 = vmatmul.mubr.f32.gmra.mxu0 %v3684_v31  ;;  %v1068_v11 = vpop.f32.mrf.mxu1  ;;  %v4351_v31 = vld [vmem:[#allocation8 + $0x4d8] sm:$0xff] }
 0x1b5   : > { %19084 = vst [vmem:[#allocation22_spill] sm:$0xff] %v16816_v30  ;;  %14234 = vmatprep.mubr.f32.mxu0 %v3685_v60  ;;  %v16819_v44 = vadd.f32 %v13735_v56, %v1188_v49  ;;  %v1187_v36 = vadd.f32 %v1068_v11, %v16702_v39  ;;  %14275 = vmatprep.subr.mxu1 %v4351_v31  ;;  %v3284_v60 = vld [vmem:[#allocation2 + $0xbd] sm:$0xff]  ;;  %v3285_v49 = vld [vmem:[#allocation2 + $0xc5] sm:$0xff] }
 0x1b6   : > { %v1474_v3 = vpop.f32.mrf.mxu0  ;;  %v13652_v25 = vpop.f32.mrf.mxu1  ;;  %14149 = vmatmul.mubr.f32.gmra.mxu1 %v3280_v13  ;;  %v3691_v11 = vld [vmem:[#allocation2 + $0xc6] sm:$0xff] }
 0x1b7   : > { %v16822_v51 = vadd.f32 %v1474_v3, %v1187_v36  ;;  %v1190_v10 = vadd.f32 %v13652_v25, %v16706_v61  ;;  %14151 = vmatprep.mubr.f32.mxu1 %v3281_v32  ;;  %14276 = vmatpush3.msra.mxu1 %v4351_v31  ;;  %v3286_v3 = vld [vmem:[#allocation2 + $0xcd] sm:$0xff] }
 0x1b8   : > { %v13738_v5 = vpop.f32.mrf.mxu0  ;;  %14235 = vmatmul.mubr.f32.gmra.mxu0 %v3686_v42  ;;  %v1078_v53 = vpop.f32.mrf.mxu1  ;;  %v3692_v25 = vld [vmem:[#allocation2 + $0xce] sm:$0xff] }
 0x1b9   : > { %19085 = vst [vmem:[#allocation23_spill] sm:$0xff] %v16822_v51  ;;  %14237 = vmatprep.mubr.f32.mxu0 %v3687_v46  ;;  %v16825_v39 = vadd.f32 %v13738_v5, %v1190_v10  ;;  %v1189_v37 = vadd.f32 %v1078_v53, %v16710_v4  ;;  %v4350_v46 = vld [vmem:[#allocation8 + $0x4d0] sm:$0xff]  ;;  %v3287_v10 = vld [vmem:[#allocation2 + $0xd5] sm:$0xff] }
 0x1ba   : > { %v1484_v20 = vpop.f32.mrf.mxu0  ;;  %v13655_v50 = vpop.f32.mrf.mxu1  ;;  %14152 = vmatmul.mubr.f32.gmra.mxu1 %v3282_v43  ;;  %14277 = vmatprep.subr.mxu1 %v4350_v46  ;;  %v3693_v53 = vld [vmem:[#allocation2 + $0xd6] sm:$0xff] }
 0x1bb   : > { %v16828_v61 = vadd.f32 %v1484_v20, %v1189_v37  ;;  %v1192_v34 = vadd.f32 %v13655_v50, %v16714_v19  ;;  %14154 = vmatprep.mubr.f32.mxu1 %v3283_v21  ;;  %14278 = vmatpush3.msra.mxu1 %v4350_v46  ;;  %v3288_v20 = vld [vmem:[#allocation2 + $0xdd] sm:$0xff] }
 0x1bc   : > { %v13741_v62 = vpop.f32.mrf.mxu0  ;;  %14238 = vmatmul.mubr.f32.gmra.mxu0 %v3688_v48  ;;  %v1088_v1 = vpop.f32.mrf.mxu1  ;;  %v3694_v50 = vld [vmem:[#allocation2 + $0xde] sm:$0xff]  ;;  %v3697_v46 = vld [vmem:[#allocation2 + $0xf6] sm:$0xff] }
 0x1bd   : > { %19086 = vst [vmem:[#allocation24_spill] sm:$0xff] %v16828_v61  ;;  %14240 = vmatprep.mubr.f32.mxu0 %v3689_v55  ;;  %v16831_v4 = vadd.f32 %v13741_v62, %v1192_v34  ;;  %v1191_v56 = vadd.f32 %v1088_v1, %v16718_v59  ;;  %v4349_v55 = vld [vmem:[#allocation8 + $0x4c8] sm:$0xff]  ;;  %v3289_v34 = vld [vmem:[#allocation2 + $0xe5] sm:$0xff] }
 0x1be   : > { %v1494_v13 = vpop.f32.mrf.mxu0  ;;  %v13658_v42 = vpop.f32.mrf.mxu1  ;;  %14155 = vmatmul.mubr.f32.gmra.mxu1 %v3284_v60  ;;  %14279 = vmatprep.subr.mxu1 %v4349_v55  ;;  %v3695_v1 = vld [vmem:[#allocation2 + $0xe6] sm:$0xff] }
 0x1bf   : > { %v16834_v32 = vadd.f32 %v1494_v13, %v1191_v56  ;;  %v1194_v19 = vadd.f32 %v13658_v42, %v16722_v6  ;;  %14157 = vmatprep.mubr.f32.mxu1 %v3285_v49  ;;  %14280 = vmatpush3.msra.mxu1 %v4349_v55  ;;  %v3290_v13 = vld [vmem:[#allocation2 + $0xed] sm:$0xff] }
 0x1c0   : > { %v13744_v36 = vpop.f32.mrf.mxu0  ;;  %14241 = vmatmul.mubr.f32.gmra.mxu0 %v3690_v38  ;;  %v1098_v45 = vpop.f32.mrf.mxu1  ;;  %v3699_v55 = vld [vmem:[#allocation2 + $0x106] sm:$0xff] }
 0x1c1   : > { %19087 = vst [vmem:[#allocation25_spill] sm:$0xff] %v16834_v32  ;;  %14243 = vmatprep.mubr.f32.mxu0 %v3691_v11  ;;  %v16837_v5 = vadd.f32 %v13744_v36, %v1194_v19  ;;  %v1193_v59 = vadd.f32 %v1098_v45, %v16726_v47  ;;  %v4348_v11 = vld [vmem:[#allocation8 + $0x4c0] sm:$0xff] }
 0x1c2   : > { %v1504_v43 = vpop.f32.mrf.mxu0  ;;  %v13661_v48 = vpop.f32.mrf.mxu1  ;;  %14158 = vmatmul.mubr.f32.gmra.mxu1 %v3286_v3  ;;  %v3696_v19 = vld [vmem:[#allocation2 + $0xee] sm:$0xff]  ;;  %14281 = vmatprep.subr.mxu1 %v4348_v11 }
 0x1c3   : > { %v16840_v6 = vadd.f32 %v1504_v43, %v1193_v59  ;;  %v1196_v21 = vadd.f32 %v13661_v48, %v16730_v9  ;;  %14160 = vmatprep.mubr.f32.mxu1 %v3287_v10  ;;  %v3291_v36 = vld [vmem:[#allocation2 + $0xf5] sm:$0xff]  ;;  %14282 = vmatpush3.msra.mxu1 %v4348_v11  ;;  %v3292_v10 = vld [vmem:[#allocation2 + $0xfd] sm:$0xff]  ;;  %v4347_v59 = vld [vmem:[#allocation8 + $0x4b8] sm:$0xff] }
 0x1c4   : > { %v13747_v37 = vpop.f32.mrf.mxu0  ;;  %14244 = vmatmul.mubr.f32.gmra.mxu0 %v3692_v25  ;;  %v1108_v31 = vpop.f32.mrf.mxu1  ;;  %v3293_v48 = vld [vmem:[#allocation2 + $0x105] sm:$0xff]  ;;  %14283 = vmatprep.subr.mxu1 %v4347_v59 }
 0x1c5   : > { %19088 = vst [vmem:[#allocation26_spill] sm:$0xff] %v16840_v6  ;;  %14246 = vmatprep.mubr.f32.mxu0 %v3693_v53  ;;  %v16843_v47 = vadd.f32 %v13747_v37, %v1196_v21  ;;  %v1195_v62 = vadd.f32 %v1108_v31, %v16734_v27  ;;  %v3698_v53 = vld [vmem:[#allocation2 + $0xfe] sm:$0xff]  ;;  %v4689_v21 = vld [vmem:[#allocation8 + $0x578] sm:$0xff]  ;;  %14284 = vmatpush3.msra.mxu1 %v4347_v59 }
 0x1c6   : > { %v1514_v60 = vpop.f32.mrf.mxu0  ;;  %v13664_v38 = vpop.f32.mrf.mxu1  ;;  %14161 = vmatmul.mubr.f32.gmra.mxu1 %v3288_v20  ;;  %14353 = vmatprep.subr.mxu0 %v4689_v21  ;;  %v4688_v31 = vld [vmem:[#allocation8 + $0x570] sm:$0xff] }
 0x1c7   : > { %v16846_v9 = vadd.f32 %v1514_v60, %v1195_v62  ;;  %v1198_v49 = vadd.f32 %v13664_v38, %v16738_v41  ;;  %14163 = vmatprep.mubr.f32.mxu1 %v3289_v34  ;;  %14354 = vmatpush3.msra.mxu0 %v4689_v21  ;;  %v3294_v62 = vld [vmem:[#allocation2 + $0x10d] sm:$0xff]  ;;  %v3295_v38 = vld [vmem:[#allocation2 + $0x115] sm:$0xff]  ;;  %v4346_v11 = vld [vmem:[#allocation8 + $0x4b0] sm:$0xff] }
 0x1c8   : > { %v13750_v56 = vpop.f32.mrf.mxu0  ;;  %14247 = vmatmul.mubr.f32.gmra.mxu0 %v3694_v50  ;;  %v16849_v42 = vpop.f32.mrf.mxu1  ;;  %14355 = vmatprep.subr.mxu0 %v4688_v31  ;;  %v4345_v21 = vld [vmem:[#allocation8 + $0x4a8] sm:$0xff] }
 0x1c9   : > { %19089 = vst [vmem:[#allocation27_spill] sm:$0xff] %v16846_v9  ;;  %14249 = vmatprep.mubr.f32.mxu0 %v3695_v1  ;;  %v16851_v27 = vadd.f32 %v13750_v56, %v1198_v49  ;;  %v3700_v1 = vld [vmem:[#allocation2 + $0x10e] sm:$0xff]  ;;  %14356 = vmatpush3.msra.mxu0 %v4688_v31 }
 0x1ca   : > { %v16853_v3 = vpop.f32.mrf.mxu0  ;;  %v13785_v45 = vpop.f32.mrf.mxu1  ;;  %14164 = vmatmul.mubr.f32.gmra.mxu1 %v3290_v13  ;;  %v3701_v13 = vld [vmem:[#allocation2 + $0x116] sm:$0xff]  ;;  %14285 = vmatprep.subr.mxu1 %v4346_v11 }
 0x1cb   : > { %v1976_v41 = vadd.f32 %v13785_v45, %v16747_v58  ;;  %14166 = vmatprep.mubr.f32.mxu1 %v3291_v36  ;;  %v3296_v45 = vld [vmem:[#allocation2 + $0x11d] sm:$0xff]  ;;  %14286 = vmatpush3.msra.mxu1 %v4346_v11 }
 0x1cc   : > { %v13871_v25 = vpop.f32.mrf.mxu0  ;;  %14250 = vmatmul.mubr.f32.gmra.mxu0 %v3696_v19  ;;  %v16856_v43 = vpop.f32.mrf.mxu1  ;;  %14287 = vmatprep.subr.mxu1 %v4345_v21  ;;  %v3705_v11 = vld [vmem:[#allocation2 + $0x136] sm:$0xff] }
 0x1cd   : > { %14252 = vmatprep.mubr.f32.mxu0 %v3697_v46  ;;  %v16858_v37 = vadd.f32 %v13871_v25, %v1976_v41  ;;  %v3702_v25 = vld [vmem:[#allocation2 + $0x11e] sm:$0xff]  ;;  %14288 = vmatpush3.msra.mxu1 %v4345_v21 }
 0x1ce   : > { %v16860_v20 = vpop.f32.mrf.mxu0  ;;  %v13788_v58 = vpop.f32.mrf.mxu1  ;;  %14167 = vmatmul.mubr.f32.gmra.mxu1 %v3292_v10  ;;  %v3297_v10 = vld [vmem:[#allocation2 + $0x125] sm:$0xff] }
 0x1cf   : > { %v1978_v50 = vadd.f32 %v13788_v58, %v16753_v16  ;;  %14169 = vmatprep.mubr.f32.mxu1 %v3293_v48  ;;  %v4687_v16 = vld [vmem:[#allocation8 + $0x568] sm:$0xff]  ;;  %v3703_v48 = vld [vmem:[#allocation2 + $0x126] sm:$0xff] }
 0x1d0   : > { %v13874_v34 = vpop.f32.mrf.mxu0  ;;  %14253 = vmatmul.mubr.f32.gmra.mxu0 %v3698_v53  ;;  %v16863_v60 = vpop.f32.mrf.mxu1  ;;  %14357 = vmatprep.subr.mxu0 %v4687_v16 }
 0x1d1   : > { %14255 = vmatprep.mubr.f32.mxu0 %v3699_v55  ;;  %v16865_v49 = vadd.f32 %v13874_v34, %v1978_v50  ;;  %14358 = vmatpush3.msra.mxu0 %v4687_v16  ;;  %v3298_v50 = vld [vmem:[#allocation2 + $0x12d] sm:$0xff] }
 0x1d2   : > { %v16867_v56 = vpop.f32.mrf.mxu0  ;;  %v13791_v19 = vpop.f32.mrf.mxu1  ;;  %14170 = vmatmul.mubr.f32.gmra.mxu1 %v3294_v62  ;;  %v3704_v62 = vld [vmem:[#allocation2 + $0x12e] sm:$0xff] }
 0x1d3   : > { %v1980_v36 = vadd.f32 %v13791_v19, %v16759_v33  ;;  %14172 = vmatprep.mubr.f32.mxu1 %v3295_v38  ;;  %v4686_v33 = vld [vmem:[#allocation8 + $0x560] sm:$0xff]  ;;  %v4685_v19 = vld [vmem:[#allocation8 + $0x558] sm:$0xff] }
 0x1d4   : > { %v13877_v46 = vpop.f32.mrf.mxu0  ;;  %14256 = vmatmul.mubr.f32.gmra.mxu0 %v3700_v1  ;;  %v16870_v41 = vpop.f32.mrf.mxu1  ;;  %v3299_v1 = vld [vmem:[#allocation2 + $0x135] sm:$0xff]  ;;  %14359 = vmatprep.subr.mxu0 %v4686_v33 }
 0x1d5   : > { %14258 = vmatprep.mubr.f32.mxu0 %v3701_v13  ;;  %v16872_v59 = vadd.f32 %v13877_v46, %v1980_v36  ;;  %14360 = vmatpush3.msra.mxu0 %v4686_v33 }
 0x1d6   : > { %v16874_v53 = vpop.f32.mrf.mxu0  ;;  %v13794_v55 = vpop.f32.mrf.mxu1  ;;  %14173 = vmatmul.mubr.f32.gmra.mxu1 %v3296_v45  ;;  %v3300_v45 = vld [vmem:[#allocation2 + $0x13d] sm:$0xff]  ;;  %14361 = vmatprep.subr.mxu0 %v4685_v19 }
 0x1d7   : > { %v1982_v58 = vadd.f32 %v13794_v55, %v16765_v29  ;;  %14175 = vmatprep.mubr.f32.mxu1 %v3297_v10  ;;  %v4344_v29 = vld [vmem:[#allocation8 + $0x4a0] sm:$0xff]  ;;  %14362 = vmatpush3.msra.mxu0 %v4685_v19 }
 0x1d8   : > { %v13880_v31 = vpop.f32.mrf.mxu0  ;;  %14259 = vmatmul.mubr.f32.gmra.mxu0 %v3702_v25  ;;  %v16877_v34 = vpop.f32.mrf.mxu1  ;;  %v4684_v25 = vld [vmem:[#allocation8 + $0x550] sm:$0xff]  ;;  %14289 = vmatprep.subr.mxu1 %v4344_v29 }
 0x1d9   : > { %14261 = vmatprep.mubr.f32.mxu0 %v3703_v48  ;;  %v16879_v38 = vadd.f32 %v13880_v31, %v1982_v58  ;;  %v3706_v48 = vld [vmem:[#allocation2 + $0x13e] sm:$0xff]  ;;  %14363 = vmatprep.subr.mxu0 %v4684_v25 }
 0x1da   : > { %v16881_v13 = vpop.f32.mrf.mxu0  ;;  %v13797_v16 = vpop.f32.mrf.mxu1  ;;  %14176 = vmatmul.mubr.f32.gmra.mxu1 %v3298_v50  ;;  %14364 = vmatpush3.msra.mxu0 %v4684_v25  ;;  %v4680_v25 = vld [vmem:[#allocation8 + $0x530] sm:$0xff] }
 0x1db   : > { %v1984_v36 = vadd.f32 %v13797_v16, %v16771_v23  ;;  %14178 = vmatprep.mubr.f32.mxu1 %v3299_v1  ;;  %v4683_v23 = vld [vmem:[#allocation8 + $0x548] sm:$0xff]  ;;  %14290 = vmatpush3.msra.mxu1 %v4344_v29  ;;  %v15933_v1 = vld [vmem:[#allocation2] sm:$0xff]  ;;  %v4343_v29 = vld [vmem:[#allocation8 + $0x498] sm:$0xff] }
 0x1dc   : > { %v13883_v46 = vpop.f32.mrf.mxu0  ;;  %14262 = vmatmul.mubr.f32.gmra.mxu0 %v3704_v62  ;;  %v16884_v10 = vpop.f32.mrf.mxu1  ;;  %v4682_v62 = vld [vmem:[#allocation8 + $0x540] sm:$0xff]  ;;  %14365 = vmatprep.subr.mxu0 %v4683_v23 }
 0x1dd   : > { %14264 = vmatprep.mubr.f32.mxu0 %v3705_v11  ;;  %v16886_v55 = vadd.f32 %v13883_v46, %v1984_v36  ;;  %14366 = vmatpush3.msra.mxu0 %v4683_v23  ;;  %v4681_v36 = vld [vmem:[#allocation8 + $0x538] sm:$0xff]  ;;  %v4342_v23 = vld [vmem:[#allocation8 + $0x490] sm:$0xff] }
 0x1de   : > { %v16888_v21 = vpop.f32.mrf.mxu0  ;;  %v13800_v33 = vpop.f32.mrf.mxu1  ;;  %14179 = vmatmul.mubr.f32.gmra.mxu1 %v3300_v45  ;;  %14367 = vmatprep.subr.mxu0 %v4682_v62 }
 0x1df   : > { %v1986_v58 = vadd.f32 %v13800_v33, %v16777_v0  ;;  %14299 = vmatprep.mubr.f32.mxu1 %v15933_v1  ;;  %14368 = vmatpush3.msra.mxu0 %v4682_v62  ;;  %v4678_v62 = vld [vmem:[#allocation8 + $0x520] sm:$0xff] }
 0x1e0   : > { %v13886_v31 = vpop.f32.mrf.mxu0  ;;  %14265 = vmatmul.mubr.f32.gmra.mxu0 %v3706_v48  ;;  %v16891_v50 = vpop.f32.mrf.mxu1  ;;  %14291 = vmatprep.subr.mxu1 %v4343_v29 }
 0x1e1   : > { %v16893_v11 = vadd.f32 %v13886_v31, %v1986_v58  ;;  %14369 = vmatprep.subr.mxu0 %v4681_v36  ;;  %14292 = vmatpush3.msra.mxu1 %v4343_v29  ;;  %v4679_v31 = vld [vmem:[#allocation8 + $0x528] sm:$0xff]  ;;  %v4677_v29 = vld [vmem:[#allocation8 + $0x518] sm:$0xff] }
 0x1e2   : > { %v16895_v16 = vpop.f32.mrf.mxu0  ;;  %v13803_v19 = vpop.f32.mrf.mxu1  ;;  %14370 = vmatpush3.msra.mxu0 %v4681_v36  ;;  %14293 = vmatprep.subr.mxu1 %v4342_v23 }
 0x1e3   : > { %v1988_v46 = vadd.f32 %v13803_v19, %v16783_v40  ;;  %14371 = vmatprep.subr.mxu0 %v4680_v25  ;;  %14294 = vmatpush3.msra.mxu1 %v4342_v23 }
 0x1e4   : > { %v13889_v0 = vpop.f32.mrf.mxu0  ;;  %v16898_v45 = vpop.f32.mrf.mxu1  ;;  %14372 = vmatpush3.msra.mxu0 %v4680_v25  ;;  %v4637_v25 = vld [vmem:[#allocation3 + $0x1] sm:$0xff] }
 0x1e5   : > { %v16900_v48 = vadd.f32 %v13889_v0, %v1988_v46  ;;  %v4341_v46 = vld [vmem:[#allocation8 + $0x488] sm:$0xff]  ;;  %14373 = vmatprep.subr.mxu0 %v4679_v31  ;;  %14385 = vmatprep.mubr.f32.mxu0 %v4637_v25 }
 0x1e6   : > { %v16902_v33 = vpop.f32.mrf.mxu0  ;;  %v13806_v58 = vpop.f32.mrf.mxu1  ;;  %14295 = vmatprep.subr.mxu1 %v4341_v46  ;;  %14374 = vmatpush3.msra.mxu0 %v4679_v31 }
 0x1e7   : > { %v1990_v40 = vadd.f32 %v13806_v58, %v16789_v22  ;;  %14296 = vmatpush3.msra.mxu1 %v4341_v46  ;;  %v4340_v22 = vld [vmem:[#allocation8 + $0x480] sm:$0xff]  ;;  %14375 = vmatprep.subr.mxu0 %v4678_v62  ;;  %v4675_v46 = vld [vmem:[#allocation8 + $0x508] sm:$0xff] }
 0x1e8   : > { %v13892_v19 = vpop.f32.mrf.mxu0  ;;  %v16905_v9 = vpop.f32.mrf.mxu1  ;;  %14297 = vmatprep.subr.mxu1 %v4340_v22  ;;  %14376 = vmatpush3.msra.mxu0 %v4678_v62  ;;  %v4674_v62 = vld [vmem:[#allocation8 + $0x500] sm:$0xff] }
 0x1e9   : > { %19090 = vst [vmem:[#allocation28_spill] sm:$0xff] %v16905_v9  ;;  %v16907_v0 = vadd.f32 %v13892_v19, %v1990_v40  ;;  %v4676_v40 = vld [vmem:[#allocation8 + $0x510] sm:$0xff]  ;;  %14298 = vmatpush3.msra.mxu1 %v4340_v22  ;;  %14377 = vmatprep.subr.mxu0 %v4677_v29 }
 0x1ea   : > { %v16909_v6 = vpop.f32.mrf.mxu0  ;;  %v13809_v36 = vpop.f32.mrf.mxu1  ;;  %14378 = vmatpush3.msra.mxu0 %v4677_v29  ;;  %14300 = vmatmul.mubr.f32.vlgmr.msra.gmra.mxu1 %v15933_v1 }
 0x1eb   : > { %19091 = vst [vmem:[#allocation29_spill] sm:$0xff] %v16909_v6  ;;  %v1992_v58 = vadd.f32 %v13809_v36, %v16795_v52  ;;  %14379 = vmatprep.subr.mxu0 %v4676_v40 }
 0x1ec   : > { %v13895_v32 = vpop.f32.mrf.mxu0  ;;  %v16912_v23 = vpop.f32.mrf.mxu1  ;;  %14380 = vmatpush3.msra.mxu0 %v4676_v40 }
 0x1ed   : > { %19092 = vst [vmem:[#allocation30_spill] sm:$0xff] %v16912_v23  ;;  %v16914_v19 = vadd.f32 %v13895_v32, %v1992_v58  ;;  %14381 = vmatprep.subr.mxu0 %v4675_v46  ;;  %v4638_v58 = vld [vmem:[#allocation3 + $0x9] sm:$0xff] }
 0x1ee   : > { %v16916_v61 = vpop.f32.mrf.mxu0  ;;  %v13812_v31 = vpop.f32.mrf.mxu1  ;;  %14382 = vmatpush3.msra.mxu0 %v4675_v46 }
 0x1ef   : > { %19093 = vst [vmem:[#allocation31_spill] sm:$0xff] %v16916_v61  ;;  %v1994_v52 = vadd.f32 %v13812_v31, %v16801_v63  ;;  %14383 = vmatprep.subr.mxu0 %v4674_v62 }
 0x1f0   : > { %v13898_v36 = vpop.f32.mrf.mxu0  ;;  %v16919_v51 = vpop.f32.mrf.mxu1  ;;  %14384 = vmatpush3.msra.mxu0 %v4674_v62 }
 0x1f1   : > { %19094 = vst [vmem:[#allocation32_spill] sm:$0xff] %v16919_v51  ;;  %v16921_v30 = vadd.f32 %v13898_v36, %v1994_v52  ;;  %14386 = vmatmul.mubr.f32.vlgmr.msra.gmra.mxu0 %v4638_v58 }
 0x1f2   : > { %v16923_v32 = vpop.f32.mrf.mxu0  ;;  %v13815_v22 = vpop.f32.mrf.mxu1 }
 0x1f3   : > { %19095 = vst [vmem:[#allocation33_spill] sm:$0xff] %v16923_v32  ;;  %v1996_v29 = vadd.f32 %v13815_v22, %v16807_v18  ;;  %v5095_v18 = vld [vmem:[#allocation8 + $0x5f8] sm:$0xff] }
 0x1f4   : > { %v13901_v25 = vpop.f32.mrf.mxu0  ;;  %v16926_v1 = vpop.f32.mrf.mxu1  ;;  %14439 = vmatprep.subr.mxu1 %v5095_v18 }
 0x1f5   : > { %19096 = vst [vmem:[#allocation34_spill] sm:$0xff] %v16926_v1  ;;  %v16928_v63 = vadd.f32 %v13901_v25, %v1996_v29  ;;  %14440 = vmatpush3.msra.mxu1 %v5095_v18 }
 0x1f6   : > { %v16930_v31 = vpop.f32.mrf.mxu0  ;;  %v13818_v40 = vpop.f32.mrf.mxu1 }
 0x1f7   : > { %19097 = vst [vmem:[#allocation35_spill] sm:$0xff] %v16930_v31  ;;  %v1998_v52 = vadd.f32 %v13818_v40, %v16813_v17 }
 0x1f8   : > { %v13904_v36 = vpop.f32.mrf.mxu0  ;;  %v16933_v32 = vpop.f32.mrf.mxu1 }
 0x1f9   : > { %19098 = vst [vmem:[#allocation36_spill] sm:$0xff] %v16933_v32  ;;  %v16935_v46 = vadd.f32 %v13904_v36, %v1998_v52  ;;  %v5094_v36 = vld [vmem:[#allocation8 + $0x5f0] sm:$0xff] }
 0x1fa   : > { %v16937_v12 = vpop.f32.mrf.mxu0  ;;  %v13821_v22 = vpop.f32.mrf.mxu1  ;;  %14441 = vmatprep.subr.mxu1 %v5094_v36 }
 0x1fb   : > { %19099 = vst [vmem:[#allocation37_spill] sm:$0xff] %v16937_v12  ;;  %v2000_v62 = vadd.f32 %v13821_v22, %v16819_v44  ;;  %14442 = vmatpush3.msra.mxu1 %v5094_v36  ;;  %v5092_v36 = vld [vmem:[#allocation8 + $0x5e0] sm:$0xff] }
 0x1fc   : > { %v13907_v29 = vpop.f32.mrf.mxu0  ;;  %v16940_v25 = vpop.f32.mrf.mxu1 }
 0x1fd   : > { %19100 = vst [vmem:[#allocation38_spill] sm:$0xff] %v16940_v25  ;;  %v16942_v58 = vadd.f32 %v13907_v29, %v2000_v62  ;;  %v5093_v62 = vld [vmem:[#allocation8 + $0x5e8] sm:$0xff] }
 0x1fe   : > { %v16944_v31 = vpop.f32.mrf.mxu0  ;;  %v13824_v17 = vpop.f32.mrf.mxu1  ;;  %14443 = vmatprep.subr.mxu1 %v5093_v62 }
 0x1ff   : > { %19101 = vst [vmem:[#allocation39_spill] sm:$0xff] %v16944_v31  ;;  %v2002_v40 = vadd.f32 %v13824_v17, %v16825_v39  ;;  %14444 = vmatpush3.msra.mxu1 %v5093_v62 }
 0x200   : > { %v13910_v52 = vpop.f32.mrf.mxu0  ;;  %v16947_v32 = vpop.f32.mrf.mxu1  ;;  %14445 = vmatprep.subr.mxu1 %v5092_v36 }
 0x201   : > { %19102 = vst [vmem:[#allocation40_spill] sm:$0xff] %v16947_v32  ;;  %v16949_v12 = vadd.f32 %v13910_v52, %v2002_v40  ;;  %14446 = vmatpush3.msra.mxu1 %v5092_v36 }
 0x202   : > { %v16951_v1 = vpop.f32.mrf.mxu0  ;;  %v13827_v44 = vpop.f32.mrf.mxu1 }
 0x203   : > { %19103 = vst [vmem:[#allocation41_spill] sm:$0xff] %v16951_v1  ;;  %v2004_v18 = vadd.f32 %v13827_v44, %v16831_v4 }
 0x204   : > { %v13913_v22 = vpop.f32.mrf.mxu0  ;;  %v16954_v29 = vpop.f32.mrf.mxu1 }
 0x205   : > { %19104 = vst [vmem:[#allocation42_spill] sm:$0xff] %v16954_v29  ;;  %v16956_v31 = vadd.f32 %v13913_v22, %v2004_v18  ;;  %v5091_v29 = vld [vmem:[#allocation8 + $0x5d8] sm:$0xff] }
 0x206   : > { %v16958_v39 = vpop.f32.mrf.mxu0  ;;  %v13830_v17 = vpop.f32.mrf.mxu1  ;;  %14447 = vmatprep.subr.mxu1 %v5091_v29 }
 0x207   : > { %19105 = vst [vmem:[#allocation43_spill] sm:$0xff] %v16958_v39  ;;  %v2006_v40 = vadd.f32 %v13830_v17, %v16837_v5  ;;  %14448 = vmatpush3.msra.mxu1 %v5091_v29 }
 0x208   : > { %v13916_v52 = vpop.f32.mrf.mxu0  ;;  %v16961_v32 = vpop.f32.mrf.mxu1 }
 0x209   : > { %19106 = vst [vmem:[#allocation44_spill] sm:$0xff] %v16961_v32  ;;  %v16963_v1 = vadd.f32 %v13916_v52, %v2006_v40 }
 0x20a   : > { %v16965_v4 = vpop.f32.mrf.mxu0  ;;  %v13833_v44 = vpop.f32.mrf.mxu1 }
 0x20b   : > { %19107 = vst [vmem:[#allocation45_spill] sm:$0xff] %v16965_v4  ;;  %v2008_v18 = vadd.f32 %v13833_v44, %v16843_v47  ;;  %v5090_v47 = vld [vmem:[#allocation8 + $0x5d0] sm:$0xff] }
 0x20c   : > { %v13919_v22 = vpop.f32.mrf.mxu0  ;;  %v16968_v39 = vpop.f32.mrf.mxu1  ;;  %14449 = vmatprep.subr.mxu1 %v5090_v47 }
 0x20d   : > { %19108 = vst [vmem:[#allocation46_spill] sm:$0xff] %v16968_v39  ;;  %v16970_v62 = vadd.f32 %v13919_v22, %v2008_v18  ;;  %14450 = vmatpush3.msra.mxu1 %v5090_v47 }
 0x20e   : > { %v16972_v5 = vpop.f32.mrf.mxu0  ;;  %v13836_v17 = vpop.f32.mrf.mxu1 }
 0x20f   : > { %19109 = vst [vmem:[#allocation47_spill] sm:$0xff] %v16972_v5  ;;  %v2010_v40 = vadd.f32 %v13836_v17, %v16851_v27  ;;  %v5089_v17 = vld [vmem:[#allocation8 + $0x5c8] sm:$0xff] }
 0x210   : > { %v13922_v52 = vpop.f32.mrf.mxu0  ;;  %v16975_v4 = vpop.f32.mrf.mxu1  ;;  %14451 = vmatprep.subr.mxu1 %v5089_v17 }
 0x211   : > { %19110 = vst [vmem:[#allocation48_spill] sm:$0xff] %v16975_v4  ;;  %v16977_v32 = vadd.f32 %v13922_v52, %v2010_v40  ;;  %14452 = vmatpush3.msra.mxu1 %v5089_v17 }
 0x212   : > { %v16979_v36 = vpop.f32.mrf.mxu0  ;;  %v13957_v44 = vpop.f32.mrf.mxu1 }
 0x213   : > { %19111 = vst [vmem:[#allocation49_spill] sm:$0xff] %v16979_v36  ;;  %v2788_v39 = vadd.f32 %v13957_v44, %v16858_v37  ;;  %v5501_v36 = vld [vmem:[#allocation8 + $0x678] sm:$0xff]  ;;  %v5088_v44 = vld [vmem:[#allocation8 + $0x5c0] sm:$0xff] }
 0x214   : > { %v14043_v18 = vpop.f32.mrf.mxu0  ;;  %v16982_v22 = vpop.f32.mrf.mxu1  ;;  %14525 = vmatprep.subr.mxu0 %v5501_v36  ;;  %14453 = vmatprep.subr.mxu1 %v5088_v44 }
 0x215   : > { %v16984_v29 = vadd.f32 %v14043_v18, %v2788_v39  ;;  %14526 = vmatpush3.msra.mxu0 %v5501_v36  ;;  %v5500_v39 = vld [vmem:[#allocation8 + $0x670] sm:$0xff]  ;;  %14454 = vmatpush3.msra.mxu1 %v5088_v44  ;;  %v5498_v36 = vld [vmem:[#allocation8 + $0x660] sm:$0xff]  ;;  %v5497_v44 = vld [vmem:[#allocation8 + $0x658] sm:$0xff] }
 0x216   : > { %v16986_v5 = vpop.f32.mrf.mxu0  ;;  %v13960_v27 = vpop.f32.mrf.mxu1  ;;  %14527 = vmatprep.subr.mxu0 %v5500_v39 }
 0x217   : > { %v2790_v40 = vadd.f32 %v13960_v27, %v16865_v49  ;;  %14528 = vmatpush3.msra.mxu0 %v5500_v39  ;;  %v5499_v27 = vld [vmem:[#allocation8 + $0x668] sm:$0xff] }
 0x218   : > { %v14046_v52 = vpop.f32.mrf.mxu0  ;;  %v16989_v4 = vpop.f32.mrf.mxu1  ;;  %14529 = vmatprep.subr.mxu0 %v5499_v27 }
 0x219   : > { %v16991_v37 = vadd.f32 %v14046_v52, %v2790_v40  ;;  %v5087_v52 = vld [vmem:[#allocation8 + $0x5b8] sm:$0xff]  ;;  %14530 = vmatpush3.msra.mxu0 %v5499_v27 }
 0x21a   : > { %v16993_v47 = vpop.f32.mrf.mxu0  ;;  %v13963_v18 = vpop.f32.mrf.mxu1  ;;  %14455 = vmatprep.subr.mxu1 %v5087_v52  ;;  %14531 = vmatprep.subr.mxu0 %v5498_v36 }
 0x21b   : > { %v2792_v25 = vadd.f32 %v13963_v18, %v16872_v59  ;;  %14456 = vmatpush3.msra.mxu1 %v5087_v52  ;;  %14532 = vmatpush3.msra.mxu0 %v5498_v36  ;;  %v5494_v36 = vld [vmem:[#allocation8 + $0x640] sm:$0xff] }
 0x21c   : > { %v14049_v49 = vpop.f32.mrf.mxu0  ;;  %v16996_v51 = vpop.f32.mrf.mxu1  ;;  %14533 = vmatprep.subr.mxu0 %v5497_v44  ;;  %14457 = vmatprep.subr.mxu1 %v5086_v35 }
 0x21d   : > { %v16998_v17 = vadd.f32 %v14049_v49, %v2792_v25  ;;  %14534 = vmatpush3.msra.mxu0 %v5497_v44  ;;  %v5496_v49 = vld [vmem:[#allocation8 + $0x650] sm:$0xff]  ;;  %14458 = vmatpush3.msra.mxu1 %v5086_v35 }
 0x21e   : > { %v17000_v40 = vpop.f32.mrf.mxu0  ;;  %v13966_v7 = vpop.f32.mrf.mxu1  ;;  %14535 = vmatprep.subr.mxu0 %v5496_v49  ;;  %v5492_v35 = vld [vmem:[#allocation8 + $0x630] sm:$0xff] }
 0x21f   : > { %v2794_v61 = vadd.f32 %v13966_v7, %v16879_v38  ;;  %14536 = vmatpush3.msra.mxu0 %v5496_v49  ;;  %v5495_v7 = vld [vmem:[#allocation8 + $0x648] sm:$0xff]  ;;  %v5493_v49 = vld [vmem:[#allocation8 + $0x638] sm:$0xff] }
 0x220   : > { %v14052_v59 = vpop.f32.mrf.mxu0  ;;  %v17003_v39 = vpop.f32.mrf.mxu1  ;;  %14537 = vmatprep.subr.mxu0 %v5495_v7 }
 0x221   : > { %v17005_v18 = vadd.f32 %v14052_v59, %v2794_v61  ;;  %14538 = vmatpush3.msra.mxu0 %v5495_v7 }
 0x222   : > { %v17007_v25 = vpop.f32.mrf.mxu0  ;;  %v13969_v27 = vpop.f32.mrf.mxu1  ;;  %14539 = vmatprep.subr.mxu0 %v5494_v36 }
 0x223   : > { %v2796_v6 = vadd.f32 %v13969_v27, %v16886_v55  ;;  %v5085_v27 = vld [vmem:[#allocation8 + $0x5a8] sm:$0xff]  ;;  %14540 = vmatpush3.msra.mxu0 %v5494_v36 }
 0x224   : > { %v14055_v23 = vpop.f32.mrf.mxu0  ;;  %v17010_v38 = vpop.f32.mrf.mxu1  ;;  %14459 = vmatprep.subr.mxu1 %v5085_v27  ;;  %14541 = vmatprep.subr.mxu0 %v5493_v49 }
 0x225   : > { %v17012_v52 = vadd.f32 %v14055_v23, %v2796_v6  ;;  %14460 = vmatpush3.msra.mxu1 %v5085_v27  ;;  %14542 = vmatpush3.msra.mxu0 %v5493_v49  ;;  %v5083_v49 = vld [vmem:[#allocation8 + $0x598] sm:$0xff] }
 0x226   : > { %v17014_v61 = vpop.f32.mrf.mxu0  ;;  %v13972_v59 = vpop.f32.mrf.mxu1  ;;  %14543 = vmatprep.subr.mxu0 %v5492_v35 }
 0x227   : > { %19112 = vst [vmem:[#allocation50_spill] sm:$0xff] %v17012_v52  ;;  %v2798_v44 = vadd.f32 %v13972_v59, %v16893_v11  ;;  %14544 = vmatpush3.msra.mxu0 %v5492_v35  ;;  %v5491_v59 = vld [vmem:[#allocation8 + $0x628] sm:$0xff]  ;;  %v5084_v52 = vld [vmem:[#allocation8 + $0x5a0] sm:$0xff] }
 0x228   : > { %v14058_v55 = vpop.f32.mrf.mxu0  ;;  %v17017_v9 = vpop.f32.mrf.mxu1  ;;  %14545 = vmatprep.subr.mxu0 %v5491_v59  ;;  %14461 = vmatprep.subr.mxu1 %v5084_v52 }
 0x229   : > { %19113 = vst [vmem:[#allocation51_spill] sm:$0xff] %v17017_v9  ;;  %v17019_v54 = vadd.f32 %v14058_v55, %v2798_v44  ;;  %14546 = vmatpush3.msra.mxu0 %v5491_v59  ;;  %v5490_v55 = vld [vmem:[#allocation8 + $0x620] sm:$0xff]  ;;  %14462 = vmatpush3.msra.mxu1 %v5084_v52 }
 0x22a   : > { %v17021_v6 = vpop.f32.mrf.mxu0  ;;  %v13975_v23 = vpop.f32.mrf.mxu1  ;;  %14547 = vmatprep.subr.mxu0 %v5490_v55  ;;  %14463 = vmatprep.subr.mxu1 %v5083_v49 }
 0x22b   : > { %19114 = vst [vmem:[#allocation52_spill] sm:$0xff] %v17019_v54  ;;  %19115 = vst [vmem:[#allocation53_spill] sm:$0xff] %v17021_v6  ;;  %v2800_v7 = vadd.f32 %v13975_v23, %v16900_v48  ;;  %v5082_v54 = vld [vmem:[#allocation8 + $0x590] sm:$0xff]  ;;  %14548 = vmatpush3.msra.mxu0 %v5490_v55  ;;  %v5489_v23 = vld [vmem:[#allocation8 + $0x618] sm:$0xff]  ;;  %14464 = vmatpush3.msra.mxu1 %v5083_v49 }
 0x22c   : > { %v14061_v11 = vpop.f32.mrf.mxu0  ;;  %v17024_v36 = vpop.f32.mrf.mxu1  ;;  %14549 = vmatprep.subr.mxu0 %v5489_v23  ;;  %14465 = vmatprep.subr.mxu1 %v5082_v54  ;;  %v5487_v55 = vld [vmem:[#allocation8 + $0x608] sm:$0xff]  ;;  %v5080_v49 = vld [vmem:[#allocation8 + $0x580] sm:$0xff] }
 0x22d   : > { %v17026_v9 = vadd.f32 %v14061_v11, %v2800_v7  ;;  %v5081_v7 = vld [vmem:[#allocation8 + $0x588] sm:$0xff]  ;;  %v5488_v11 = vld [vmem:[#allocation8 + $0x610] sm:$0xff]  ;;  %14550 = vmatpush3.msra.mxu0 %v5489_v23  ;;  %14466 = vmatpush3.msra.mxu1 %v5082_v54  ;;  %v5486_v23 = vld [vmem:[#allocation8 + $0x600] sm:$0xff] }
 0x22e   : > { %v17028_v44 = vpop.f32.mrf.mxu0  ;;  %v13978_v27 = vpop.f32.mrf.mxu1  ;;  %14551 = vmatprep.subr.mxu0 %v5488_v11  ;;  %14467 = vmatprep.subr.mxu1 %v5081_v7 }
 0x22f   : > { %19116 = vst [vmem:[#allocation54_spill] sm:$0xff] %v17026_v9  ;;  %v2802_v48 = vadd.f32 %v13978_v27, %v16907_v0  ;;  %14552 = vmatpush3.msra.mxu0 %v5488_v11  ;;  %14468 = vmatpush3.msra.mxu1 %v5081_v7 }
 0x230   : > { %v14064_v35 = vpop.f32.mrf.mxu0  ;;  %v17031_v6 = vpop.f32.mrf.mxu1  ;;  %14553 = vmatprep.subr.mxu0 %v5487_v55  ;;  %14469 = vmatprep.subr.mxu1 %v5080_v49 }
 0x231   : > { %19117 = vst [vmem:[#allocation55_spill] sm:$0xff] %v17031_v6  ;;  %v17033_v9 = vadd.f32 %v14064_v35, %v2802_v48  ;;  %14554 = vmatpush3.msra.mxu0 %v5487_v55  ;;  %14470 = vmatpush3.msra.mxu1 %v5080_v49 }
 0x232   : > { %v17035_v59 = vpop.f32.mrf.mxu0  ;;  %v13981_v52 = vpop.f32.mrf.mxu1  ;;  %14555 = vmatprep.subr.mxu0 %v5486_v23 }
 0x233   : > { %19118 = vst [vmem:[#allocation56_spill] sm:$0xff] %v17033_v9  ;;  %v2804_v0 = vadd.f32 %v13981_v52, %v16914_v19  ;;  %14556 = vmatpush3.msra.mxu0 %v5486_v23 }
 0x234   : > { %v14067_v27 = vpop.f32.mrf.mxu0  ;;  %v17038_v6 = vpop.f32.mrf.mxu1 }
 0x235   : > { %19119 = vst [vmem:[#allocation57_spill] sm:$0xff] %v17038_v6  ;;  %v17040_v48 = vadd.f32 %v14067_v27, %v2804_v0  ;;  %v5907_v6 = vld [vmem:[#allocation8 + $0x6f8] sm:$0xff] }
 0x236   : > { %v17042_v35 = vpop.f32.mrf.mxu0  ;;  %v13984_v54 = vpop.f32.mrf.mxu1  ;;  %14611 = vmatprep.subr.mxu1 %v5907_v6 }
 0x237   : > { %19120 = vst [vmem:[#allocation58_spill] sm:$0xff] %v17040_v48  ;;  %19121 = vst [vmem:[#allocation59_spill] sm:$0xff] %v17042_v35  ;;  %v2806_v19 = vadd.f32 %v13984_v54, %v16921_v30 }
 0x238   : > { %v14070_v52 = vpop.f32.mrf.mxu0  ;;  %v17045_v11 = vpop.f32.mrf.mxu1 }
 0x239   : > { %19122 = vst [vmem:[#allocation60_spill] sm:$0xff] %v17045_v11  ;;  %v17047_v7 = vadd.f32 %v14070_v52, %v2806_v19 }
 0x23a   : > { %v17049_v9 = vpop.f32.mrf.mxu0  ;;  %v13987_v0 = vpop.f32.mrf.mxu1 }
 0x23b   : > { %19123 = vst [vmem:[#allocation61_spill] sm:$0xff] %v17047_v7  ;;  %v2808_v27 = vadd.f32 %v13987_v0, %v16928_v63 }
 0x23c   : > { %v14073_v55 = vpop.f32.mrf.mxu0  ;;  %v17052_v48 = vpop.f32.mrf.mxu1 }
 0x23d   : > { %v17054_v49 = vadd.f32 %v14073_v55, %v2808_v27 }
 0x23e   : > { %v17056_v35 = vpop.f32.mrf.mxu0  ;;  %v13990_v30 = vpop.f32.mrf.mxu1 }
 0x23f   : > { %19124 = vst [vmem:[#allocation62_spill] sm:$0xff] %v17054_v49  ;;  %19125 = vst [vmem:[#allocation63_spill] sm:$0xff] %v17056_v35  ;;  %v2810_v23 = vadd.f32 %v13990_v30, %v16935_v46 }
 0x240   : > { %v14076_v54 = vpop.f32.mrf.mxu0  ;;  %v17059_v11 = vpop.f32.mrf.mxu1 }
 0x241   : > { %v17061_v19 = vadd.f32 %v14076_v54, %v2810_v23 }
 0x242   : > { %v17063_v52 = vpop.f32.mrf.mxu0  ;;  %v13993_v6 = vpop.f32.mrf.mxu1 }
 0x243   : > { %19126 = vst [vmem:[#allocation64_spill] sm:$0xff] %v17061_v19  ;;  %19127 = vst [vmem:[#allocation65_spill] sm:$0xff] %v17063_v52  ;;  %v2812_v63 = vadd.f32 %v13993_v6, %v16942_v58 }
 0x244   : > { %v14079_v0 = vpop.f32.mrf.mxu0  ;;  %v17066_v7 = vpop.f32.mrf.mxu1 }
 0x245   : > { %v17068_v27 = vadd.f32 %v14079_v0, %v2812_v63 }
 0x246   : > { %v17070_v55 = vpop.f32.mrf.mxu0  ;;  %v13996_v49 = vpop.f32.mrf.mxu1 }
 0x247   : > { %19128 = vst [vmem:[#allocation66_spill] sm:$0xff] %v17068_v27  ;;  %19129 = vst [vmem:[#allocation67_spill] sm:$0xff] %v17070_v55  ;;  %v2814_v46 = vadd.f32 %v13996_v49, %v16949_v12 }
 0x248   : > { %v14082_v30 = vpop.f32.mrf.mxu0  ;;  %v17073_v35 = vpop.f32.mrf.mxu1 }
 0x249   : > { %v17075_v23 = vadd.f32 %v14082_v30, %v2814_v46  ;;  %v1975_v46 = vadd.f32 %v16856_v43, %v16750_v8 }
 0x24a   : > { %v17077_v54 = vpop.f32.mrf.mxu0  ;;  %v13999_v19 = vpop.f32.mrf.mxu1 }
 0x24b   : > { %19130 = vst [vmem:[#allocation68_spill] sm:$0xff] %v17075_v23  ;;  %v2816_v58 = vadd.f32 %v13999_v19, %v16956_v31 }
 0x24c   : > { %v14085_v6 = vpop.f32.mrf.mxu0  ;;  %v17080_v52 = vpop.f32.mrf.mxu1 }
 0x24d   : > { %v17082_v63 = vadd.f32 %v14085_v6, %v2816_v58 }
 0x24e   : > { %v17084_v0 = vpop.f32.mrf.mxu0  ;;  %v14002_v27 = vpop.f32.mrf.mxu1 }
 0x24f   : > { %19131 = vst [vmem:[#allocation69_spill] sm:$0xff] %v17082_v63  ;;  %19132 = vst [vmem:[#allocation70_spill] sm:$0xff] %v17084_v0  ;;  %v2818_v12 = vadd.f32 %v14002_v27, %v16963_v1  ;;  %v2381_v63 = vadd.f32 %v16860_v20, %v1975_v46  ;;  %v1977_v1 = vadd.f32 %v16863_v60, %v16756_v28 }
 0x250   : > { %v14088_v49 = vpop.f32.mrf.mxu0  ;;  %v17087_v55 = vpop.f32.mrf.mxu1  ;;  %v1979_v28 = vadd.f32 %v16870_v41, %v16762_v24  ;;  %v1197_v24 = vadd.f32 %v16849_v42, %v16742_v26  ;;  %v1985_v26 = vadd.f32 %v16891_v50, %v16780_v14 }
 0x251   : > { %v17091_v30 = vadd.f32 %v14088_v49, %v2818_v12  ;;  %v2787_v43 = vadd.f32 %v16982_v22, %v2381_v63  ;;  %v1981_v63 = vadd.f32 %v16877_v34, %v16768_v2 }
 0x252   : > { %v17093_v23 = vpop.f32.mrf.mxu0  ;;  %v14005_v31 = vpop.f32.mrf.mxu1  ;;  %v2385_v41 = vadd.f32 %v16874_v53, %v1979_v28 }
 0x253   : > { %19133 = vst [vmem:[#allocation71_spill] sm:$0xff] %v17091_v30  ;;  %v2820_v19 = vadd.f32 %v14005_v31, %v16970_v62  ;;  %v2383_v62 = vadd.f32 %v16867_v56, %v1977_v1  ;;  %v3193_v46 = vadd.f32 %v16986_v5, %v2787_v43  ;;  %v17128_v5 = vld [vmem:[#allocation10 + $0x1] ss:$0 sm:$0xff] }
 0x254   : > { %v14091_v58 = vpop.f32.mrf.mxu0  ;;  %v17096_v6 = vpop.f32.mrf.mxu1  ;;  %v2791_v42 = vadd.f32 %v16996_v51, %v2385_v41 }
 0x255   : > { %v17101_v27 = vadd.f32 %v14091_v58, %v2820_v19  ;;  %v2789_v19 = vadd.f32 %v16989_v4, %v2383_v62  ;;  %v17121_v58 = vld [vmem:[#allocation10] ss:$0 sm:$0xff]  ;;  %v1983_v4 = vadd.f32 %v16884_v10, %v16774_v15 }
 0x256   : > { %v17103_v0 = vpop.f32.mrf.mxu0  ;;  %v14008_v8 = vpop.f32.mrf.mxu1 }
 0x257   : > { %v2822_v12 = vadd.f32 %v14008_v8, %v16977_v32  ;;  %v3195_v43 = vadd.f32 %v16993_v47, %v2789_v19 }
 0x258   : > { %v14094_v49 = vpop.f32.mrf.mxu0  ;;  %v17107_v30 = vpop.f32.mrf.mxu1 }
 0x259   : > { %v17110_v31 = vadd.f32 %v14094_v49, %v2822_v12 }
 0x25a   : > { %v17112_v20 = vpop.f32.mrf.mxu0  ;;  %v14129_v60 = vpop.f32.mrf.mxu1 }
 0x25b   : > { %v3600_v22 = vadd.f32 %v14129_v60, %v16984_v29  ;;  %v6313_v60 = vld [vmem:[#allocation8 + $0x778] sm:$0xff] }
 0x25c   : > { %v14215_v32 = vpop.f32.mrf.mxu0  ;;  %v3384_v56 = vpop.f32.mrf.mxu1  ;;  %14697 = vmatprep.subr.mxu0 %v6313_v60 }
 0x25d   : > { %v4006_v1 = vadd.f32 %v14215_v32, %v3600_v22  ;;  %v3599_v8 = vadd.f32 %v3384_v56, %v3193_v46  ;;  %v2387_v46 = vadd.f32 %v16881_v13, %v1981_v63  ;;  %v2389_v22 = vadd.f32 %v16888_v21, %v1983_v4  ;;  %v461_v32 = vld [vmem:[#allocation11 + $0x8] sm:$0xff] }
 0x25e   : > { %v3790_v12 = vpop.f32.mrf.mxu0  ;;  %v14132_v29 = vpop.f32.mrf.mxu1 }
 0x25f   : > { %v4120_v2 = vmul.f32 %v17121_v58, %v4006_v1  ;;  %v4005_v34 = vadd.f32 %v3790_v12, %v3599_v8  ;;  %v3602_v49 = vadd.f32 %v14132_v29, %v16991_v37  ;;  %v17140_v37 = vadd.f32 %v16853_v3, %v1197_v24  ;;  %v460_v24 = vld [vmem:[#allocation11] sm:$0xff] }
 0x260   : > { %v14218_v62 = vpop.f32.mrf.mxu0  ;;  %v3394_v15 = vpop.f32.mrf.mxu1  ;;  %v2793_v13 = vadd.f32 %v17003_v39, %v2387_v46  ;;  %v2391_v8 = vadd.f32 %v16895_v16, %v1985_v26  ;;  %v1987_v12 = vadd.f32 %v16898_v45, %v16786_v57  ;;  %v3197_v3 = vadd.f32 %v17000_v40, %v2791_v42 }
 0x261   : > { %v4160_v53 = vadd.f32 %v17128_v5, %v4120_v2  ;;  %v4119_v10 = vmul.f32 %v17121_v58, %v4005_v34  ;;  %v4008_v47 = vadd.f32 %v14218_v62, %v3602_v49  ;;  %v3601_v28 = vadd.f32 %v3394_v15, %v3195_v43  ;;  %v463_v49 = vld [vmem:[#allocation11 + $0x18] sm:$0xff]  ;;  %v19134_v15 = vld [vmem:[#allocation18_spill] sm:$0xff] }
 0x262   : > { %v3800_v19 = vpop.f32.mrf.mxu0  ;;  %v14135_v14 = vpop.f32.mrf.mxu1  ;;  %v3199_v34 = vadd.f32 %v17007_v25, %v2793_v13  ;;  %v2795_v16 = vadd.f32 %v17010_v38, %v2389_v22  ;;  %v2393_v42 = vadd.f32 %v16902_v33, %v1987_v12  ;;  %v462_v25 = vld [vmem:[#allocation11 + $0x10] sm:$0xff] }
 0x263   : > { %v4196_v50 = vmax.f32 %v4160_v53, 0.0  ;;  %v4159_v51 = vadd.f32 %v17128_v5, %v4119_v10  ;;  %v4122_v63 = vmul.f32 %v17121_v58, %v4008_v47  ;;  %v4007_v56 = vadd.f32 %v3800_v19, %v3601_v28  ;;  %v19135_v53 = vld [vmem:[#allocation28_spill] sm:$0xff] }
 0x264   : > { %v14221_v1 = vpop.f32.mrf.mxu0  ;;  %v3604_v21 = vadd.f32 %v14135_v14, %v16998_v17  ;;  %v3404_v39 = vpop.f32.mrf.mxu1  ;;  %v1989_v10 = vadd.f32 %v19135_v53, %v19134_v15 }
 0x265   : > { %v4232_v41 = vmul.f32 %v4196_v50, %v461_v32  ;;  %v4195_v4 = vmax.f32 %v4159_v51, 0.0  ;;  %v4162_v29 = vadd.f32 %v17128_v5, %v4122_v63  ;;  %v4121_v43 = vmul.f32 %v17121_v58, %v4007_v56  ;;  %v19136_v50 = vld [vmem:[#allocation19_spill] sm:$0xff]  ;;  %v19137_v51 = vld [vmem:[#allocation30_spill] sm:$0xff] }
 0x266   : > { %v3810_v2 = vpop.f32.mrf.mxu0  ;;  %v4010_v62 = vadd.f32 %v14221_v1, %v3604_v21  ;;  %v3603_v57 = vadd.f32 %v3404_v39, %v3197_v3  ;;  %v14138_v45 = vpop.f32.mrf.mxu1  ;;  %v3201_v63 = vadd.f32 %v17014_v61, %v2795_v16  ;;  %v465_v3 = vld [vmem:[#allocation11 + $0x28] sm:$0xff]  ;;  %v19138_v39 = vld [vmem:[#allocation50_spill] sm:$0xff] }
 0x267   : > { %4268 = vst [vmem:[#allocation3 + $0x1b] sm:$0xff] %v4232_v41  ;;  %v4231_v40 = vmul.f32 %v4195_v4, %v460_v24  ;;  %v4198_v60 = vmax.f32 %v4162_v29, 0.0  ;;  %v4161_v17 = vadd.f32 %v17128_v5, %v4121_v43  ;;  %v3606_v46 = vadd.f32 %v14138_v45, %v17005_v18  ;;  %v19139_v29 = vld [vmem:[#allocation51_spill] sm:$0xff] }
 0x268   : > { %v14224_v26 = vpop.f32.mrf.mxu0  ;;  %v4124_v38 = vmul.f32 %v17121_v58, %v4010_v62  ;;  %v4009_v47 = vadd.f32 %v3810_v2, %v3603_v57  ;;  %v3414_v28 = vpop.f32.mrf.mxu1  ;;  %v1991_v18 = vadd.f32 %v19137_v51, %v19136_v50  ;;  %v2797_v43 = vadd.f32 %v19139_v29, %v2391_v8  ;;  %v19143_v50 = vld [vmem:[#allocation52_spill] sm:$0xff] }
 0x269   : > { %4267 = vst [vmem:[#allocation3 + $0x13] sm:$0xff] %v4231_v40  ;;  %v4234_v19 = vmul.f32 %v4198_v60, %v463_v49  ;;  %v4197_v22 = vmax.f32 %v4161_v17, 0.0  ;;  %v4012_v13 = vadd.f32 %v14224_v26, %v3606_v46  ;;  %v3605_v32 = vadd.f32 %v3414_v28, %v3199_v34  ;;  %v464_v49 = vld [vmem:[#allocation11 + $0x20] sm:$0xff]  ;;  %v19140_v17 = vld [vmem:[#allocation29_spill] sm:$0xff]  ;;  %v19141_v26 = vld [vmem:[#allocation31_spill] sm:$0xff] }
 0x26a   : > { %v3820_v14 = vpop.f32.mrf.mxu0  ;;  %v4164_v33 = vadd.f32 %v17128_v5, %v4124_v38  ;;  %v4123_v56 = vmul.f32 %v17121_v58, %v4009_v47  ;;  %v14141_v1 = vpop.f32.mrf.mxu1  ;;  %v2799_v2 = vadd.f32 %v17024_v36, %v2393_v42  ;;  %v2395_v46 = vadd.f32 %v19140_v17, %v1989_v10  ;;  %v467_v42 = vld [vmem:[#allocation11 + $0x38] sm:$0xff]  ;;  %v466_v38 = vld [vmem:[#allocation11 + $0x30] sm:$0xff] }
 0x26b   : > { %4270 = vst [vmem:[#allocation3 + $0x2b] sm:$0xff] %v4234_v19  ;;  %v4233_v12 = vmul.f32 %v4197_v22, %v462_v25  ;;  %v4126_v24 = vmul.f32 %v17121_v58, %v4012_v13  ;;  %v4011_v21 = vadd.f32 %v3820_v14, %v3605_v32  ;;  %v3608_v41 = vadd.f32 %v14141_v1, %v19138_v39  ;;  %v19142_v13 = vld [vmem:[#allocation53_spill] sm:$0xff] }
 0x26c   : > { %v14227_v4 = vpop.f32.mrf.mxu0  ;;  %v4200_v34 = vmax.f32 %v4164_v33, 0.0  ;;  %v4163_v61 = vadd.f32 %v17128_v5, %v4123_v56  ;;  %v3424_v16 = vpop.f32.mrf.mxu1  ;;  %v17175_v15 = vadd.f32 %v19141_v26, %v1991_v18  ;;  %v3203_v32 = vadd.f32 %v19142_v13, %v2797_v43  ;;  %v19149_v26 = vld [vmem:[#allocation34_spill] sm:$0xff] }
 0x26d   : > { %4269 = vst [vmem:[#allocation3 + $0x23] sm:$0xff] %v4233_v12  ;;  %v4166_v62 = vadd.f32 %v17128_v5, %v4126_v24  ;;  %v4125_v57 = vmul.f32 %v17121_v58, %v4011_v21  ;;  %v4014_v45 = vadd.f32 %v14227_v4, %v3608_v41  ;;  %v3607_v40 = vadd.f32 %v3424_v16, %v3201_v63  ;;  %v19144_v41 = vld [vmem:[#allocation55_spill] sm:$0xff]  ;;  %v469_v4 = vld [vmem:[#allocation11 + $0x48] sm:$0xff]  ;;  %v468_v16 = vld [vmem:[#allocation11 + $0x40] sm:$0xff] }
 0x26e   : > { %v3830_v60 = vpop.f32.mrf.mxu0  ;;  %v4236_v8 = vmul.f32 %v4200_v34, %v465_v3  ;;  %v4199_v36 = vmax.f32 %v4163_v61, 0.0  ;;  %v14144_v53 = vpop.f32.mrf.mxu1  ;;  %v3205_v14 = vadd.f32 %v17028_v44, %v2799_v2  ;;  %v2801_v44 = vadd.f32 %v19144_v41, %v2395_v46  ;;  %v19148_v46 = vld [vmem:[#allocation21_spill] sm:$0xff] }
 0x26f   : > { %v4202_v25 = vmax.f32 %v4166_v62, 0.0  ;;  %v4165_v47 = vadd.f32 %v17128_v5, %v4125_v57  ;;  %v4128_v28 = vmul.f32 %v17121_v58, %v4014_v45  ;;  %v4013_v19 = vadd.f32 %v3830_v60, %v3607_v40  ;;  %v19145_v62 = vld [vmem:[#allocation54_spill] sm:$0xff]  ;;  %v19146_v40 = vld [vmem:[#allocation20_spill] sm:$0xff] }
 0x270   : > { %v14230_v22 = vpop.f32.mrf.mxu0  ;;  %4272 = vst [vmem:[#allocation3 + $0x3b] sm:$0xff] %v4236_v8  ;;  %v4235_v10 = vmul.f32 %v4199_v36, %v464_v49  ;;  %v3610_v51 = vadd.f32 %v14144_v53, %v19143_v50  ;;  %v3434_v18 = vpop.f32.mrf.mxu1  ;;  %v4305_v63 = vld [vmem:[#allocation3 + $0x10] sm:$0xff]  ;;  %v4306_v56 = vld [vmem:[#allocation3 + $0x18] sm:$0xff]  ;;  %v1995_v8 = vadd.f32 %v19149_v26, %v19148_v46  ;;  %v3207_v50 = vadd.f32 %v17035_v59, %v2801_v44 }
 0x271   : > { %v4639_v33 = vld [vmem:[#allocation3 + $0x11] sm:$0xff]  ;;  %v4238_v1 = vmul.f32 %v4202_v25, %v467_v42  ;;  %v4201_v12 = vmax.f32 %v4165_v47, 0.0  ;;  %v4168_v3 = vadd.f32 %v17128_v5, %v4128_v28  ;;  %v4127_v24 = vmul.f32 %v17121_v58, %v4013_v19  ;;  %14302 = vmatprep.mubr.f32.mxu1 %v4305_v63  ;;  %v4640_v39 = vld [vmem:[#allocation3 + $0x19] sm:$0xff] }
 0x272   : > { %v3840_v21 = vpop.f32.mrf.mxu0  ;;  %14388 = vmatprep.mubr.f32.mxu0 %v4639_v33  ;;  %4271 = vst [vmem:[#allocation3 + $0x33] sm:$0xff] %v4235_v10  ;;  %v4016_v29 = vadd.f32 %v14230_v22, %v3610_v51  ;;  %v3609_v43 = vadd.f32 %v3434_v18, %v3203_v32  ;;  %v14147_v2 = vpop.f32.mrf.mxu1  ;;  %14303 = vmatmul.mubr.f32.gmra.mxu1 %v4306_v56  ;;  %v19147_v60 = vld [vmem:[#allocation32_spill] sm:$0xff]  ;;  %v471_v56 = vld [vmem:[#allocation11 + $0x58] sm:$0xff]  ;;  %v19152_v59 = vld [vmem:[#allocation57_spill] sm:$0xff] }
 0x273   : > { %14389 = vmatmul.mubr.f32.gmra.mxu0 %v4640_v39  ;;  %4274 = vst [vmem:[#allocation3 + $0x4b] sm:$0xff] %v4238_v1  ;;  %v4237_v34 = vmul.f32 %v4201_v12, %v466_v38  ;;  %v4204_v61 = vmax.f32 %v4168_v3, 0.0  ;;  %v4167_v49 = vadd.f32 %v17128_v5, %v4127_v24  ;;  %v3612_v57 = vadd.f32 %v14147_v2, %v19145_v62 }
 0x274   : > { %v14233_v45 = vpop.f32.mrf.mxu0  ;;  %v1993_v17 = vadd.f32 %v19147_v60, %v19146_v40  ;;  %v4130_v36 = vmul.f32 %v17121_v58, %v4016_v29  ;;  %v4015_v42 = vadd.f32 %v3840_v21, %v3609_v43  ;;  %v3444_v53 = vpop.f32.mrf.mxu1  ;;  %v4307_v25 = vld [vmem:[#allocation3 + $0x20] sm:$0xff]  ;;  %v4308_v38 = vld [vmem:[#allocation3 + $0x28] sm:$0xff]  ;;  %v19151_v21 = vld [vmem:[#allocation33_spill] sm:$0xff]  ;;  %v2803_v41 = vadd.f32 %v19152_v59, %v17175_v15 }
 0x275   : > { %v4641_v47 = vld [vmem:[#allocation3 + $0x21] sm:$0xff]  ;;  %4273 = vst [vmem:[#allocation3 + $0x43] sm:$0xff] %v4237_v34  ;;  %v4240_v28 = vmul.f32 %v4204_v61, %v469_v4  ;;  %v4203_v19 = vmax.f32 %v4167_v49, 0.0  ;;  %v4018_v22 = vadd.f32 %v14233_v45, %v3612_v57  ;;  %v3611_v13 = vadd.f32 %v3444_v53, %v3205_v14  ;;  %14305 = vmatprep.mubr.f32.mxu1 %v4307_v25  ;;  %v4642_v10 = vld [vmem:[#allocation3 + $0x29] sm:$0xff] }
 0x276   : > { %v3850_v32 = vpop.f32.mrf.mxu0  ;;  %14391 = vmatprep.mubr.f32.mxu0 %v4641_v47  ;;  %v4170_v51 = vadd.f32 %v17128_v5, %v4130_v36  ;;  %v4129_v18 = vmul.f32 %v17121_v58, %v4015_v42  ;;  %v14150_v63 = vpop.f32.mrf.mxu1  ;;  %14306 = vmatmul.mubr.f32.gmra.mxu1 %v4308_v38  ;;  %v19150_v14 = vld [vmem:[#allocation56_spill] sm:$0xff]  ;;  %v2399_v39 = vadd.f32 %v19151_v21, %v1993_v17  ;;  %v470_v4 = vld [vmem:[#allocation11 + $0x50] sm:$0xff]  ;;  %v19153_v40 = vld [vmem:[#allocation35_spill] sm:$0xff] }
 0x277   : > { %14392 = vmatmul.mubr.f32.gmra.mxu0 %v4642_v10  ;;  %4276 = vst [vmem:[#allocation3 + $0x5b] sm:$0xff] %v4240_v28  ;;  %v4239_v33 = vmul.f32 %v4203_v19, %v468_v16  ;;  %v4132_v1 = vmul.f32 %v17121_v58, %v4018_v22  ;;  %v4017_v12 = vadd.f32 %v3850_v32, %v3611_v13  ;;  %v19154_v17 = vld [vmem:[#allocation60_spill] sm:$0xff]  ;;  %v473_v36 = vld [vmem:[#allocation11 + $0x68] sm:$0xff]  ;;  %v19157_v10 = vld [vmem:[#allocation59_spill] sm:$0xff] }
 0x278   : > { %v3614_v3 = vadd.f32 %v14150_v63, %v19150_v14  ;;  %v14236_v24 = vpop.f32.mrf.mxu0  ;;  %v4206_v44 = vmax.f32 %v4170_v51, 0.0  ;;  %v4169_v29 = vadd.f32 %v17128_v5, %v4129_v18  ;;  %v3454_v43 = vpop.f32.mrf.mxu1  ;;  %v2401_v60 = vadd.f32 %v19153_v40, %v1995_v8  ;;  %v472_v47 = vld [vmem:[#allocation11 + $0x60] sm:$0xff]  ;;  %v19155_v8 = vld [vmem:[#allocation22_spill] sm:$0xff]  ;;  %v19160_v40 = vld [vmem:[#allocation37_spill] sm:$0xff] }
 0x279   : > { %4275 = vst [vmem:[#allocation3 + $0x53] sm:$0xff] %v4239_v33  ;;  %v4172_v2 = vadd.f32 %v17128_v5, %v4132_v1  ;;  %v4131_v34 = vmul.f32 %v17121_v58, %v4017_v12  ;;  %v3613_v16 = vadd.f32 %v3454_v43, %v3207_v50  ;;  %v4309_v62 = vld [vmem:[#allocation3 + $0x30] sm:$0xff]  ;;  %v4310_v45 = vld [vmem:[#allocation3 + $0x38] sm:$0xff]  ;;  %v2805_v15 = vadd.f32 %v19154_v17, %v2399_v39  ;;  %v19158_v18 = vld [vmem:[#allocation58_spill] sm:$0xff] }
 0x27a   : > { %v4020_v61 = vadd.f32 %v14236_v24, %v3614_v3  ;;  %v3860_v49 = vpop.f32.mrf.mxu0  ;;  %v4643_v57 = vld [vmem:[#allocation3 + $0x31] sm:$0xff]  ;;  %v4242_v46 = vmul.f32 %v4206_v44, %v471_v56  ;;  %v4205_v26 = vmax.f32 %v4169_v29, 0.0  ;;  %14308 = vmatprep.mubr.f32.mxu1 %v4309_v62  ;;  %v14153_v42 = vpop.f32.mrf.mxu1  ;;  %v4644_v53 = vld [vmem:[#allocation3 + $0x39] sm:$0xff]  ;;  %v3209_v50 = vadd.f32 %v19157_v10, %v2803_v41  ;;  %v19161_v17 = vld [vmem:[#allocation23_spill] sm:$0xff] }
 0x27b   : > { %14394 = vmatprep.mubr.f32.mxu0 %v4643_v57  ;;  %v4208_v25 = vmax.f32 %v4172_v2, 0.0  ;;  %v4171_v38 = vadd.f32 %v17128_v5, %v4131_v34  ;;  %v4019_v19 = vadd.f32 %v3860_v49, %v3613_v16  ;;  %14309 = vmatmul.mubr.f32.gmra.mxu1 %v4310_v45  ;;  %v19156_v13 = vld [vmem:[#allocation36_spill] sm:$0xff]  ;;  %v3616_v63 = vadd.f32 %v14153_v42, %v19158_v18  ;;  %v474_v16 = vld [vmem:[#allocation11 + $0x70] sm:$0xff]  ;;  %v19159_v62 = vld [vmem:[#allocation61_spill] sm:$0xff] }
 0x27c   : > { %v4134_v28 = vmul.f32 %v17121_v58, %v4020_v61  ;;  %14395 = vmatmul.mubr.f32.gmra.mxu0 %v4644_v53  ;;  %v14239_v22 = vpop.f32.mrf.mxu0  ;;  %v1997_v32 = vadd.f32 %v19156_v13, %v19155_v8  ;;  %4278 = vst [vmem:[#allocation3 + $0x6b] sm:$0xff] %v4242_v46  ;;  %v4241_v51 = vmul.f32 %v4205_v26, %v470_v4  ;;  %v3464_v33 = vpop.f32.mrf.mxu1  ;;  %v4311_v56 = vld [vmem:[#allocation3 + $0x40] sm:$0xff]  ;;  %v4312_v12 = vld [vmem:[#allocation3 + $0x48] sm:$0xff]  ;;  %v19163_v8 = vld [vmem:[#allocation24_spill] sm:$0xff] }
 0x27d   : > { %v4645_v1 = vld [vmem:[#allocation3 + $0x41] sm:$0xff]  ;;  %v4244_v14 = vmul.f32 %v4208_v25, %v473_v36  ;;  %v4207_v3 = vmax.f32 %v4171_v38, 0.0  ;;  %v4133_v21 = vmul.f32 %v17121_v58, %v4019_v19  ;;  %14311 = vmatprep.mubr.f32.mxu1 %v4311_v56  ;;  %v4646_v59 = vld [vmem:[#allocation3 + $0x49] sm:$0xff]  ;;  %v3211_v41 = vadd.f32 %v17049_v9, %v2805_v15  ;;  %v477_v56 = vld [vmem:[#allocation11 + $0x88] sm:$0xff] }
 0x27e   : > { %v4174_v24 = vadd.f32 %v17128_v5, %v4134_v28  ;;  %v3870_v39 = vpop.f32.mrf.mxu0  ;;  %14397 = vmatprep.mubr.f32.mxu0 %v4645_v1  ;;  %v2807_v44 = vadd.f32 %v17052_v48, %v2401_v60  ;;  %4277 = vst [vmem:[#allocation3 + $0x63] sm:$0xff] %v4241_v51  ;;  %v475_v4 = vld [vmem:[#allocation11 + $0x78] sm:$0xff]  ;;  %v4022_v29 = vadd.f32 %v14239_v22, %v3616_v63  ;;  %v14156_v2 = vpop.f32.mrf.mxu1  ;;  %v19162_v48 = vld [vmem:[#allocation38_spill] sm:$0xff]  ;;  %v19164_v13 = vld [vmem:[#allocation40_spill] sm:$0xff] }
 0x27f   : > { %v3615_v43 = vadd.f32 %v3464_v33, %v3209_v50  ;;  %4280 = vst [vmem:[#allocation3 + $0x7b] sm:$0xff] %v4244_v14  ;;  %v4243_v34 = vmul.f32 %v4207_v3, %v472_v47  ;;  %v4173_v49 = vadd.f32 %v17128_v5, %v4133_v21  ;;  %v3618_v57 = vadd.f32 %v14156_v2, %v19159_v62  ;;  %v19165_v10 = vld [vmem:[#allocation63_spill] sm:$0xff]  ;;  %v19166_v14 = vld [vmem:[#allocation62_spill] sm:$0xff] }
 0x280   : > { %v4210_v61 = vmax.f32 %v4174_v24, 0.0  ;;  %14312 = vmatmul.mubr.f32.gmra.mxu1 %v4312_v12  ;;  %14398 = vmatmul.mubr.f32.gmra.mxu0 %v4646_v59  ;;  %v14242_v45 = vpop.f32.mrf.mxu0  ;;  %v2403_v9 = vadd.f32 %v19160_v40, %v1997_v32  ;;  %v1999_v60 = vadd.f32 %v19162_v48, %v19161_v17  ;;  %v4136_v15 = vmul.f32 %v17121_v58, %v4022_v29  ;;  %v3474_v26 = vpop.f32.mrf.mxu1  ;;  %v4313_v36 = vld [vmem:[#allocation3 + $0x50] sm:$0xff]  ;;  %v4314_v53 = vld [vmem:[#allocation3 + $0x58] sm:$0xff]  ;;  %v19167_v21 = vld [vmem:[#allocation39_spill] sm:$0xff] }
 0x281   : > { %v4021_v46 = vadd.f32 %v3870_v39, %v3615_v43  ;;  %v4647_v42 = vld [vmem:[#allocation3 + $0x51] sm:$0xff]  ;;  %4279 = vst [vmem:[#allocation3 + $0x73] sm:$0xff] %v4243_v34  ;;  %v4209_v47 = vmax.f32 %v4173_v49, 0.0  ;;  %v4024_v38 = vadd.f32 %v14242_v45, %v3618_v57  ;;  %v3617_v28 = vadd.f32 %v3474_v26, %v3211_v41  ;;  %14314 = vmatprep.mubr.f32.mxu1 %v4313_v36  ;;  %v4648_v22 = vld [vmem:[#allocation3 + $0x59] sm:$0xff]  ;;  %v479_v48 = vld [vmem:[#allocation11 + $0x98] sm:$0xff] }
 0x282   : > { %v4246_v25 = vmul.f32 %v4210_v61, %v475_v4  ;;  %v3880_v19 = vpop.f32.mrf.mxu0  ;;  %14400 = vmatprep.mubr.f32.mxu0 %v4647_v42  ;;  %v2001_v32 = vadd.f32 %v19164_v13, %v19163_v8  ;;  %v3213_v50 = vadd.f32 %v19165_v10, %v2807_v44  ;;  %v4176_v51 = vadd.f32 %v17128_v5, %v4136_v15  ;;  %v14159_v63 = vpop.f32.mrf.mxu1  ;;  %v476_v44 = vld [vmem:[#allocation11 + $0x80] sm:$0xff]  ;;  %v19168_v45 = vld [vmem:[#allocation41_spill] sm:$0xff]  ;;  %v478_v26 = vld [vmem:[#allocation11 + $0x90] sm:$0xff] }
 0x283   : > { %v4135_v18 = vmul.f32 %v17121_v58, %v4021_v46  ;;  %v4245_v33 = vmul.f32 %v4209_v47, %v474_v16  ;;  %v4138_v1 = vmul.f32 %v17121_v58, %v4024_v38  ;;  %v4023_v12 = vadd.f32 %v3880_v19, %v3617_v28  ;;  %v19169_v47 = vld [vmem:[#allocation25_spill] sm:$0xff]  ;;  %v19170_v38 = vld [vmem:[#allocation42_spill] sm:$0xff]  ;;  %v19172_v8 = vld [vmem:[#allocation64_spill] sm:$0xff] }
 0x284   : > { %4282 = vst [vmem:[#allocation3 + $0x8b] sm:$0xff] %v4246_v25  ;;  %v3620_v3 = vadd.f32 %v14159_v63, %v19166_v14  ;;  %14315 = vmatmul.mubr.f32.gmra.mxu1 %v4314_v53  ;;  %v14245_v24 = vpop.f32.mrf.mxu0  ;;  %v2405_v39 = vadd.f32 %v19167_v21, %v1999_v60  ;;  %v2809_v59 = vadd.f32 %v17059_v11, %v2403_v9  ;;  %v4212_v41 = vmax.f32 %v4176_v51, 0.0  ;;  %v3484_v29 = vpop.f32.mrf.mxu1  ;;  %v19173_v14 = vld [vmem:[#allocation67_spill] sm:$0xff]  ;;  %v481_v21 = vld [vmem:[#allocation11 + $0xa8] sm:$0xff] }
 0x285   : > { %v4175_v4 = vadd.f32 %v17128_v5, %v4135_v18  ;;  %14401 = vmatmul.mubr.f32.gmra.mxu0 %v4648_v22  ;;  %4281 = vst [vmem:[#allocation3 + $0x83] sm:$0xff] %v4245_v33  ;;  %v4178_v43 = vadd.f32 %v17128_v5, %v4138_v1  ;;  %v4137_v2 = vmul.f32 %v17121_v58, %v4023_v12  ;;  %v4315_v49 = vld [vmem:[#allocation3 + $0x60] sm:$0xff]  ;;  %v4316_v57 = vld [vmem:[#allocation3 + $0x68] sm:$0xff] }
 0x286   : > { %v4026_v34 = vadd.f32 %v14245_v24, %v3620_v3  ;;  %v3619_v61 = vadd.f32 %v3484_v29, %v3213_v50  ;;  %v3890_v16 = vpop.f32.mrf.mxu0  ;;  %v4649_v62 = vld [vmem:[#allocation3 + $0x61] sm:$0xff]  ;;  %v2407_v40 = vadd.f32 %v19168_v45, %v2001_v32  ;;  %v2811_v11 = vadd.f32 %v17066_v7, %v2405_v39  ;;  %14317 = vmatprep.mubr.f32.mxu1 %v4315_v49  ;;  %v14162_v60 = vpop.f32.mrf.mxu1  ;;  %v4650_v15 = vld [vmem:[#allocation3 + $0x69] sm:$0xff]  ;;  %v19171_v7 = vld [vmem:[#allocation65_spill] sm:$0xff] }
 0x287   : > { %v4248_v9 = vmul.f32 %v4212_v41, %v477_v56  ;;  %v4211_v17 = vmax.f32 %v4175_v4, 0.0  ;;  %14403 = vmatprep.mubr.f32.mxu0 %v4649_v62  ;;  %v4214_v46 = vmax.f32 %v4178_v43, 0.0  ;;  %v4177_v36 = vadd.f32 %v17128_v5, %v4137_v2  ;;  %v480_v29 = vld [vmem:[#allocation11 + $0xa0] sm:$0xff]  ;;  %v19174_v2 = vld [vmem:[#allocation66_spill] sm:$0xff] }
 0x288   : > { %v4140_v42 = vmul.f32 %v17121_v58, %v4026_v34  ;;  %v4025_v53 = vadd.f32 %v3890_v16, %v3619_v61  ;;  %14318 = vmatmul.mubr.f32.gmra.mxu1 %v4316_v57  ;;  %v14248_v25 = vpop.f32.mrf.mxu0  ;;  %v2003_v28 = vadd.f32 %v19170_v38, %v19169_v47  ;;  %v3215_v19 = vadd.f32 %v19171_v7, %v2809_v59  ;;  %v3494_v32 = vpop.f32.mrf.mxu1  ;;  %v4317_v10 = vld [vmem:[#allocation3 + $0x70] sm:$0xff]  ;;  %v4318_v51 = vld [vmem:[#allocation3 + $0x78] sm:$0xff]  ;;  %v19175_v16 = vld [vmem:[#allocation43_spill] sm:$0xff] }
 0x289   : > { %4284 = vst [vmem:[#allocation3 + $0x9b] sm:$0xff] %v4248_v9  ;;  %v4247_v22 = vmul.f32 %v4211_v17, %v476_v44  ;;  %v3622_v13 = vadd.f32 %v14162_v60, %v19172_v8  ;;  %14404 = vmatmul.mubr.f32.gmra.mxu0 %v4650_v15  ;;  %v4651_v50 = vld [vmem:[#allocation3 + $0x71] sm:$0xff]  ;;  %v4250_v18 = vmul.f32 %v4214_v46, %v479_v48  ;;  %v4213_v63 = vmax.f32 %v4177_v36, 0.0  ;;  %v4652_v12 = vld [vmem:[#allocation3 + $0x79] sm:$0xff]  ;;  %v483_v8 = vld [vmem:[#allocation11 + $0xb8] sm:$0xff] }
 0x28a   : > { %v4180_v33 = vadd.f32 %v17128_v5, %v4140_v42  ;;  %v4139_v56 = vmul.f32 %v17121_v58, %v4025_v53  ;;  %v3900_v1 = vpop.f32.mrf.mxu0  ;;  %14320 = vmatprep.mubr.f32.mxu1 %v4317_v10  ;;  %14406 = vmatprep.mubr.f32.mxu0 %v4651_v50  ;;  %v3217_v3 = vadd.f32 %v19173_v14, %v2811_v11  ;;  %v14165_v41 = vpop.f32.mrf.mxu1  ;;  %v19176_v62 = vld [vmem:[#allocation26_spill] sm:$0xff]  ;;  %v19177_v57 = vld [vmem:[#allocation44_spill] sm:$0xff]  ;;  %v19178_v53 = vld [vmem:[#allocation27_spill] sm:$0xff] }
 0x28b   : > { %v2813_v24 = vadd.f32 %v17073_v35, %v2407_v40  ;;  %4283 = vst [vmem:[#allocation3 + $0x93] sm:$0xff] %v4247_v22  ;;  %v4028_v39 = vadd.f32 %v14248_v25, %v3622_v13  ;;  %v3621_v59 = vadd.f32 %v3494_v32, %v3215_v19  ;;  %4286 = vst [vmem:[#allocation3 + $0xab] sm:$0xff] %v4250_v18  ;;  %v19179_v25 = vld [vmem:[#allocation46_spill] sm:$0xff]  ;;  %v19180_v10 = vld [vmem:[#allocation68_spill] sm:$0xff] }
 0x28c   : > { %v4249_v44 = vmul.f32 %v4213_v63, %v478_v26  ;;  %v4216_v4 = vmax.f32 %v4180_v33, 0.0  ;;  %v4179_v43 = vadd.f32 %v17128_v5, %v4139_v56  ;;  %v3624_v34 = vadd.f32 %v14165_v41, %v19174_v2  ;;  %14321 = vmatmul.mubr.f32.gmra.mxu1 %v4318_v51  ;;  %v14251_v61 = vpop.f32.mrf.mxu0  ;;  %v3504_v11 = vpop.f32.mrf.mxu1  ;;  %v4319_v9 = vld [vmem:[#allocation3 + $0x80] sm:$0xff]  ;;  %v4320_v48 = vld [vmem:[#allocation3 + $0x88] sm:$0xff]  ;;  %v19181_v18 = vld [vmem:[#allocation45_spill] sm:$0xff] }
 0x28d   : > { %v2409_v49 = vadd.f32 %v19175_v16, %v2003_v28  ;;  %v2005_v35 = vadd.f32 %v19177_v57, %v19176_v62  ;;  %v4142_v45 = vmul.f32 %v17121_v58, %v4028_v39  ;;  %v4027_v40 = vadd.f32 %v3900_v1, %v3621_v59  ;;  %14407 = vmatmul.mubr.f32.gmra.mxu0 %v4652_v12  ;;  %v4653_v17 = vld [vmem:[#allocation3 + $0x81] sm:$0xff]  ;;  %v4654_v42 = vld [vmem:[#allocation3 + $0x89] sm:$0xff] }
 0x28e   : > { %4285 = vst [vmem:[#allocation3 + $0xa3] sm:$0xff] %v4249_v44  ;;  %v4252_v60 = vmul.f32 %v4216_v4, %v481_v21  ;;  %v4215_v15 = vmax.f32 %v4179_v43, 0.0  ;;  %v4030_v46 = vadd.f32 %v14251_v61, %v3624_v34  ;;  %v3623_v26 = vadd.f32 %v3504_v11, %v3217_v3  ;;  %v3910_v36 = vpop.f32.mrf.mxu0  ;;  %14323 = vmatprep.mubr.f32.mxu1 %v4319_v9  ;;  %v14168_v19 = vpop.f32.mrf.mxu1  ;;  %v482_v56 = vld [vmem:[#allocation11 + $0xb0] sm:$0xff]  ;;  %v19182_v4 = vld [vmem:[#allocation47_spill] sm:$0xff]  ;;  %v485_v34 = vld [vmem:[#allocation11 + $0xc8] sm:$0xff] }
 0x28f   : > { %14409 = vmatprep.mubr.f32.mxu0 %v4653_v17  ;;  %v2007_v47 = vadd.f32 %v19179_v25, %v19178_v53  ;;  %v3219_v38 = vadd.f32 %v17077_v54, %v2813_v24  ;;  %v4182_v28 = vadd.f32 %v17128_v5, %v4142_v45  ;;  %v4141_v7 = vmul.f32 %v17121_v58, %v4027_v40  ;;  %v484_v62 = vld [vmem:[#allocation11 + $0xc0] sm:$0xff] }
 0x290   : > { %4288 = vst [vmem:[#allocation3 + $0xbb] sm:$0xff] %v4252_v60  ;;  %v4251_v22 = vmul.f32 %v4215_v15, %v480_v29  ;;  %v4144_v13 = vmul.f32 %v17121_v58, %v4030_v46  ;;  %v4029_v32 = vadd.f32 %v3910_v36, %v3623_v26  ;;  %v3626_v50 = vadd.f32 %v14168_v19, %v19180_v10  ;;  %v14254_v51 = vpop.f32.mrf.mxu0  ;;  %v3514_v12 = vpop.f32.mrf.mxu1  ;;  %v19183_v11 = vld [vmem:[#allocation48_spill] sm:$0xff]  ;;  %v19185_v60 = vld [vmem:[#allocation69_spill] sm:$0xff] }
 0x291   : > { %14324 = vmatmul.mubr.f32.gmra.mxu1 %v4320_v48  ;;  %v2411_v63 = vadd.f32 %v19181_v18, %v2005_v35  ;;  %v2815_v33 = vadd.f32 %v17080_v52, %v2409_v49  ;;  %v4218_v54 = vmax.f32 %v4182_v28, 0.0  ;;  %v4181_v1 = vadd.f32 %v17128_v5, %v4141_v7  ;;  %14410 = vmatmul.mubr.f32.gmra.mxu0 %v4654_v42 }
 0x292   : > { %4287 = vst [vmem:[#allocation3 + $0xb3] sm:$0xff] %v4251_v22  ;;  %v4184_v14 = vadd.f32 %v17128_v5, %v4144_v13  ;;  %v4143_v3 = vmul.f32 %v17121_v58, %v4029_v32  ;;  %v4032_v24 = vadd.f32 %v14254_v51, %v3626_v50  ;;  %v3625_v21 = vadd.f32 %v3514_v12, %v3219_v38  ;;  %v3920_v39 = vpop.f32.mrf.mxu0  ;;  %v4321_v59 = vld [vmem:[#allocation3 + $0x90] sm:$0xff]  ;;  %v4322_v44 = vld [vmem:[#allocation3 + $0x98] sm:$0xff]  ;;  %v14171_v61 = vpop.f32.mrf.mxu1  ;;  %v487_v22 = vld [vmem:[#allocation11 + $0xd8] sm:$0xff] }
 0x293   : > { %v4655_v41 = vld [vmem:[#allocation3 + $0x91] sm:$0xff]  ;;  %v2413_v29 = vadd.f32 %v19182_v4, %v2007_v47  ;;  %v2817_v52 = vadd.f32 %v17087_v55, %v2411_v63  ;;  %v4254_v43 = vmul.f32 %v4218_v54, %v483_v8  ;;  %v4217_v2 = vmax.f32 %v4181_v1, 0.0  ;;  %14326 = vmatprep.mubr.f32.mxu1 %v4321_v59  ;;  %v4656_v16 = vld [vmem:[#allocation3 + $0x99] sm:$0xff]  ;;  %v19186_v63 = vld [vmem:[#allocation71_spill] sm:$0xff] }
 0x294   : > { %14412 = vmatprep.mubr.f32.mxu0 %v4655_v41  ;;  %v4220_v49 = vmax.f32 %v4184_v14, 0.0  ;;  %v4183_v57 = vadd.f32 %v17128_v5, %v4143_v3  ;;  %v4146_v35 = vmul.f32 %v17121_v58, %v4032_v24  ;;  %v4031_v45 = vadd.f32 %v3920_v39, %v3625_v21  ;;  %v14257_v40 = vpop.f32.mrf.mxu0  ;;  %v19184_v55 = vld [vmem:[#allocation70_spill] sm:$0xff]  ;;  %v3524_v46 = vpop.f32.mrf.mxu1 }
 0x295   : > { %14327 = vmatmul.mubr.f32.gmra.mxu1 %v4322_v44  ;;  %v2009_v9 = vadd.f32 %v19183_v11, %v17140_v37  ;;  %v3221_v17 = vadd.f32 %v19184_v55, %v2815_v33  ;;  %4290 = vst [vmem:[#allocation3 + $0xcb] sm:$0xff] %v4254_v43  ;;  %v4253_v48 = vmul.f32 %v4217_v2, %v482_v56  ;;  %v4323_v26 = vld [vmem:[#allocation3 + $0xa0] sm:$0xff]  ;;  %v4324_v42 = vld [vmem:[#allocation3 + $0xa8] sm:$0xff]  ;;  %v19187_v44 = vld [vmem:[#allocation49_spill] sm:$0xff] }
 0x296   : > { %v3628_v15 = vadd.f32 %v14171_v61, %v19185_v60  ;;  %14413 = vmatmul.mubr.f32.gmra.mxu0 %v4656_v16  ;;  %v4657_v36 = vld [vmem:[#allocation3 + $0xa1] sm:$0xff]  ;;  %v4256_v53 = vmul.f32 %v4220_v49, %v485_v34  ;;  %v4219_v25 = vmax.f32 %v4183_v57, 0.0  ;;  %v4186_v47 = vadd.f32 %v17128_v5, %v4146_v35  ;;  %v3930_v28 = vpop.f32.mrf.mxu0  ;;  %14329 = vmatprep.mubr.f32.mxu1 %v4323_v26  ;;  %v4658_v37 = vld [vmem:[#allocation3 + $0xa9] sm:$0xff]  ;;  %v14174_v32 = vpop.f32.mrf.mxu1  ;;  %v489_v61 = vld [vmem:[#allocation11 + $0xe8] sm:$0xff] }
 0x297   : > { %v4145_v38 = vmul.f32 %v17121_v58, %v4031_v45  ;;  %14415 = vmatprep.mubr.f32.mxu0 %v4657_v36  ;;  %v3223_v7 = vadd.f32 %v17093_v23, %v2817_v52  ;;  %v2819_v19 = vadd.f32 %v17096_v6, %v2413_v29  ;;  %4289 = vst [vmem:[#allocation3 + $0xc3] sm:$0xff] %v4253_v48  ;;  %v486_v51 = vld [vmem:[#allocation11 + $0xd0] sm:$0xff] }
 0x298   : > { %v4034_v8 = vadd.f32 %v14257_v40, %v3628_v15  ;;  %v3627_v13 = vadd.f32 %v3524_v46, %v3221_v17  ;;  %4292 = vst [vmem:[#allocation3 + $0xdb] sm:$0xff] %v4256_v53  ;;  %v4255_v10 = vmul.f32 %v4219_v25, %v484_v62  ;;  %v4222_v50 = vmax.f32 %v4186_v47, 0.0  ;;  %v14260_v54 = vpop.f32.mrf.mxu0  ;;  %v3534_v6 = vpop.f32.mrf.mxu1  ;;  %v488_v40 = vld [vmem:[#allocation11 + $0xe0] sm:$0xff]  ;;  %v490_v47 = vld [vmem:[#allocation11 + $0xf0] sm:$0xff] }
 0x299   : > { %v4185_v18 = vadd.f32 %v17128_v5, %v4145_v38  ;;  %v3630_v33 = vadd.f32 %v14174_v32, %v19186_v63  ;;  %14330 = vmatmul.mubr.f32.gmra.mxu1 %v4324_v42  ;;  %v4325_v1 = vld [vmem:[#allocation3 + $0xb0] sm:$0xff]  ;;  %v4326_v14 = vld [vmem:[#allocation3 + $0xb8] sm:$0xff]  ;;  %v3629_v39 = vadd.f32 %v3534_v6, %v3223_v7  ;;  %v2415_v4 = vadd.f32 %v19187_v44, %v2009_v9 }
 0x29a   : > { %v4148_v56 = vmul.f32 %v17121_v58, %v4034_v8  ;;  %v4033_v23 = vadd.f32 %v3930_v28, %v3627_v13  ;;  %14416 = vmatmul.mubr.f32.gmra.mxu0 %v4658_v37  ;;  %v4659_v12 = vld [vmem:[#allocation3 + $0xb1] sm:$0xff]  ;;  %4291 = vst [vmem:[#allocation3 + $0xd3] sm:$0xff] %v4255_v10  ;;  %v4258_v3 = vmul.f32 %v4222_v50, %v487_v22  ;;  %v3940_v59 = vpop.f32.mrf.mxu0  ;;  %v4660_v41 = vld [vmem:[#allocation3 + $0xb9] sm:$0xff]  ;;  %v14177_v2 = vpop.f32.mrf.mxu1 }
 0x29b   : > { %v4221_v24 = vmax.f32 %v4185_v18, 0.0  ;;  %v4036_v21 = vadd.f32 %v14260_v54, %v3630_v33  ;;  %14332 = vmatprep.mubr.f32.mxu1 %v4325_v1  ;;  %14418 = vmatprep.mubr.f32.mxu0 %v4659_v12  ;;  %v3225_v29 = vadd.f32 %v17103_v0, %v2819_v19  ;;  %v4035_v49 = vadd.f32 %v3940_v59, %v3629_v39  ;;  %v492_v12 = vld [vmem:[#allocation11 + $0x100] sm:$0xff] }
 0x29c   : > { %v4188_v52 = vadd.f32 %v17128_v5, %v4148_v56  ;;  %v4147_v43 = vmul.f32 %v17121_v58, %v4033_v23  ;;  %4294 = vst [vmem:[#allocation3 + $0xeb] sm:$0xff] %v4258_v3  ;;  %v3632_v62 = vadd.f32 %v14177_v2, %v17101_v27  ;;  %v14263_v57 = vpop.f32.mrf.mxu0  ;;  %v2821_v35 = vadd.f32 %v17107_v30, %v2415_v4  ;;  %v3544_v11 = vpop.f32.mrf.mxu1  ;;  %v491_v30 = vld [vmem:[#allocation11 + $0xf8] sm:$0xff] }
 0x29d   : > { %v4257_v34 = vmul.f32 %v4221_v24, %v486_v51  ;;  %v4150_v16 = vmul.f32 %v17121_v58, %v4036_v21  ;;  %14333 = vmatmul.mubr.f32.gmra.mxu1 %v4326_v14  ;;  %v4149_v55 = vmul.f32 %v17121_v58, %v4035_v49  ;;  %v3631_v48 = vadd.f32 %v3544_v11, %v3225_v29  ;;  %v15934_v29 = vld [vmem:[#allocation10 + $0x1] ss:$0 sm:$0xff] }
 0x29e   : > { %v4224_v45 = vmax.f32 %v4188_v52, 0.0  ;;  %v4187_v0 = vadd.f32 %v17128_v5, %v4147_v43  ;;  %14419 = vmatmul.mubr.f32.gmra.mxu0 %v4660_v41  ;;  %v4038_v17 = vadd.f32 %v14263_v57, %v3632_v62  ;;  %v3950_v60 = vpop.f32.mrf.mxu0  ;;  %v4327_v15 = vld [vmem:[#allocation3 + $0xc0] sm:$0xff]  ;;  %v4328_v46 = vld [vmem:[#allocation3 + $0xc8] sm:$0xff]  ;;  %v14180_v42 = vpop.f32.mrf.mxu1  ;;  %v3227_v19 = vadd.f32 %v17112_v20, %v2821_v35  ;;  %v493_v20 = vld [vmem:[#allocation11 + $0x108] sm:$0xff] }
 0x29f   : > { %4293 = vst [vmem:[#allocation3 + $0xe3] sm:$0xff] %v4257_v34  ;;  %v4190_v9 = vadd.f32 %v17128_v5, %v4150_v16  ;;  %v4661_v27 = vld [vmem:[#allocation3 + $0xc1] sm:$0xff]  ;;  %14335 = vmatprep.mubr.f32.mxu1 %v4327_v15  ;;  %v4662_v53 = vld [vmem:[#allocation3 + $0xc9] sm:$0xff]  ;;  %v4189_v38 = vadd.f32 %v17128_v5, %v4149_v55  ;;  %v4037_v37 = vadd.f32 %v3950_v60, %v3631_v48 }
 0x2a0   : > { %v4260_v26 = vmul.f32 %v4224_v45, %v489_v61  ;;  %v4223_v36 = vmax.f32 %v4187_v0, 0.0  ;;  %14421 = vmatprep.mubr.f32.mxu0 %v4661_v27  ;;  %v4152_v28 = vmul.f32 %v17121_v58, %v4038_v17  ;;  %v14266_v7 = vpop.f32.mrf.mxu0  ;;  %v3634_v8 = vadd.f32 %v14180_v42, %v17110_v31  ;;  %v3554_v13 = vpop.f32.mrf.mxu1  ;;  %v15935_v43 = vld [vmem:[#allocation10] ss:$0 sm:$0xff]  ;;  %v494_v61 = vld [vmem:[#allocation11 + $0x110] sm:$0xff] }
 0x2a1   : > { %v4226_v25 = vmax.f32 %v4190_v9, 0.0  ;;  %14336 = vmatmul.mubr.f32.gmra.mxu1 %v4328_v46  ;;  %v4329_v32 = vld [vmem:[#allocation3 + $0xd0] sm:$0xff]  ;;  %v4330_v50 = vld [vmem:[#allocation3 + $0xd8] sm:$0xff]  ;;  %v4225_v18 = vmax.f32 %v4189_v38, 0.0  ;;  %v4151_v33 = vmul.f32 %v17121_v58, %v4037_v37  ;;  %v3633_v23 = vadd.f32 %v3554_v13, %v3227_v19  ;;  %v495_v34 = vld [vmem:[#allocation11 + $0x118] sm:$0xff] }
 0x2a2   : > { %4296 = vst [vmem:[#allocation3 + $0xfb] sm:$0xff] %v4260_v26  ;;  %v4259_v22 = vmul.f32 %v4223_v36, %v488_v40  ;;  %14422 = vmatmul.mubr.f32.gmra.mxu0 %v4662_v53  ;;  %v4663_v10 = vld [vmem:[#allocation3 + $0xd1] sm:$0xff]  ;;  %v4192_v63 = vadd.f32 %v17128_v5, %v4152_v28  ;;  %14338 = vmatprep.mubr.f32.mxu1 %v4329_v32  ;;  %v3960_v54 = vpop.f32.mrf.mxu0  ;;  %v4664_v56 = vld [vmem:[#allocation3 + $0xd9] sm:$0xff]  ;;  %v5043_v46 = vld [vmem:[#allocation3 + $0x2] sm:$0xff] }
 0x2a3   : > { %v4262_v51 = vmul.f32 %v4226_v25, %v491_v30  ;;  %14424 = vmatprep.mubr.f32.mxu0 %v4663_v10  ;;  %v4040_v6 = vadd.f32 %v14266_v7, %v3634_v8  ;;  %v4261_v31 = vmul.f32 %v4225_v18, %v490_v47  ;;  %v4191_v14 = vadd.f32 %v17128_v5, %v4151_v33  ;;  %v5449_v26 = vld [vmem:[#allocation3 + $0x12] sm:$0xff]  ;;  %v5044_v36 = vld [vmem:[#allocation3 + $0xa] sm:$0xff]  ;;  %v5450_v25 = vld [vmem:[#allocation3 + $0x1a] sm:$0xff] }
 0x2a4   : > { %4295 = vst [vmem:[#allocation3 + $0xf3] sm:$0xff] %v4259_v22  ;;  %v4228_v1 = vmax.f32 %v4192_v63, 0.0  ;;  %v4039_v24 = vadd.f32 %v3960_v54, %v3633_v23  ;;  %v5906_v47 = vld [vmem:[#allocation8 + $0x6f0] sm:$0xff]  ;;  %v5451_v38 = vld [vmem:[#allocation3 + $0x22] sm:$0xff]  ;;  %v5452_v19 = vld [vmem:[#allocation3 + $0x2a] sm:$0xff] }
 0x2a5   : > { %4298 = vst [vmem:[#allocation3 + $0x10b] sm:$0xff] %v4262_v51  ;;  %14339 = vmatmul.mubr.f32.gmra.mxu1 %v4330_v50  ;;  %v4154_v3 = vmul.f32 %v17121_v58, %v4040_v6  ;;  %4297 = vst [vmem:[#allocation3 + $0x103] sm:$0xff] %v4261_v31  ;;  %v4227_v44 = vmax.f32 %v4191_v14, 0.0  ;;  %v6312_v28 = vld [vmem:[#allocation8 + $0x770] sm:$0xff]  ;;  %v15936_v37 = vld [vmem:[#allocation8 + $0x6f8] sm:$0xff] }
 0x2a6   : > { %14425 = vmatmul.mubr.f32.gmra.mxu0 %v4664_v56  ;;  %v4331_v21 = vld [vmem:[#allocation3 + $0xe0] sm:$0xff]  ;;  %v4332_v59 = vld [vmem:[#allocation3 + $0xe8] sm:$0xff]  ;;  %v4264_v41 = vmul.f32 %v4228_v1, %v493_v20  ;;  %v4153_v2 = vmul.f32 %v15935_v43, %v4039_v24  ;;  %v5905_v22 = vld [vmem:[#allocation8 + $0x6e8] sm:$0xff] }
 0x2a7   : > { %v4665_v39 = vld [vmem:[#allocation3 + $0xe1] sm:$0xff]  ;;  %14341 = vmatprep.mubr.f32.mxu1 %v4331_v21  ;;  %v4666_v4 = vld [vmem:[#allocation3 + $0xe9] sm:$0xff]  ;;  %v4194_v52 = vadd.f32 %v15934_v29, %v4154_v3  ;;  %v4263_v5 = vmul.f32 %v4227_v44, %v492_v12  ;;  %v5453_v8 = vld [vmem:[#allocation3 + $0x32] sm:$0xff] }
 0x2a8   : > { %14427 = vmatprep.mubr.f32.mxu0 %v4665_v39  ;;  %4300 = vst [vmem:[#allocation3 + $0x11b] sm:$0xff] %v4264_v41  ;;  %v4193_v16 = vadd.f32 %v15934_v29, %v4153_v2  ;;  %v15937_v7 = vld [vmem:[#allocation8 + $0x778] sm:$0xff]  ;;  %v6311_v13 = vld [vmem:[#allocation8 + $0x768] sm:$0xff]  ;;  %v5904_v10 = vld [vmem:[#allocation8 + $0x6e0] sm:$0xff] }
 0x2a9   : > { %14342 = vmatmul.mubr.f32.gmra.mxu1 %v4332_v59  ;;  %v4230_v58 = vmax.f32 %v4194_v52, 0.0  ;;  %4299 = vst [vmem:[#allocation3 + $0x113] sm:$0xff] %v4263_v5  ;;  %v5454_v32 = vld [vmem:[#allocation3 + $0x3a] sm:$0xff]  ;;  %v5455_v50 = vld [vmem:[#allocation3 + $0x42] sm:$0xff]  ;;  %v5456_v18 = vld [vmem:[#allocation3 + $0x4a] sm:$0xff] }
 0x2aa   : > { %14428 = vmatmul.mubr.f32.gmra.mxu0 %v4666_v4  ;;  %v4229_v45 = vmax.f32 %v4193_v16, 0.0  ;;  %v14301_v30 = vpop.f32.mrf.mxu1  ;;  %v6310_v51 = vld [vmem:[#allocation8 + $0x760] sm:$0xff]  ;;  %v5903_v63 = vld [vmem:[#allocation8 + $0x6d8] sm:$0xff]  ;;  %v5457_v33 = vld [vmem:[#allocation3 + $0x52] sm:$0xff] }
 0x2ab   : > { %v4333_v49 = vld [vmem:[#allocation3 + $0xf0] sm:$0xff]  ;;  %v4334_v57 = vld [vmem:[#allocation3 + $0xf8] sm:$0xff]  ;;  %v4266_v35 = vmul.f32 %v4230_v58, %v495_v34  ;;  %v6309_v54 = vld [vmem:[#allocation8 + $0x758] sm:$0xff] }
 0x2ac   : > { %v4667_v62 = vld [vmem:[#allocation3 + $0xf1] sm:$0xff]  ;;  %14344 = vmatprep.mubr.f32.mxu1 %v4333_v49  ;;  %v4668_v40 = vld [vmem:[#allocation3 + $0xf9] sm:$0xff]  ;;  %v4265_v0 = vmul.f32 %v4229_v45, %v494_v61  ;;  %v4669_v9 = vld [vmem:[#allocation3 + $0x101] sm:$0xff] }
 0x2ad   : > { %14430 = vmatprep.mubr.f32.mxu0 %v4667_v62  ;;  %14345 = vmatmul.mubr.f32.gmra.mxu1 %v4334_v57  ;;  %4302 = vst [vmem:[#allocation3 + $0x12b] sm:$0xff] %v4266_v35  ;;  %v4335_v11 = vld [vmem:[#allocation3 + $0x100] sm:$0xff]  ;;  %v4336_v55 = vld [vmem:[#allocation3 + $0x108] sm:$0xff]  ;;  %v5902_v20 = vld [vmem:[#allocation8 + $0x6d0] sm:$0xff] }
 0x2ae   : > { %14431 = vmatmul.mubr.f32.gmra.mxu0 %v4668_v40  ;;  %14347 = vmatprep.mubr.f32.mxu1 %v4335_v11  ;;  %v4670_v17 = vld [vmem:[#allocation3 + $0x109] sm:$0xff]  ;;  %4301 = vst [vmem:[#allocation3 + $0x123] sm:$0xff] %v4265_v0  ;;  %v5458_v56 = vld [vmem:[#allocation3 + $0x5a] sm:$0xff]  ;;  %v5461_v12 = vld [vmem:[#allocation3 + $0x72] sm:$0xff] }
 0x2af   : > { %14433 = vmatprep.mubr.f32.mxu0 %v4669_v9  ;;  %v5459_v23 = vld [vmem:[#allocation3 + $0x62] sm:$0xff]  ;;  %v6308_v6 = vld [vmem:[#allocation8 + $0x750] sm:$0xff]  ;;  %v5460_v31 = vld [vmem:[#allocation3 + $0x6a] sm:$0xff] }
 0x2b0   : > { %v4337_v48 = vld [vmem:[#allocation3 + $0x110] sm:$0xff]  ;;  %v4338_v15 = vld [vmem:[#allocation3 + $0x118] sm:$0xff]  ;;  %v5900_v24 = vld [vmem:[#allocation8 + $0x6c0] sm:$0xff] }
 0x2b1   : > { %14348 = vmatmul.mubr.f32.gmra.mxu1 %v4336_v55  ;;  %v4671_v60 = vld [vmem:[#allocation3 + $0x111] sm:$0xff]  ;;  %v4672_v27 = vld [vmem:[#allocation3 + $0x119] sm:$0xff]  ;;  %v14387_v42 = vpop.f32.mrf.mxu0  ;;  %v5463_v21 = vld [vmem:[#allocation3 + $0x82] sm:$0xff] }
 0x2b2   : > { %14434 = vmatmul.mubr.f32.gmra.mxu0 %v4670_v17  ;;  %14350 = vmatprep.mubr.f32.mxu1 %v4337_v48  ;;  %v17296_v53 = vadd.f32 %v14387_v42, %v14301_v30  ;;  %v5901_v1 = vld [vmem:[#allocation8 + $0x6c8] sm:$0xff]  ;;  %v5462_v3 = vld [vmem:[#allocation3 + $0x7a] sm:$0xff]  ;;  %v6306_v39 = vld [vmem:[#allocation8 + $0x740] sm:$0xff] }
 0x2b3   : > { %14436 = vmatprep.mubr.f32.mxu0 %v4671_v60  ;;  %v6307_v14 = vld [vmem:[#allocation8 + $0x748] sm:$0xff]  ;;  %v5899_v41 = vld [vmem:[#allocation8 + $0x6b8] sm:$0xff]  ;;  %v5898_v52 = vld [vmem:[#allocation8 + $0x6b0] sm:$0xff] }
 0x2b4   : > { %v5464_v59 = vld [vmem:[#allocation3 + $0x8a] sm:$0xff]  ;;  %v5465_v44 = vld [vmem:[#allocation3 + $0x92] sm:$0xff]  ;;  %v6305_v4 = vld [vmem:[#allocation8 + $0x738] sm:$0xff] }
 0x2b5   : > { %14351 = vmatmul.mubr.f32.gmra.mxu1 %v4338_v15  ;;  %v5466_v29 = vld [vmem:[#allocation3 + $0x9a] sm:$0xff]  ;;  %v5467_v43 = vld [vmem:[#allocation3 + $0xa2] sm:$0xff]  ;;  %v5468_v5 = vld [vmem:[#allocation3 + $0xaa] sm:$0xff] }
 0x2b6   : > { %14437 = vmatmul.mubr.f32.gmra.mxu0 %v4672_v27  ;;  %14471 = vmatprep.mubr.f32.mxu1 %v5043_v46  ;;  %v6304_v2 = vld [vmem:[#allocation8 + $0x730] sm:$0xff]  ;;  %v5897_v34 = vld [vmem:[#allocation8 + $0x6a8] sm:$0xff]  ;;  %v5896_v49 = vld [vmem:[#allocation8 + $0x6a0] sm:$0xff] }
 0x2b7   : > { %14557 = vmatprep.mubr.f32.mxu0 %v5449_v26  ;;  %v5469_v58 = vld [vmem:[#allocation3 + $0xb2] sm:$0xff]  ;;  %v5470_v16 = vld [vmem:[#allocation3 + $0xba] sm:$0xff]  ;;  %v5471_v62 = vld [vmem:[#allocation3 + $0xc2] sm:$0xff] }
 0x2b8   : > { %v6303_v61 = vld [vmem:[#allocation8 + $0x728] sm:$0xff]  ;;  %v6302_v57 = vld [vmem:[#allocation8 + $0x720] sm:$0xff]  ;;  %v5895_v45 = vld [vmem:[#allocation8 + $0x698] sm:$0xff] }
 0x2b9   : > { %14472 = vmatmul.mubr.f32.vlgmr.msra.gmra.mxu1 %v5044_v36  ;;  %v5472_v35 = vld [vmem:[#allocation3 + $0xca] sm:$0xff]  ;;  %v5473_v40 = vld [vmem:[#allocation3 + $0xd2] sm:$0xff]  ;;  %v6301_v0 = vld [vmem:[#allocation8 + $0x718] sm:$0xff] }
 0x2ba   : > { %14558 = vmatmul.mubr.f32.vlgmr.msra.gmra.mxu0 %v5450_v25  ;;  %14474 = vmatprep.mubr.f32.mxu1 %v5449_v26  ;;  %v5474_v11 = vld [vmem:[#allocation3 + $0xda] sm:$0xff]  ;;  %v5475_v55 = vld [vmem:[#allocation3 + $0xe2] sm:$0xff]  ;;  %v5476_v48 = vld [vmem:[#allocation3 + $0xea] sm:$0xff] }
 0x2bb   : > { %14560 = vmatprep.mubr.f32.mxu0 %v5451_v38  ;;  %14612 = vmatpush3.msra.mxu1 %v15936_v37  ;;  %v5894_v9 = vld [vmem:[#allocation8 + $0x690] sm:$0xff]  ;;  %v5893_v60 = vld [vmem:[#allocation8 + $0x688] sm:$0xff]  ;;  %v5892_v26 = vld [vmem:[#allocation8 + $0x680] sm:$0xff] }
 0x2bc   : > { %14613 = vmatprep.subr.mxu1 %v5906_v47  ;;  %14698 = vmatpush3.msra.mxu0 %v15937_v7  ;;  %v6300_v17 = vld [vmem:[#allocation8 + $0x710] sm:$0xff]  ;;  %v6299_v27 = vld [vmem:[#allocation8 + $0x708] sm:$0xff]  ;;  %v5479_v36 = vld [vmem:[#allocation3 + $0x102] sm:$0xff] }
 0x2bd   : > { %14475 = vmatmul.mubr.f32.gmra.mxu1 %v5450_v25  ;;  %14699 = vmatprep.subr.mxu0 %v6312_v28  ;;  %v5477_v15 = vld [vmem:[#allocation3 + $0xf2] sm:$0xff]  ;;  %v5478_v46 = vld [vmem:[#allocation3 + $0xfa] sm:$0xff]  ;;  %v6298_v30 = vld [vmem:[#allocation8 + $0x700] sm:$0xff] }
 0x2be   : > { %14561 = vmatmul.mubr.f32.gmra.mxu0 %v5452_v19  ;;  %14477 = vmatprep.mubr.f32.mxu1 %v5451_v38  ;;  %v5480_v42 = vld [vmem:[#allocation3 + $0x10a] sm:$0xff]  ;;  %v6719_v25 = vld [vmem:[#allocation8 + $0x7f8] sm:$0xff] }
 0x2bf   : > { %14563 = vmatprep.mubr.f32.mxu0 %v5453_v8  ;;  %14614 = vmatpush3.msra.mxu1 %v5906_v47  ;;  %v5481_v47 = vld [vmem:[#allocation3 + $0x112] sm:$0xff]  ;;  %v7125_v38 = vld [vmem:[#allocation8 + $0x878] sm:$0xff]  ;;  %v5484_v7 = vld [vmem:[#allocation3 + $0x12a] sm:$0xff] }
 0x2c0   : > { %14615 = vmatprep.subr.mxu1 %v5905_v22  ;;  %14700 = vmatpush3.msra.mxu0 %v6312_v28  ;;  %v5482_v28 = vld [vmem:[#allocation3 + $0x11a] sm:$0xff]  ;;  %v5483_v37 = vld [vmem:[#allocation3 + $0x122] sm:$0xff] }
 0x2c1   : > { %14478 = vmatmul.mubr.f32.gmra.mxu1 %v5452_v19  ;;  %14701 = vmatprep.subr.mxu0 %v6311_v13  ;;  %v5855_v19 = vld [vmem:[#allocation3 + $0x13] sm:$0xff] }
 0x2c2   : > { %14564 = vmatmul.mubr.f32.gmra.mxu0 %v5454_v32  ;;  %14480 = vmatprep.mubr.f32.mxu1 %v5453_v8  ;;  %v5856_v8 = vld [vmem:[#allocation3 + $0x1b] sm:$0xff] }
 0x2c3   : > { %14566 = vmatprep.mubr.f32.mxu0 %v5455_v50  ;;  %14616 = vmatpush3.msra.mxu1 %v5905_v22  ;;  %v6261_v22 = vld [vmem:[#allocation3 + $0x14] sm:$0xff] }
 0x2c4   : > { %14617 = vmatprep.subr.mxu1 %v5904_v10  ;;  %14702 = vmatpush3.msra.mxu0 %v6311_v13  ;;  %v6262_v13 = vld [vmem:[#allocation3 + $0x1c] sm:$0xff] }
 0x2c5   : > { %14481 = vmatmul.mubr.f32.gmra.mxu1 %v5454_v32  ;;  %14703 = vmatprep.subr.mxu0 %v6310_v51  ;;  %v5857_v32 = vld [vmem:[#allocation3 + $0x23] sm:$0xff] }
 0x2c6   : > { %14567 = vmatmul.mubr.f32.gmra.mxu0 %v5456_v18  ;;  %14483 = vmatprep.mubr.f32.mxu1 %v5455_v50  ;;  %v17298_v50 = vld [vmem:[#allocation3 + $0x24] sm:$0xff] }
 0x2c7   : > { %14569 = vmatprep.mubr.f32.mxu0 %v5457_v33  ;;  %14618 = vmatpush3.msra.mxu1 %v5904_v10  ;;  %v6718_v10 = vld [vmem:[#allocation8 + $0x7f0] sm:$0xff] }
 0x2c8   : > { %14619 = vmatprep.subr.mxu1 %v5903_v63  ;;  %14704 = vmatpush3.msra.mxu0 %v6310_v51  ;;  %v7124_v51 = vld [vmem:[#allocation8 + $0x870] sm:$0xff] }
 0x2c9   : > { %14484 = vmatmul.mubr.f32.gmra.mxu1 %v5456_v18  ;;  %14705 = vmatprep.subr.mxu0 %v6309_v54  ;;  %v5858_v18 = vld [vmem:[#allocation3 + $0x2b] sm:$0xff] }
 0x2ca   : > { %14570 = vmatmul.mubr.f32.gmra.mxu0 %v5458_v56  ;;  %14486 = vmatprep.mubr.f32.mxu1 %v5457_v33  ;;  %v5859_v33 = vld [vmem:[#allocation3 + $0x33] sm:$0xff] }
 0x2cb   : > { %14572 = vmatprep.mubr.f32.mxu0 %v5459_v23  ;;  %14620 = vmatpush3.msra.mxu1 %v5903_v63  ;;  %v17301_v63 = vld [vmem:[#allocation3 + $0x2c] sm:$0xff] }
 0x2cc   : > { %14621 = vmatprep.subr.mxu1 %v5902_v20  ;;  %14706 = vmatpush3.msra.mxu0 %v6309_v54  ;;  %v6717_v54 = vld [vmem:[#allocation8 + $0x7e8] sm:$0xff] }
 0x2cd   : > { %14487 = vmatmul.mubr.f32.gmra.mxu1 %v5458_v56  ;;  %14707 = vmatprep.subr.mxu0 %v6308_v6  ;;  %v17304_v56 = vld [vmem:[#allocation3 + $0x34] sm:$0xff] }
 0x2ce   : > { %14573 = vmatmul.mubr.f32.gmra.mxu0 %v5460_v31  ;;  %14489 = vmatprep.mubr.f32.mxu1 %v5459_v23  ;;  %v5860_v23 = vld [vmem:[#allocation3 + $0x3b] sm:$0xff] }
 0x2cf   : > { %14575 = vmatprep.mubr.f32.mxu0 %v5461_v12  ;;  %14622 = vmatpush3.msra.mxu1 %v5902_v20  ;;  %v7123_v20 = vld [vmem:[#allocation8 + $0x868] sm:$0xff] }
 0x2d0   : > { %14623 = vmatprep.subr.mxu1 %v5901_v1  ;;  %14708 = vmatpush3.msra.mxu0 %v6308_v6  ;;  %v17307_v6 = vld [vmem:[#allocation3 + $0x3c] sm:$0xff] }
 0x2d1   : > { %14490 = vmatmul.mubr.f32.gmra.mxu1 %v5460_v31  ;;  %14709 = vmatprep.subr.mxu0 %v6307_v14  ;;  %v5861_v31 = vld [vmem:[#allocation3 + $0x43] sm:$0xff] }
 0x2d2   : > { %14576 = vmatmul.mubr.f32.gmra.mxu0 %v5462_v3  ;;  %14492 = vmatprep.mubr.f32.mxu1 %v5461_v12  ;;  %v17310_v12 = vld [vmem:[#allocation3 + $0x44] sm:$0xff] }
 0x2d3   : > { %14578 = vmatprep.mubr.f32.mxu0 %v5463_v21  ;;  %14624 = vmatpush3.msra.mxu1 %v5901_v1  ;;  %v6716_v1 = vld [vmem:[#allocation8 + $0x7e0] sm:$0xff] }
 0x2d4   : > { %14625 = vmatprep.subr.mxu1 %v5900_v24  ;;  %14710 = vmatpush3.msra.mxu0 %v6307_v14  ;;  %v7122_v14 = vld [vmem:[#allocation8 + $0x860] sm:$0xff] }
 0x2d5   : > { %14493 = vmatmul.mubr.f32.gmra.mxu1 %v5462_v3  ;;  %14711 = vmatprep.subr.mxu0 %v6306_v39  ;;  %v5862_v3 = vld [vmem:[#allocation3 + $0x4b] sm:$0xff] }
 0x2d6   : > { %14579 = vmatmul.mubr.f32.gmra.mxu0 %v5464_v59  ;;  %14495 = vmatprep.mubr.f32.mxu1 %v5463_v21  ;;  %v5863_v21 = vld [vmem:[#allocation3 + $0x53] sm:$0xff] }
 0x2d7   : > { %14581 = vmatprep.mubr.f32.mxu0 %v5465_v44  ;;  %14626 = vmatpush3.msra.mxu1 %v5900_v24  ;;  %v17313_v24 = vld [vmem:[#allocation3 + $0x4c] sm:$0xff] }
 0x2d8   : > { %14627 = vmatprep.subr.mxu1 %v5899_v41  ;;  %14712 = vmatpush3.msra.mxu0 %v6306_v39  ;;  %v6715_v39 = vld [vmem:[#allocation8 + $0x7d8] sm:$0xff] }
 0x2d9   : > { %14496 = vmatmul.mubr.f32.gmra.mxu1 %v5464_v59  ;;  %14713 = vmatprep.subr.mxu0 %v6305_v4  ;;  %v17316_v59 = vld [vmem:[#allocation3 + $0x54] sm:$0xff] }
 0x2da   : > { %14582 = vmatmul.mubr.f32.gmra.mxu0 %v5466_v29  ;;  %14498 = vmatprep.mubr.f32.mxu1 %v5465_v44  ;;  %v5864_v44 = vld [vmem:[#allocation3 + $0x5b] sm:$0xff] }
 0x2db   : > { %14584 = vmatprep.mubr.f32.mxu0 %v5467_v43  ;;  %14628 = vmatpush3.msra.mxu1 %v5899_v41  ;;  %v7121_v41 = vld [vmem:[#allocation8 + $0x858] sm:$0xff] }
 0x2dc   : > { %14629 = vmatprep.subr.mxu1 %v5898_v52  ;;  %14714 = vmatpush3.msra.mxu0 %v6305_v4  ;;  %v17319_v4 = vld [vmem:[#allocation3 + $0x5c] sm:$0xff] }
 0x2dd   : > { %14499 = vmatmul.mubr.f32.gmra.mxu1 %v5466_v29  ;;  %14715 = vmatprep.subr.mxu0 %v6304_v2  ;;  %v5865_v29 = vld [vmem:[#allocation3 + $0x63] sm:$0xff] }
 0x2de   : > { %14585 = vmatmul.mubr.f32.gmra.mxu0 %v5468_v5  ;;  %14501 = vmatprep.mubr.f32.mxu1 %v5467_v43  ;;  %v17322_v43 = vld [vmem:[#allocation3 + $0x64] sm:$0xff] }
 0x2df   : > { %14587 = vmatprep.mubr.f32.mxu0 %v5469_v58  ;;  %14630 = vmatpush3.msra.mxu1 %v5898_v52  ;;  %v6714_v52 = vld [vmem:[#allocation8 + $0x7d0] sm:$0xff] }
 0x2e0   : > { %14631 = vmatprep.subr.mxu1 %v5897_v34  ;;  %14716 = vmatpush3.msra.mxu0 %v6304_v2  ;;  %v7120_v2 = vld [vmem:[#allocation8 + $0x850] sm:$0xff] }
 0x2e1   : > { %14502 = vmatmul.mubr.f32.gmra.mxu1 %v5468_v5  ;;  %14717 = vmatprep.subr.mxu0 %v6303_v61  ;;  %v5866_v5 = vld [vmem:[#allocation3 + $0x6b] sm:$0xff] }
 0x2e2   : > { %14588 = vmatmul.mubr.f32.gmra.mxu0 %v5470_v16  ;;  %14504 = vmatprep.mubr.f32.mxu1 %v5469_v58  ;;  %v5867_v58 = vld [vmem:[#allocation3 + $0x73] sm:$0xff] }
 0x2e3   : > { %14590 = vmatprep.mubr.f32.mxu0 %v5471_v62  ;;  %14632 = vmatpush3.msra.mxu1 %v5897_v34  ;;  %v17325_v34 = vld [vmem:[#allocation3 + $0x6c] sm:$0xff] }
 0x2e4   : > { %14633 = vmatprep.subr.mxu1 %v5896_v49  ;;  %14718 = vmatpush3.msra.mxu0 %v6303_v61  ;;  %v6713_v61 = vld [vmem:[#allocation8 + $0x7c8] sm:$0xff] }
 0x2e5   : > { %14505 = vmatmul.mubr.f32.gmra.mxu1 %v5470_v16  ;;  %14719 = vmatprep.subr.mxu0 %v6302_v57  ;;  %v17328_v16 = vld [vmem:[#allocation3 + $0x74] sm:$0xff] }
 0x2e6   : > { %14591 = vmatmul.mubr.f32.gmra.mxu0 %v5472_v35  ;;  %14507 = vmatprep.mubr.f32.mxu1 %v5471_v62  ;;  %v5868_v62 = vld [vmem:[#allocation3 + $0x7b] sm:$0xff] }
 0x2e7   : > { %14593 = vmatprep.mubr.f32.mxu0 %v5473_v40  ;;  %14634 = vmatpush3.msra.mxu1 %v5896_v49  ;;  %v7119_v49 = vld [vmem:[#allocation8 + $0x848] sm:$0xff] }
 0x2e8   : > { %14635 = vmatprep.subr.mxu1 %v5895_v45  ;;  %14720 = vmatpush3.msra.mxu0 %v6302_v57  ;;  %v17331_v57 = vld [vmem:[#allocation3 + $0x7c] sm:$0xff] }
 0x2e9   : > { %14508 = vmatmul.mubr.f32.gmra.mxu1 %v5472_v35  ;;  %14721 = vmatprep.subr.mxu0 %v6301_v0  ;;  %v5869_v35 = vld [vmem:[#allocation3 + $0x83] sm:$0xff] }
 0x2ea   : > { %14594 = vmatmul.mubr.f32.gmra.mxu0 %v5474_v11  ;;  %14510 = vmatprep.mubr.f32.mxu1 %v5473_v40  ;;  %v17334_v40 = vld [vmem:[#allocation3 + $0x84] sm:$0xff] }
 0x2eb   : > { %14596 = vmatprep.mubr.f32.mxu0 %v5475_v55  ;;  %14636 = vmatpush3.msra.mxu1 %v5895_v45  ;;  %v6712_v45 = vld [vmem:[#allocation8 + $0x7c0] sm:$0xff] }
 0x2ec   : > { %14637 = vmatprep.subr.mxu1 %v5894_v9  ;;  %14722 = vmatpush3.msra.mxu0 %v6301_v0  ;;  %v7118_v0 = vld [vmem:[#allocation8 + $0x840] sm:$0xff] }
 0x2ed   : > { %14511 = vmatmul.mubr.f32.gmra.mxu1 %v5474_v11  ;;  %14723 = vmatprep.subr.mxu0 %v6300_v17  ;;  %v5870_v11 = vld [vmem:[#allocation3 + $0x8b] sm:$0xff] }
 0x2ee   : > { %14597 = vmatmul.mubr.f32.gmra.mxu0 %v5476_v48  ;;  %14513 = vmatprep.mubr.f32.mxu1 %v5475_v55  ;;  %v5871_v55 = vld [vmem:[#allocation3 + $0x93] sm:$0xff] }
 0x2ef   : > { %14599 = vmatprep.mubr.f32.mxu0 %v5477_v15  ;;  %14638 = vmatpush3.msra.mxu1 %v5894_v9  ;;  %v17337_v9 = vld [vmem:[#allocation3 + $0x8c] sm:$0xff] }
 0x2f0   : > { %14639 = vmatprep.subr.mxu1 %v5893_v60  ;;  %14724 = vmatpush3.msra.mxu0 %v6300_v17  ;;  %v6711_v17 = vld [vmem:[#allocation8 + $0x7b8] sm:$0xff] }
 0x2f1   : > { %14514 = vmatmul.mubr.f32.gmra.mxu1 %v5476_v48  ;;  %14725 = vmatprep.subr.mxu0 %v6299_v27  ;;  %v17340_v48 = vld [vmem:[#allocation3 + $0x94] sm:$0xff] }
 0x2f2   : > { %14600 = vmatmul.mubr.f32.gmra.mxu0 %v5478_v46  ;;  %14516 = vmatprep.mubr.f32.mxu1 %v5477_v15  ;;  %v5872_v15 = vld [vmem:[#allocation3 + $0x9b] sm:$0xff] }
 0x2f3   : > { %14602 = vmatprep.mubr.f32.mxu0 %v5479_v36  ;;  %14640 = vmatpush3.msra.mxu1 %v5893_v60  ;;  %v7117_v60 = vld [vmem:[#allocation8 + $0x838] sm:$0xff] }
 0x2f4   : > { %14641 = vmatprep.subr.mxu1 %v5892_v26  ;;  %14726 = vmatpush3.msra.mxu0 %v6299_v27  ;;  %v17343_v27 = vld [vmem:[#allocation3 + $0x9c] sm:$0xff] }
 0x2f5   : > { %14517 = vmatmul.mubr.f32.gmra.mxu1 %v5478_v46  ;;  %14727 = vmatprep.subr.mxu0 %v6298_v30  ;;  %v5873_v46 = vld [vmem:[#allocation3 + $0xa3] sm:$0xff] }
 0x2f6   : > { %14603 = vmatmul.mubr.f32.gmra.mxu0 %v5480_v42  ;;  %14519 = vmatprep.mubr.f32.mxu1 %v5479_v36  ;;  %v17346_v36 = vld [vmem:[#allocation3 + $0xa4] sm:$0xff] }
 0x2f7   : > { %14605 = vmatprep.mubr.f32.mxu0 %v5481_v47  ;;  %14642 = vmatpush3.msra.mxu1 %v5892_v26  ;;  %v6710_v26 = vld [vmem:[#allocation8 + $0x7b0] sm:$0xff] }
 0x2f8   : > { %14728 = vmatpush3.msra.mxu0 %v6298_v30  ;;  %14783 = vmatprep.subr.mxu1 %v6719_v25  ;;  %v7116_v30 = vld [vmem:[#allocation8 + $0x830] sm:$0xff] }
 0x2f9   : > { %14520 = vmatmul.mubr.f32.gmra.mxu1 %v5480_v42  ;;  %14869 = vmatprep.subr.mxu0 %v7125_v38  ;;  %v5874_v42 = vld [vmem:[#allocation3 + $0xab] sm:$0xff] }
 0x2fa   : > { %14606 = vmatmul.mubr.f32.gmra.mxu0 %v5482_v28  ;;  %14522 = vmatprep.mubr.f32.mxu1 %v5481_v47  ;;  %v5875_v47 = vld [vmem:[#allocation3 + $0xb3] sm:$0xff] }
 0x2fb   : > { %14608 = vmatprep.mubr.f32.mxu0 %v5483_v37  ;;  %v7115_v37 = vld [vmem:[#allocation8 + $0x828] sm:$0xff] }
 0x2fd   : > { %14523 = vmatmul.mubr.f32.gmra.mxu1 %v5482_v28  ;;  %v17352_v28 = vld [vmem:[#allocation3 + $0xb4] sm:$0xff] }
 0x2fe   : > { %14609 = vmatmul.mubr.f32.gmra.mxu0 %v5484_v7  ;;  %14643 = vmatprep.mubr.f32.mxu1 %v5855_v19  ;;  %v5876_v7 = vld [vmem:[#allocation3 + $0xbb] sm:$0xff] }
 0x2ff   : > { %14729 = vmatprep.mubr.f32.mxu0 %v6261_v22  ;;  %v17355_v19 = vld [vmem:[#allocation3 + $0xbc] sm:$0xff] }
 0x300   : > { %v5877_v22 = vld [vmem:[#allocation3 + $0xc3] sm:$0xff] }
 0x301   : > { %14644 = vmatmul.mubr.f32.vlgmr.msra.gmra.mxu1 %v5856_v8  ;;  %v6708_v8 = vld [vmem:[#allocation8 + $0x7a0] sm:$0xff] }
 0x302   : > { %14730 = vmatmul.mubr.f32.vlgmr.msra.gmra.mxu0 %v6262_v13  ;;  %14646 = vmatprep.mubr.f32.mxu1 %v5857_v32  ;;  %v17358_v13 = vld [vmem:[#allocation3 + $0xc4] sm:$0xff] }
 0x303   : > { %14732 = vmatprep.mubr.f32.mxu0 %v17298_v50  ;;  %14784 = vmatpush3.msra.mxu1 %v6719_v25  ;;  %v17349_v25 = vld [vmem:[#allocation3 + $0xac] sm:$0xff] }
 0x304   : > { %14785 = vmatprep.subr.mxu1 %v6718_v10  ;;  %14870 = vmatpush3.msra.mxu0 %v7125_v38  ;;  %v6709_v38 = vld [vmem:[#allocation8 + $0x7a8] sm:$0xff]  ;;  %v7114_v32 = vld [vmem:[#allocation8 + $0x820] sm:$0xff] }
 0x305   : > { %14647 = vmatmul.mubr.f32.gmra.mxu1 %v5858_v18  ;;  %14871 = vmatprep.subr.mxu0 %v7124_v51  ;;  %v5879_v18 = vld [vmem:[#allocation3 + $0xd3] sm:$0xff] }
 0x306   : > { %14733 = vmatmul.mubr.f32.gmra.mxu0 %v17301_v63  ;;  %14649 = vmatprep.mubr.f32.mxu1 %v5859_v33  ;;  %v6707_v33 = vld [vmem:[#allocation8 + $0x798] sm:$0xff] }
 0x307   : > { %14735 = vmatprep.mubr.f32.mxu0 %v17304_v56  ;;  %14786 = vmatpush3.msra.mxu1 %v6718_v10  ;;  %v5878_v10 = vld [vmem:[#allocation3 + $0xcb] sm:$0xff] }
 0x308   : > { %14787 = vmatprep.subr.mxu1 %v6717_v54  ;;  %14872 = vmatpush3.msra.mxu0 %v7124_v51  ;;  %v17361_v51 = vld [vmem:[#allocation3 + $0xcc] sm:$0xff] }
 0x309   : > { %14650 = vmatmul.mubr.f32.gmra.mxu1 %v5860_v23  ;;  %14873 = vmatprep.subr.mxu0 %v7123_v20  ;;  %v5880_v23 = vld [vmem:[#allocation3 + $0xdb] sm:$0xff] }
 0x30a   : > { %14736 = vmatmul.mubr.f32.gmra.mxu0 %v17307_v6  ;;  %14652 = vmatprep.mubr.f32.mxu1 %v5861_v31  ;;  %v17367_v31 = vld [vmem:[#allocation3 + $0xdc] sm:$0xff] }
 0x30b   : > { %14738 = vmatprep.mubr.f32.mxu0 %v17310_v12  ;;  %14788 = vmatpush3.msra.mxu1 %v6717_v54  ;;  %v17364_v54 = vld [vmem:[#allocation3 + $0xd4] sm:$0xff] }
 0x30c   : > { %14789 = vmatprep.subr.mxu1 %v6716_v1  ;;  %14874 = vmatpush3.msra.mxu0 %v7123_v20  ;;  %v7113_v20 = vld [vmem:[#allocation8 + $0x818] sm:$0xff] }
 0x30d   : > { %14653 = vmatmul.mubr.f32.gmra.mxu1 %v5862_v3  ;;  %14875 = vmatprep.subr.mxu0 %v7122_v14  ;;  %v17370_v3 = vpop.f32.mrf.mxu1 }
 0x30e   : > { %14739 = vmatmul.mubr.f32.gmra.mxu0 %v17313_v24  ;;  %14655 = vmatprep.mubr.f32.mxu1 %v5863_v21  ;;  %v17372_v21 = vpop.f32.mrf.mxu0 }
 0x30f   : > { %14741 = vmatprep.mubr.f32.mxu0 %v17316_v59  ;;  %14790 = vmatpush3.msra.mxu1 %v6716_v1  ;;  %v5881_v1 = vld [vmem:[#allocation3 + $0xe3] sm:$0xff] }
 0x310   : > { %14791 = vmatprep.subr.mxu1 %v6715_v39  ;;  %14876 = vmatpush3.msra.mxu0 %v7122_v14  ;;  %v6706_v14 = vld [vmem:[#allocation8 + $0x790] sm:$0xff] }
 0x311   : > { %14656 = vmatmul.mubr.f32.gmra.mxu1 %v5864_v44  ;;  %14877 = vmatprep.subr.mxu0 %v7121_v41 }
 0x312   : > { %14742 = vmatmul.mubr.f32.gmra.mxu0 %v17319_v4  ;;  %14658 = vmatprep.mubr.f32.mxu1 %v5865_v29 }
 0x313   : > { %14744 = vmatprep.mubr.f32.mxu0 %v17322_v43  ;;  %14792 = vmatpush3.msra.mxu1 %v6715_v39  ;;  %v17374_v39 = vld [vmem:[#allocation3 + $0xe4] sm:$0xff] }
 0x314   : > { %14793 = vmatprep.subr.mxu1 %v6714_v52  ;;  %14878 = vmatpush3.msra.mxu0 %v7121_v41  ;;  %v7112_v41 = vld [vmem:[#allocation8 + $0x810] sm:$0xff] }
 0x315   : > { %14659 = vmatmul.mubr.f32.gmra.mxu1 %v5866_v5  ;;  %14879 = vmatprep.subr.mxu0 %v7120_v2  ;;  %v17379_v5 = vld [vmem:[#allocation3 + $0xec] sm:$0xff] }
 0x316   : > { %14745 = vmatmul.mubr.f32.gmra.mxu0 %v17325_v34  ;;  %14661 = vmatprep.mubr.f32.mxu1 %v5867_v58  ;;  %v5883_v58 = vld [vmem:[#allocation3 + $0xf3] sm:$0xff] }
 0x317   : > { %14747 = vmatprep.mubr.f32.mxu0 %v17328_v16  ;;  %14794 = vmatpush3.msra.mxu1 %v6714_v52  ;;  %v5882_v52 = vld [vmem:[#allocation3 + $0xeb] sm:$0xff] }
 0x318   : > { %14795 = vmatprep.subr.mxu1 %v6713_v61  ;;  %14880 = vmatpush3.msra.mxu0 %v7120_v2 }
 0x319   : > { %14662 = vmatmul.mubr.f32.gmra.mxu1 %v5868_v62  ;;  %14881 = vmatprep.subr.mxu0 %v7119_v49 }
 0x31a   : > { %14748 = vmatmul.mubr.f32.gmra.mxu0 %v17331_v57  ;;  %14664 = vmatprep.mubr.f32.mxu1 %v5869_v35 }
 0x31b   : > { %14750 = vmatprep.mubr.f32.mxu0 %v17334_v40  ;;  %14796 = vmatpush3.msra.mxu1 %v6713_v61  ;;  %v6705_v61 = vld [vmem:[#allocation8 + $0x788] sm:$0xff] }
 0x31c   : > { %14797 = vmatprep.subr.mxu1 %v6712_v45  ;;  %14882 = vmatpush3.msra.mxu0 %v7119_v49  ;;  %v17382_v49 = vld [vmem:[#allocation3 + $0xf4] sm:$0xff] }
 0x31d   : > { %14665 = vmatmul.mubr.f32.gmra.mxu1 %v5870_v11  ;;  %14883 = vmatprep.subr.mxu0 %v7118_v0 }
 0x31e   : > { %14751 = vmatmul.mubr.f32.gmra.mxu0 %v17337_v9  ;;  %14667 = vmatprep.mubr.f32.mxu1 %v5871_v55 }
 0x31f   : > { %14753 = vmatprep.mubr.f32.mxu0 %v17340_v48  ;;  %14798 = vmatpush3.msra.mxu1 %v6712_v45  ;;  %v7111_v45 = vld [vmem:[#allocation8 + $0x808] sm:$0xff] }
 0x320   : > { %14799 = vmatprep.subr.mxu1 %v6711_v17  ;;  %14884 = vmatpush3.msra.mxu0 %v7118_v0 }
 0x321   : > { %14668 = vmatmul.mubr.f32.gmra.mxu1 %v5872_v15  ;;  %14885 = vmatprep.subr.mxu0 %v7117_v60  ;;  %v17389_v15 = vld [vmem:[#allocation3 + $0xfc] sm:$0xff] }
 0x322   : > { %14754 = vmatmul.mubr.f32.gmra.mxu0 %v17343_v27  ;;  %14670 = vmatprep.mubr.f32.mxu1 %v5873_v46  ;;  %v5885_v46 = vld [vmem:[#allocation3 + $0x103] sm:$0xff] }
 0x323   : > { %14756 = vmatprep.mubr.f32.mxu0 %v17346_v36  ;;  %14800 = vmatpush3.msra.mxu1 %v6711_v17  ;;  %v5884_v17 = vld [vmem:[#allocation3 + $0xfb] sm:$0xff] }
 0x324   : > { %14801 = vmatprep.subr.mxu1 %v6710_v26  ;;  %14886 = vmatpush3.msra.mxu0 %v7117_v60 }
 0x325   : > { %14671 = vmatmul.mubr.f32.gmra.mxu1 %v5874_v42  ;;  %14887 = vmatprep.subr.mxu0 %v7116_v30 }
 0x326   : > { %14757 = vmatmul.mubr.f32.gmra.mxu0 %v17349_v25  ;;  %14673 = vmatprep.mubr.f32.mxu1 %v5875_v47 }
 0x327   : > { %14759 = vmatprep.mubr.f32.mxu0 %v17352_v28  ;;  %14802 = vmatpush3.msra.mxu1 %v6710_v26  ;;  %v6704_v26 = vld [vmem:[#allocation8 + $0x780] sm:$0xff] }
 0x328   : > { %14803 = vmatprep.subr.mxu1 %v6709_v38  ;;  %14888 = vmatpush3.msra.mxu0 %v7116_v30  ;;  %v17392_v30 = vld [vmem:[#allocation3 + $0x104] sm:$0xff] }
 0x329   : > { %14674 = vmatmul.mubr.f32.gmra.mxu1 %v5876_v7  ;;  %14889 = vmatprep.subr.mxu0 %v7115_v37  ;;  %v5886_v7 = vld [vmem:[#allocation3 + $0x10b] sm:$0xff] }
 0x32a   : > { %14760 = vmatmul.mubr.f32.gmra.mxu0 %v17355_v19  ;;  %14676 = vmatprep.mubr.f32.mxu1 %v5877_v22 }
 0x32b   : > { %14762 = vmatprep.mubr.f32.mxu0 %v17358_v13  ;;  %14804 = vmatpush3.msra.mxu1 %v6709_v38  ;;  %v7110_v38 = vld [vmem:[#allocation8 + $0x800] sm:$0xff] }
 0x32c   : > { %14805 = vmatprep.subr.mxu1 %v6708_v8  ;;  %14890 = vmatpush3.msra.mxu0 %v7115_v37 }
 0x32d   : > { %14677 = vmatmul.mubr.f32.gmra.mxu1 %v5878_v10  ;;  %14891 = vmatprep.subr.mxu0 %v7114_v32  ;;  %v5887_v10 = vld [vmem:[#allocation3 + $0x113] sm:$0xff] }
 0x32e   : > { %14763 = vmatmul.mubr.f32.gmra.mxu0 %v17361_v51  ;;  %14679 = vmatprep.mubr.f32.mxu1 %v5879_v18  ;;  %v7531_v18 = vld [vmem:[#allocation8 + $0x8f8] sm:$0xff] }
 0x32f   : > { %14765 = vmatprep.mubr.f32.mxu0 %v17364_v54  ;;  %14806 = vmatpush3.msra.mxu1 %v6708_v8 }
 0x330   : > { %14807 = vmatprep.subr.mxu1 %v6707_v33  ;;  %14892 = vmatpush3.msra.mxu0 %v7114_v32  ;;  %v17397_v32 = vld [vmem:[#allocation3 + $0x10c] sm:$0xff] }
 0x331   : > { %14680 = vmatmul.mubr.f32.gmra.mxu1 %v5880_v23  ;;  %14893 = vmatprep.subr.mxu0 %v7113_v20 }
 0x332   : > { %14766 = vmatmul.mubr.f32.gmra.mxu0 %v17367_v31  ;;  %14682 = vmatprep.mubr.f32.mxu1 %v5881_v1  ;;  %v14304_v44 = vpop.f32.mrf.mxu1 }
 0x333   : > { %14768 = vmatprep.mubr.f32.mxu0 %v17374_v39  ;;  %14808 = vmatpush3.msra.mxu1 %v6707_v33  ;;  %v14390_v29 = vpop.f32.mrf.mxu0 }
 0x334   : > { %14809 = vmatprep.subr.mxu1 %v6706_v14  ;;  %14894 = vmatpush3.msra.mxu0 %v7113_v20  ;;  %v17377_v2 = vadd.f32 %v14390_v29, %v14304_v44  ;;  %v4432_v62 = vpop.f32.mrf.mxu1  ;;  %v17402_v20 = vld [vmem:[#allocation3 + $0x114] sm:$0xff] }
 0x335   : > { %14683 = vmatmul.mubr.f32.gmra.mxu1 %v5882_v52  ;;  %14895 = vmatprep.subr.mxu0 %v7112_v41  ;;  %v4766_v35 = vpop.f32.mrf.mxu0  ;;  %v17407_v52 = vld [vmem:[#allocation3 + $0x11c] sm:$0xff] }
 0x336   : > { %14769 = vmatmul.mubr.f32.gmra.mxu0 %v17379_v5  ;;  %14685 = vmatprep.mubr.f32.mxu1 %v5883_v58  ;;  %v17385_v0 = vadd.f32 %v4766_v35, %v4432_v62  ;;  %v14307_v11 = vpop.f32.mrf.mxu1  ;;  %v5889_v58 = vld [vmem:[#allocation3 + $0x123] sm:$0xff] }
 0x337   : > { %14771 = vmatprep.mubr.f32.mxu0 %v17382_v49  ;;  %14810 = vmatpush3.msra.mxu1 %v6706_v14  ;;  %v14393_v55 = vpop.f32.mrf.mxu0  ;;  %v17412_v62 = vld [vmem:[#allocation3 + $0x124] sm:$0xff] }
 0x338   : > { %14811 = vmatprep.subr.mxu1 %v6705_v61  ;;  %14896 = vmatpush3.msra.mxu0 %v7112_v41  ;;  %v17387_v60 = vadd.f32 %v14393_v55, %v14307_v11  ;;  %v4442_v42 = vpop.f32.mrf.mxu1  ;;  %v5888_v41 = vld [vmem:[#allocation3 + $0x11b] sm:$0xff]  ;;  %v5890_v55 = vld [vmem:[#allocation3 + $0x12b] sm:$0xff] }
 0x339   : > { %14686 = vmatmul.mubr.f32.gmra.mxu1 %v5884_v17  ;;  %14897 = vmatprep.subr.mxu0 %v7111_v45  ;;  %v4776_v47 = vpop.f32.mrf.mxu0 }
 0x33a   : > { %14772 = vmatmul.mubr.f32.gmra.mxu0 %v17389_v15  ;;  %14688 = vmatprep.mubr.f32.mxu1 %v5885_v46  ;;  %v17395_v37 = vadd.f32 %v4776_v47, %v4442_v42  ;;  %v17417_v46 = vld [vmem:[#allocation3 + $0x12c] sm:$0xff] }
 0x33b   : > { %14774 = vmatprep.mubr.f32.mxu0 %v17392_v30  ;;  %14812 = vmatpush3.msra.mxu1 %v6705_v61  ;;  %v14310_v22 = vpop.f32.mrf.mxu1  ;;  %v7073_v42 = vld [vmem:[#allocation3 + $0x25] sm:$0xff] }
 0x33c   : > { %14813 = vmatprep.subr.mxu1 %v6704_v26  ;;  %14898 = vmatpush3.msra.mxu0 %v7111_v45  ;;  %v14396_v8 = vpop.f32.mrf.mxu0 }
 0x33d   : > { %14689 = vmatmul.mubr.f32.gmra.mxu1 %v5886_v7  ;;  %14899 = vmatprep.subr.mxu0 %v7110_v38  ;;  %v17399_v33 = vadd.f32 %v14396_v8, %v14310_v22  ;;  %v4452_v23 = vpop.f32.mrf.mxu1 }
 0x33e   : > { %14775 = vmatmul.mubr.f32.gmra.mxu0 %v17397_v32  ;;  %14691 = vmatprep.mubr.f32.mxu1 %v5887_v10  ;;  %v4786_v1 = vpop.f32.mrf.mxu0  ;;  %v7074_v10 = vld [vmem:[#allocation3 + $0x2d] sm:$0xff] }
 0x33f   : > { %14777 = vmatprep.mubr.f32.mxu0 %v17402_v20  ;;  %14814 = vmatpush3.msra.mxu1 %v6704_v26  ;;  %v17405_v14 = vadd.f32 %v4786_v1, %v4452_v23  ;;  %v7530_v23 = vld [vmem:[#allocation8 + $0x8f0] sm:$0xff] }
 0x340   : > { %14900 = vmatpush3.msra.mxu0 %v7110_v38  ;;  %14955 = vmatprep.subr.mxu1 %v7531_v18  ;;  %v14313_v44 = vpop.f32.mrf.mxu1  ;;  %v14399_v29 = vpop.f32.mrf.mxu0 }
 0x341   : > { %14692 = vmatmul.mubr.f32.gmra.mxu1 %v5888_v41  ;;  %v17409_v61 = vadd.f32 %v14399_v29, %v14313_v44  ;;  %v7075_v41 = vld [vmem:[#allocation3 + $0x35] sm:$0xff] }
 0x342   : > { %14778 = vmatmul.mubr.f32.gmra.mxu0 %v17407_v52  ;;  %14694 = vmatprep.mubr.f32.mxu1 %v5889_v58  ;;  %v4462_v35 = vpop.f32.mrf.mxu1  ;;  %v4796_v45 = vpop.f32.mrf.mxu0 }
 0x343   : > { %14780 = vmatprep.mubr.f32.mxu0 %v17412_v62  ;;  %v17415_v11 = vadd.f32 %v4796_v45, %v4462_v35  ;;  %v7529_v45 = vld [vmem:[#allocation8 + $0x8e8] sm:$0xff] }
 0x344   : > { %v14316_v17 = vpop.f32.mrf.mxu1 }
 0x345   : > { %14695 = vmatmul.mubr.f32.gmra.mxu1 %v5890_v55  ;;  %v14402_v26 = vpop.f32.mrf.mxu0 }
 0x346   : > { %14781 = vmatmul.mubr.f32.gmra.mxu0 %v17417_v46  ;;  %14815 = vmatprep.mubr.f32.mxu1 %v17298_v50  ;;  %v17421_v47 = vadd.f32 %v14402_v26, %v14316_v17  ;;  %v4472_v38 = vpop.f32.mrf.mxu1 }
 0x347   : > { %14901 = vmatprep.mubr.f32.mxu0 %v7073_v42  ;;  %v4806_v7 = vpop.f32.mrf.mxu0 }
 0x348   : > { %v17423_v22 = vadd.f32 %v4806_v7, %v4472_v38  ;;  %v14319_v8 = vpop.f32.mrf.mxu1  ;;  %v7528_v7 = vld [vmem:[#allocation8 + $0x8e0] sm:$0xff] }
 0x349   : > { %14816 = vmatmul.mubr.f32.vlgmr.msra.gmra.mxu1 %v17301_v63  ;;  %v14405_v1 = vpop.f32.mrf.mxu0  ;;  %v7076_v63 = vld [vmem:[#allocation3 + $0x3d] sm:$0xff] }
 0x34a   : > { %14902 = vmatmul.mubr.f32.vlgmr.msra.gmra.mxu0 %v7074_v10  ;;  %14818 = vmatprep.mubr.f32.mxu1 %v17304_v56  ;;  %v17427_v44 = vadd.f32 %v14405_v1, %v14319_v8  ;;  %v4482_v50 = vpop.f32.mrf.mxu1  ;;  %v7077_v56 = vld [vmem:[#allocation3 + $0x45] sm:$0xff] }
 0x34b   : > { %14904 = vmatprep.mubr.f32.mxu0 %v7075_v41  ;;  %14956 = vmatpush3.msra.mxu1 %v7531_v18  ;;  %v4816_v29 = vpop.f32.mrf.mxu0 }
 0x34c   : > { %14957 = vmatprep.subr.mxu1 %v7530_v23  ;;  %v17429_v58 = vadd.f32 %v4816_v29, %v4482_v50  ;;  %v14322_v35 = vpop.f32.mrf.mxu1  ;;  %v7527_v29 = vld [vmem:[#allocation8 + $0x8d8] sm:$0xff] }
 0x34d   : > { %14819 = vmatmul.mubr.f32.gmra.mxu1 %v17307_v6  ;;  %v14408_v55 = vpop.f32.mrf.mxu0  ;;  %v7078_v6 = vld [vmem:[#allocation3 + $0x4d] sm:$0xff] }
 0x34e   : > { %14905 = vmatmul.mubr.f32.gmra.mxu0 %v7076_v63  ;;  %14821 = vmatprep.mubr.f32.mxu1 %v17310_v12  ;;  %v17433_v17 = vadd.f32 %v14408_v55, %v14322_v35  ;;  %v4492_v26 = vpop.f32.mrf.mxu1  ;;  %v7079_v12 = vld [vmem:[#allocation3 + $0x55] sm:$0xff] }
 0x34f   : > { %14907 = vmatprep.mubr.f32.mxu0 %v7077_v56  ;;  %14958 = vmatpush3.msra.mxu1 %v7530_v23  ;;  %v4826_v18 = vpop.f32.mrf.mxu0 }
 0x350   : > { %14959 = vmatprep.subr.mxu1 %v7529_v45  ;;  %v17435_v42 = vadd.f32 %v4826_v18, %v4492_v26  ;;  %v7526_v18 = vld [vmem:[#allocation8 + $0x8d0] sm:$0xff] }
 0x351   : > { %v14325_v38 = vpop.f32.mrf.mxu1  ;;  %14822 = vmatmul.mubr.f32.gmra.mxu1 %v17313_v24  ;;  %v14411_v8 = vpop.f32.mrf.mxu0  ;;  %v7080_v24 = vld [vmem:[#allocation3 + $0x5d] sm:$0xff] }
 0x352   : > { %14908 = vmatmul.mubr.f32.gmra.mxu0 %v7078_v6  ;;  %14824 = vmatprep.mubr.f32.mxu1 %v17316_v59  ;;  %v17439_v10 = vadd.f32 %v14411_v8, %v14325_v38  ;;  %v7081_v59 = vld [vmem:[#allocation3 + $0x65] sm:$0xff] }
 0x353   : > { %14910 = vmatprep.mubr.f32.mxu0 %v7079_v12  ;;  %v4502_v1 = vpop.f32.mrf.mxu1  ;;  %14960 = vmatpush3.msra.mxu1 %v7529_v45  ;;  %v4836_v23 = vpop.f32.mrf.mxu0 }
 0x354   : > { %14961 = vmatprep.subr.mxu1 %v7528_v7  ;;  %v17441_v41 = vadd.f32 %v4836_v23, %v4502_v1  ;;  %v7525_v23 = vld [vmem:[#allocation8 + $0x8c8] sm:$0xff] }
 0x355   : > { %v14328_v50 = vpop.f32.mrf.mxu1  ;;  %14825 = vmatmul.mubr.f32.gmra.mxu1 %v17319_v4  ;;  %v7082_v4 = vld [vmem:[#allocation3 + $0x6d] sm:$0xff] }
 0x356   : > { %v14414_v35 = vpop.f32.mrf.mxu0  ;;  %14911 = vmatmul.mubr.f32.gmra.mxu0 %v7080_v24  ;;  %14827 = vmatprep.mubr.f32.mxu1 %v17322_v43  ;;  %v7083_v43 = vld [vmem:[#allocation3 + $0x75] sm:$0xff] }
 0x357   : > { %v17445_v63 = vadd.f32 %v14414_v35, %v14328_v50  ;;  %14913 = vmatprep.mubr.f32.mxu0 %v7081_v59  ;;  %v4512_v55 = vpop.f32.mrf.mxu1  ;;  %14962 = vmatpush3.msra.mxu1 %v7528_v7 }
 0x358   : > { %v4846_v45 = vpop.f32.mrf.mxu0  ;;  %14963 = vmatprep.subr.mxu1 %v7527_v29 }
 0x359   : > { %v17447_v56 = vadd.f32 %v4846_v45, %v4512_v55  ;;  %v14331_v26 = vpop.f32.mrf.mxu1  ;;  %14828 = vmatmul.mubr.f32.gmra.mxu1 %v17325_v34  ;;  %v7084_v34 = vld [vmem:[#allocation3 + $0x7d] sm:$0xff]  ;;  %v7524_v45 = vld [vmem:[#allocation8 + $0x8c0] sm:$0xff] }
 0x35a   : > { %v14417_v38 = vpop.f32.mrf.mxu0  ;;  %14914 = vmatmul.mubr.f32.gmra.mxu0 %v7082_v4  ;;  %14830 = vmatprep.mubr.f32.mxu1 %v17328_v16  ;;  %v7085_v16 = vld [vmem:[#allocation3 + $0x85] sm:$0xff] }
 0x35b   : > { %v17451_v6 = vadd.f32 %v14417_v38, %v14331_v26  ;;  %14916 = vmatprep.mubr.f32.mxu0 %v7083_v43  ;;  %v4522_v8 = vpop.f32.mrf.mxu1  ;;  %14964 = vmatpush3.msra.mxu1 %v7527_v29 }
 0x35c   : > { %v4856_v7 = vpop.f32.mrf.mxu0  ;;  %14965 = vmatprep.subr.mxu1 %v7526_v18 }
 0x35d   : > { %v17453_v12 = vadd.f32 %v4856_v7, %v4522_v8  ;;  %v14334_v1 = vpop.f32.mrf.mxu1  ;;  %14831 = vmatmul.mubr.f32.gmra.mxu1 %v17331_v57  ;;  %v7086_v57 = vld [vmem:[#allocation3 + $0x8d] sm:$0xff]  ;;  %v7523_v7 = vld [vmem:[#allocation8 + $0x8b8] sm:$0xff] }
 0x35e   : > { %v14420_v50 = vpop.f32.mrf.mxu0  ;;  %14917 = vmatmul.mubr.f32.gmra.mxu0 %v7084_v34  ;;  %14833 = vmatprep.mubr.f32.mxu1 %v17334_v40  ;;  %v7087_v40 = vld [vmem:[#allocation3 + $0x95] sm:$0xff] }
 0x35f   : > { %v17457_v24 = vadd.f32 %v14420_v50, %v14334_v1  ;;  %14919 = vmatprep.mubr.f32.mxu0 %v7085_v16  ;;  %v4532_v35 = vpop.f32.mrf.mxu1  ;;  %14966 = vmatpush3.msra.mxu1 %v7526_v18 }
 0x360   : > { %v4866_v29 = vpop.f32.mrf.mxu0  ;;  %14967 = vmatprep.subr.mxu1 %v7525_v23 }
 0x361   : > { %v17459_v59 = vadd.f32 %v4866_v29, %v4532_v35  ;;  %v14337_v55 = vpop.f32.mrf.mxu1  ;;  %14834 = vmatmul.mubr.f32.gmra.mxu1 %v17337_v9  ;;  %v7088_v9 = vld [vmem:[#allocation3 + $0x9d] sm:$0xff] }
 0x362   : > { %v14423_v26 = vpop.f32.mrf.mxu0  ;;  %14920 = vmatmul.mubr.f32.gmra.mxu0 %v7086_v57  ;;  %14836 = vmatprep.mubr.f32.mxu1 %v17340_v48  ;;  %v7089_v48 = vld [vmem:[#allocation3 + $0xa5] sm:$0xff]  ;;  %v7522_v29 = vld [vmem:[#allocation8 + $0x8b0] sm:$0xff] }
 0x363   : > { %v17463_v4 = vadd.f32 %v14423_v26, %v14337_v55  ;;  %14922 = vmatprep.mubr.f32.mxu0 %v7087_v40  ;;  %v4542_v38 = vpop.f32.mrf.mxu1  ;;  %14968 = vmatpush3.msra.mxu1 %v7525_v23 }
 0x364   : > { %v4876_v18 = vpop.f32.mrf.mxu0  ;;  %14969 = vmatprep.subr.mxu1 %v7524_v45 }
 0x365   : > { %v17465_v43 = vadd.f32 %v4876_v18, %v4542_v38  ;;  %v14340_v8 = vpop.f32.mrf.mxu1  ;;  %14837 = vmatmul.mubr.f32.gmra.mxu1 %v17343_v27  ;;  %v7090_v27 = vld [vmem:[#allocation3 + $0xad] sm:$0xff] }
 0x366   : > { %v14426_v1 = vpop.f32.mrf.mxu0  ;;  %14923 = vmatmul.mubr.f32.gmra.mxu0 %v7088_v9  ;;  %14839 = vmatprep.mubr.f32.mxu1 %v17346_v36  ;;  %v7091_v36 = vld [vmem:[#allocation3 + $0xb5] sm:$0xff] }
 0x367   : > { %v17469_v34 = vadd.f32 %v14426_v1, %v14340_v8  ;;  %14925 = vmatprep.mubr.f32.mxu0 %v7089_v48  ;;  %v4552_v50 = vpop.f32.mrf.mxu1  ;;  %14970 = vmatpush3.msra.mxu1 %v7524_v45  ;;  %v7521_v18 = vld [vmem:[#allocation8 + $0x8a8] sm:$0xff] }
 0x368   : > { %v4886_v23 = vpop.f32.mrf.mxu0  ;;  %14971 = vmatprep.subr.mxu1 %v7523_v7 }
 0x369   : > { %v17471_v16 = vadd.f32 %v4886_v23, %v4552_v50  ;;  %v14343_v35 = vpop.f32.mrf.mxu1  ;;  %14840 = vmatmul.mubr.f32.gmra.mxu1 %v17349_v25  ;;  %v7092_v25 = vld [vmem:[#allocation3 + $0xbd] sm:$0xff]  ;;  %v7520_v23 = vld [vmem:[#allocation8 + $0x8a0] sm:$0xff] }
 0x36a   : > { %v14429_v55 = vpop.f32.mrf.mxu0  ;;  %14926 = vmatmul.mubr.f32.gmra.mxu0 %v7090_v27  ;;  %14842 = vmatprep.mubr.f32.mxu1 %v17352_v28  ;;  %v7093_v28 = vld [vmem:[#allocation3 + $0xc5] sm:$0xff] }
 0x36b   : > { %v17475_v57 = vadd.f32 %v14429_v55, %v14343_v35  ;;  %14928 = vmatprep.mubr.f32.mxu0 %v7091_v36  ;;  %v4562_v26 = vpop.f32.mrf.mxu1  ;;  %14972 = vmatpush3.msra.mxu1 %v7523_v7 }
 0x36c   : > { %v4896_v45 = vpop.f32.mrf.mxu0  ;;  %14973 = vmatprep.subr.mxu1 %v7522_v29 }
 0x36d   : > { %v17477_v40 = vadd.f32 %v4896_v45, %v4562_v26  ;;  %v14346_v38 = vpop.f32.mrf.mxu1  ;;  %14843 = vmatmul.mubr.f32.gmra.mxu1 %v17355_v19  ;;  %v7094_v19 = vld [vmem:[#allocation3 + $0xcd] sm:$0xff]  ;;  %v7519_v26 = vld [vmem:[#allocation8 + $0x898] sm:$0xff] }
 0x36e   : > { %v14432_v8 = vpop.f32.mrf.mxu0  ;;  %14929 = vmatmul.mubr.f32.gmra.mxu0 %v7092_v25  ;;  %14845 = vmatprep.mubr.f32.mxu1 %v17358_v13  ;;  %v7095_v13 = vld [vmem:[#allocation3 + $0xd5] sm:$0xff] }
 0x36f   : > { %v17481_v9 = vadd.f32 %v14432_v8, %v14346_v38  ;;  %14931 = vmatprep.mubr.f32.mxu0 %v7093_v28  ;;  %v4572_v1 = vpop.f32.mrf.mxu1  ;;  %14974 = vmatpush3.msra.mxu1 %v7522_v29  ;;  %v7518_v28 = vld [vmem:[#allocation8 + $0x890] sm:$0xff] }
 0x370   : > { %v4906_v7 = vpop.f32.mrf.mxu0  ;;  %14975 = vmatprep.subr.mxu1 %v7521_v18 }
 0x371   : > { %v17483_v48 = vadd.f32 %v4906_v7, %v4572_v1  ;;  %v14349_v50 = vpop.f32.mrf.mxu1  ;;  %14846 = vmatmul.mubr.f32.gmra.mxu1 %v17361_v51  ;;  %v7096_v51 = vld [vmem:[#allocation3 + $0xdd] sm:$0xff] }
 0x372   : > { %v14435_v35 = vpop.f32.mrf.mxu0  ;;  %14932 = vmatmul.mubr.f32.gmra.mxu0 %v7094_v19  ;;  %14848 = vmatprep.mubr.f32.mxu1 %v17364_v54  ;;  %v7097_v54 = vld [vmem:[#allocation3 + $0xe5] sm:$0xff] }
 0x373   : > { %v17487_v27 = vadd.f32 %v14435_v35, %v14349_v50  ;;  %14934 = vmatprep.mubr.f32.mxu0 %v7095_v13  ;;  %v17489_v55 = vpop.f32.mrf.mxu1  ;;  %14976 = vmatpush3.msra.mxu1 %v7521_v18  ;;  %v7517_v13 = vld [vmem:[#allocation8 + $0x888] sm:$0xff] }
 0x374   : > { %v17491_v29 = vpop.f32.mrf.mxu0  ;;  %14977 = vmatprep.subr.mxu1 %v7520_v23 }
 0x375   : > { %v14352_v36 = vpop.f32.mrf.mxu1  ;;  %14849 = vmatmul.mubr.f32.gmra.mxu1 %v17367_v31  ;;  %v7098_v31 = vld [vmem:[#allocation3 + $0xed] sm:$0xff] }
 0x376   : > { %v14438_v45 = vpop.f32.mrf.mxu0  ;;  %14935 = vmatmul.mubr.f32.gmra.mxu0 %v7096_v51  ;;  %14851 = vmatprep.mubr.f32.mxu1 %v17374_v39  ;;  %v7099_v39 = vld [vmem:[#allocation3 + $0xf5] sm:$0xff] }
 0x377   : > { %v17495_v38 = vadd.f32 %v14438_v45, %v14352_v36  ;;  %14937 = vmatprep.mubr.f32.mxu0 %v7097_v54  ;;  %v17497_v25 = vpop.f32.mrf.mxu1  ;;  %14978 = vmatpush3.msra.mxu1 %v7520_v23 }
 0x378   : > { %v17499_v18 = vpop.f32.mrf.mxu0  ;;  %14979 = vmatprep.subr.mxu1 %v7519_v26 }
 0x379   : > { %v14473_v8 = vpop.f32.mrf.mxu1  ;;  %14852 = vmatmul.mubr.f32.gmra.mxu1 %v17379_v5  ;;  %v7100_v5 = vld [vmem:[#allocation3 + $0xfd] sm:$0xff] }
 0x37a   : > { %v5378_v1 = vadd.f32 %v14473_v8, %v17296_v53  ;;  %v14559_v7 = vpop.f32.mrf.mxu0  ;;  %14938 = vmatmul.mubr.f32.gmra.mxu0 %v7098_v31  ;;  %14854 = vmatprep.mubr.f32.mxu1 %v17382_v49  ;;  %v7101_v49 = vld [vmem:[#allocation3 + $0x105] sm:$0xff] }
 0x37b   : > { %14940 = vmatprep.mubr.f32.mxu0 %v7099_v39  ;;  %v17504_v50 = vpop.f32.mrf.mxu1  ;;  %14980 = vmatpush3.msra.mxu1 %v7519_v26  ;;  %v7516_v8 = vld [vmem:[#allocation8 + $0x880] sm:$0xff] }
 0x37c   : > { %v17506_v19 = vadd.f32 %v14559_v7, %v5378_v1  ;;  %v17508_v23 = vpop.f32.mrf.mxu0  ;;  %14981 = vmatprep.subr.mxu1 %v7518_v28 }
 0x37d   : > { %v14476_v35 = vpop.f32.mrf.mxu1  ;;  %14855 = vmatmul.mubr.f32.gmra.mxu1 %v17389_v15 }
 0x37e   : > { %v5380_v53 = vadd.f32 %v14476_v35, %v17377_v2  ;;  %v14562_v36 = vpop.f32.mrf.mxu0  ;;  %14941 = vmatmul.mubr.f32.gmra.mxu0 %v7100_v5  ;;  %14857 = vmatprep.mubr.f32.mxu1 %v17392_v30  ;;  %v7102_v2 = vld [vmem:[#allocation3 + $0x10d] sm:$0xff] }
 0x37f   : > { %14943 = vmatprep.mubr.f32.mxu0 %v7101_v49  ;;  %v5172_v51 = vpop.f32.mrf.mxu1  ;;  %14982 = vmatpush3.msra.mxu1 %v7518_v28  ;;  %v7103_v28 = vld [vmem:[#allocation3 + $0x115] sm:$0xff] }
 0x380   : > { %v17513_v26 = vadd.f32 %v14562_v36, %v5380_v53  ;;  %v17516_v45 = vadd.f32 %v5172_v51, %v17385_v0  ;;  %v17518_v54 = vpop.f32.mrf.mxu0  ;;  %14983 = vmatprep.subr.mxu1 %v7517_v13  ;;  %v6701_v53 = vld [vmem:[#allocation3 + $0x134] sm:$0xff] }
 0x381   : > { %v14479_v15 = vpop.f32.mrf.mxu1  ;;  %14858 = vmatmul.mubr.f32.gmra.mxu1 %v17397_v32 }
 0x382   : > { %v5382_v31 = vadd.f32 %v14479_v15, %v17387_v60  ;;  %v14565_v30 = vpop.f32.mrf.mxu0  ;;  %14944 = vmatmul.mubr.f32.gmra.mxu0 %v7102_v2  ;;  %14860 = vmatprep.mubr.f32.mxu1 %v17402_v20  ;;  %v7104_v60 = vld [vmem:[#allocation3 + $0x11d] sm:$0xff]  ;;  %v7105_v20 = vld [vmem:[#allocation3 + $0x125] sm:$0xff] }
 0x383   : > { %14946 = vmatprep.mubr.f32.mxu0 %v7103_v28  ;;  %v5182_v1 = vpop.f32.mrf.mxu1  ;;  %14984 = vmatpush3.msra.mxu1 %v7517_v13  ;;  %v6702_v2 = vld [vmem:[#allocation3 + $0x13c] sm:$0xff] }
 0x384   : > { %v17523_v0 = vadd.f32 %v14565_v30, %v5382_v31  ;;  %v17526_v7 = vadd.f32 %v5182_v1, %v17395_v37  ;;  %v17528_v39 = vpop.f32.mrf.mxu0  ;;  %14985 = vmatprep.subr.mxu1 %v7516_v8 }
 0x385   : > { %v14482_v32 = vpop.f32.mrf.mxu1  ;;  %14861 = vmatmul.mubr.f32.gmra.mxu1 %v17407_v52  ;;  %v7107_v52 = vld [vmem:[#allocation3 + $0x135] sm:$0xff] }
 0x386   : > { %v5384_v35 = vadd.f32 %v14482_v32, %v17399_v33  ;;  %v14568_v5 = vpop.f32.mrf.mxu0  ;;  %14947 = vmatmul.mubr.f32.gmra.mxu0 %v7104_v60  ;;  %14863 = vmatprep.mubr.f32.mxu1 %v17412_v62  ;;  %v7106_v33 = vld [vmem:[#allocation3 + $0x12d] sm:$0xff] }
 0x387   : > { %14949 = vmatprep.mubr.f32.mxu0 %v7105_v20  ;;  %v5192_v13 = vpop.f32.mrf.mxu1  ;;  %14986 = vmatpush3.msra.mxu1 %v7516_v8  ;;  %v7108_v8 = vld [vmem:[#allocation3 + $0x13d] sm:$0xff] }
 0x388   : > { %v17533_v37 = vadd.f32 %v14568_v5, %v5384_v35  ;;  %v17536_v36 = vadd.f32 %v5192_v13, %v17405_v14  ;;  %v17538_v49 = vpop.f32.mrf.mxu0  ;;  %v17550_v35 = vld [vmem:[#allocation2] sm:$0xff]  ;;  %v7480_v13 = vld [vmem:[#allocation3 + $0x2e] sm:$0xff] }
 0x389   : > { %v14485_v51 = vpop.f32.mrf.mxu1  ;;  %14864 = vmatmul.mubr.f32.gmra.mxu1 %v17417_v46  ;;  %v7479_v46 = vld [vmem:[#allocation3 + $0x26] sm:$0xff] }
 0x38a   : > { %v5386_v15 = vadd.f32 %v14485_v51, %v17409_v61  ;;  %v14571_v62 = vpop.f32.mrf.mxu0  ;;  %14950 = vmatmul.mubr.f32.gmra.mxu0 %v7106_v33  ;;  %14866 = vmatprep.mubr.f32.mxu1 %v6701_v53 }
 0x38b   : > { %v5202_v31 = vpop.f32.mrf.mxu1  ;;  %14952 = vmatprep.mubr.f32.mxu0 %v7107_v52  ;;  %v7481_v52 = vld [vmem:[#allocation3 + $0x36] sm:$0xff] }
 0x38c   : > { %v17542_v30 = vadd.f32 %v14571_v62, %v5386_v15  ;;  %v17545_v14 = vadd.f32 %v5202_v31, %v17415_v11  ;;  %v17547_v28 = vpop.f32.mrf.mxu0 }
 0x38d   : > { %v14488_v1 = vpop.f32.mrf.mxu1  ;;  %14867 = vmatmul.mubr.f32.gmra.mxu1 %v6702_v2 }
 0x38e   : > { %v5388_v32 = vadd.f32 %v14488_v1, %v17421_v47  ;;  %v14574_v61 = vpop.f32.mrf.mxu0  ;;  %14987 = vmatprep.mubr.f32.mxu1 %v7479_v46  ;;  %14953 = vmatmul.mubr.f32.gmra.mxu0 %v7108_v8  ;;  %v7483_v8 = vld [vmem:[#allocation3 + $0x46] sm:$0xff] }
 0x38f   : > { %v5212_v60 = vpop.f32.mrf.mxu1  ;;  %15073 = vmatprep.mubr.f32.mxu0 %v17550_v35 }
 0x390   : > { %v17553_v5 = vadd.f32 %v14574_v61, %v5388_v32  ;;  %v17556_v11 = vadd.f32 %v5212_v60, %v17423_v22  ;;  %v17558_v20 = vpop.f32.mrf.mxu0  ;;  %v7482_v22 = vld [vmem:[#allocation3 + $0x3e] sm:$0xff] }
 0x391   : > { %v14491_v53 = vpop.f32.mrf.mxu1  ;;  %14988 = vmatmul.mubr.f32.vlgmr.msra.gmra.mxu1 %v7480_v13 }
 0x392   : > { %v5390_v47 = vadd.f32 %v14491_v53, %v17427_v44  ;;  %v14577_v51 = vpop.f32.mrf.mxu0  ;;  %14990 = vmatprep.mubr.f32.mxu1 %v7481_v52  ;;  %v7485_v53 = vld [vmem:[#allocation3 + $0x56] sm:$0xff] }
 0x393   : > { %v5222_v33 = vpop.f32.mrf.mxu1 }
 0x394   : > { %v17561_v15 = vadd.f32 %v14577_v51, %v5390_v47  ;;  %v17564_v62 = vadd.f32 %v5222_v33, %v17429_v58  ;;  %v17566_v2 = vpop.f32.mrf.mxu0  ;;  %v7484_v58 = vld [vmem:[#allocation3 + $0x4e] sm:$0xff] }
 0x395   : > { %v14494_v31 = vpop.f32.mrf.mxu1  ;;  %14991 = vmatmul.mubr.f32.gmra.mxu1 %v7482_v22 }
 0x396   : > { %v5392_v1 = vadd.f32 %v14494_v31, %v17433_v17  ;;  %v14580_v46 = vpop.f32.mrf.mxu0  ;;  %14993 = vmatprep.mubr.f32.mxu1 %v7483_v8  ;;  %v7487_v8 = vld [vmem:[#allocation3 + $0x66] sm:$0xff] }
 0x397   : > { %v5232_v32 = vpop.f32.mrf.mxu1 }
 0x398   : > { %v17569_v44 = vadd.f32 %v14580_v46, %v5392_v1  ;;  %v17572_v61 = vadd.f32 %v5232_v32, %v17435_v42  ;;  %v17574_v60 = vpop.f32.mrf.mxu0  ;;  %v7486_v42 = vld [vmem:[#allocation3 + $0x5e] sm:$0xff] }
 0x399   : > { %v14497_v13 = vpop.f32.mrf.mxu1  ;;  %14994 = vmatmul.mubr.f32.gmra.mxu1 %v7484_v58  ;;  %v8163_v32 = vld [vmem:[#allocation8 + $0x978] sm:$0xff] }
 0x39a   : > { %v5394_v52 = vadd.f32 %v14497_v13, %v17439_v10  ;;  %v14583_v47 = vpop.f32.mrf.mxu0  ;;  %14996 = vmatprep.mubr.f32.mxu1 %v7485_v53  ;;  %15041 = vmatprep.subr.mxu0 %v8163_v32  ;;  %v7488_v53 = vld [vmem:[#allocation3 + $0x6e] sm:$0xff] }
 0x39b   : > { %v5242_v51 = vpop.f32.mrf.mxu1  ;;  %15042 = vmatpush3.msra.mxu0 %v8163_v32 }
 0x39c   : > { %v17577_v17 = vadd.f32 %v14583_v47, %v5394_v52  ;;  %v17580_v33 = vadd.f32 %v5242_v51, %v17441_v41  ;;  %v17582_v22 = vpop.f32.mrf.mxu0  ;;  %v7489_v47 = vld [vmem:[#allocation3 + $0x76] sm:$0xff] }
 0x39d   : > { %v14500_v31 = vpop.f32.mrf.mxu1  ;;  %14997 = vmatmul.mubr.f32.gmra.mxu1 %v7486_v42  ;;  %v8162_v42 = vld [vmem:[#allocation8 + $0x970] sm:$0xff] }
 0x39e   : > { %v5396_v1 = vadd.f32 %v14500_v31, %v17445_v63  ;;  %v14586_v46 = vpop.f32.mrf.mxu0  ;;  %14999 = vmatprep.mubr.f32.mxu1 %v7487_v8  ;;  %15043 = vmatprep.subr.mxu0 %v8162_v42 }
 0x39f   : > { %v5252_v10 = vpop.f32.mrf.mxu1  ;;  %15044 = vmatpush3.msra.mxu0 %v8162_v42 }
 0x3a0   : > { %v17585_v58 = vadd.f32 %v14586_v46, %v5396_v1  ;;  %v17588_v13 = vadd.f32 %v5252_v10, %v17447_v56  ;;  %v17590_v41 = vpop.f32.mrf.mxu0  ;;  %v7490_v46 = vld [vmem:[#allocation3 + $0x7e] sm:$0xff]  ;;  %v7491_v10 = vld [vmem:[#allocation3 + $0x86] sm:$0xff] }
 0x3a1   : > { %19189 = vst [vmem:[#allocation28_spill] sm:$0xff] %v17590_v41  ;;  %v14503_v52 = vpop.f32.mrf.mxu1  ;;  %15000 = vmatmul.mubr.f32.gmra.mxu1 %v7488_v53 }
 0x3a2   : > { %19188 = vst [vmem:[#allocation18_spill] sm:$0xff] %v17588_v13  ;;  %v5398_v51 = vadd.f32 %v14503_v52, %v17451_v6  ;;  %v14589_v63 = vpop.f32.mrf.mxu0  ;;  %15002 = vmatprep.mubr.f32.mxu1 %v7489_v47  ;;  %v8161_v52 = vld [vmem:[#allocation8 + $0x968] sm:$0xff] }
 0x3a3   : > { %v5262_v31 = vpop.f32.mrf.mxu1  ;;  %15045 = vmatprep.subr.mxu0 %v8161_v52 }
 0x3a4   : > { %v17593_v8 = vadd.f32 %v14589_v63, %v5398_v51  ;;  %v17596_v1 = vadd.f32 %v5262_v31, %v17453_v12  ;;  %v17598_v56 = vpop.f32.mrf.mxu0  ;;  %v7492_v63 = vld [vmem:[#allocation3 + $0x8e] sm:$0xff]  ;;  %15046 = vmatpush3.msra.mxu0 %v8161_v52  ;;  %v7493_v31 = vld [vmem:[#allocation3 + $0x96] sm:$0xff]  ;;  %v7495_v52 = vld [vmem:[#allocation3 + $0xa6] sm:$0xff] }
 0x3a5   : > { %19191 = vst [vmem:[#allocation30_spill] sm:$0xff] %v17598_v56  ;;  %v14506_v32 = vpop.f32.mrf.mxu1  ;;  %15003 = vmatmul.mubr.f32.gmra.mxu1 %v7490_v46 }
 0x3a6   : > { %19190 = vst [vmem:[#allocation19_spill] sm:$0xff] %v17596_v1  ;;  %v5400_v53 = vadd.f32 %v14506_v32, %v17457_v24  ;;  %v14592_v6 = vpop.f32.mrf.mxu0  ;;  %15005 = vmatprep.mubr.f32.mxu1 %v7491_v10 }
 0x3a7   : > { %v5272_v47 = vpop.f32.mrf.mxu1 }
 0x3a8   : > { %v17601_v41 = vadd.f32 %v14592_v6, %v5400_v53  ;;  %v17604_v51 = vadd.f32 %v5272_v47, %v17459_v59  ;;  %v17606_v12 = vpop.f32.mrf.mxu0  ;;  %v7494_v59 = vld [vmem:[#allocation3 + $0x9e] sm:$0xff]  ;;  %v8160_v47 = vld [vmem:[#allocation8 + $0x960] sm:$0xff] }
 0x3a9   : > { %19193 = vst [vmem:[#allocation51_spill] sm:$0xff] %v17606_v12  ;;  %v14509_v42 = vpop.f32.mrf.mxu1  ;;  %15006 = vmatmul.mubr.f32.gmra.mxu1 %v7492_v63  ;;  %15047 = vmatprep.subr.mxu0 %v8160_v47 }
 0x3aa   : > { %19192 = vst [vmem:[#allocation50_spill] sm:$0xff] %v17604_v51  ;;  %v5402_v46 = vadd.f32 %v14509_v42, %v17463_v4  ;;  %v14595_v24 = vpop.f32.mrf.mxu0  ;;  %15008 = vmatprep.mubr.f32.mxu1 %v7493_v31  ;;  %15048 = vmatpush3.msra.mxu0 %v8160_v47 }
 0x3ab   : > { %v5282_v32 = vpop.f32.mrf.mxu1 }
 0x3ac   : > { %v17609_v10 = vadd.f32 %v14595_v24, %v5402_v46  ;;  %v17612_v53 = vadd.f32 %v5282_v32, %v17465_v43  ;;  %v17614_v6 = vpop.f32.mrf.mxu0  ;;  %v7496_v46 = vld [vmem:[#allocation3 + $0xae] sm:$0xff]  ;;  %v8159_v24 = vld [vmem:[#allocation8 + $0x958] sm:$0xff] }
 0x3ad   : > { %19195 = vst [vmem:[#allocation31_spill] sm:$0xff] %v17614_v6  ;;  %v14512_v12 = vpop.f32.mrf.mxu1  ;;  %15009 = vmatmul.mubr.f32.gmra.mxu1 %v7494_v59  ;;  %v7497_v59 = vld [vmem:[#allocation3 + $0xb6] sm:$0xff]  ;;  %15049 = vmatprep.subr.mxu0 %v8159_v24 }
 0x3ae   : > { %19194 = vst [vmem:[#allocation29_spill] sm:$0xff] %v17612_v53  ;;  %v5404_v63 = vadd.f32 %v14512_v12, %v17469_v34  ;;  %v14598_v51 = vpop.f32.mrf.mxu0  ;;  %15011 = vmatprep.mubr.f32.mxu1 %v7495_v52  ;;  %15050 = vmatpush3.msra.mxu0 %v8159_v24  ;;  %v7498_v52 = vld [vmem:[#allocation3 + $0xbe] sm:$0xff]  ;;  %v8490_v53 = vld [vmem:[#allocation8 + $0x9c0] sm:$0xff] }
 0x3af   : > { %v5292_v4 = vpop.f32.mrf.mxu1 }
 0x3b0   : > { %v17617_v42 = vadd.f32 %v14598_v51, %v5404_v63  ;;  %v17620_v31 = vadd.f32 %v5292_v4, %v17471_v16  ;;  %v17622_v43 = vpop.f32.mrf.mxu0  ;;  %v8158_v63 = vld [vmem:[#allocation8 + $0x950] sm:$0xff] }
 0x3b1   : > { %19197 = vst [vmem:[#allocation52_spill] sm:$0xff] %v17622_v43  ;;  %v14515_v32 = vpop.f32.mrf.mxu1  ;;  %15012 = vmatmul.mubr.f32.gmra.mxu1 %v7496_v46  ;;  %v7499_v46 = vld [vmem:[#allocation3 + $0xc6] sm:$0xff]  ;;  %15051 = vmatprep.subr.mxu0 %v8158_v63 }
 0x3b2   : > { %19196 = vst [vmem:[#allocation53_spill] sm:$0xff] %v17620_v31  ;;  %v5406_v6 = vadd.f32 %v14515_v32, %v17475_v57  ;;  %v14601_v34 = vpop.f32.mrf.mxu0  ;;  %15014 = vmatprep.mubr.f32.mxu1 %v7497_v59  ;;  %15052 = vmatpush3.msra.mxu0 %v8158_v63  ;;  %v7500_v59 = vld [vmem:[#allocation3 + $0xce] sm:$0xff] }
 0x3b3   : > { %v5302_v12 = vpop.f32.mrf.mxu1  ;;  %v8491_v31 = vld [vmem:[#allocation8 + $0x9c8] sm:$0xff] }
 0x3b4   : > { %v17625_v47 = vadd.f32 %v14601_v34, %v5406_v6  ;;  %v17628_v51 = vadd.f32 %v5302_v12, %v17477_v40  ;;  %v17630_v16 = vpop.f32.mrf.mxu0  ;;  %v8157_v34 = vld [vmem:[#allocation8 + $0x948] sm:$0xff] }
 0x3b5   : > { %19199 = vst [vmem:[#allocation54_spill] sm:$0xff] %v17630_v16  ;;  %v14518_v4 = vpop.f32.mrf.mxu1  ;;  %15015 = vmatmul.mubr.f32.gmra.mxu1 %v7498_v52  ;;  %v7501_v52 = vld [vmem:[#allocation3 + $0xd6] sm:$0xff]  ;;  %15053 = vmatprep.subr.mxu0 %v8157_v34 }
 0x3b6   : > { %19198 = vst [vmem:[#allocation55_spill] sm:$0xff] %v17628_v51  ;;  %v5408_v43 = vadd.f32 %v14518_v4, %v17481_v9  ;;  %v14604_v57 = vpop.f32.mrf.mxu0  ;;  %15017 = vmatprep.mubr.f32.mxu1 %v7499_v46  ;;  %v5003_v9 = vadd.f32 %v17491_v29, %v17489_v55  ;;  %15054 = vmatpush3.msra.mxu0 %v8157_v34  ;;  %v8156_v55 = vld [vmem:[#allocation8 + $0x940] sm:$0xff] }
 0x3b7   : > { %v5312_v24 = vpop.f32.mrf.mxu1  ;;  %15055 = vmatprep.subr.mxu0 %v8156_v55  ;;  %v8152_v51 = vld [vmem:[#allocation8 + $0x920] sm:$0xff] }
 0x3b8   : > { %v17633_v32 = vadd.f32 %v14604_v57, %v5408_v43  ;;  %v17636_v6 = vadd.f32 %v5312_v24, %v17483_v48  ;;  %v17638_v40 = vpop.f32.mrf.mxu0  ;;  %v7502_v24 = vld [vmem:[#allocation3 + $0xde] sm:$0xff]  ;;  %15056 = vmatpush3.msra.mxu0 %v8156_v55  ;;  %v7507_v55 = vld [vmem:[#allocation3 + $0x106] sm:$0xff] }
 0x3b9   : > { %19201 = vst [vmem:[#allocation32_spill] sm:$0xff] %v17638_v40  ;;  %v14521_v12 = vpop.f32.mrf.mxu1  ;;  %15018 = vmatmul.mubr.f32.gmra.mxu1 %v7500_v59  ;;  %v7503_v59 = vld [vmem:[#allocation3 + $0xe6] sm:$0xff] }
 0x3ba   : > { %19200 = vst [vmem:[#allocation20_spill] sm:$0xff] %v17636_v6  ;;  %v5410_v4 = vadd.f32 %v14521_v12, %v17487_v27  ;;  %v14607_v63 = vpop.f32.mrf.mxu0  ;;  %15020 = vmatprep.mubr.f32.mxu1 %v7501_v52  ;;  %v7504_v12 = vld [vmem:[#allocation3 + $0xee] sm:$0xff] }
 0x3bb   : > { %v5322_v43 = vpop.f32.mrf.mxu1 }
 0x3bc   : > { %v17643_v46 = vadd.f32 %v14607_v63, %v5410_v4  ;;  %v17645_v48 = vadd.f32 %v5322_v43, %v5003_v9  ;;  %v17647_v57 = vpop.f32.mrf.mxu0  ;;  %v7505_v9 = vld [vmem:[#allocation3 + $0xf6] sm:$0xff] }
 0x3bd   : > { %19203 = vst [vmem:[#allocation34_spill] sm:$0xff] %v17647_v57  ;;  %v14524_v40 = vpop.f32.mrf.mxu1  ;;  %15021 = vmatmul.mubr.f32.gmra.mxu1 %v7502_v24  ;;  %v8494_v57 = vld [vmem:[#allocation8 + $0x9e0] sm:$0xff] }
 0x3be   : > { %19202 = vst [vmem:[#allocation21_spill] sm:$0xff] %v17645_v48  ;;  %v5412_v6 = vadd.f32 %v14524_v40, %v17495_v38  ;;  %v14610_v16 = vpop.f32.mrf.mxu0  ;;  %15023 = vmatprep.mubr.f32.mxu1 %v7503_v59  ;;  %v8155_v38 = vld [vmem:[#allocation8 + $0x938] sm:$0xff] }
 0x3bf   : > { %v17650_v27 = vpop.f32.mrf.mxu1  ;;  %15057 = vmatprep.subr.mxu0 %v8155_v38 }
 0x3c0   : > { %19204 = vst [vmem:[#allocation56_spill] sm:$0xff] %v17650_v27  ;;  %v17652_v29 = vadd.f32 %v14610_v16, %v5412_v6  ;;  %v17654_v34 = vpop.f32.mrf.mxu0  ;;  %v7506_v16 = vld [vmem:[#allocation3 + $0xfe] sm:$0xff]  ;;  %15058 = vmatpush3.msra.mxu0 %v8155_v38  ;;  %v7508_v38 = vld [vmem:[#allocation3 + $0x10e] sm:$0xff] }
 0x3c1   : > { %19205 = vst [vmem:[#allocation33_spill] sm:$0xff] %v17654_v34  ;;  %v14645_v52 = vpop.f32.mrf.mxu1  ;;  %15024 = vmatmul.mubr.f32.gmra.mxu1 %v7504_v12  ;;  %v8497_v6 = vld [vmem:[#allocation8 + $0x9f8] sm:$0xff] }
 0x3c2   : > { %v6190_v4 = vadd.f32 %v14645_v52, %v17506_v19  ;;  %v14731_v63 = vpop.f32.mrf.mxu0  ;;  %15026 = vmatprep.mubr.f32.mxu1 %v7505_v9  ;;  %15127 = vmatprep.subr.mxu1 %v8497_v6  ;;  %v8154_v52 = vld [vmem:[#allocation8 + $0x930] sm:$0xff] }
 0x3c3   : > { %v17657_v40 = vpop.f32.mrf.mxu1  ;;  %15128 = vmatpush3.msra.mxu1 %v8497_v6  ;;  %v8496_v9 = vld [vmem:[#allocation8 + $0x9f0] sm:$0xff]  ;;  %15059 = vmatprep.subr.mxu0 %v8154_v52 }
 0x3c4   : > { %v17659_v43 = vadd.f32 %v14731_v63, %v6190_v4  ;;  %v17661_v24 = vpop.f32.mrf.mxu0  ;;  %15129 = vmatprep.subr.mxu1 %v8496_v9  ;;  %15060 = vmatpush3.msra.mxu0 %v8154_v52  ;;  %v7510_v52 = vld [vmem:[#allocation3 + $0x11e] sm:$0xff] }
 0x3c5   : > { %v14648_v59 = vpop.f32.mrf.mxu1  ;;  %15027 = vmatmul.mubr.f32.gmra.mxu1 %v7506_v16  ;;  %v8495_v16 = vld [vmem:[#allocation8 + $0x9e8] sm:$0xff] }
 0x3c6   : > { %v6192_v12 = vadd.f32 %v14648_v59, %v17513_v26  ;;  %v14734_v19 = vpop.f32.mrf.mxu0  ;;  %15029 = vmatprep.mubr.f32.mxu1 %v7507_v55  ;;  %15130 = vmatpush3.msra.mxu1 %v8496_v9  ;;  %v7509_v26 = vld [vmem:[#allocation3 + $0x116] sm:$0xff]  ;;  %v8493_v9 = vld [vmem:[#allocation8 + $0x9d8] sm:$0xff] }
 0x3c7   : > { %v17664_v34 = vpop.f32.mrf.mxu1  ;;  %15131 = vmatprep.subr.mxu1 %v8495_v16  ;;  %v8153_v55 = vld [vmem:[#allocation8 + $0x928] sm:$0xff] }
 0x3c8   : > { %v17666_v4 = vadd.f32 %v14734_v19, %v6192_v12  ;;  %v17668_v63 = vpop.f32.mrf.mxu0  ;;  %15132 = vmatpush3.msra.mxu1 %v8495_v16  ;;  %15061 = vmatprep.subr.mxu0 %v8153_v55 }
 0x3c9   : > { %v14651_v27 = vpop.f32.mrf.mxu1  ;;  %15030 = vmatmul.mubr.f32.gmra.mxu1 %v7508_v38  ;;  %15133 = vmatprep.subr.mxu1 %v8494_v57 }
 0x3ca   : > { %v6194_v6 = vadd.f32 %v14651_v27, %v17523_v0  ;;  %v14737_v59 = vpop.f32.mrf.mxu0  ;;  %15032 = vmatprep.mubr.f32.mxu1 %v7509_v26  ;;  %15062 = vmatpush3.msra.mxu0 %v8153_v55  ;;  %v7511_v0 = vld [vmem:[#allocation3 + $0x126] sm:$0xff]  ;;  %v8492_v26 = vld [vmem:[#allocation8 + $0x9d0] sm:$0xff] }
 0x3cb   : > { %v17671_v48 = vpop.f32.mrf.mxu1  ;;  %15134 = vmatpush3.msra.mxu1 %v8494_v57  ;;  %15063 = vmatprep.subr.mxu0 %v8152_v51 }
 0x3cc   : > { %v17673_v12 = vadd.f32 %v14737_v59, %v6194_v6  ;;  %v17675_v19 = vpop.f32.mrf.mxu0  ;;  %15135 = vmatprep.subr.mxu1 %v8493_v9  ;;  %v7513_v59 = vld [vmem:[#allocation3 + $0x136] sm:$0xff]  ;;  %15064 = vmatpush3.msra.mxu0 %v8152_v51 }
 0x3cd   : > { %v14654_v38 = vpop.f32.mrf.mxu1  ;;  %15033 = vmatmul.mubr.f32.gmra.mxu1 %v7510_v52  ;;  %v7512_v52 = vld [vmem:[#allocation3 + $0x12e] sm:$0xff] }
 0x3ce   : > { %v6196_v27 = vadd.f32 %v14654_v38, %v17533_v37  ;;  %v14740_v16 = vpop.f32.mrf.mxu0  ;;  %15035 = vmatprep.mubr.f32.mxu1 %v7511_v0  ;;  %15136 = vmatpush3.msra.mxu1 %v8493_v9  ;;  %v7514_v0 = vld [vmem:[#allocation3 + $0x13e] sm:$0xff] }
 0x3cf   : > { %v17678_v6 = vpop.f32.mrf.mxu1  ;;  %15137 = vmatprep.subr.mxu1 %v8492_v26 }
 0x3d0   : > { %v17680_v55 = vadd.f32 %v14740_v16, %v6196_v27  ;;  %v17682_v57 = vpop.f32.mrf.mxu0  ;;  %15138 = vmatpush3.msra.mxu1 %v8492_v26 }
 0x3d1   : > { %19206 = vst [vmem:[#allocation57_spill] sm:$0xff] %v17682_v57  ;;  %v14657_v37 = vpop.f32.mrf.mxu1  ;;  %15036 = vmatmul.mubr.f32.gmra.mxu1 %v7512_v52  ;;  %15139 = vmatprep.subr.mxu1 %v8491_v31  ;;  %v8893_v57 = vld [vmem:[#allocation8 + $0xa28] sm:$0xff] }
 0x3d2   : > { %v6198_v9 = vadd.f32 %v14657_v37, %v17542_v30  ;;  %v14743_v38 = vpop.f32.mrf.mxu0  ;;  %15038 = vmatprep.mubr.f32.mxu1 %v7513_v59  ;;  %15140 = vmatpush3.msra.mxu1 %v8491_v31 }
 0x3d3   : > { %v17685_v56 = vpop.f32.mrf.mxu1  ;;  %15141 = vmatprep.subr.mxu1 %v8490_v53 }
 0x3d4   : > { %19207 = vst [vmem:[#allocation35_spill] sm:$0xff] %v17685_v56  ;;  %v17687_v27 = vadd.f32 %v14743_v38, %v6198_v9  ;;  %v17689_v16 = vpop.f32.mrf.mxu0  ;;  %15142 = vmatpush3.msra.mxu1 %v8490_v53  ;;  %v8894_v56 = vld [vmem:[#allocation8 + $0xa30] sm:$0xff] }
 0x3d5   : > { %19208 = vst [vmem:[#allocation60_spill] sm:$0xff] %v17689_v16  ;;  %v14660_v26 = vpop.f32.mrf.mxu1  ;;  %15039 = vmatmul.mubr.f32.gmra.mxu1 %v7514_v0  ;;  %v8151_v0 = vld [vmem:[#allocation8 + $0x918] sm:$0xff] }
 0x3d6   : > { %v6200_v51 = vadd.f32 %v14660_v26, %v17553_v5  ;;  %v14746_v52 = vpop.f32.mrf.mxu0  ;;  %v8489_v16 = vld [vmem:[#allocation8 + $0x9b8] sm:$0xff]  ;;  %15065 = vmatprep.subr.mxu0 %v8151_v0 }
 0x3d7   : > { %v17692_v1 = vpop.f32.mrf.mxu1  ;;  %15143 = vmatprep.subr.mxu1 %v8489_v16  ;;  %15066 = vmatpush3.msra.mxu0 %v8151_v0 }
 0x3d8   : > { %19209 = vst [vmem:[#allocation22_spill] sm:$0xff] %v17692_v1  ;;  %v17694_v30 = vadd.f32 %v14746_v52, %v6200_v51  ;;  %v17696_v59 = vpop.f32.mrf.mxu0  ;;  %15144 = vmatpush3.msra.mxu1 %v8489_v16  ;;  %v8488_v52 = vld [vmem:[#allocation8 + $0x9b0] sm:$0xff]  ;;  %v8486_v16 = vld [vmem:[#allocation8 + $0x9a0] sm:$0xff] }
 0x3d9   : > { %19210 = vst [vmem:[#allocation36_spill] sm:$0xff] %v17696_v59  ;;  %v14663_v31 = vpop.f32.mrf.mxu1  ;;  %15145 = vmatprep.subr.mxu1 %v8488_v52 }
 0x3da   : > { %v6202_v37 = vadd.f32 %v14663_v31, %v17561_v15  ;;  %v14749_v13 = vpop.f32.mrf.mxu0  ;;  %15146 = vmatpush3.msra.mxu1 %v8488_v52  ;;  %v8150_v31 = vld [vmem:[#allocation8 + $0x910] sm:$0xff]  ;;  %v8149_v52 = vld [vmem:[#allocation8 + $0x908] sm:$0xff] }
 0x3db   : > { %v17699_v9 = vpop.f32.mrf.mxu1  ;;  %15067 = vmatprep.subr.mxu0 %v8150_v31 }
 0x3dc   : > { %19211 = vst [vmem:[#allocation59_spill] sm:$0xff] %v17699_v9  ;;  %v17701_v38 = vadd.f32 %v14749_v13, %v6202_v37  ;;  %v17703_v53 = vpop.f32.mrf.mxu0  ;;  %v8487_v37 = vld [vmem:[#allocation8 + $0x9a8] sm:$0xff]  ;;  %15068 = vmatpush3.msra.mxu0 %v8150_v31 }
 0x3dd   : > { %19212 = vst [vmem:[#allocation58_spill] sm:$0xff] %v17703_v53  ;;  %v14666_v5 = vpop.f32.mrf.mxu1  ;;  %15147 = vmatprep.subr.mxu1 %v8487_v37  ;;  %15069 = vmatprep.subr.mxu0 %v8149_v52 }
 0x3de   : > { %v6204_v26 = vadd.f32 %v14666_v5, %v17569_v44  ;;  %v14752_v51 = vpop.f32.mrf.mxu0  ;;  %15148 = vmatpush3.msra.mxu1 %v8487_v37  ;;  %15070 = vmatpush3.msra.mxu0 %v8149_v52  ;;  %v8483_v37 = vld [vmem:[#allocation8 + $0x988] sm:$0xff] }
 0x3df   : > { %v17706_v59 = vpop.f32.mrf.mxu1  ;;  %15149 = vmatprep.subr.mxu1 %v8486_v16 }
 0x3e0   : > { %19213 = vst [vmem:[#allocation61_spill] sm:$0xff] %v17706_v59  ;;  %v17708_v15 = vadd.f32 %v14752_v51, %v6204_v26  ;;  %v17710_v13 = vpop.f32.mrf.mxu0  ;;  %15150 = vmatpush3.msra.mxu1 %v8486_v16 }
 0x3e1   : > { %19214 = vst [vmem:[#allocation37_spill] sm:$0xff] %v17710_v13  ;;  %v14669_v53 = vpop.f32.mrf.mxu1  ;;  %v8485_v13 = vld [vmem:[#allocation8 + $0x998] sm:$0xff] }
 0x3e2   : > { %v6206_v9 = vadd.f32 %v14669_v53, %v17577_v17  ;;  %v14755_v44 = vpop.f32.mrf.mxu0  ;;  %15151 = vmatprep.subr.mxu1 %v8485_v13  ;;  %v8484_v17 = vld [vmem:[#allocation8 + $0x990] sm:$0xff] }
 0x3e3   : > { %v17713_v0 = vpop.f32.mrf.mxu1  ;;  %15152 = vmatpush3.msra.mxu1 %v8485_v13  ;;  %v8446_v13 = vld [vmem:[#allocation2 + $0x9] sm:$0xff] }
 0x3e4   : > { %19215 = vst [vmem:[#allocation23_spill] sm:$0xff] %v17713_v0  ;;  %v17715_v5 = vadd.f32 %v14755_v44, %v6206_v9  ;;  %v17717_v26 = vpop.f32.mrf.mxu0  ;;  %15153 = vmatprep.subr.mxu1 %v8484_v17 }
 0x3e5   : > { %19216 = vst [vmem:[#allocation38_spill] sm:$0xff] %v17717_v26  ;;  %v14672_v51 = vpop.f32.mrf.mxu1  ;;  %15154 = vmatpush3.msra.mxu1 %v8484_v17 }
 0x3e6   : > { %v6208_v59 = vadd.f32 %v14672_v51, %v17585_v58  ;;  %v14758_v1 = vpop.f32.mrf.mxu0  ;;  %15155 = vmatprep.subr.mxu1 %v8483_v37  ;;  %v8148_v58 = vld [vmem:[#allocation8 + $0x900] sm:$0xff] }
 0x3e7   : > { %v17720_v53 = vpop.f32.mrf.mxu1  ;;  %v8482_v51 = vld [vmem:[#allocation8 + $0x980] sm:$0xff]  ;;  %15071 = vmatprep.subr.mxu0 %v8148_v58  ;;  %15156 = vmatpush3.msra.mxu1 %v8483_v37  ;;  %v8903_v37 = vld [vmem:[#allocation8 + $0xa78] sm:$0xff] }
 0x3e8   : > { %19217 = vst [vmem:[#allocation24_spill] sm:$0xff] %v17720_v53  ;;  %v17722_v31 = vadd.f32 %v14758_v1, %v6208_v59  ;;  %v17724_v9 = vpop.f32.mrf.mxu0  ;;  %15072 = vmatpush3.msra.mxu0 %v8148_v58  ;;  %15157 = vmatprep.subr.mxu1 %v8482_v51  ;;  %v8445_v59 = vld [vmem:[#allocation2 + $0x1] sm:$0xff] }
 0x3e9   : > { %19218 = vst [vmem:[#allocation40_spill] sm:$0xff] %v17724_v9  ;;  %v14675_v44 = vpop.f32.mrf.mxu1  ;;  %15158 = vmatpush3.msra.mxu1 %v8482_v51  ;;  %15159 = vmatprep.mubr.f32.mxu1 %v8445_v59  ;;  %v8902_v59 = vld [vmem:[#allocation8 + $0xa70] sm:$0xff]  ;;  %v9309_v53 = vld [vmem:[#allocation8 + $0xaf8] sm:$0xff] }
 0x3ea   : > { %v6210_v16 = vadd.f32 %v14675_v44, %v17593_v8  ;;  %v14761_v26 = vpop.f32.mrf.mxu0  ;;  %15074 = vmatmul.mubr.f32.vlgmr.msra.gmra.mxu0 %v17550_v35  ;;  %15160 = vmatmul.mubr.f32.vlgmr.msra.gmra.mxu1 %v8446_v13 }
 0x3eb   : > { %v17727_v0 = vpop.f32.mrf.mxu1  ;;  %15213 = vmatprep.subr.mxu0 %v8903_v37  ;;  %15299 = vmatprep.subr.mxu1 %v9309_v53 }
 0x3ec   : > { %19219 = vst [vmem:[#allocation63_spill] sm:$0xff] %v17727_v0  ;;  %v17729_v52 = vadd.f32 %v14761_v26, %v6210_v16  ;;  %v17731_v1 = vpop.f32.mrf.mxu0  ;;  %15214 = vmatpush3.msra.mxu0 %v8903_v37  ;;  %15300 = vmatpush3.msra.mxu1 %v9309_v53 }
 0x3ed   : > { %19220 = vst [vmem:[#allocation62_spill] sm:$0xff] %v17731_v1  ;;  %v14678_v9 = vpop.f32.mrf.mxu1  ;;  %15215 = vmatprep.subr.mxu0 %v8902_v59 }
 0x3ee   : > { %v6212_v8 = vadd.f32 %v14678_v9, %v17601_v41  ;;  %v14764_v17 = vpop.f32.mrf.mxu0  ;;  %15216 = vmatpush3.msra.mxu0 %v8902_v59 }
 0x3ef   : > { %v17735_v44 = vpop.f32.mrf.mxu1 }
 0x3f0   : > { %19221 = vst [vmem:[#allocation39_spill] sm:$0xff] %v17735_v44  ;;  %v17737_v26 = vadd.f32 %v14764_v17, %v6212_v8  ;;  %v17739_v16 = vpop.f32.mrf.mxu0  ;;  %v8901_v17 = vld [vmem:[#allocation8 + $0xa68] sm:$0xff] }
 0x3f1   : > { %19222 = vst [vmem:[#allocation41_spill] sm:$0xff] %v17739_v16  ;;  %v14681_v58 = vpop.f32.mrf.mxu1  ;;  %15217 = vmatprep.subr.mxu0 %v8901_v17 }
 0x3f2   : > { %v6214_v1 = vadd.f32 %v14681_v58, %v17609_v10  ;;  %v14767_v51 = vpop.f32.mrf.mxu0  ;;  %15218 = vmatpush3.msra.mxu0 %v8901_v17 }
 0x3f3   : > { %v17742_v0 = vpop.f32.mrf.mxu1 }
 0x3f4   : > { %19223 = vst [vmem:[#allocation25_spill] sm:$0xff] %v17742_v0  ;;  %v17744_v41 = vadd.f32 %v14767_v51, %v6214_v1  ;;  %v17746_v35 = vpop.f32.mrf.mxu0 }
 0x3f5   : > { %19224 = vst [vmem:[#allocation42_spill] sm:$0xff] %v17746_v35  ;;  %v14684_v9 = vpop.f32.mrf.mxu1 }
 0x3f6   : > { %v6216_v13 = vadd.f32 %v14684_v9, %v17617_v42  ;;  %v14770_v8 = vpop.f32.mrf.mxu0  ;;  %v8900_v42 = vld [vmem:[#allocation8 + $0xa60] sm:$0xff] }
 0x3f7   : > { %v17749_v16 = vpop.f32.mrf.mxu1  ;;  %15219 = vmatprep.subr.mxu0 %v8900_v42 }
 0x3f8   : > { %19225 = vst [vmem:[#allocation65_spill] sm:$0xff] %v17749_v16  ;;  %v17751_v37 = vadd.f32 %v14770_v8, %v6216_v13  ;;  %v17753_v10 = vpop.f32.mrf.mxu0  ;;  %15220 = vmatpush3.msra.mxu0 %v8900_v42  ;;  %v8898_v42 = vld [vmem:[#allocation8 + $0xa50] sm:$0xff] }
 0x3f9   : > { %19226 = vst [vmem:[#allocation64_spill] sm:$0xff] %v17753_v10  ;;  %v14687_v58 = vpop.f32.mrf.mxu1 }
 0x3fa   : > { %v6218_v1 = vadd.f32 %v14687_v58, %v17625_v47  ;;  %v14773_v51 = vpop.f32.mrf.mxu0  ;;  %v8899_v47 = vld [vmem:[#allocation8 + $0xa58] sm:$0xff] }
 0x3fb   : > { %v17756_v0 = vpop.f32.mrf.mxu1  ;;  %15221 = vmatprep.subr.mxu0 %v8899_v47 }
 0x3fc   : > { %19227 = vst [vmem:[#allocation67_spill] sm:$0xff] %v17756_v0  ;;  %v17758_v59 = vadd.f32 %v14773_v51, %v6218_v1  ;;  %v17760_v35 = vpop.f32.mrf.mxu0  ;;  %15222 = vmatpush3.msra.mxu0 %v8899_v47  ;;  %v8897_v47 = vld [vmem:[#allocation8 + $0xa48] sm:$0xff] }
 0x3fd   : > { %19228 = vst [vmem:[#allocation66_spill] sm:$0xff] %v17760_v35  ;;  %v14690_v9 = vpop.f32.mrf.mxu1  ;;  %15223 = vmatprep.subr.mxu0 %v8898_v42 }
 0x3fe   : > { %v6220_v16 = vadd.f32 %v14690_v9, %v17633_v32  ;;  %v14776_v13 = vpop.f32.mrf.mxu0  ;;  %15224 = vmatpush3.msra.mxu0 %v8898_v42 }
 0x3ff   : > { %v17763_v8 = vpop.f32.mrf.mxu1  ;;  %15225 = vmatprep.subr.mxu0 %v8897_v47 }
 0x400   : > { %19229 = vst [vmem:[#allocation43_spill] sm:$0xff] %v17763_v8  ;;  %v17765_v17 = vadd.f32 %v14776_v13, %v6220_v16  ;;  %v17767_v10 = vpop.f32.mrf.mxu0  ;;  %15226 = vmatpush3.msra.mxu0 %v8897_v47  ;;  %v8895_v47 = vld [vmem:[#allocation8 + $0xa38] sm:$0xff] }
 0x401   : > { %19230 = vst [vmem:[#allocation26_spill] sm:$0xff] %v17767_v10  ;;  %v14693_v58 = vpop.f32.mrf.mxu1 }
 0x402   : > { %v6222_v1 = vadd.f32 %v14693_v58, %v17643_v46  ;;  %v14779_v51 = vpop.f32.mrf.mxu0 }
 0x403   : > { %v17770_v35 = vpop.f32.mrf.mxu1 }
 0x404   : > { %19231 = vst [vmem:[#allocation44_spill] sm:$0xff] %v17770_v35  ;;  %v17772_v0 = vadd.f32 %v14779_v51, %v6222_v1  ;;  %v17774_v32 = vpop.f32.mrf.mxu0 }
 0x405   : > { %19232 = vst [vmem:[#allocation27_spill] sm:$0xff] %v17774_v32  ;;  %v14696_v9 = vpop.f32.mrf.mxu1 }
 0x406   : > { %v6224_v16 = vadd.f32 %v14696_v9, %v17652_v29  ;;  %v14782_v13 = vpop.f32.mrf.mxu0 }
 0x407   : > { %v17777_v10 = vpop.f32.mrf.mxu1 }
 0x408   : > { %19233 = vst [vmem:[#allocation46_spill] sm:$0xff] %v17777_v10  ;;  %v17779_v8 = vadd.f32 %v14782_v13, %v6224_v16  ;;  %v17781_v46 = vpop.f32.mrf.mxu0  ;;  %v8896_v16 = vld [vmem:[#allocation8 + $0xa40] sm:$0xff] }
 0x409   : > { %19234 = vst [vmem:[#allocation68_spill] sm:$0xff] %v17781_v46  ;;  %v14817_v58 = vpop.f32.mrf.mxu1  ;;  %15227 = vmatprep.subr.mxu0 %v8896_v16 }
 0x40a   : > { %v17784_v1 = vadd.f32 %v14817_v58, %v17659_v43  ;;  %v17786_v51 = vpop.f32.mrf.mxu0  ;;  %15228 = vmatpush3.msra.mxu0 %v8896_v16 }
 0x40b   : > { %v17788_v32 = vpop.f32.mrf.mxu1  ;;  %15229 = vmatprep.subr.mxu0 %v8895_v47 }
 0x40c   : > { %v17790_v29 = vpop.f32.mrf.mxu0  ;;  %15230 = vmatpush3.msra.mxu0 %v8895_v47  ;;  %v9307_v47 = vld [vmem:[#allocation8 + $0xae8] sm:$0xff] }
 0x40d   : > { %v14820_v42 = vpop.f32.mrf.mxu1  ;;  %15231 = vmatprep.subr.mxu0 %v8894_v56 }
 0x40e   : > { %v17793_v9 = vadd.f32 %v14820_v42, %v17666_v4  ;;  %v17797_v46 = vpop.f32.mrf.mxu0  ;;  %15232 = vmatpush3.msra.mxu0 %v8894_v56  ;;  %v9305_v56 = vld [vmem:[#allocation8 + $0xad8] sm:$0xff] }
 0x40f   : > { %v17795_v13 = vpop.f32.mrf.mxu1  ;;  %15233 = vmatprep.subr.mxu0 %v8893_v57 }
 0x410   : > { %v17804_v35 = vpop.f32.mrf.mxu0  ;;  %15234 = vmatpush3.msra.mxu0 %v8893_v57 }
 0x411   : > { %v14823_v43 = vpop.f32.mrf.mxu1 }
 0x412   : > { %v17800_v58 = vadd.f32 %v14823_v43, %v17673_v12  ;;  %v17811_v16 = vpop.f32.mrf.mxu0  ;;  %v9308_v12 = vld [vmem:[#allocation8 + $0xaf0] sm:$0xff] }
 0x413   : > { %v17802_v10 = vpop.f32.mrf.mxu1  ;;  %15301 = vmatprep.subr.mxu1 %v9308_v12 }
 0x414   : > { %19235 = vst [vmem:[#allocation45_spill] sm:$0xff] %v17800_v58  ;;  %15302 = vmatpush3.msra.mxu1 %v9308_v12 }
 0x415   : > { %v14826_v4 = vpop.f32.mrf.mxu1  ;;  %15303 = vmatprep.subr.mxu1 %v9307_v47 }
 0x416   : > { %v17807_v42 = vadd.f32 %v14826_v4, %v17680_v55  ;;  %v17818_v4 = vpop.f32.mrf.mxu0  ;;  %15304 = vmatpush3.msra.mxu1 %v9307_v47  ;;  %v9303_v47 = vld [vmem:[#allocation8 + $0xac8] sm:$0xff] }
 0x417   : > { %v17809_v44 = vpop.f32.mrf.mxu1 }
 0x418   : > { %19236 = vst [vmem:[#allocation47_spill] sm:$0xff] %v17807_v42  ;;  %19237 = vst [vmem:[#allocation48_spill] sm:$0xff] %v17809_v44  ;;  %v9306_v42 = vld [vmem:[#allocation8 + $0xae0] sm:$0xff] }
 0x419   : > { %v14829_v43 = vpop.f32.mrf.mxu1  ;;  %15305 = vmatprep.subr.mxu1 %v9306_v42 }
 0x41a   : > { %v17814_v58 = vadd.f32 %v14829_v43, %v17687_v27  ;;  %15306 = vmatpush3.msra.mxu1 %v9306_v42  ;;  %v17825_v43 = vpop.f32.mrf.mxu0  ;;  %v8890_v42 = vld [vmem:[#allocation8 + $0xa10] sm:$0xff] }
 0x41b   : > { %v17816_v55 = vpop.f32.mrf.mxu1  ;;  %19242 = vst [vmem:[#allocation72_spill] sm:$0xff] %v17825_v43  ;;  %15307 = vmatprep.subr.mxu1 %v9305_v56  ;;  %v9301_v43 = vld [vmem:[#allocation8 + $0xab8] sm:$0xff] }
 0x41c   : > { %19238 = vst [vmem:[#allocation70_spill] sm:$0xff] %v17814_v58  ;;  %19239 = vst [vmem:[#allocation69_spill] sm:$0xff] %v17816_v55  ;;  %15308 = vmatpush3.msra.mxu1 %v9305_v56  ;;  %v8892_v55 = vld [vmem:[#allocation8 + $0xa20] sm:$0xff]  ;;  %v9304_v58 = vld [vmem:[#allocation8 + $0xad0] sm:$0xff] }
 0x41d   : > { %v14832_v44 = vpop.f32.mrf.mxu1  ;;  %15235 = vmatprep.subr.mxu0 %v8892_v55  ;;  %15309 = vmatprep.subr.mxu1 %v9304_v58 }
 0x41e   : > { %v17821_v53 = vadd.f32 %v14832_v44, %v17694_v30  ;;  %v8891_v30 = vld [vmem:[#allocation8 + $0xa18] sm:$0xff]  ;;  %15236 = vmatpush3.msra.mxu0 %v8892_v55  ;;  %15310 = vmatpush3.msra.mxu1 %v9304_v58  ;;  %v9300_v58 = vld [vmem:[#allocation8 + $0xab0] sm:$0xff] }
 0x41f   : > { %v17823_v27 = vpop.f32.mrf.mxu1  ;;  %15311 = vmatprep.subr.mxu1 %v9303_v47  ;;  %15237 = vmatprep.subr.mxu0 %v8891_v30 }
 0x420   : > { %19240 = vst [vmem:[#allocation71_spill] sm:$0xff] %v17821_v53  ;;  %19241 = vst [vmem:[#allocation49_spill] sm:$0xff] %v17823_v27  ;;  %v9302_v53 = vld [vmem:[#allocation8 + $0xac0] sm:$0xff]  ;;  %v17832_v27 = vpop.f32.mrf.mxu0  ;;  %15312 = vmatpush3.msra.mxu1 %v9303_v47  ;;  %15238 = vmatpush3.msra.mxu0 %v8891_v30  ;;  %v9299_v47 = vld [vmem:[#allocation8 + $0xaa8] sm:$0xff] }
 0x421   : > { %v14835_v12 = vpop.f32.mrf.mxu1  ;;  %19245 = vst [vmem:[#allocation75_spill] sm:$0xff] %v17832_v27  ;;  %15313 = vmatprep.subr.mxu1 %v9302_v53  ;;  %15239 = vmatprep.subr.mxu0 %v8890_v42  ;;  %v8888_v30 = vld [vmem:[#allocation8 + $0xa00] sm:$0xff] }
 0x422   : > { %v17828_v57 = vadd.f32 %v14835_v12, %v17701_v38  ;;  %v8889_v38 = vld [vmem:[#allocation8 + $0xa08] sm:$0xff]  ;;  %15314 = vmatpush3.msra.mxu1 %v9302_v53  ;;  %15240 = vmatpush3.msra.mxu0 %v8890_v42  ;;  %v17839_v55 = vpop.f32.mrf.mxu0  ;;  %v9298_v53 = vld [vmem:[#allocation8 + $0xaa0] sm:$0xff] }
 0x423   : > { %v17830_v44 = vpop.f32.mrf.mxu1  ;;  %15315 = vmatprep.subr.mxu1 %v9301_v43  ;;  %15241 = vmatprep.subr.mxu0 %v8889_v38 }
 0x424   : > { %19243 = vst [vmem:[#allocation73_spill] sm:$0xff] %v17828_v57  ;;  %19244 = vst [vmem:[#allocation74_spill] sm:$0xff] %v17830_v44  ;;  %15316 = vmatpush3.msra.mxu1 %v9301_v43  ;;  %15242 = vmatpush3.msra.mxu0 %v8889_v38  ;;  %v17846_v42 = vpop.f32.mrf.mxu0  ;;  %v9715_v43 = vld [vmem:[#allocation8 + $0xb78] sm:$0xff] }
 0x425   : > { %v14838_v56 = vpop.f32.mrf.mxu1  ;;  %15317 = vmatprep.subr.mxu1 %v9300_v58  ;;  %15243 = vmatprep.subr.mxu0 %v8888_v30 }
 0x426   : > { %v17835_v12 = vadd.f32 %v14838_v56, %v17708_v15  ;;  %15318 = vmatpush3.msra.mxu1 %v9300_v58  ;;  %15244 = vmatpush3.msra.mxu0 %v8888_v30  ;;  %v9295_v30 = vld [vmem:[#allocation8 + $0xa88] sm:$0xff] }
 0x427   : > { %v17837_v57 = vpop.f32.mrf.mxu1  ;;  %15319 = vmatprep.subr.mxu1 %v9299_v47  ;;  %15385 = vmatprep.subr.mxu0 %v9715_v43 }
 0x428   : > { %19246 = vst [vmem:[#allocation76_spill] sm:$0xff] %v17835_v12  ;;  %15320 = vmatpush3.msra.mxu1 %v9299_v47  ;;  %v9297_v12 = vld [vmem:[#allocation8 + $0xa98] sm:$0xff] }
 0x429   : > { %v14841_v44 = vpop.f32.mrf.mxu1  ;;  %15321 = vmatprep.subr.mxu1 %v9298_v53 }
 0x42a   : > { %v17842_v27 = vadd.f32 %v14841_v44, %v17715_v5  ;;  %15322 = vmatpush3.msra.mxu1 %v9298_v53  ;;  %v9296_v44 = vld [vmem:[#allocation8 + $0xa90] sm:$0xff] }
 0x42b   : > { %v17844_v15 = vpop.f32.mrf.mxu1  ;;  %15323 = vmatprep.subr.mxu1 %v9297_v12 }
 0x42c   : > { %19247 = vst [vmem:[#allocation77_spill] sm:$0xff] %v17842_v27  ;;  %19248 = vst [vmem:[#allocation78_spill] sm:$0xff] %v17844_v15  ;;  %v17853_v27 = vpop.f32.mrf.mxu0  ;;  %15324 = vmatpush3.msra.mxu1 %v9297_v12 }
 0x42d   : > { %v14844_v56 = vpop.f32.mrf.mxu1  ;;  %15325 = vmatprep.subr.mxu1 %v9296_v44 }
 0x42e   : > { %v17849_v38 = vadd.f32 %v14844_v56, %v17722_v31  ;;  %15326 = vmatpush3.msra.mxu1 %v9296_v44  ;;  %v9294_v31 = vld [vmem:[#allocation8 + $0xa80] sm:$0xff]  ;;  %v17860_v56 = vpop.f32.mrf.mxu0 }
 0x42f   : > { %v17851_v5 = vpop.f32.mrf.mxu1  ;;  %15327 = vmatprep.subr.mxu1 %v9295_v30 }
 0x430   : > { %19249 = vst [vmem:[#allocation79_spill] sm:$0xff] %v17851_v5  ;;  %15328 = vmatpush3.msra.mxu1 %v9295_v30  ;;  %v17867_v12 = vpop.f32.mrf.mxu0 }
 0x431   : > { %v14847_v58 = vpop.f32.mrf.mxu1  ;;  %15329 = vmatprep.subr.mxu1 %v9294_v31 }
 0x432   : > { %v17856_v15 = vadd.f32 %v14847_v58, %v17729_v52  ;;  %15330 = vmatpush3.msra.mxu1 %v9294_v31 }
 0x433   : > { %v17858_v47 = vpop.f32.mrf.mxu1 }
 0x434   : > { %19250 = vst [vmem:[#allocation80_spill] sm:$0xff] %v17856_v15  ;;  %19251 = vst [vmem:[#allocation81_spill] sm:$0xff] %v17858_v47  ;;  %v17874_v15 = vpop.f32.mrf.mxu0 }
 0x435   : > { %v14850_v43 = vpop.f32.mrf.mxu1 }
 0x436   : > { %v17863_v53 = vadd.f32 %v14850_v43, %v17737_v26  ;;  %v4971_v43 = vadd.f32 %v17372_v21, %v17370_v3  ;;  %v17883_v31 = vpop.f32.mrf.mxu0 }
 0x437   : > { %v17865_v5 = vpop.f32.mrf.mxu1 }
 0x438   : > { %19252 = vst [vmem:[#allocation82_spill] sm:$0xff] %v17863_v53  ;;  %19253 = vst [vmem:[#allocation83_spill] sm:$0xff] %v17865_v5  ;;  %v5377_v5 = vadd.f32 %v17504_v50, %v4971_v43 }
 0x439   : > { %v14853_v52 = vpop.f32.mrf.mxu1 }
 0x43a   : > { %v17870_v58 = vadd.f32 %v14853_v52, %v17744_v41 }
 0x43b   : > { %v17872_v44 = vpop.f32.mrf.mxu1 }
 0x43c   : > { %19254 = vst [vmem:[#allocation84_spill] sm:$0xff] %v17870_v58  ;;  %19255 = vst [vmem:[#allocation85_spill] sm:$0xff] %v17872_v44  ;;  %v17891_v58 = vpop.f32.mrf.mxu0 }
 0x43d   : > { %v14856_v47 = vpop.f32.mrf.mxu1 }
 0x43e   : > { %v17877_v30 = vadd.f32 %v14856_v47, %v17751_v37  ;;  %v5783_v37 = vadd.f32 %v17508_v23, %v5377_v5  ;;  %v17900_v21 = vpop.f32.mrf.mxu0 }
 0x43f   : > { %v17879_v26 = vpop.f32.mrf.mxu1 }
 0x440   : > { %19256 = vst [vmem:[#allocation86_spill] sm:$0xff] %v17877_v30  ;;  %v6189_v3 = vadd.f32 %v17657_v40, %v5783_v37  ;;  %v17911_v5 = vpop.f32.mrf.mxu0  ;;  %v5787_v40 = vadd.f32 %v17528_v39, %v17526_v7  ;;  %v5789_v7 = vadd.f32 %v17538_v49, %v17536_v36  ;;  %v7410_v36 = vadd.f32 %v17797_v46, %v17793_v9 }
 0x441   : > { %v14859_v53 = vpop.f32.mrf.mxu1 }
 0x442   : > { %v17887_v41 = vadd.f32 %v14859_v53, %v17758_v59  ;;  %v5785_v59 = vadd.f32 %v17518_v54, %v17516_v45  ;;  %v6595_v23 = vadd.f32 %v17661_v24, %v6189_v3  ;;  %v6193_v45 = vadd.f32 %v17671_v48, %v5787_v40  ;;  %v17925_v24 = vpop.f32.mrf.mxu0  ;;  %v17929_v3 = vld [vmem:[#allocation10 + $0x2] ss:$0 sm:$0xff] }
 0x443   : > { %v17889_v52 = vpop.f32.mrf.mxu1 }
 0x444   : > { %v7001_v37 = vadd.f32 %v17788_v32, %v6595_v23  ;;  %v17943_v49 = vpop.f32.mrf.mxu0  ;;  %v5795_v23 = vadd.f32 %v17566_v2, %v17564_v62  ;;  %v19259_v62 = vld [vmem:[#allocation35_spill] sm:$0xff] }
 0x445   : > { %v14862_v44 = vpop.f32.mrf.mxu1 }
 0x446   : > { %v17895_v47 = vadd.f32 %v14862_v44, %v17765_v17  ;;  %v6191_v17 = vadd.f32 %v17664_v34, %v5785_v59  ;;  %v7408_v34 = vadd.f32 %v17786_v51, %v17784_v1  ;;  %v17935_v59 = vld [vmem:[#allocation10 + $0x3] ss:$0 sm:$0xff]  ;;  %v17939_v51 = vadd.f32 %v17499_v18, %v17497_v25 }
 0x447   : > { %v17897_v30 = vpop.f32.mrf.mxu1 }
 0x448   : > { %19257 = vst [vmem:[#allocation87_spill] sm:$0xff] %v17895_v47 }
 0x449   : > { %v14865_v50 = vpop.f32.mrf.mxu1 }
 0x44a   : > { %v17905_v53 = vadd.f32 %v14865_v50, %v17772_v0  ;;  %v6597_v0 = vadd.f32 %v17668_v63, %v6191_v17  ;;  %v6599_v50 = vadd.f32 %v17675_v19, %v6193_v45  ;;  %v6195_v63 = vadd.f32 %v17678_v6, %v5789_v7  ;;  %v17953_v17 = vld [vmem:[#allocation8 + $0xbf8] sm:$0xff] }
 0x44b   : > { %v17907_v43 = vpop.f32.mrf.mxu1  ;;  %v5791_v19 = vadd.f32 %v17547_v28, %v17545_v14  ;;  %v5793_v6 = vadd.f32 %v17558_v20, %v17556_v11  ;;  %15471 = vmatprep.subr.mxu1 %v17953_v17  ;;  %v5797_v14 = vadd.f32 %v17574_v60, %v17572_v61  ;;  %v17963_v28 = vadd.f32 %v17582_v22, %v17580_v33  ;;  %v19258_v11 = vld [vmem:[#allocation57_spill] sm:$0xff]  ;;  %v19260_v7 = vld [vmem:[#allocation22_spill] sm:$0xff]  ;;  %v19262_v22 = vld [vmem:[#allocation48_spill] sm:$0xff] }
 0x44c   : > { %v7003_v32 = vadd.f32 %v17795_v13, %v6597_v0  ;;  %v7005_v25 = vadd.f32 %v17802_v10, %v6599_v50  ;;  %v6601_v20 = vadd.f32 %v19258_v11, %v6195_v63  ;;  %v19261_v61 = vld [vmem:[#allocation45_spill] sm:$0xff]  ;;  %v15940_v11 = vld [vmem:[#allocation11] sm:$0xff] }
 0x44d   : > { %v14868_v44 = vpop.f32.mrf.mxu1  ;;  %v6197_v2 = vadd.f32 %v19259_v62, %v5791_v19  ;;  %v7412_v60 = vadd.f32 %v17811_v16, %v19261_v61  ;;  %v19267_v16 = vld [vmem:[#allocation47_spill] sm:$0xff] }
 0x44e   : > { %v17917_v47 = vadd.f32 %v14868_v44, %v17779_v8  ;;  %v7407_v8 = vadd.f32 %v17790_v29, %v7001_v37  ;;  %v7409_v46 = vadd.f32 %v17804_v35, %v7003_v32  ;;  %v17967_v35 = vpop.f32.mrf.mxu0  ;;  %v7411_v33 = vadd.f32 %v17818_v4, %v7005_v25  ;;  %v19268_v4 = vld [vmem:[#allocation72_spill] sm:$0xff]  ;;  %v19271_v61 = vld [vmem:[#allocation75_spill] sm:$0xff] }
 0x44f   : > { %v17920_v54 = vpop.f32.mrf.mxu1  ;;  %v7414_v25 = vadd.f32 %v19268_v4, %v19267_v16  ;;  %v15942_v4 = vld [vmem:[#allocation11 + $0x10] sm:$0xff] }
 0x451   : > { %v14989_v39 = vpop.f32.mrf.mxu1 }
 0x452   : > { %v7814_v48 = vadd.f32 %v14989_v39, %v7408_v34  ;;  %v6199_v39 = vadd.f32 %v19260_v7, %v5793_v6  ;;  %v19265_v6 = vld [vmem:[#allocation19_spill] sm:$0xff] }
 0x453   : > { %v7598_v1 = vpop.f32.mrf.mxu1 }
 0x454   : > { %v7928_v29 = vmul.f32 %v17929_v3, %v7814_v48  ;;  %v7813_v13 = vadd.f32 %v7598_v1, %v7407_v8  ;;  %v7007_v8 = vadd.f32 %v19262_v22, %v6601_v20  ;;  %v15939_v48 = vld [vmem:[#allocation11 + $0x8] sm:$0xff] }
 0x455   : > { %v14992_v18 = vpop.f32.mrf.mxu1 }
 0x456   : > { %v7968_v9 = vadd.f32 %v17935_v59, %v7928_v29  ;;  %v7927_v40 = vmul.f32 %v17929_v3, %v7813_v13  ;;  %v7816_v44 = vadd.f32 %v14992_v18, %v7410_v36  ;;  %v19263_v29 = vld [vmem:[#allocation18_spill] sm:$0xff]  ;;  %v19264_v13 = vld [vmem:[#allocation28_spill] sm:$0xff]  ;;  %v7413_v22 = vadd.f32 %v19271_v61, %v7007_v8 }
 0x457   : > { %v7608_v10 = vpop.f32.mrf.mxu1  ;;  %v17980_v19 = vadd.f32 %v19264_v13, %v19263_v29  ;;  %v19266_v18 = vld [vmem:[#allocation30_spill] sm:$0xff] }
 0x458   : > { %v8004_v37 = vmax.f32 %v7968_v9, 0.0  ;;  %v7967_v45 = vadd.f32 %v17935_v59, %v7927_v40  ;;  %v7930_v0 = vmul.f32 %v17929_v3, %v7816_v44  ;;  %v7815_v34 = vadd.f32 %v7608_v10, %v7409_v46  ;;  %v17988_v44 = vpop.f32.mrf.mxu0 }
 0x459   : > { %v14995_v32 = vpop.f32.mrf.mxu1  ;;  %v17984_v46 = vadd.f32 %v19266_v18, %v19265_v6 }
 0x45a   : > { %v8040_v50 = vmul.f32 %v15939_v48, %v8004_v37  ;;  %v8003_v63 = vmax.f32 %v7967_v45, 0.0  ;;  %v7970_v1 = vadd.f32 %v17935_v59, %v7930_v0  ;;  %v7929_v36 = vmul.f32 %v17929_v3, %v7815_v34  ;;  %v19269_v45 = vld [vmem:[#allocation60_spill] sm:$0xff]  ;;  %v18001_v16 = vpop.f32.mrf.mxu0 }
 0x45b   : > { %v7818_v9 = vadd.f32 %v14995_v32, %v7412_v60  ;;  %v7618_v40 = vpop.f32.mrf.mxu1  ;;  %v6603_v0 = vadd.f32 %v19269_v45, %v6197_v2  ;;  %v19270_v34 = vld [vmem:[#allocation36_spill] sm:$0xff]  ;;  %v15941_v60 = vld [vmem:[#allocation11 + $0x18] sm:$0xff]  ;;  %v19274_v2 = vld [vmem:[#allocation69_spill] sm:$0xff] }
 0x45c   : > { %8076 = vst [vmem:[#allocation2 + $0x1b] sm:$0xff] %v8040_v50  ;;  %v8039_v20 = vmul.f32 %v15940_v11, %v8003_v63  ;;  %v8006_v62 = vmax.f32 %v7970_v1, 0.0  ;;  %v7969_v10 = vadd.f32 %v17935_v59, %v7929_v36  ;;  %v7817_v37 = vadd.f32 %v7618_v40, %v7411_v33  ;;  %v19272_v1 = vld [vmem:[#allocation59_spill] sm:$0xff]  ;;  %v19273_v36 = vld [vmem:[#allocation70_spill] sm:$0xff] }
 0x45d   : > { %v6605_v7 = vadd.f32 %v19270_v34, %v6199_v39  ;;  %v7932_v48 = vmul.f32 %v17929_v3, %v7818_v9  ;;  %v14998_v29 = vpop.f32.mrf.mxu1  ;;  %v6201_v6 = vadd.f32 %v19272_v1, %v5795_v23  ;;  %v7416_v33 = vadd.f32 %v17839_v55, %v19273_v36  ;;  %v19276_v23 = vld [vmem:[#allocation51_spill] sm:$0xff]  ;;  %v19277_v55 = vld [vmem:[#allocation61_spill] sm:$0xff] }
 0x45e   : > { %8075 = vst [vmem:[#allocation2 + $0x13] sm:$0xff] %v8039_v20  ;;  %v8042_v32 = vmul.f32 %v15941_v60, %v8006_v62  ;;  %v8005_v13 = vmax.f32 %v7969_v10, 0.0  ;;  %v7931_v50 = vmul.f32 %v17929_v3, %v7817_v37  ;;  %v7820_v63 = vadd.f32 %v14998_v29, %v7414_v25  ;;  %v19275_v20 = vld [vmem:[#allocation50_spill] sm:$0xff]  ;;  %v19278_v37 = vld [vmem:[#allocation49_spill] sm:$0xff] }
 0x45f   : > { %v7009_v18 = vadd.f32 %v19274_v2, %v6603_v0  ;;  %v7972_v39 = vadd.f32 %v17935_v59, %v7932_v48  ;;  %v7628_v8 = vpop.f32.mrf.mxu1  ;;  %v18007_v62 = vadd.f32 %v19276_v23, %v19275_v20  ;;  %v6203_v10 = vadd.f32 %v19277_v55, %v5797_v14  ;;  %v15943_v1 = vld [vmem:[#allocation11 + $0x28] sm:$0xff]  ;;  %v15944_v2 = vld [vmem:[#allocation11 + $0x20] sm:$0xff]  ;;  %v15945_v55 = vld [vmem:[#allocation11 + $0x38] sm:$0xff] }
 0x460   : > { %8078 = vst [vmem:[#allocation2 + $0x2b] sm:$0xff] %v8042_v32  ;;  %v8041_v9 = vmul.f32 %v15942_v4, %v8005_v13  ;;  %v7971_v40 = vadd.f32 %v17935_v59, %v7931_v50  ;;  %v7934_v11 = vmul.f32 %v17929_v3, %v7820_v63  ;;  %v7819_v25 = vadd.f32 %v7628_v8, %v7413_v22  ;;  %v19279_v32 = vld [vmem:[#allocation58_spill] sm:$0xff]  ;;  %v19280_v50 = vld [vmem:[#allocation71_spill] sm:$0xff] }
 0x461   : > { %v7011_v45 = vadd.f32 %v19278_v37, %v6605_v7  ;;  %v8008_v0 = vmax.f32 %v7972_v39, 0.0  ;;  %v15001_v34 = vpop.f32.mrf.mxu1  ;;  %v6607_v13 = vadd.f32 %v19279_v32, %v6201_v6  ;;  %v7415_v22 = vadd.f32 %v17846_v42, %v7009_v18  ;;  %v18017_v7 = vpop.f32.mrf.mxu0  ;;  %v19282_v42 = vld [vmem:[#allocation74_spill] sm:$0xff] }
 0x462   : > { %8077 = vst [vmem:[#allocation2 + $0x23] sm:$0xff] %v8041_v9  ;;  %v8007_v61 = vmax.f32 %v7971_v40, 0.0  ;;  %v7974_v48 = vadd.f32 %v17935_v59, %v7934_v11  ;;  %v7933_v29 = vmul.f32 %v17929_v3, %v7819_v25  ;;  %v7822_v60 = vadd.f32 %v15001_v34, %v7416_v33  ;;  %v19281_v33 = vld [vmem:[#allocation37_spill] sm:$0xff] }
 0x463   : > { %v7418_v63 = vadd.f32 %v17853_v27, %v19280_v50  ;;  %v8044_v14 = vmul.f32 %v15943_v1, %v8008_v0  ;;  %v7638_v36 = vpop.f32.mrf.mxu1  ;;  %v6609_v40 = vadd.f32 %v19281_v33, %v6203_v10  ;;  %v7417_v6 = vadd.f32 %v17860_v56, %v7011_v45  ;;  %v19283_v56 = vld [vmem:[#allocation23_spill] sm:$0xff] }
 0x464   : > { %v8043_v39 = vmul.f32 %v15944_v2, %v8007_v61  ;;  %v8010_v8 = vmax.f32 %v7974_v48, 0.0  ;;  %v7973_v4 = vadd.f32 %v17935_v59, %v7933_v29  ;;  %v7936_v9 = vmul.f32 %v17929_v3, %v7822_v60  ;;  %v19284_v48 = vld [vmem:[#allocation73_spill] sm:$0xff]  ;;  %v19286_v2 = vld [vmem:[#allocation31_spill] sm:$0xff] }
 0x465   : > { %v7013_v18 = vadd.f32 %v19282_v42, %v6607_v13  ;;  %8080 = vst [vmem:[#allocation2 + $0x3b] sm:$0xff] %v8044_v14  ;;  %v7821_v27 = vadd.f32 %v7638_v36, %v7415_v22  ;;  %v15004_v11 = vpop.f32.mrf.mxu1  ;;  %v8113_v25 = vld [vmem:[#allocation2 + $0x10] sm:$0xff]  ;;  %v8114_v23 = vld [vmem:[#allocation2 + $0x18] sm:$0xff]  ;;  %v6205_v45 = vadd.f32 %v19283_v56, %v17963_v28  ;;  %v7420_v29 = vadd.f32 %v17867_v12, %v19284_v48  ;;  %v18030_v13 = vpop.f32.mrf.mxu0  ;;  %v15946_v22 = vld [vmem:[#allocation11 + $0x30] sm:$0xff] }
 0x466   : > { %v8447_v20 = vld [vmem:[#allocation2 + $0x11] sm:$0xff]  ;;  %8079 = vst [vmem:[#allocation2 + $0x33] sm:$0xff] %v8043_v39  ;;  %v8046_v37 = vmul.f32 %v15945_v55, %v8010_v8  ;;  %v8009_v0 = vmax.f32 %v7973_v4, 0.0  ;;  %v7976_v34 = vadd.f32 %v17935_v59, %v7936_v9  ;;  %v7824_v61 = vadd.f32 %v15004_v11, %v7418_v63  ;;  %15076 = vmatprep.mubr.f32.mxu0 %v8113_v25  ;;  %v8448_v10 = vld [vmem:[#allocation2 + $0x19] sm:$0xff] }
 0x467   : > { %15162 = vmatprep.mubr.f32.mxu1 %v8447_v20  ;;  %v7935_v60 = vmul.f32 %v17929_v3, %v7821_v27  ;;  %v7648_v32 = vpop.f32.mrf.mxu1  ;;  %15077 = vmatmul.mubr.f32.gmra.mxu0 %v8114_v23  ;;  %v19285_v36 = vld [vmem:[#allocation29_spill] sm:$0xff]  ;;  %v7419_v12 = vadd.f32 %v17874_v15, %v7013_v18  ;;  %v7015_v39 = vadd.f32 %v17837_v57, %v6609_v40  ;;  %v19288_v15 = vld [vmem:[#allocation52_spill] sm:$0xff]  ;;  %v19289_v57 = vld [vmem:[#allocation38_spill] sm:$0xff] }
 0x468   : > { %15163 = vmatmul.mubr.f32.gmra.mxu1 %v8448_v10  ;;  %8082 = vst [vmem:[#allocation2 + $0x4b] sm:$0xff] %v8046_v37  ;;  %v8045_v50 = vmul.f32 %v15946_v22, %v8009_v0  ;;  %v8012_v63 = vmax.f32 %v7976_v34, 0.0  ;;  %v7938_v1 = vmul.f32 %v17929_v3, %v7824_v61  ;;  %v7823_v14 = vadd.f32 %v7648_v32, %v7417_v6  ;;  %v15947_v27 = vld [vmem:[#allocation11 + $0x48] sm:$0xff]  ;;  %v19290_v37 = vld [vmem:[#allocation24_spill] sm:$0xff]  ;;  %v18049_v10 = vpop.f32.mrf.mxu0 }
 0x469   : > { %v18035_v28 = vadd.f32 %v19286_v2, %v19285_v36  ;;  %v7975_v8 = vadd.f32 %v17935_v59, %v7935_v60  ;;  %v15007_v4 = vpop.f32.mrf.mxu1  ;;  %v8115_v9 = vld [vmem:[#allocation2 + $0x20] sm:$0xff]  ;;  %v8116_v42 = vld [vmem:[#allocation2 + $0x28] sm:$0xff]  ;;  %v6611_v40 = vadd.f32 %v19289_v57, %v6205_v45  ;;  %v6207_v0 = vadd.f32 %v19290_v37, %v17980_v19  ;;  %v19291_v32 = vld [vmem:[#allocation76_spill] sm:$0xff] }
 0x46a   : > { %v8449_v33 = vld [vmem:[#allocation2 + $0x21] sm:$0xff]  ;;  %8081 = vst [vmem:[#allocation2 + $0x43] sm:$0xff] %v8045_v50  ;;  %v8048_v11 = vmul.f32 %v15947_v27, %v8012_v63  ;;  %v7978_v25 = vadd.f32 %v17935_v59, %v7938_v1  ;;  %v7937_v6 = vmul.f32 %v17929_v3, %v7823_v14  ;;  %v7826_v20 = vadd.f32 %v15007_v4, %v7420_v29  ;;  %v8450_v23 = vld [vmem:[#allocation2 + $0x29] sm:$0xff]  ;;  %v15948_v63 = vld [vmem:[#allocation11 + $0x40] sm:$0xff] }
 0x46b   : > { %15079 = vmatprep.mubr.f32.mxu0 %v8115_v9  ;;  %v19287_v55 = vld [vmem:[#allocation53_spill] sm:$0xff]  ;;  %v8011_v34 = vmax.f32 %v7975_v8, 0.0  ;;  %15165 = vmatprep.mubr.f32.mxu1 %v8449_v33  ;;  %v7658_v61 = vpop.f32.mrf.mxu1  ;;  %v7422_v45 = vadd.f32 %v17883_v31, %v19291_v32  ;;  %v7421_v22 = vadd.f32 %v17891_v58, %v7015_v39  ;;  %v19292_v19 = vld [vmem:[#allocation78_spill] sm:$0xff]  ;;  %v15949_v4 = vld [vmem:[#allocation11 + $0x58] sm:$0xff] }
 0x46c   : > { %v18044_v18 = vadd.f32 %v19288_v15, %v19287_v55  ;;  %15080 = vmatmul.mubr.f32.gmra.mxu0 %v8116_v42  ;;  %8084 = vst [vmem:[#allocation2 + $0x5b] sm:$0xff] %v8048_v11  ;;  %v8014_v56 = vmax.f32 %v7978_v25, 0.0  ;;  %v7977_v48 = vadd.f32 %v17935_v59, %v7937_v6  ;;  %v7940_v29 = vmul.f32 %v17929_v3, %v7826_v20  ;;  %v19293_v27 = vld [vmem:[#allocation55_spill] sm:$0xff]  ;;  %v19294_v58 = vld [vmem:[#allocation54_spill] sm:$0xff]  ;;  %v19296_v6 = vld [vmem:[#allocation77_spill] sm:$0xff]  ;;  %v18067_v15 = vpop.f32.mrf.mxu0 }
 0x46d   : > { %v7825_v60 = vadd.f32 %v7658_v61, %v7419_v12  ;;  %15166 = vmatmul.mubr.f32.gmra.mxu1 %v8450_v23  ;;  %v7017_v50 = vadd.f32 %v19292_v19, %v6611_v40  ;;  %v8047_v1 = vmul.f32 %v15948_v63, %v8011_v34  ;;  %v15010_v14 = vpop.f32.mrf.mxu1  ;;  %v8117_v36 = vld [vmem:[#allocation2 + $0x30] sm:$0xff]  ;;  %v8118_v8 = vld [vmem:[#allocation2 + $0x38] sm:$0xff]  ;;  %v18061_v39 = vadd.f32 %v19294_v58, %v19293_v27  ;;  %v15950_v57 = vld [vmem:[#allocation11 + $0x50] sm:$0xff] }
 0x46e   : > { %v8451_v2 = vld [vmem:[#allocation2 + $0x31] sm:$0xff]  ;;  %v8050_v9 = vmul.f32 %v15949_v4, %v8014_v56  ;;  %v8013_v33 = vmax.f32 %v7977_v48, 0.0  ;;  %v7980_v42 = vadd.f32 %v17935_v59, %v7940_v29  ;;  %15082 = vmatprep.mubr.f32.mxu0 %v8117_v36  ;;  %v8452_v31 = vld [vmem:[#allocation2 + $0x39] sm:$0xff]  ;;  %v7424_v20 = vadd.f32 %v17900_v21, %v19296_v6 }
 0x46f   : > { %v7939_v12 = vmul.f32 %v17929_v3, %v7825_v60  ;;  %15168 = vmatprep.mubr.f32.mxu1 %v8451_v2  ;;  %v19295_v11 = vld [vmem:[#allocation63_spill] sm:$0xff]  ;;  %8083 = vst [vmem:[#allocation2 + $0x53] sm:$0xff] %v8047_v1  ;;  %v7828_v23 = vadd.f32 %v15010_v14, %v7422_v45  ;;  %v7668_v55 = vpop.f32.mrf.mxu1  ;;  %v19297_v56 = vld [vmem:[#allocation40_spill] sm:$0xff]  ;;  %v7423_v21 = vadd.f32 %v17911_v5, %v7017_v50  ;;  %v15951_v1 = vld [vmem:[#allocation11 + $0x68] sm:$0xff] }
 0x470   : > { %v6209_v25 = vadd.f32 %v19295_v11, %v17984_v46  ;;  %15083 = vmatmul.mubr.f32.gmra.mxu0 %v8118_v8  ;;  %8086 = vst [vmem:[#allocation2 + $0x6b] sm:$0xff] %v8050_v9  ;;  %v8049_v40 = vmul.f32 %v15950_v57, %v8013_v33  ;;  %v8016_v37 = vmax.f32 %v7980_v42, 0.0  ;;  %v7827_v61 = vadd.f32 %v7668_v55, %v7421_v22  ;;  %v19298_v46 = vld [vmem:[#allocation39_spill] sm:$0xff]  ;;  %v19299_v8 = vld [vmem:[#allocation62_spill] sm:$0xff]  ;;  %v18081_v42 = vpop.f32.mrf.mxu0 }
 0x471   : > { %v7979_v34 = vadd.f32 %v17935_v59, %v7939_v12  ;;  %15169 = vmatmul.mubr.f32.gmra.mxu1 %v8452_v31  ;;  %v6613_v48 = vadd.f32 %v19297_v56, %v6207_v0  ;;  %v6211_v29 = vadd.f32 %v19298_v46, %v18007_v62  ;;  %v7942_v60 = vmul.f32 %v17929_v3, %v7828_v23  ;;  %v15013_v32 = vpop.f32.mrf.mxu1  ;;  %v8119_v45 = vld [vmem:[#allocation2 + $0x40] sm:$0xff]  ;;  %v8120_v63 = vld [vmem:[#allocation2 + $0x48] sm:$0xff]  ;;  %v19300_v50 = vld [vmem:[#allocation79_spill] sm:$0xff] }
 0x472   : > { %v8453_v19 = vld [vmem:[#allocation2 + $0x41] sm:$0xff]  ;;  %8085 = vst [vmem:[#allocation2 + $0x63] sm:$0xff] %v8049_v40  ;;  %v8052_v14 = vmul.f32 %v15951_v1, %v8016_v37  ;;  %v7941_v22 = vmul.f32 %v17929_v3, %v7827_v61  ;;  %v7830_v2 = vadd.f32 %v15013_v32, %v7424_v20  ;;  %15085 = vmatprep.mubr.f32.mxu0 %v8119_v45  ;;  %v8454_v0 = vld [vmem:[#allocation2 + $0x49] sm:$0xff]  ;;  %v15952_v12 = vld [vmem:[#allocation11 + $0x60] sm:$0xff] }
 0x473   : > { %v8015_v36 = vmax.f32 %v7979_v34, 0.0  ;;  %15171 = vmatprep.mubr.f32.mxu1 %v8453_v19  ;;  %v6615_v62 = vadd.f32 %v19299_v8, %v6209_v25  ;;  %v7426_v5 = vadd.f32 %v17925_v24, %v17849_v38  ;;  %v7019_v4 = vadd.f32 %v19300_v50, %v6613_v48  ;;  %v7678_v33 = vpop.f32.mrf.mxu1  ;;  %v19301_v25 = vld [vmem:[#allocation41_spill] sm:$0xff]  ;;  %v15954_v1 = vld [vmem:[#allocation11 + $0x70] sm:$0xff] }
 0x474   : > { %v7982_v9 = vadd.f32 %v17935_v59, %v7942_v60  ;;  %15086 = vmatmul.mubr.f32.gmra.mxu0 %v8120_v63  ;;  %8088 = vst [vmem:[#allocation2 + $0x7b] sm:$0xff] %v8052_v14  ;;  %v7981_v27 = vadd.f32 %v17935_v59, %v7941_v22  ;;  %v7944_v58 = vmul.f32 %v17929_v3, %v7830_v2  ;;  %v19302_v38 = vld [vmem:[#allocation25_spill] sm:$0xff]  ;;  %v18094_v63 = vpop.f32.mrf.mxu0 }
 0x475   : > { %v8051_v31 = vmul.f32 %v15952_v12, %v8015_v36  ;;  %v7829_v11 = vadd.f32 %v7678_v33, %v7423_v21  ;;  %15172 = vmatmul.mubr.f32.gmra.mxu1 %v8454_v0  ;;  %v6617_v6 = vadd.f32 %v19301_v25, %v6211_v29  ;;  %v6213_v24 = vadd.f32 %v19302_v38, %v18035_v28  ;;  %v19303_v20 = vld [vmem:[#allocation81_spill] sm:$0xff]  ;;  %v15016_v57 = vpop.f32.mrf.mxu1  ;;  %v19304_v29 = vld [vmem:[#allocation80_spill] sm:$0xff]  ;;  %v15953_v28 = vld [vmem:[#allocation11 + $0x78] sm:$0xff] }
 0x476   : > { %v7021_v23 = vadd.f32 %v19303_v20, %v6615_v62  ;;  %v8018_v55 = vmax.f32 %v7982_v9, 0.0  ;;  %v8017_v40 = vmax.f32 %v7981_v27, 0.0  ;;  %v7984_v37 = vadd.f32 %v17935_v59, %v7944_v58  ;;  %v8121_v56 = vld [vmem:[#allocation2 + $0x50] sm:$0xff]  ;;  %v8122_v46 = vld [vmem:[#allocation2 + $0x58] sm:$0xff]  ;;  %v19308_v20 = vld [vmem:[#allocation42_spill] sm:$0xff] }
 0x477   : > { %8087 = vst [vmem:[#allocation2 + $0x73] sm:$0xff] %v8051_v31  ;;  %v7943_v34 = vmul.f32 %v17929_v3, %v7829_v11  ;;  %v7832_v61 = vadd.f32 %v15016_v57, %v7426_v5  ;;  %v8455_v48 = vld [vmem:[#allocation2 + $0x51] sm:$0xff]  ;;  %v7425_v21 = vadd.f32 %v17943_v49, %v7019_v4  ;;  %v7428_v60 = vadd.f32 %v17967_v35, %v19304_v29  ;;  %v7688_v45 = vpop.f32.mrf.mxu1  ;;  %v8456_v19 = vld [vmem:[#allocation2 + $0x59] sm:$0xff]  ;;  %v19312_v29 = vld [vmem:[#allocation34_spill] sm:$0xff] }
 0x478   : > { %v8054_v32 = vmul.f32 %v15953_v28, %v8018_v55  ;;  %15088 = vmatprep.mubr.f32.mxu0 %v8121_v56  ;;  %15174 = vmatprep.mubr.f32.mxu1 %v8455_v48  ;;  %v8053_v14 = vmul.f32 %v15954_v1, %v8017_v40  ;;  %v8020_v36 = vmax.f32 %v7984_v37, 0.0  ;;  %v19305_v49 = vld [vmem:[#allocation20_spill] sm:$0xff]  ;;  %v7427_v8 = vadd.f32 %v17988_v44, %v7021_v23  ;;  %v19307_v62 = vld [vmem:[#allocation83_spill] sm:$0xff]  ;;  %v15955_v31 = vld [vmem:[#allocation11 + $0x88] sm:$0xff] }
 0x479   : > { %v7983_v22 = vadd.f32 %v17935_v59, %v7943_v34  ;;  %v7946_v2 = vmul.f32 %v17929_v3, %v7832_v61  ;;  %15089 = vmatmul.mubr.f32.gmra.mxu0 %v8122_v46  ;;  %15175 = vmatmul.mubr.f32.gmra.mxu1 %v8456_v19  ;;  %v19306_v0 = vld [vmem:[#allocation32_spill] sm:$0xff]  ;;  %v7023_v5 = vadd.f32 %v19307_v62, %v6617_v6  ;;  %v15019_v4 = vpop.f32.mrf.mxu1  ;;  %v8123_v9 = vld [vmem:[#allocation2 + $0x60] sm:$0xff]  ;;  %v8124_v12 = vld [vmem:[#allocation2 + $0x68] sm:$0xff]  ;;  %v18111_v34 = vpop.f32.mrf.mxu0 }
 0x47a   : > { %v18100_v35 = vadd.f32 %v19306_v0, %v19305_v49  ;;  %8090 = vst [vmem:[#allocation2 + $0x8b] sm:$0xff] %v8054_v32  ;;  %v7831_v50 = vadd.f32 %v7688_v45, %v7425_v21  ;;  %v8457_v33 = vld [vmem:[#allocation2 + $0x61] sm:$0xff]  ;;  %8089 = vst [vmem:[#allocation2 + $0x83] sm:$0xff] %v8053_v14  ;;  %v8056_v27 = vmul.f32 %v15955_v31, %v8020_v36  ;;  %15091 = vmatprep.mubr.f32.mxu0 %v8123_v9  ;;  %v8458_v38 = vld [vmem:[#allocation2 + $0x69] sm:$0xff] }
 0x47b   : > { %v8019_v58 = vmax.f32 %v7983_v22, 0.0  ;;  %v7986_v11 = vadd.f32 %v17935_v59, %v7946_v2  ;;  %v7834_v25 = vadd.f32 %v15019_v4, %v7428_v60  ;;  %15177 = vmatprep.mubr.f32.mxu1 %v8457_v33  ;;  %v6619_v44 = vadd.f32 %v19308_v20, %v6213_v24  ;;  %v19309_v6 = vld [vmem:[#allocation65_spill] sm:$0xff]  ;;  %v19310_v55 = vld [vmem:[#allocation82_spill] sm:$0xff]  ;;  %v7698_v37 = vpop.f32.mrf.mxu1  ;;  %v15956_v61 = vld [vmem:[#allocation11 + $0x80] sm:$0xff]  ;;  %v18128_v31 = vpop.f32.mrf.mxu0 }
 0x47c   : > { %v6215_v23 = vadd.f32 %v19309_v6, %v18044_v18  ;;  %v7430_v57 = vadd.f32 %v18001_v16, %v19310_v55  ;;  %v7945_v40 = vmul.f32 %v17929_v3, %v7831_v50  ;;  %8092 = vst [vmem:[#allocation2 + $0x9b] sm:$0xff] %v8056_v27  ;;  %v7833_v21 = vadd.f32 %v7698_v37, %v7427_v8  ;;  %v19311_v24 = vld [vmem:[#allocation21_spill] sm:$0xff]  ;;  %v15957_v36 = vld [vmem:[#allocation11 + $0x98] sm:$0xff] }
 0x47d   : > { %v8055_v56 = vmul.f32 %v15956_v61, %v8019_v58  ;;  %v8022_v48 = vmax.f32 %v7986_v11, 0.0  ;;  %v7948_v46 = vmul.f32 %v17929_v3, %v7834_v25  ;;  %15092 = vmatmul.mubr.f32.gmra.mxu0 %v8124_v12  ;;  %15178 = vmatmul.mubr.f32.gmra.mxu1 %v8458_v38  ;;  %v18116_v18 = vadd.f32 %v19312_v29, %v19311_v24  ;;  %v19313_v60 = vld [vmem:[#allocation85_spill] sm:$0xff]  ;;  %v15022_v45 = vpop.f32.mrf.mxu1  ;;  %v19316_v4 = vld [vmem:[#allocation67_spill] sm:$0xff]  ;;  %v19320_v29 = vld [vmem:[#allocation86_spill] sm:$0xff] }
 0x47e   : > { %v7429_v16 = vadd.f32 %v18017_v7, %v7023_v5  ;;  %v7025_v28 = vadd.f32 %v19313_v60, %v6619_v44  ;;  %v7985_v32 = vadd.f32 %v17935_v59, %v7945_v40  ;;  %v8125_v19 = vld [vmem:[#allocation2 + $0x70] sm:$0xff]  ;;  %v8126_v14 = vld [vmem:[#allocation2 + $0x78] sm:$0xff]  ;;  %v7947_v49 = vmul.f32 %v17929_v3, %v7833_v21  ;;  %v15958_v44 = vld [vmem:[#allocation11 + $0x90] sm:$0xff] }
 0x47f   : > { %v8459_v1 = vld [vmem:[#allocation2 + $0x71] sm:$0xff]  ;;  %8091 = vst [vmem:[#allocation2 + $0x93] sm:$0xff] %v8055_v56  ;;  %v8058_v22 = vmul.f32 %v15957_v36, %v8022_v48  ;;  %v7988_v2 = vadd.f32 %v17935_v59, %v7948_v46  ;;  %v7836_v0 = vadd.f32 %v15022_v45, %v7430_v57  ;;  %15094 = vmatprep.mubr.f32.mxu0 %v8125_v19  ;;  %v8460_v8 = vld [vmem:[#allocation2 + $0x79] sm:$0xff]  ;;  %v7708_v12 = vpop.f32.mrf.mxu1 }
 0x480   : > { %v19314_v7 = vld [vmem:[#allocation56_spill] sm:$0xff]  ;;  %v6217_v9 = vadd.f32 %v19316_v4, %v18061_v39  ;;  %v8021_v33 = vmax.f32 %v7985_v32, 0.0  ;;  %15180 = vmatprep.mubr.f32.mxu1 %v8459_v1  ;;  %v7987_v58 = vadd.f32 %v17935_v59, %v7947_v49  ;;  %v7835_v25 = vadd.f32 %v7708_v12, %v7429_v16  ;;  %v15959_v37 = vld [vmem:[#allocation11 + $0xa8] sm:$0xff]  ;;  %v18143_v32 = vpop.f32.mrf.mxu0 }
 0x481   : > { %v5411_v62 = vadd.f32 %v19314_v7, %v17939_v51  ;;  %v19315_v5 = vld [vmem:[#allocation64_spill] sm:$0xff]  ;;  %8094 = vst [vmem:[#allocation2 + $0xab] sm:$0xff] %v8058_v22  ;;  %v8024_v27 = vmax.f32 %v7988_v2, 0.0  ;;  %v7950_v11 = vmul.f32 %v17929_v3, %v7836_v0  ;;  %15095 = vmatmul.mubr.f32.gmra.mxu0 %v8126_v14  ;;  %15181 = vmatmul.mubr.f32.gmra.mxu1 %v8460_v8  ;;  %v8127_v55 = vld [vmem:[#allocation2 + $0x80] sm:$0xff]  ;;  %v8128_v40 = vld [vmem:[#allocation2 + $0x88] sm:$0xff] }
 0x482   : > { %v6621_v50 = vadd.f32 %v19315_v5, %v6215_v23  ;;  %v19317_v51 = vld [vmem:[#allocation84_spill] sm:$0xff]  ;;  %v7431_v20 = vadd.f32 %v18049_v10, %v7025_v28  ;;  %v8057_v6 = vmul.f32 %v15958_v44, %v8021_v33  ;;  %v15025_v23 = vpop.f32.mrf.mxu1  ;;  %v8461_v57 = vld [vmem:[#allocation2 + $0x81] sm:$0xff]  ;;  %v8023_v56 = vmax.f32 %v7987_v58, 0.0  ;;  %15097 = vmatprep.mubr.f32.mxu0 %v8127_v55  ;;  %v19324_v55 = vld [vmem:[#allocation27_spill] sm:$0xff] }
 0x483   : > { %v7432_v38 = vadd.f32 %v18030_v13, %v19317_v51  ;;  %v8060_v61 = vmul.f32 %v15959_v37, %v8024_v27  ;;  %v7990_v48 = vadd.f32 %v17935_v59, %v7950_v11  ;;  %v7949_v46 = vmul.f32 %v17929_v3, %v7835_v25  ;;  %15183 = vmatprep.mubr.f32.mxu1 %v8461_v57  ;;  %v8462_v13 = vld [vmem:[#allocation2 + $0x89] sm:$0xff]  ;;  %v19318_v21 = vld [vmem:[#allocation33_spill] sm:$0xff]  ;;  %v15960_v45 = vld [vmem:[#allocation11 + $0xa0] sm:$0xff] }
 0x484   : > { %v7027_v39 = vadd.f32 %v17879_v26, %v6621_v50  ;;  %v5817_v10 = vadd.f32 %v19318_v21, %v5411_v62  ;;  %v19319_v26 = vld [vmem:[#allocation43_spill] sm:$0xff]  ;;  %v7434_v16 = vadd.f32 %v18067_v15, %v19320_v29  ;;  %8093 = vst [vmem:[#allocation2 + $0xa3] sm:$0xff] %v8057_v6  ;;  %v7718_v28 = vpop.f32.mrf.mxu1  ;;  %v8059_v19 = vmul.f32 %v15960_v45, %v8023_v56  ;;  %v19321_v22 = vld [vmem:[#allocation66_spill] sm:$0xff] }
 0x485   : > { %v6219_v24 = vadd.f32 %v19319_v26, %v18100_v35  ;;  %v7838_v60 = vadd.f32 %v15025_v23, %v7432_v38  ;;  %8096 = vst [vmem:[#allocation2 + $0xbb] sm:$0xff] %v8060_v61  ;;  %v8026_v1 = vmax.f32 %v7990_v48, 0.0  ;;  %v7989_v14 = vadd.f32 %v17935_v59, %v7949_v46  ;;  %15098 = vmatmul.mubr.f32.gmra.mxu0 %v8128_v40  ;;  %v19322_v35 = vld [vmem:[#allocation44_spill] sm:$0xff]  ;;  %v15961_v50 = vld [vmem:[#allocation11 + $0xb8] sm:$0xff]  ;;  %v19323_v58 = vld [vmem:[#allocation26_spill] sm:$0xff]  ;;  %v14951_v38 = vpop.f32.mrf.mxu0 }
 0x486   : > { %v7837_v36 = vadd.f32 %v7718_v28, %v7431_v20  ;;  %15184 = vmatmul.mubr.f32.gmra.mxu1 %v8462_v13  ;;  %v6623_v2 = vadd.f32 %v19321_v22, %v6217_v9  ;;  %v6221_v49 = vadd.f32 %v19322_v35, %v18116_v18  ;;  %v7433_v15 = vadd.f32 %v18081_v42, %v7027_v39  ;;  %v15028_v8 = vpop.f32.mrf.mxu1  ;;  %v8129_v7 = vld [vmem:[#allocation2 + $0x90] sm:$0xff]  ;;  %v8130_v5 = vld [vmem:[#allocation2 + $0x98] sm:$0xff]  ;;  %v15962_v20 = vld [vmem:[#allocation11 + $0xb0] sm:$0xff] }
 0x487   : > { %v7952_v0 = vmul.f32 %v17929_v3, %v7838_v60  ;;  %v8463_v62 = vld [vmem:[#allocation2 + $0x91] sm:$0xff]  ;;  %8095 = vst [vmem:[#allocation2 + $0xb3] sm:$0xff] %v8059_v19  ;;  %v8062_v4 = vmul.f32 %v15961_v50, %v8026_v1  ;;  %v8025_v33 = vmax.f32 %v7989_v14, 0.0  ;;  %v7840_v27 = vadd.f32 %v15028_v8, %v7434_v16  ;;  %15100 = vmatprep.mubr.f32.mxu0 %v8129_v7  ;;  %v8464_v9 = vld [vmem:[#allocation2 + $0x99] sm:$0xff]  ;;  %v19325_v40 = vld [vmem:[#allocation46_spill] sm:$0xff]  ;;  %v7352_v45 = vpop.f32.mrf.mxu0 }
 0x488   : > { %v7951_v12 = vmul.f32 %v17929_v3, %v7837_v36  ;;  %15186 = vmatprep.mubr.f32.mxu1 %v8463_v62  ;;  %v6625_v18 = vadd.f32 %v19323_v58, %v6219_v24  ;;  %v7436_v42 = vadd.f32 %v18094_v63, %v17887_v41  ;;  %v7029_v11 = vadd.f32 %v17889_v52, %v6623_v2  ;;  %v7728_v51 = vpop.f32.mrf.mxu1  ;;  %v19326_v29 = vld [vmem:[#allocation87_spill] sm:$0xff]  ;;  %v15963_v16 = vld [vmem:[#allocation11 + $0xc8] sm:$0xff]  ;;  %v15964_v19 = vld [vmem:[#allocation11 + $0xc0] sm:$0xff] }
 0x489   : > { %v7992_v25 = vadd.f32 %v17935_v59, %v7952_v0  ;;  %8098 = vst [vmem:[#allocation2 + $0xcb] sm:$0xff] %v8062_v4  ;;  %v8061_v39 = vmul.f32 %v15962_v20, %v8025_v33  ;;  %v7954_v6 = vmul.f32 %v17929_v3, %v7840_v27  ;;  %v7839_v23 = vadd.f32 %v7728_v51, %v7433_v15  ;;  %v14954_v8 = vpop.f32.mrf.mxu0  ;;  %v15965_v7 = vld [vmem:[#allocation11 + $0xd8] sm:$0xff]  ;;  %v19327_v33 = vld [vmem:[#allocation68_spill] sm:$0xff]  ;;  %v15966_v58 = vld [vmem:[#allocation11 + $0xd0] sm:$0xff] }
 0x48a   : > { %v7991_v44 = vadd.f32 %v17935_v59, %v7951_v12  ;;  %15101 = vmatmul.mubr.f32.gmra.mxu0 %v8130_v5  ;;  %v6627_v57 = vadd.f32 %v19324_v55, %v6221_v49  ;;  %v6223_v37 = vadd.f32 %v19325_v40, %v5817_v10  ;;  %v7031_v41 = vadd.f32 %v17897_v30, %v6625_v18  ;;  %v15031_v63 = vpop.f32.mrf.mxu1  ;;  %v15967_v55 = vld [vmem:[#allocation11 + $0xe8] sm:$0xff] }
 0x48b   : > { %v8028_v52 = vmax.f32 %v7992_v25, 0.0  ;;  %15187 = vmatmul.mubr.f32.gmra.mxu1 %v8464_v9  ;;  %8097 = vst [vmem:[#allocation2 + $0xc3] sm:$0xff] %v8061_v39  ;;  %v7994_v56 = vadd.f32 %v17935_v59, %v7954_v6  ;;  %v7953_v48 = vmul.f32 %v17929_v3, %v7839_v23  ;;  %v7842_v46 = vadd.f32 %v15031_v63, %v7436_v42  ;;  %v8131_v13 = vld [vmem:[#allocation2 + $0xa0] sm:$0xff]  ;;  %v8132_v26 = vld [vmem:[#allocation2 + $0xa8] sm:$0xff]  ;;  %v7362_v23 = vpop.f32.mrf.mxu0 }
 0x48c   : > { %v8027_v61 = vmax.f32 %v7991_v44, 0.0  ;;  %v8465_v21 = vld [vmem:[#allocation2 + $0xa1] sm:$0xff]  ;;  %v7435_v24 = vadd.f32 %v18111_v34, %v7029_v11  ;;  %v7438_v10 = vadd.f32 %v18128_v31, %v19326_v29  ;;  %15103 = vmatprep.mubr.f32.mxu0 %v8131_v13  ;;  %v7738_v60 = vpop.f32.mrf.mxu1  ;;  %v8466_v28 = vld [vmem:[#allocation2 + $0xa9] sm:$0xff]  ;;  %v7437_v34 = vadd.f32 %v18143_v32, %v7031_v41 }
 0x48d   : > { %v8064_v30 = vmul.f32 %v15963_v16, %v8028_v52  ;;  %15189 = vmatprep.mubr.f32.mxu1 %v8465_v21  ;;  %v8030_v14 = vmax.f32 %v7994_v56, 0.0  ;;  %v7993_v36 = vadd.f32 %v17935_v59, %v7953_v48  ;;  %v7956_v22 = vmul.f32 %v17929_v3, %v7842_v46 }
 0x48e   : > { %v8063_v1 = vmul.f32 %v15964_v19, %v8027_v61  ;;  %15104 = vmatmul.mubr.f32.gmra.mxu0 %v8132_v26  ;;  %v7033_v2 = vadd.f32 %v17907_v43, %v6627_v57  ;;  %v7841_v31 = vadd.f32 %v7738_v60, %v7435_v24  ;;  %v15034_v35 = vpop.f32.mrf.mxu1  ;;  %v8133_v49 = vld [vmem:[#allocation2 + $0xb0] sm:$0xff]  ;;  %v8134_v0 = vld [vmem:[#allocation2 + $0xb8] sm:$0xff]  ;;  %v6629_v43 = vadd.f32 %v19327_v33, %v6223_v37 }
 0x48f   : > { %8100 = vst [vmem:[#allocation2 + $0xdb] sm:$0xff] %v8064_v30  ;;  %15190 = vmatmul.mubr.f32.gmra.mxu1 %v8466_v28  ;;  %v8467_v15 = vld [vmem:[#allocation2 + $0xb1] sm:$0xff]  ;;  %v8066_v62 = vmul.f32 %v15965_v7, %v8030_v14  ;;  %v8029_v5 = vmax.f32 %v7993_v36, 0.0  ;;  %v7996_v50 = vadd.f32 %v17935_v59, %v7956_v22  ;;  %v7844_v4 = vadd.f32 %v15034_v35, %v7438_v10  ;;  %v8468_v32 = vld [vmem:[#allocation2 + $0xb9] sm:$0xff]  ;;  %v15970_v22 = vld [vmem:[#allocation11 + $0xf0] sm:$0xff] }
 0x490   : > { %8099 = vst [vmem:[#allocation2 + $0xd3] sm:$0xff] %v8063_v1  ;;  %15106 = vmatprep.mubr.f32.mxu0 %v8133_v49  ;;  %15192 = vmatprep.mubr.f32.mxu1 %v8467_v15  ;;  %v7440_v12 = vadd.f32 %v14951_v38, %v17905_v53  ;;  %v7955_v27 = vmul.f32 %v17929_v3, %v7841_v31  ;;  %v7748_v9 = vpop.f32.mrf.mxu1  ;;  %v15968_v26 = vld [vmem:[#allocation11 + $0xe0] sm:$0xff]  ;;  %v15969_v60 = vld [vmem:[#allocation11 + $0xf8] sm:$0xff]  ;;  %v15971_v7 = vld [vmem:[#allocation11 + $0x108] sm:$0xff] }
 0x491   : > { %8102 = vst [vmem:[#allocation2 + $0xeb] sm:$0xff] %v8066_v62  ;;  %v8065_v18 = vmul.f32 %v15966_v58, %v8029_v5  ;;  %v8032_v42 = vmax.f32 %v7996_v50, 0.0  ;;  %v7958_v11 = vmul.f32 %v17929_v3, %v7844_v4  ;;  %v7843_v25 = vadd.f32 %v7748_v9, %v7437_v34  ;;  %v15972_v33 = vld [vmem:[#allocation11 + $0x100] sm:$0xff] }
 0x492   : > { %15107 = vmatmul.mubr.f32.gmra.mxu0 %v8134_v0  ;;  %v7439_v51 = vadd.f32 %v7352_v45, %v7033_v2  ;;  %v7035_v20 = vadd.f32 %v17920_v54, %v6629_v43  ;;  %v7995_v39 = vadd.f32 %v17935_v59, %v7955_v27  ;;  %v15037_v44 = vpop.f32.mrf.mxu1  ;;  %v8135_v6 = vld [vmem:[#allocation2 + $0xc0] sm:$0xff]  ;;  %v8136_v38 = vld [vmem:[#allocation2 + $0xc8] sm:$0xff]  ;;  %v7442_v13 = vadd.f32 %v14954_v8, %v17917_v47 }
 0x493   : > { %15193 = vmatmul.mubr.f32.gmra.mxu1 %v8468_v32  ;;  %v8469_v53 = vld [vmem:[#allocation2 + $0xc1] sm:$0xff]  ;;  %8101 = vst [vmem:[#allocation2 + $0xe3] sm:$0xff] %v8065_v18  ;;  %v8068_v57 = vmul.f32 %v15967_v55, %v8032_v42  ;;  %v7998_v40 = vadd.f32 %v17935_v59, %v7958_v11  ;;  %v7957_v37 = vmul.f32 %v17929_v3, %v7843_v25  ;;  %v8470_v52 = vld [vmem:[#allocation2 + $0xc9] sm:$0xff] }
 0x494   : > { %v7846_v41 = vadd.f32 %v15037_v44, %v7440_v12  ;;  %15109 = vmatprep.mubr.f32.mxu0 %v8135_v6  ;;  %v8031_v63 = vmax.f32 %v7995_v39, 0.0  ;;  %15195 = vmatprep.mubr.f32.mxu1 %v8469_v53  ;;  %v7758_v54 = vpop.f32.mrf.mxu1  ;;  %v7441_v21 = vadd.f32 %v7362_v23, %v7035_v20  ;;  %v15973_v11 = vld [vmem:[#allocation11 + $0x118] sm:$0xff] }
 0x495   : > { %8104 = vst [vmem:[#allocation2 + $0xfb] sm:$0xff] %v8068_v57  ;;  %v8034_v61 = vmax.f32 %v7998_v40, 0.0  ;;  %v7997_v56 = vadd.f32 %v17935_v59, %v7957_v37  ;;  %v7845_v46 = vadd.f32 %v7758_v54, %v7439_v51  ;;  %v15974_v51 = vld [vmem:[#allocation11 + $0x110] sm:$0xff]  ;;  %v9257_v40 = vld [vmem:[#allocation2 + $0x12] sm:$0xff]  ;;  %v10120_v54 = vld [vmem:[#allocation8 + $0xbf0] sm:$0xff] }
 0x496   : > { %v7960_v48 = vmul.f32 %v17929_v3, %v7846_v41  ;;  %15110 = vmatmul.mubr.f32.gmra.mxu0 %v8136_v38  ;;  %v8067_v24 = vmul.f32 %v15968_v26, %v8031_v63  ;;  %v15040_v29 = vpop.f32.mrf.mxu1  ;;  %v8851_v57 = vld [vmem:[#allocation2 + $0x2] sm:$0xff]  ;;  %v8852_v37 = vld [vmem:[#allocation2 + $0xa] sm:$0xff]  ;;  %v9258_v41 = vld [vmem:[#allocation2 + $0x1a] sm:$0xff] }
 0x497   : > { %15196 = vmatmul.mubr.f32.gmra.mxu1 %v8470_v52  ;;  %v8137_v10 = vld [vmem:[#allocation2 + $0xd0] sm:$0xff]  ;;  %v8138_v30 = vld [vmem:[#allocation2 + $0xd8] sm:$0xff]  ;;  %v8070_v28 = vmul.f32 %v15969_v60, %v8034_v61  ;;  %v8033_v45 = vmax.f32 %v7997_v56, 0.0  ;;  %v7959_v1 = vmul.f32 %v17929_v3, %v7845_v46  ;;  %v7848_v47 = vadd.f32 %v15040_v29, %v7442_v13  ;;  %v9714_v52 = vld [vmem:[#allocation8 + $0xb70] sm:$0xff] }
 0x498   : > { %v8471_v16 = vld [vmem:[#allocation2 + $0xd1] sm:$0xff]  ;;  %v8000_v19 = vadd.f32 %v17935_v59, %v7960_v48  ;;  %15112 = vmatprep.mubr.f32.mxu0 %v8137_v10  ;;  %v8472_v14 = vld [vmem:[#allocation2 + $0xd9] sm:$0xff]  ;;  %8103 = vst [vmem:[#allocation2 + $0xf3] sm:$0xff] %v8067_v24  ;;  %v7768_v36 = vpop.f32.mrf.mxu1  ;;  %v9259_v63 = vld [vmem:[#allocation2 + $0x22] sm:$0xff] }
 0x499   : > { %15198 = vmatprep.mubr.f32.mxu1 %v8471_v16  ;;  %8106 = vst [vmem:[#allocation2 + $0x10b] sm:$0xff] %v8070_v28  ;;  %v8069_v34 = vmul.f32 %v15970_v22, %v8033_v45  ;;  %v7999_v31 = vadd.f32 %v17935_v59, %v7959_v1  ;;  %v7847_v35 = vadd.f32 %v7768_v36, %v7441_v21  ;;  %v15975_v61 = vld [vmem:[#allocation8 + $0xb78] sm:$0xff]  ;;  %v9713_v21 = vld [vmem:[#allocation8 + $0xb68] sm:$0xff]  ;;  %v9712_v10 = vld [vmem:[#allocation8 + $0xb60] sm:$0xff] }
 0x49a   : > { %v8036_v2 = vmax.f32 %v8000_v19, 0.0  ;;  %15113 = vmatmul.mubr.f32.gmra.mxu0 %v8138_v30  ;;  %v7962_v49 = vmul.f32 %v17929_v3, %v7848_v47  ;;  %v8139_v15 = vld [vmem:[#allocation2 + $0xe0] sm:$0xff]  ;;  %v8140_v8 = vld [vmem:[#allocation2 + $0xe8] sm:$0xff]  ;;  %v9261_v26 = vld [vmem:[#allocation2 + $0x32] sm:$0xff] }
 0x49b   : > { %15199 = vmatmul.mubr.f32.gmra.mxu1 %v8472_v14  ;;  %v8473_v0 = vld [vmem:[#allocation2 + $0xe1] sm:$0xff]  ;;  %8105 = vst [vmem:[#allocation2 + $0x103] sm:$0xff] %v8069_v34  ;;  %v8035_v5 = vmax.f32 %v7999_v31, 0.0  ;;  %v7961_v50 = vmul.f32 %v17929_v3, %v7847_v35  ;;  %15115 = vmatprep.mubr.f32.mxu0 %v8139_v15  ;;  %v8474_v4 = vld [vmem:[#allocation2 + $0xe9] sm:$0xff]  ;;  %v10119_v24 = vld [vmem:[#allocation8 + $0xbe8] sm:$0xff] }
 0x49c   : > { %v8072_v62 = vmul.f32 %v15971_v7, %v8036_v2  ;;  %15201 = vmatprep.mubr.f32.mxu1 %v8473_v0  ;;  %v8002_v32 = vadd.f32 %v17935_v59, %v7962_v49  ;;  %v9260_v13 = vld [vmem:[#allocation2 + $0x2a] sm:$0xff]  ;;  %v9262_v29 = vld [vmem:[#allocation2 + $0x3a] sm:$0xff]  ;;  %v9265_v28 = vld [vmem:[#allocation2 + $0x52] sm:$0xff] }
 0x49d   : > { %v8071_v43 = vmul.f32 %v15972_v33, %v8035_v5  ;;  %v8001_v12 = vadd.f32 %v17935_v59, %v7961_v50  ;;  %v10118_v16 = vld [vmem:[#allocation8 + $0xbe0] sm:$0xff]  ;;  %v9711_v60 = vld [vmem:[#allocation8 + $0xb58] sm:$0xff]  ;;  %v9266_v19 = vld [vmem:[#allocation2 + $0x5a] sm:$0xff] }
 0x49e   : > { %8108 = vst [vmem:[#allocation2 + $0x11b] sm:$0xff] %v8072_v62  ;;  %15116 = vmatmul.mubr.f32.gmra.mxu0 %v8140_v8  ;;  %v8038_v27 = vmax.f32 %v8002_v32, 0.0  ;;  %v9264_v30 = vld [vmem:[#allocation2 + $0x4a] sm:$0xff]  ;;  %v9710_v1 = vld [vmem:[#allocation8 + $0xb50] sm:$0xff]  ;;  %v9709_v22 = vld [vmem:[#allocation8 + $0xb48] sm:$0xff] }
 0x49f   : > { %15202 = vmatmul.mubr.f32.gmra.mxu1 %v8474_v4  ;;  %8107 = vst [vmem:[#allocation2 + $0x113] sm:$0xff] %v8071_v43  ;;  %v8037_v9 = vmax.f32 %v8001_v12, 0.0  ;;  %v8141_v58 = vld [vmem:[#allocation2 + $0xf0] sm:$0xff]  ;;  %v8142_v42 = vld [vmem:[#allocation2 + $0xf8] sm:$0xff]  ;;  %v10117_v45 = vld [vmem:[#allocation8 + $0xbd8] sm:$0xff] }
 0x4a0   : > { %v8475_v18 = vld [vmem:[#allocation2 + $0xf1] sm:$0xff]  ;;  %v8074_v3 = vmul.f32 %v15973_v11, %v8038_v27  ;;  %15118 = vmatprep.mubr.f32.mxu0 %v8141_v58  ;;  %v8476_v25 = vld [vmem:[#allocation2 + $0xf9] sm:$0xff]  ;;  %v9267_v14 = vld [vmem:[#allocation2 + $0x62] sm:$0xff] }
 0x4a1   : > { %15204 = vmatprep.mubr.f32.mxu1 %v8475_v18  ;;  %v8073_v20 = vmul.f32 %v15974_v51, %v8037_v9  ;;  %v10116_v47 = vld [vmem:[#allocation8 + $0xbd0] sm:$0xff]  ;;  %v9268_v36 = vld [vmem:[#allocation2 + $0x6a] sm:$0xff]  ;;  %v9269_v34 = vld [vmem:[#allocation2 + $0x72] sm:$0xff] }
 0x4a2   : > { %15119 = vmatmul.mubr.f32.gmra.mxu0 %v8142_v42  ;;  %8110 = vst [vmem:[#allocation2 + $0x12b] sm:$0xff] %v8074_v3  ;;  %v8143_v39 = vld [vmem:[#allocation2 + $0x100] sm:$0xff]  ;;  %v8144_v44 = vld [vmem:[#allocation2 + $0x108] sm:$0xff]  ;;  %v10115_v2 = vld [vmem:[#allocation8 + $0xbc8] sm:$0xff] }
 0x4a3   : > { %15205 = vmatmul.mubr.f32.gmra.mxu1 %v8476_v25  ;;  %v8477_v59 = vld [vmem:[#allocation2 + $0x101] sm:$0xff]  ;;  %8109 = vst [vmem:[#allocation2 + $0x123] sm:$0xff] %v8073_v20  ;;  %15121 = vmatprep.mubr.f32.mxu0 %v8143_v39  ;;  %v8478_v6 = vld [vmem:[#allocation2 + $0x109] sm:$0xff]  ;;  %v9273_v7 = vld [vmem:[#allocation2 + $0x92] sm:$0xff] }
 0x4a4   : > { %15207 = vmatprep.mubr.f32.mxu1 %v8477_v59  ;;  %v9270_v31 = vld [vmem:[#allocation2 + $0x7a] sm:$0xff]  ;;  %v9708_v35 = vld [vmem:[#allocation8 + $0xb40] sm:$0xff]  ;;  %v9271_v49 = vld [vmem:[#allocation2 + $0x82] sm:$0xff] }
 0x4a5   : > { %v10114_v15 = vld [vmem:[#allocation8 + $0xbc0] sm:$0xff]  ;;  %v9707_v8 = vld [vmem:[#allocation8 + $0xb38] sm:$0xff]  ;;  %v9274_v5 = vld [vmem:[#allocation2 + $0x9a] sm:$0xff] }
 0x4a6   : > { %15122 = vmatmul.mubr.f32.gmra.mxu0 %v8144_v44  ;;  %v8145_v53 = vld [vmem:[#allocation2 + $0x110] sm:$0xff]  ;;  %v8146_v23 = vld [vmem:[#allocation2 + $0x118] sm:$0xff]  ;;  %v10113_v62 = vld [vmem:[#allocation8 + $0xbb8] sm:$0xff] }
 0x4a7   : > { %15208 = vmatmul.mubr.f32.gmra.mxu1 %v8478_v6  ;;  %v8479_v38 = vld [vmem:[#allocation2 + $0x111] sm:$0xff]  ;;  %15124 = vmatprep.mubr.f32.mxu0 %v8145_v53  ;;  %v8480_v55 = vld [vmem:[#allocation2 + $0x119] sm:$0xff]  ;;  %v9275_v4 = vld [vmem:[#allocation2 + $0xa2] sm:$0xff] }
 0x4a8   : > { %15210 = vmatprep.mubr.f32.mxu1 %v8479_v38  ;;  %v9272_v0 = vld [vmem:[#allocation2 + $0x8a] sm:$0xff]  ;;  %v9706_v50 = vld [vmem:[#allocation8 + $0xb30] sm:$0xff]  ;;  %v9705_v43 = vld [vmem:[#allocation8 + $0xb28] sm:$0xff] }
 0x4a9   : > { %v10112_v32 = vld [vmem:[#allocation8 + $0xbb0] sm:$0xff]  ;;  %v9276_v33 = vld [vmem:[#allocation2 + $0xaa] sm:$0xff]  ;;  %v9277_v12 = vld [vmem:[#allocation2 + $0xb2] sm:$0xff] }
 0x4aa   : > { %15125 = vmatmul.mubr.f32.gmra.mxu0 %v8146_v23  ;;  %v15075_v56 = vpop.f32.mrf.mxu0  ;;  %v15161_v48 = vpop.f32.mrf.mxu1  ;;  %v10111_v27 = vld [vmem:[#allocation8 + $0xba8] sm:$0xff]  ;;  %v9704_v58 = vld [vmem:[#allocation8 + $0xb20] sm:$0xff]  ;;  %v9279_v18 = vld [vmem:[#allocation2 + $0xc2] sm:$0xff] }
 0x4ab   : > { %15211 = vmatmul.mubr.f32.gmra.mxu1 %v8480_v55  ;;  %15245 = vmatprep.mubr.f32.mxu0 %v8851_v57  ;;  %v18191_v46 = vadd.f32 %v15161_v48, %v15075_v56  ;;  %v9278_v9 = vld [vmem:[#allocation2 + $0xba] sm:$0xff]  ;;  %v10110_v42 = vld [vmem:[#allocation8 + $0xba0] sm:$0xff]  ;;  %v9703_v3 = vld [vmem:[#allocation8 + $0xb18] sm:$0xff] }
 0x4ac   : > { %15331 = vmatprep.mubr.f32.mxu1 %v9257_v40  ;;  %v9280_v11 = vld [vmem:[#allocation2 + $0xca] sm:$0xff]  ;;  %v9281_v25 = vld [vmem:[#allocation2 + $0xd2] sm:$0xff]  ;;  %v9282_v20 = vld [vmem:[#allocation2 + $0xda] sm:$0xff] }
 0x4ad   : > { %v10109_v51 = vld [vmem:[#allocation8 + $0xb98] sm:$0xff]  ;;  %v9702_v39 = vld [vmem:[#allocation8 + $0xb10] sm:$0xff]  ;;  %v9701_v53 = vld [vmem:[#allocation8 + $0xb08] sm:$0xff] }
 0x4ae   : > { %15246 = vmatmul.mubr.f32.vlgmr.msra.gmra.mxu0 %v8852_v37  ;;  %v9283_v59 = vld [vmem:[#allocation2 + $0xe2] sm:$0xff]  ;;  %v9284_v6 = vld [vmem:[#allocation2 + $0xea] sm:$0xff]  ;;  %v9285_v38 = vld [vmem:[#allocation2 + $0xf2] sm:$0xff] }
 0x4af   : > { %15332 = vmatmul.mubr.f32.vlgmr.msra.gmra.mxu1 %v9258_v41  ;;  %15248 = vmatprep.mubr.f32.mxu0 %v9257_v40  ;;  %v10108_v44 = vld [vmem:[#allocation8 + $0xb90] sm:$0xff]  ;;  %v10107_v23 = vld [vmem:[#allocation8 + $0xb88] sm:$0xff]  ;;  %v9700_v57 = vld [vmem:[#allocation8 + $0xb00] sm:$0xff] }
 0x4b0   : > { %15334 = vmatprep.mubr.f32.mxu1 %v9259_v63  ;;  %15386 = vmatpush3.msra.mxu0 %v15975_v61  ;;  %v9286_v55 = vld [vmem:[#allocation2 + $0xfa] sm:$0xff]  ;;  %v9287_v40 = vld [vmem:[#allocation2 + $0x102] sm:$0xff]  ;;  %v10106_v37 = vld [vmem:[#allocation8 + $0xb80] sm:$0xff] }
 0x4b1   : > { %15387 = vmatprep.subr.mxu0 %v9714_v52  ;;  %15472 = vmatpush3.msra.mxu1 %v17953_v17  ;;  %v9263_v17 = vld [vmem:[#allocation2 + $0x42] sm:$0xff]  ;;  %v9290_v61 = vld [vmem:[#allocation2 + $0x11a] sm:$0xff]  ;;  %v9292_v48 = vld [vmem:[#allocation2 + $0x12a] sm:$0xff] }
 0x4b2   : > { %15249 = vmatmul.mubr.f32.gmra.mxu0 %v9258_v41  ;;  %15473 = vmatprep.subr.mxu1 %v10120_v54  ;;  %v9288_v41 = vld [vmem:[#allocation2 + $0x10a] sm:$0xff]  ;;  %v9291_v56 = vld [vmem:[#allocation2 + $0x122] sm:$0xff] }
 0x4b3   : > { %15335 = vmatmul.mubr.f32.gmra.mxu1 %v9260_v13  ;;  %15251 = vmatprep.mubr.f32.mxu0 %v9259_v63  ;;  %v9289_v63 = vld [vmem:[#allocation2 + $0x112] sm:$0xff] }
 0x4b4   : > { %15337 = vmatprep.mubr.f32.mxu1 %v9261_v26  ;;  %15388 = vmatpush3.msra.mxu0 %v9714_v52  ;;  %v10527_v52 = vld [vmem:[#allocation8 + $0xc78] sm:$0xff] }
 0x4b5   : > { %15389 = vmatprep.subr.mxu0 %v9713_v21  ;;  %15474 = vmatpush3.msra.mxu1 %v10120_v54  ;;  %v10933_v54 = vld [vmem:[#allocation8 + $0xcf8] sm:$0xff] }
 0x4b6   : > { %15252 = vmatmul.mubr.f32.gmra.mxu0 %v9260_v13  ;;  %15475 = vmatprep.subr.mxu1 %v10119_v24  ;;  %v9663_v13 = vld [vmem:[#allocation2 + $0x13] sm:$0xff] }
 0x4b7   : > { %15338 = vmatmul.mubr.f32.gmra.mxu1 %v9262_v29  ;;  %15254 = vmatprep.mubr.f32.mxu0 %v9261_v26  ;;  %v9664_v26 = vld [vmem:[#allocation2 + $0x1b] sm:$0xff] }
 0x4b8   : > { %15340 = vmatprep.mubr.f32.mxu1 %v9263_v17  ;;  %15390 = vmatpush3.msra.mxu0 %v9713_v21  ;;  %v10069_v21 = vld [vmem:[#allocation2 + $0x14] sm:$0xff] }
 0x4b9   : > { %15391 = vmatprep.subr.mxu0 %v9712_v10  ;;  %15476 = vmatpush3.msra.mxu1 %v10119_v24  ;;  %v10070_v24 = vld [vmem:[#allocation2 + $0x1c] sm:$0xff] }
 0x4ba   : > { %15255 = vmatmul.mubr.f32.gmra.mxu0 %v9262_v29  ;;  %15477 = vmatprep.subr.mxu1 %v10118_v16  ;;  %v9665_v29 = vld [vmem:[#allocation2 + $0x23] sm:$0xff] }
 0x4bb   : > { %15341 = vmatmul.mubr.f32.gmra.mxu1 %v9264_v30  ;;  %15257 = vmatprep.mubr.f32.mxu0 %v9263_v17  ;;  %v18193_v17 = vld [vmem:[#allocation2 + $0x24] sm:$0xff] }
 0x4bc   : > { %15343 = vmatprep.mubr.f32.mxu1 %v9265_v28  ;;  %15392 = vmatpush3.msra.mxu0 %v9712_v10  ;;  %v10526_v10 = vld [vmem:[#allocation8 + $0xc70] sm:$0xff] }
 0x4bd   : > { %15393 = vmatprep.subr.mxu0 %v9711_v60  ;;  %15478 = vmatpush3.msra.mxu1 %v10118_v16  ;;  %v10932_v16 = vld [vmem:[#allocation8 + $0xcf0] sm:$0xff] }
 0x4be   : > { %15258 = vmatmul.mubr.f32.gmra.mxu0 %v9264_v30  ;;  %15479 = vmatprep.subr.mxu1 %v10117_v45  ;;  %v9666_v30 = vld [vmem:[#allocation2 + $0x2b] sm:$0xff] }
 0x4bf   : > { %15344 = vmatmul.mubr.f32.gmra.mxu1 %v9266_v19  ;;  %15260 = vmatprep.mubr.f32.mxu0 %v9265_v28  ;;  %v9667_v28 = vld [vmem:[#allocation2 + $0x33] sm:$0xff] }
 0x4c0   : > { %15346 = vmatprep.mubr.f32.mxu1 %v9267_v14  ;;  %15394 = vmatpush3.msra.mxu0 %v9711_v60  ;;  %v18196_v60 = vld [vmem:[#allocation2 + $0x2c] sm:$0xff] }
 0x4c1   : > { %15395 = vmatprep.subr.mxu0 %v9710_v1  ;;  %15480 = vmatpush3.msra.mxu1 %v10117_v45  ;;  %v10525_v45 = vld [vmem:[#allocation8 + $0xc68] sm:$0xff] }
 0x4c2   : > { %15261 = vmatmul.mubr.f32.gmra.mxu0 %v9266_v19  ;;  %15481 = vmatprep.subr.mxu1 %v10116_v47  ;;  %v18199_v19 = vld [vmem:[#allocation2 + $0x34] sm:$0xff] }
 0x4c3   : > { %15347 = vmatmul.mubr.f32.gmra.mxu1 %v9268_v36  ;;  %15263 = vmatprep.mubr.f32.mxu0 %v9267_v14  ;;  %v9668_v14 = vld [vmem:[#allocation2 + $0x3b] sm:$0xff] }
 0x4c4   : > { %15349 = vmatprep.mubr.f32.mxu1 %v9269_v34  ;;  %15396 = vmatpush3.msra.mxu0 %v9710_v1  ;;  %v10931_v1 = vld [vmem:[#allocation8 + $0xce8] sm:$0xff] }
 0x4c5   : > { %15397 = vmatprep.subr.mxu0 %v9709_v22  ;;  %15482 = vmatpush3.msra.mxu1 %v10116_v47  ;;  %v18202_v47 = vld [vmem:[#allocation2 + $0x3c] sm:$0xff] }
 0x4c6   : > { %15264 = vmatmul.mubr.f32.gmra.mxu0 %v9268_v36  ;;  %15483 = vmatprep.subr.mxu1 %v10115_v2  ;;  %v9669_v36 = vld [vmem:[#allocation2 + $0x43] sm:$0xff] }
 0x4c7   : > { %15350 = vmatmul.mubr.f32.gmra.mxu1 %v9270_v31  ;;  %15266 = vmatprep.mubr.f32.mxu0 %v9269_v34  ;;  %v18205_v34 = vld [vmem:[#allocation2 + $0x44] sm:$0xff] }
 0x4c8   : > { %15352 = vmatprep.mubr.f32.mxu1 %v9271_v49  ;;  %15398 = vmatpush3.msra.mxu0 %v9709_v22  ;;  %v10524_v22 = vld [vmem:[#allocation8 + $0xc60] sm:$0xff] }
 0x4c9   : > { %15399 = vmatprep.subr.mxu0 %v9708_v35  ;;  %15484 = vmatpush3.msra.mxu1 %v10115_v2  ;;  %v10930_v2 = vld [vmem:[#allocation8 + $0xce0] sm:$0xff] }
 0x4ca   : > { %15267 = vmatmul.mubr.f32.gmra.mxu0 %v9270_v31  ;;  %15485 = vmatprep.subr.mxu1 %v10114_v15  ;;  %v9670_v31 = vld [vmem:[#allocation2 + $0x4b] sm:$0xff] }
 0x4cb   : > { %15353 = vmatmul.mubr.f32.gmra.mxu1 %v9272_v0  ;;  %15269 = vmatprep.mubr.f32.mxu0 %v9271_v49  ;;  %v9671_v49 = vld [vmem:[#allocation2 + $0x53] sm:$0xff] }
 0x4cc   : > { %15355 = vmatprep.mubr.f32.mxu1 %v9273_v7  ;;  %15400 = vmatpush3.msra.mxu0 %v9708_v35  ;;  %v18208_v35 = vld [vmem:[#allocation2 + $0x4c] sm:$0xff] }
 0x4cd   : > { %15401 = vmatprep.subr.mxu0 %v9707_v8  ;;  %15486 = vmatpush3.msra.mxu1 %v10114_v15  ;;  %v10523_v15 = vld [vmem:[#allocation8 + $0xc58] sm:$0xff] }
 0x4ce   : > { %15270 = vmatmul.mubr.f32.gmra.mxu0 %v9272_v0  ;;  %15487 = vmatprep.subr.mxu1 %v10113_v62  ;;  %v18211_v0 = vld [vmem:[#allocation2 + $0x54] sm:$0xff] }
 0x4cf   : > { %15356 = vmatmul.mubr.f32.gmra.mxu1 %v9274_v5  ;;  %15272 = vmatprep.mubr.f32.mxu0 %v9273_v7  ;;  %v9672_v7 = vld [vmem:[#allocation2 + $0x5b] sm:$0xff] }
 0x4d0   : > { %15358 = vmatprep.mubr.f32.mxu1 %v9275_v4  ;;  %15402 = vmatpush3.msra.mxu0 %v9707_v8  ;;  %v10929_v8 = vld [vmem:[#allocation8 + $0xcd8] sm:$0xff] }
 0x4d1   : > { %15403 = vmatprep.subr.mxu0 %v9706_v50  ;;  %15488 = vmatpush3.msra.mxu1 %v10113_v62  ;;  %v18214_v62 = vld [vmem:[#allocation2 + $0x5c] sm:$0xff] }
 0x4d2   : > { %15273 = vmatmul.mubr.f32.gmra.mxu0 %v9274_v5  ;;  %15489 = vmatprep.subr.mxu1 %v10112_v32  ;;  %v9673_v5 = vld [vmem:[#allocation2 + $0x63] sm:$0xff] }
 0x4d3   : > { %15359 = vmatmul.mubr.f32.gmra.mxu1 %v9276_v33  ;;  %15275 = vmatprep.mubr.f32.mxu0 %v9275_v4  ;;  %v18217_v4 = vld [vmem:[#allocation2 + $0x64] sm:$0xff] }
 0x4d4   : > { %15361 = vmatprep.mubr.f32.mxu1 %v9277_v12  ;;  %15404 = vmatpush3.msra.mxu0 %v9706_v50  ;;  %v10522_v50 = vld [vmem:[#allocation8 + $0xc50] sm:$0xff] }
 0x4d5   : > { %15405 = vmatprep.subr.mxu0 %v9705_v43  ;;  %15490 = vmatpush3.msra.mxu1 %v10112_v32  ;;  %v10928_v32 = vld [vmem:[#allocation8 + $0xcd0] sm:$0xff] }
 0x4d6   : > { %15276 = vmatmul.mubr.f32.gmra.mxu0 %v9276_v33  ;;  %15491 = vmatprep.subr.mxu1 %v10111_v27  ;;  %v9674_v33 = vld [vmem:[#allocation2 + $0x6b] sm:$0xff] }
 0x4d7   : > { %15362 = vmatmul.mubr.f32.gmra.mxu1 %v9278_v9  ;;  %15278 = vmatprep.mubr.f32.mxu0 %v9277_v12  ;;  %v9675_v12 = vld [vmem:[#allocation2 + $0x73] sm:$0xff] }
 0x4d8   : > { %15364 = vmatprep.mubr.f32.mxu1 %v9279_v18  ;;  %15406 = vmatpush3.msra.mxu0 %v9705_v43  ;;  %v18220_v43 = vld [vmem:[#allocation2 + $0x6c] sm:$0xff] }
 0x4d9   : > { %15407 = vmatprep.subr.mxu0 %v9704_v58  ;;  %15492 = vmatpush3.msra.mxu1 %v10111_v27  ;;  %v10521_v27 = vld [vmem:[#allocation8 + $0xc48] sm:$0xff] }
 0x4da   : > { %15279 = vmatmul.mubr.f32.gmra.mxu0 %v9278_v9  ;;  %15493 = vmatprep.subr.mxu1 %v10110_v42  ;;  %v18223_v9 = vld [vmem:[#allocation2 + $0x74] sm:$0xff] }
 0x4db   : > { %15365 = vmatmul.mubr.f32.gmra.mxu1 %v9280_v11  ;;  %15281 = vmatprep.mubr.f32.mxu0 %v9279_v18  ;;  %v9676_v18 = vld [vmem:[#allocation2 + $0x7b] sm:$0xff] }
 0x4dc   : > { %15367 = vmatprep.mubr.f32.mxu1 %v9281_v25  ;;  %15408 = vmatpush3.msra.mxu0 %v9704_v58  ;;  %v10927_v58 = vld [vmem:[#allocation8 + $0xcc8] sm:$0xff] }
 0x4dd   : > { %15409 = vmatprep.subr.mxu0 %v9703_v3  ;;  %15494 = vmatpush3.msra.mxu1 %v10110_v42  ;;  %v18226_v42 = vld [vmem:[#allocation2 + $0x7c] sm:$0xff] }
 0x4de   : > { %15282 = vmatmul.mubr.f32.gmra.mxu0 %v9280_v11  ;;  %15495 = vmatprep.subr.mxu1 %v10109_v51  ;;  %v9677_v11 = vld [vmem:[#allocation2 + $0x83] sm:$0xff] }
 0x4df   : > { %15368 = vmatmul.mubr.f32.gmra.mxu1 %v9282_v20  ;;  %15284 = vmatprep.mubr.f32.mxu0 %v9281_v25  ;;  %v18229_v25 = vld [vmem:[#allocation2 + $0x84] sm:$0xff] }
 0x4e0   : > { %15370 = vmatprep.mubr.f32.mxu1 %v9283_v59  ;;  %15410 = vmatpush3.msra.mxu0 %v9703_v3  ;;  %v10520_v3 = vld [vmem:[#allocation8 + $0xc40] sm:$0xff] }
 0x4e1   : > { %15411 = vmatprep.subr.mxu0 %v9702_v39  ;;  %15496 = vmatpush3.msra.mxu1 %v10109_v51  ;;  %v10926_v51 = vld [vmem:[#allocation8 + $0xcc0] sm:$0xff] }
 0x4e2   : > { %15285 = vmatmul.mubr.f32.gmra.mxu0 %v9282_v20  ;;  %15497 = vmatprep.subr.mxu1 %v10108_v44  ;;  %v9678_v20 = vld [vmem:[#allocation2 + $0x8b] sm:$0xff] }
 0x4e3   : > { %15371 = vmatmul.mubr.f32.gmra.mxu1 %v9284_v6  ;;  %15287 = vmatprep.mubr.f32.mxu0 %v9283_v59  ;;  %v9679_v59 = vld [vmem:[#allocation2 + $0x93] sm:$0xff] }
 0x4e4   : > { %15373 = vmatprep.mubr.f32.mxu1 %v9285_v38  ;;  %15412 = vmatpush3.msra.mxu0 %v9702_v39  ;;  %v18232_v39 = vld [vmem:[#allocation2 + $0x8c] sm:$0xff] }
 0x4e5   : > { %15413 = vmatprep.subr.mxu0 %v9701_v53  ;;  %15498 = vmatpush3.msra.mxu1 %v10108_v44  ;;  %v10519_v44 = vld [vmem:[#allocation8 + $0xc38] sm:$0xff] }
 0x4e6   : > { %15288 = vmatmul.mubr.f32.gmra.mxu0 %v9284_v6  ;;  %15499 = vmatprep.subr.mxu1 %v10107_v23  ;;  %v18235_v6 = vld [vmem:[#allocation2 + $0x94] sm:$0xff] }
 0x4e7   : > { %15374 = vmatmul.mubr.f32.gmra.mxu1 %v9286_v55  ;;  %15290 = vmatprep.mubr.f32.mxu0 %v9285_v38  ;;  %v9680_v38 = vld [vmem:[#allocation2 + $0x9b] sm:$0xff] }
 0x4e8   : > { %15376 = vmatprep.mubr.f32.mxu1 %v9287_v40  ;;  %15414 = vmatpush3.msra.mxu0 %v9701_v53  ;;  %v10925_v53 = vld [vmem:[#allocation8 + $0xcb8] sm:$0xff] }
 0x4e9   : > { %15415 = vmatprep.subr.mxu0 %v9700_v57  ;;  %15500 = vmatpush3.msra.mxu1 %v10107_v23  ;;  %v18238_v23 = vld [vmem:[#allocation2 + $0x9c] sm:$0xff] }
 0x4ea   : > { %15291 = vmatmul.mubr.f32.gmra.mxu0 %v9286_v55  ;;  %15501 = vmatprep.subr.mxu1 %v10106_v37  ;;  %v9681_v55 = vld [vmem:[#allocation2 + $0xa3] sm:$0xff] }
 0x4eb   : > { %15377 = vmatmul.mubr.f32.gmra.mxu1 %v9288_v41  ;;  %15293 = vmatprep.mubr.f32.mxu0 %v9287_v40  ;;  %v18241_v40 = vld [vmem:[#allocation2 + $0xa4] sm:$0xff] }
 0x4ec   : > { %15379 = vmatprep.mubr.f32.mxu1 %v9289_v63  ;;  %15416 = vmatpush3.msra.mxu0 %v9700_v57  ;;  %v10518_v57 = vld [vmem:[#allocation8 + $0xc30] sm:$0xff] }
 0x4ed   : > { %15502 = vmatpush3.msra.mxu1 %v10106_v37  ;;  %15557 = vmatprep.subr.mxu0 %v10527_v52  ;;  %v10924_v37 = vld [vmem:[#allocation8 + $0xcb0] sm:$0xff] }
 0x4ee   : > { %15294 = vmatmul.mubr.f32.gmra.mxu0 %v9288_v41  ;;  %15643 = vmatprep.subr.mxu1 %v10933_v54  ;;  %v9682_v41 = vld [vmem:[#allocation2 + $0xab] sm:$0xff] }
 0x4ef   : > { %15380 = vmatmul.mubr.f32.gmra.mxu1 %v9290_v61  ;;  %15296 = vmatprep.mubr.f32.mxu0 %v9289_v63  ;;  %v9683_v63 = vld [vmem:[#allocation2 + $0xb3] sm:$0xff] }
 0x4f0   : > { %15382 = vmatprep.mubr.f32.mxu1 %v9291_v56  ;;  %v10923_v56 = vld [vmem:[#allocation8 + $0xca8] sm:$0xff] }
 0x4f2   : > { %15297 = vmatmul.mubr.f32.gmra.mxu0 %v9290_v61  ;;  %v18247_v61 = vld [vmem:[#allocation2 + $0xb4] sm:$0xff] }
 0x4f3   : > { %15383 = vmatmul.mubr.f32.gmra.mxu1 %v9292_v48  ;;  %15417 = vmatprep.mubr.f32.mxu0 %v9663_v13  ;;  %v9684_v48 = vld [vmem:[#allocation2 + $0xbb] sm:$0xff] }
 0x4f4   : > { %15503 = vmatprep.mubr.f32.mxu1 %v10069_v21  ;;  %v18250_v13 = vld [vmem:[#allocation2 + $0xbc] sm:$0xff] }
 0x4f5   : > { %v9685_v21 = vld [vmem:[#allocation2 + $0xc3] sm:$0xff] }
 0x4f6   : > { %15418 = vmatmul.mubr.f32.vlgmr.msra.gmra.mxu0 %v9664_v26  ;;  %v10516_v26 = vld [vmem:[#allocation8 + $0xc20] sm:$0xff] }
 0x4f7   : > { %15504 = vmatmul.mubr.f32.vlgmr.msra.gmra.mxu1 %v10070_v24  ;;  %15420 = vmatprep.mubr.f32.mxu0 %v9665_v29  ;;  %v18253_v24 = vld [vmem:[#allocation2 + $0xc4] sm:$0xff]  ;;  %v10922_v29 = vld [vmem:[#allocation8 + $0xca0] sm:$0xff] }
 0x4f8   : > { %15506 = vmatprep.mubr.f32.mxu1 %v18193_v17  ;;  %15558 = vmatpush3.msra.mxu0 %v10527_v52  ;;  %v18244_v52 = vld [vmem:[#allocation2 + $0xac] sm:$0xff] }
 0x4f9   : > { %15559 = vmatprep.subr.mxu0 %v10526_v10  ;;  %15644 = vmatpush3.msra.mxu1 %v10933_v54  ;;  %v10517_v54 = vld [vmem:[#allocation8 + $0xc28] sm:$0xff] }
 0x4fa   : > { %15421 = vmatmul.mubr.f32.gmra.mxu0 %v9666_v30  ;;  %15645 = vmatprep.subr.mxu1 %v10932_v16  ;;  %v9687_v30 = vld [vmem:[#allocation2 + $0xd3] sm:$0xff] }
 0x4fb   : > { %15507 = vmatmul.mubr.f32.gmra.mxu1 %v18196_v60  ;;  %15423 = vmatprep.mubr.f32.mxu0 %v9667_v28  ;;  %v10515_v28 = vld [vmem:[#allocation8 + $0xc18] sm:$0xff] }
 0x4fc   : > { %15509 = vmatprep.mubr.f32.mxu1 %v18199_v19  ;;  %15560 = vmatpush3.msra.mxu0 %v10526_v10  ;;  %v9686_v10 = vld [vmem:[#allocation2 + $0xcb] sm:$0xff] }
 0x4fd   : > { %15561 = vmatprep.subr.mxu0 %v10525_v45  ;;  %15646 = vmatpush3.msra.mxu1 %v10932_v16  ;;  %v18256_v16 = vld [vmem:[#allocation2 + $0xcc] sm:$0xff] }
 0x4fe   : > { %15424 = vmatmul.mubr.f32.gmra.mxu0 %v9668_v14  ;;  %15647 = vmatprep.subr.mxu1 %v10931_v1  ;;  %v9688_v14 = vld [vmem:[#allocation2 + $0xdb] sm:$0xff] }
 0x4ff   : > { %15510 = vmatmul.mubr.f32.gmra.mxu1 %v18202_v47  ;;  %15426 = vmatprep.mubr.f32.mxu0 %v9669_v36  ;;  %v18262_v36 = vld [vmem:[#allocation2 + $0xdc] sm:$0xff] }
 0x500   : > { %15512 = vmatprep.mubr.f32.mxu1 %v18205_v34  ;;  %15562 = vmatpush3.msra.mxu0 %v10525_v45  ;;  %v18259_v45 = vld [vmem:[#allocation2 + $0xd4] sm:$0xff] }
 0x501   : > { %15563 = vmatprep.subr.mxu0 %v10524_v22  ;;  %15648 = vmatpush3.msra.mxu1 %v10931_v1  ;;  %v10921_v1 = vld [vmem:[#allocation8 + $0xc98] sm:$0xff] }
 0x502   : > { %15427 = vmatmul.mubr.f32.gmra.mxu0 %v9670_v31  ;;  %15649 = vmatprep.subr.mxu1 %v10930_v2  ;;  %v18265_v31 = vpop.f32.mrf.mxu0 }
 0x503   : > { %15513 = vmatmul.mubr.f32.gmra.mxu1 %v18208_v35  ;;  %15429 = vmatprep.mubr.f32.mxu0 %v9671_v49  ;;  %v18267_v49 = vpop.f32.mrf.mxu1 }
 0x504   : > { %15515 = vmatprep.mubr.f32.mxu1 %v18211_v0  ;;  %15564 = vmatpush3.msra.mxu0 %v10524_v22  ;;  %v9689_v22 = vld [vmem:[#allocation2 + $0xe3] sm:$0xff] }
 0x505   : > { %15565 = vmatprep.subr.mxu0 %v10523_v15  ;;  %15650 = vmatpush3.msra.mxu1 %v10930_v2  ;;  %v10514_v2 = vld [vmem:[#allocation8 + $0xc10] sm:$0xff] }
 0x506   : > { %15430 = vmatmul.mubr.f32.gmra.mxu0 %v9672_v7  ;;  %15651 = vmatprep.subr.mxu1 %v10929_v8 }
 0x507   : > { %15516 = vmatmul.mubr.f32.gmra.mxu1 %v18214_v62  ;;  %15432 = vmatprep.mubr.f32.mxu0 %v9673_v5 }
 0x508   : > { %15518 = vmatprep.mubr.f32.mxu1 %v18217_v4  ;;  %15566 = vmatpush3.msra.mxu0 %v10523_v15  ;;  %v18269_v15 = vld [vmem:[#allocation2 + $0xe4] sm:$0xff] }
 0x509   : > { %15567 = vmatprep.subr.mxu0 %v10522_v50  ;;  %15652 = vmatpush3.msra.mxu1 %v10929_v8  ;;  %v10920_v8 = vld [vmem:[#allocation8 + $0xc90] sm:$0xff] }
 0x50a   : > { %15433 = vmatmul.mubr.f32.gmra.mxu0 %v9674_v33  ;;  %15653 = vmatprep.subr.mxu1 %v10928_v32  ;;  %v18274_v33 = vld [vmem:[#allocation2 + $0xec] sm:$0xff] }
 0x50b   : > { %15519 = vmatmul.mubr.f32.gmra.mxu1 %v18220_v43  ;;  %15435 = vmatprep.mubr.f32.mxu0 %v9675_v12  ;;  %v9691_v12 = vld [vmem:[#allocation2 + $0xf3] sm:$0xff] }
 0x50c   : > { %15521 = vmatprep.mubr.f32.mxu1 %v18223_v9  ;;  %15568 = vmatpush3.msra.mxu0 %v10522_v50  ;;  %v9690_v50 = vld [vmem:[#allocation2 + $0xeb] sm:$0xff] }
 0x50d   : > { %15569 = vmatprep.subr.mxu0 %v10521_v27  ;;  %15654 = vmatpush3.msra.mxu1 %v10928_v32 }
 0x50e   : > { %15436 = vmatmul.mubr.f32.gmra.mxu0 %v9676_v18  ;;  %15655 = vmatprep.subr.mxu1 %v10927_v58 }
 0x50f   : > { %15522 = vmatmul.mubr.f32.gmra.mxu1 %v18226_v42  ;;  %15438 = vmatprep.mubr.f32.mxu0 %v9677_v11 }
 0x510   : > { %15524 = vmatprep.mubr.f32.mxu1 %v18229_v25  ;;  %15570 = vmatpush3.msra.mxu0 %v10521_v27  ;;  %v10513_v27 = vld [vmem:[#allocation8 + $0xc08] sm:$0xff] }
 0x511   : > { %15571 = vmatprep.subr.mxu0 %v10520_v3  ;;  %15656 = vmatpush3.msra.mxu1 %v10927_v58  ;;  %v18277_v58 = vld [vmem:[#allocation2 + $0xf4] sm:$0xff] }
 0x512   : > { %15439 = vmatmul.mubr.f32.gmra.mxu0 %v9678_v20  ;;  %15657 = vmatprep.subr.mxu1 %v10926_v51 }
 0x513   : > { %15525 = vmatmul.mubr.f32.gmra.mxu1 %v18232_v39  ;;  %15441 = vmatprep.mubr.f32.mxu0 %v9679_v59  ;;  %v9692_v59 = vld [vmem:[#allocation2 + $0xfb] sm:$0xff] }
 0x514   : > { %15527 = vmatprep.mubr.f32.mxu1 %v18235_v6  ;;  %15572 = vmatpush3.msra.mxu0 %v10520_v3  ;;  %v10919_v3 = vld [vmem:[#allocation8 + $0xc88] sm:$0xff] }
 0x515   : > { %15573 = vmatprep.subr.mxu0 %v10519_v44  ;;  %15658 = vmatpush3.msra.mxu1 %v10926_v51 }
 0x516   : > { %15442 = vmatmul.mubr.f32.gmra.mxu0 %v9680_v38  ;;  %15659 = vmatprep.subr.mxu1 %v10925_v53  ;;  %v9693_v38 = vld [vmem:[#allocation2 + $0x103] sm:$0xff] }
 0x517   : > { %15528 = vmatmul.mubr.f32.gmra.mxu1 %v18238_v23  ;;  %15444 = vmatprep.mubr.f32.mxu0 %v9681_v55  ;;  %v10512_v55 = vld [vmem:[#allocation8 + $0xc00] sm:$0xff] }
 0x518   : > { %15530 = vmatprep.mubr.f32.mxu1 %v18241_v40  ;;  %15574 = vmatpush3.msra.mxu0 %v10519_v44 }
 0x519   : > { %15575 = vmatprep.subr.mxu0 %v10518_v57  ;;  %15660 = vmatpush3.msra.mxu1 %v10925_v53  ;;  %v18282_v53 = vld [vmem:[#allocation2 + $0xfc] sm:$0xff] }
 0x51a   : > { %15445 = vmatmul.mubr.f32.gmra.mxu0 %v9682_v41  ;;  %15661 = vmatprep.subr.mxu1 %v10924_v37 }
 0x51b   : > { %15531 = vmatmul.mubr.f32.gmra.mxu1 %v18244_v52  ;;  %15447 = vmatprep.mubr.f32.mxu0 %v9683_v63  ;;  %v10918_v63 = vld [vmem:[#allocation8 + $0xc80] sm:$0xff] }
 0x51c   : > { %15533 = vmatprep.mubr.f32.mxu1 %v18247_v61  ;;  %15576 = vmatpush3.msra.mxu0 %v10518_v57 }
 0x51d   : > { %15577 = vmatprep.subr.mxu0 %v10517_v54  ;;  %15662 = vmatpush3.msra.mxu1 %v10924_v37  ;;  %v18287_v37 = vld [vmem:[#allocation2 + $0x104] sm:$0xff] }
 0x51e   : > { %15448 = vmatmul.mubr.f32.gmra.mxu0 %v9684_v48  ;;  %15663 = vmatprep.subr.mxu1 %v10923_v56 }
 0x51f   : > { %15534 = vmatmul.mubr.f32.gmra.mxu1 %v18250_v13  ;;  %15450 = vmatprep.mubr.f32.mxu0 %v9685_v21  ;;  %v9694_v21 = vld [vmem:[#allocation2 + $0x10b] sm:$0xff] }
 0x520   : > { %15536 = vmatprep.mubr.f32.mxu1 %v18253_v24  ;;  %15578 = vmatpush3.msra.mxu0 %v10517_v54 }
 0x521   : > { %15579 = vmatprep.subr.mxu0 %v10516_v26  ;;  %15664 = vmatpush3.msra.mxu1 %v10923_v56 }
 0x522   : > { %15451 = vmatmul.mubr.f32.gmra.mxu0 %v9686_v10  ;;  %15665 = vmatprep.subr.mxu1 %v10922_v29  ;;  %v9695_v10 = vld [vmem:[#allocation2 + $0x113] sm:$0xff] }
 0x523   : > { %15537 = vmatmul.mubr.f32.gmra.mxu1 %v18256_v16  ;;  %15453 = vmatprep.mubr.f32.mxu0 %v9687_v30  ;;  %v11339_v30 = vld [vmem:[#allocation8 + $0xd78] sm:$0xff] }
 0x524   : > { %15539 = vmatprep.mubr.f32.mxu1 %v18259_v45  ;;  %15580 = vmatpush3.msra.mxu0 %v10516_v26 }
 0x525   : > { %15581 = vmatprep.subr.mxu0 %v10515_v28  ;;  %15666 = vmatpush3.msra.mxu1 %v10922_v29  ;;  %v18292_v29 = vld [vmem:[#allocation2 + $0x10c] sm:$0xff] }
 0x526   : > { %15454 = vmatmul.mubr.f32.gmra.mxu0 %v9688_v14  ;;  %15667 = vmatprep.subr.mxu1 %v10921_v1 }
 0x527   : > { %15540 = vmatmul.mubr.f32.gmra.mxu1 %v18262_v36  ;;  %15456 = vmatprep.mubr.f32.mxu0 %v9689_v22  ;;  %v15078_v7 = vpop.f32.mrf.mxu0 }
 0x528   : > { %15542 = vmatprep.mubr.f32.mxu1 %v18269_v15  ;;  %15582 = vmatpush3.msra.mxu0 %v10515_v28  ;;  %v15164_v5 = vpop.f32.mrf.mxu1 }
 0x529   : > { %15583 = vmatprep.subr.mxu0 %v10514_v2  ;;  %15668 = vmatpush3.msra.mxu1 %v10921_v1  ;;  %v18272_v32 = vadd.f32 %v15164_v5, %v15078_v7  ;;  %v8240_v18 = vpop.f32.mrf.mxu0  ;;  %v18297_v1 = vld [vmem:[#allocation2 + $0x114] sm:$0xff] }
 0x52a   : > { %15457 = vmatmul.mubr.f32.gmra.mxu0 %v9690_v50  ;;  %15669 = vmatprep.subr.mxu1 %v10920_v8  ;;  %v8574_v11 = vpop.f32.mrf.mxu1  ;;  %v9696_v7 = vld [vmem:[#allocation2 + $0x11b] sm:$0xff] }
 0x52b   : > { %15543 = vmatmul.mubr.f32.gmra.mxu1 %v18274_v33  ;;  %15459 = vmatprep.mubr.f32.mxu0 %v9691_v12  ;;  %v18280_v51 = vadd.f32 %v8574_v11, %v8240_v18  ;;  %v18302_v50 = vld [vmem:[#allocation2 + $0x11c] sm:$0xff]  ;;  %v18307_v18 = vld [vmem:[#allocation2 + $0x124] sm:$0xff] }
 0x52c   : > { %15545 = vmatprep.mubr.f32.mxu1 %v18277_v58  ;;  %15584 = vmatpush3.msra.mxu0 %v10514_v2  ;;  %v15081_v20 = vpop.f32.mrf.mxu0  ;;  %v9697_v12 = vld [vmem:[#allocation2 + $0x123] sm:$0xff] }
 0x52d   : > { %15585 = vmatprep.subr.mxu0 %v10513_v27  ;;  %15670 = vmatpush3.msra.mxu1 %v10920_v8  ;;  %v15167_v44 = vpop.f32.mrf.mxu1 }
 0x52e   : > { %15460 = vmatmul.mubr.f32.gmra.mxu0 %v9692_v59  ;;  %15671 = vmatprep.subr.mxu1 %v10919_v3  ;;  %v18284_v57 = vadd.f32 %v15167_v44, %v15081_v20  ;;  %v8250_v41 = vpop.f32.mrf.mxu0  ;;  %v9698_v59 = vld [vmem:[#allocation2 + $0x12b] sm:$0xff] }
 0x52f   : > { %15546 = vmatmul.mubr.f32.gmra.mxu1 %v18282_v53  ;;  %15462 = vmatprep.mubr.f32.mxu0 %v9693_v38  ;;  %v8584_v54 = vpop.f32.mrf.mxu1 }
 0x530   : > { %15548 = vmatprep.mubr.f32.mxu1 %v18287_v37  ;;  %15586 = vmatpush3.msra.mxu0 %v10513_v27  ;;  %v18290_v56 = vadd.f32 %v8584_v54, %v8250_v41  ;;  %v15084_v48 = vpop.f32.mrf.mxu0 }
 0x531   : > { %15587 = vmatprep.subr.mxu0 %v10512_v55  ;;  %15672 = vmatpush3.msra.mxu1 %v10919_v3  ;;  %v15170_v26 = vpop.f32.mrf.mxu1 }
 0x532   : > { %15463 = vmatmul.mubr.f32.gmra.mxu0 %v9694_v21  ;;  %15673 = vmatprep.subr.mxu1 %v10918_v63  ;;  %v18294_v28 = vadd.f32 %v15170_v26, %v15084_v48  ;;  %v8260_v14 = vpop.f32.mrf.mxu0 }
 0x533   : > { %15549 = vmatmul.mubr.f32.gmra.mxu1 %v18292_v29  ;;  %15465 = vmatprep.mubr.f32.mxu0 %v9695_v10  ;;  %v8594_v22 = vpop.f32.mrf.mxu1 }
 0x534   : > { %15551 = vmatprep.mubr.f32.mxu1 %v18297_v1  ;;  %15588 = vmatpush3.msra.mxu0 %v10512_v55  ;;  %v18300_v2 = vadd.f32 %v8594_v22, %v8260_v14  ;;  %v15087_v8 = vpop.f32.mrf.mxu0  ;;  %v18312_v55 = vld [vmem:[#allocation2 + $0x12c] sm:$0xff]  ;;  %v11338_v22 = vld [vmem:[#allocation8 + $0xd70] sm:$0xff] }
 0x535   : > { %15674 = vmatpush3.msra.mxu1 %v10918_v63  ;;  %15729 = vmatprep.subr.mxu0 %v11339_v30  ;;  %v15173_v5 = vpop.f32.mrf.mxu1  ;;  %v10881_v63 = vld [vmem:[#allocation2 + $0x25] sm:$0xff]  ;;  %v10882_v14 = vld [vmem:[#allocation2 + $0x2d] sm:$0xff] }
 0x536   : > { %15466 = vmatmul.mubr.f32.gmra.mxu0 %v9696_v7  ;;  %v18304_v27 = vadd.f32 %v15173_v5, %v15087_v8  ;;  %v8270_v11 = vpop.f32.mrf.mxu0  ;;  %v10883_v7 = vld [vmem:[#allocation2 + $0x35] sm:$0xff] }
 0x537   : > { %15552 = vmatmul.mubr.f32.gmra.mxu1 %v18302_v50  ;;  %15468 = vmatprep.mubr.f32.mxu0 %v9697_v12  ;;  %v8604_v3 = vpop.f32.mrf.mxu1 }
 0x538   : > { %15554 = vmatprep.mubr.f32.mxu1 %v18307_v18  ;;  %v18310_v20 = vadd.f32 %v8604_v3, %v8270_v11 }
 0x539   : > { %v15090_v44 = vpop.f32.mrf.mxu0  ;;  %v15176_v38 = vpop.f32.mrf.mxu1 }
 0x53a   : > { %15469 = vmatmul.mubr.f32.gmra.mxu0 %v9698_v59  ;;  %v18314_v41 = vadd.f32 %v15176_v38, %v15090_v44  ;;  %v11337_v59 = vld [vmem:[#allocation8 + $0xd68] sm:$0xff] }
 0x53b   : > { %15555 = vmatmul.mubr.f32.gmra.mxu1 %v18312_v55  ;;  %15589 = vmatprep.mubr.f32.mxu0 %v18193_v17  ;;  %v8280_v54 = vpop.f32.mrf.mxu0  ;;  %v8614_v48 = vpop.f32.mrf.mxu1 }
 0x53c   : > { %15675 = vmatprep.mubr.f32.mxu1 %v10881_v63  ;;  %v18318_v21 = vadd.f32 %v8614_v48, %v8280_v54 }
 0x53d   : > { %v15093_v26 = vpop.f32.mrf.mxu0  ;;  %v15179_v10 = vpop.f32.mrf.mxu1 }
 0x53e   : > { %15590 = vmatmul.mubr.f32.vlgmr.msra.gmra.mxu0 %v18196_v60  ;;  %v18321_v8 = vadd.f32 %v15179_v10, %v15093_v26  ;;  %v10884_v60 = vld [vmem:[#allocation2 + $0x3d] sm:$0xff]  ;;  %v11336_v26 = vld [vmem:[#allocation8 + $0xd60] sm:$0xff] }
 0x53f   : > { %15676 = vmatmul.mubr.f32.vlgmr.msra.gmra.mxu1 %v10882_v14  ;;  %15592 = vmatprep.mubr.f32.mxu0 %v18199_v19  ;;  %v8290_v17 = vpop.f32.mrf.mxu0  ;;  %v8624_v5 = vpop.f32.mrf.mxu1  ;;  %v10885_v19 = vld [vmem:[#allocation2 + $0x45] sm:$0xff] }
 0x540   : > { %15678 = vmatprep.mubr.f32.mxu1 %v10883_v7  ;;  %15730 = vmatpush3.msra.mxu0 %v11339_v30  ;;  %v18324_v12 = vadd.f32 %v8624_v5, %v8290_v17  ;;  %v10888_v5 = vld [vmem:[#allocation2 + $0x5d] sm:$0xff] }
 0x541   : > { %15731 = vmatprep.subr.mxu0 %v11338_v22  ;;  %v15096_v11 = vpop.f32.mrf.mxu0  ;;  %v15182_v3 = vpop.f32.mrf.mxu1 }
 0x542   : > { %15593 = vmatmul.mubr.f32.gmra.mxu0 %v18202_v47  ;;  %v18327_v44 = vadd.f32 %v15182_v3, %v15096_v11  ;;  %v10886_v47 = vld [vmem:[#allocation2 + $0x4d] sm:$0xff]  ;;  %v10889_v3 = vld [vmem:[#allocation2 + $0x65] sm:$0xff] }
 0x543   : > { %15679 = vmatmul.mubr.f32.gmra.mxu1 %v10884_v60  ;;  %15595 = vmatprep.mubr.f32.mxu0 %v18205_v34  ;;  %v8300_v38 = vpop.f32.mrf.mxu0  ;;  %v8634_v30 = vpop.f32.mrf.mxu1  ;;  %v10887_v34 = vld [vmem:[#allocation2 + $0x55] sm:$0xff] }
 0x544   : > { %15681 = vmatprep.mubr.f32.mxu1 %v10885_v19  ;;  %15732 = vmatpush3.msra.mxu0 %v11338_v22  ;;  %v18330_v63 = vadd.f32 %v8634_v30, %v8300_v38  ;;  %v11334_v30 = vld [vmem:[#allocation8 + $0xd50] sm:$0xff] }
 0x545   : > { %15733 = vmatprep.subr.mxu0 %v11337_v59  ;;  %v15099_v54 = vpop.f32.mrf.mxu0 }
 0x546   : > { %v15185_v48 = vpop.f32.mrf.mxu1  ;;  %15596 = vmatmul.mubr.f32.gmra.mxu0 %v18208_v35  ;;  %v11335_v35 = vld [vmem:[#allocation8 + $0xd58] sm:$0xff] }
 0x547   : > { %v18333_v10 = vadd.f32 %v15185_v48, %v15099_v54  ;;  %15682 = vmatmul.mubr.f32.gmra.mxu1 %v10886_v47  ;;  %15598 = vmatprep.mubr.f32.mxu0 %v18211_v0  ;;  %v8310_v14 = vpop.f32.mrf.mxu0 }
 0x548   : > { %15684 = vmatprep.mubr.f32.mxu1 %v10887_v34  ;;  %v8644_v7 = vpop.f32.mrf.mxu1  ;;  %15734 = vmatpush3.msra.mxu0 %v11337_v59 }
 0x549   : > { %v18336_v22 = vadd.f32 %v8644_v7, %v8310_v14  ;;  %15735 = vmatprep.subr.mxu0 %v11336_v26  ;;  %v11333_v7 = vld [vmem:[#allocation8 + $0xd48] sm:$0xff] }
 0x54a   : > { %v15102_v17 = vpop.f32.mrf.mxu0  ;;  %15599 = vmatmul.mubr.f32.gmra.mxu0 %v18214_v62  ;;  %v10890_v62 = vld [vmem:[#allocation2 + $0x6d] sm:$0xff] }
 0x54b   : > { %v15188_v11 = vpop.f32.mrf.mxu1  ;;  %15685 = vmatmul.mubr.f32.gmra.mxu1 %v10888_v5  ;;  %15601 = vmatprep.mubr.f32.mxu0 %v18217_v4  ;;  %v10891_v4 = vld [vmem:[#allocation2 + $0x75] sm:$0xff] }
 0x54c   : > { %v18340_v60 = vadd.f32 %v15188_v11, %v15102_v17  ;;  %15687 = vmatprep.mubr.f32.mxu1 %v10889_v3  ;;  %v8320_v0 = vpop.f32.mrf.mxu0  ;;  %15736 = vmatpush3.msra.mxu0 %v11336_v26 }
 0x54d   : > { %v8654_v19 = vpop.f32.mrf.mxu1  ;;  %15737 = vmatprep.subr.mxu0 %v11335_v35 }
 0x54e   : > { %v18342_v59 = vadd.f32 %v8654_v19, %v8320_v0  ;;  %v15105_v38 = vpop.f32.mrf.mxu0  ;;  %15602 = vmatmul.mubr.f32.gmra.mxu0 %v18220_v43  ;;  %v10892_v43 = vld [vmem:[#allocation2 + $0x7d] sm:$0xff]  ;;  %v11332_v19 = vld [vmem:[#allocation8 + $0xd40] sm:$0xff] }
 0x54f   : > { %v15191_v54 = vpop.f32.mrf.mxu1  ;;  %15688 = vmatmul.mubr.f32.gmra.mxu1 %v10890_v62  ;;  %15604 = vmatprep.mubr.f32.mxu0 %v18223_v9  ;;  %v10893_v9 = vld [vmem:[#allocation2 + $0x85] sm:$0xff] }
 0x550   : > { %v18346_v48 = vadd.f32 %v15191_v54, %v15105_v38  ;;  %15690 = vmatprep.mubr.f32.mxu1 %v10891_v4  ;;  %v8330_v47 = vpop.f32.mrf.mxu0  ;;  %15738 = vmatpush3.msra.mxu0 %v11335_v35 }
 0x551   : > { %v8664_v26 = vpop.f32.mrf.mxu1  ;;  %15739 = vmatprep.subr.mxu0 %v11334_v30 }
 0x552   : > { %v18348_v34 = vadd.f32 %v8664_v26, %v8330_v47  ;;  %v15108_v14 = vpop.f32.mrf.mxu0  ;;  %15605 = vmatmul.mubr.f32.gmra.mxu0 %v18226_v42  ;;  %v10894_v42 = vld [vmem:[#allocation2 + $0x8d] sm:$0xff] }
 0x553   : > { %v15194_v17 = vpop.f32.mrf.mxu1  ;;  %15691 = vmatmul.mubr.f32.gmra.mxu1 %v10892_v43  ;;  %15607 = vmatprep.mubr.f32.mxu0 %v18229_v25  ;;  %v10895_v25 = vld [vmem:[#allocation2 + $0x95] sm:$0xff]  ;;  %v11331_v26 = vld [vmem:[#allocation8 + $0xd38] sm:$0xff] }
 0x554   : > { %v18352_v5 = vadd.f32 %v15194_v17, %v15108_v14  ;;  %15693 = vmatprep.mubr.f32.mxu1 %v10893_v9  ;;  %v8340_v11 = vpop.f32.mrf.mxu0  ;;  %15740 = vmatpush3.msra.mxu0 %v11334_v30 }
 0x555   : > { %v8674_v35 = vpop.f32.mrf.mxu1  ;;  %15741 = vmatprep.subr.mxu0 %v11333_v7 }
 0x556   : > { %v18354_v3 = vadd.f32 %v8674_v35, %v8340_v11  ;;  %v15111_v0 = vpop.f32.mrf.mxu0  ;;  %15608 = vmatmul.mubr.f32.gmra.mxu0 %v18232_v39  ;;  %v10896_v39 = vld [vmem:[#allocation2 + $0x9d] sm:$0xff] }
 0x557   : > { %v15197_v38 = vpop.f32.mrf.mxu1  ;;  %15694 = vmatmul.mubr.f32.gmra.mxu1 %v10894_v42  ;;  %15610 = vmatprep.mubr.f32.mxu0 %v18235_v6  ;;  %v10897_v6 = vld [vmem:[#allocation2 + $0xa5] sm:$0xff] }
 0x558   : > { %v18358_v62 = vadd.f32 %v15197_v38, %v15111_v0  ;;  %15696 = vmatprep.mubr.f32.mxu1 %v10895_v25  ;;  %v8350_v54 = vpop.f32.mrf.mxu0  ;;  %15742 = vmatpush3.msra.mxu0 %v11333_v7  ;;  %v11330_v35 = vld [vmem:[#allocation8 + $0xd30] sm:$0xff] }
 0x559   : > { %v8684_v30 = vpop.f32.mrf.mxu1  ;;  %15743 = vmatprep.subr.mxu0 %v11332_v19 }
 0x55a   : > { %v18360_v4 = vadd.f32 %v8684_v30, %v8350_v54  ;;  %v15114_v47 = vpop.f32.mrf.mxu0  ;;  %15611 = vmatmul.mubr.f32.gmra.mxu0 %v18238_v23  ;;  %v10898_v23 = vld [vmem:[#allocation2 + $0xad] sm:$0xff]  ;;  %v11329_v30 = vld [vmem:[#allocation8 + $0xd28] sm:$0xff] }
 0x55b   : > { %v15200_v14 = vpop.f32.mrf.mxu1  ;;  %15697 = vmatmul.mubr.f32.gmra.mxu1 %v10896_v39  ;;  %15613 = vmatprep.mubr.f32.mxu0 %v18241_v40  ;;  %v10899_v40 = vld [vmem:[#allocation2 + $0xb5] sm:$0xff] }
 0x55c   : > { %v18364_v43 = vadd.f32 %v15200_v14, %v15114_v47  ;;  %15699 = vmatprep.mubr.f32.mxu1 %v10897_v6  ;;  %v8360_v17 = vpop.f32.mrf.mxu0  ;;  %15744 = vmatpush3.msra.mxu0 %v11332_v19 }
 0x55d   : > { %v8694_v7 = vpop.f32.mrf.mxu1  ;;  %15745 = vmatprep.subr.mxu0 %v11331_v26 }
 0x55e   : > { %v18366_v9 = vadd.f32 %v8694_v7, %v8360_v17  ;;  %v15117_v11 = vpop.f32.mrf.mxu0  ;;  %15614 = vmatmul.mubr.f32.gmra.mxu0 %v18244_v52  ;;  %v10900_v52 = vld [vmem:[#allocation2 + $0xbd] sm:$0xff]  ;;  %v11328_v7 = vld [vmem:[#allocation8 + $0xd20] sm:$0xff] }
 0x55f   : > { %v15203_v0 = vpop.f32.mrf.mxu1  ;;  %15700 = vmatmul.mubr.f32.gmra.mxu1 %v10898_v23  ;;  %15616 = vmatprep.mubr.f32.mxu0 %v18247_v61  ;;  %v10901_v61 = vld [vmem:[#allocation2 + $0xc5] sm:$0xff] }
 0x560   : > { %v18370_v42 = vadd.f32 %v15203_v0, %v15117_v11  ;;  %15702 = vmatprep.mubr.f32.mxu1 %v10899_v40  ;;  %v8370_v38 = vpop.f32.mrf.mxu0  ;;  %15746 = vmatpush3.msra.mxu0 %v11331_v26 }
 0x561   : > { %v8704_v19 = vpop.f32.mrf.mxu1  ;;  %15747 = vmatprep.subr.mxu0 %v11330_v35 }
 0x562   : > { %v18372_v25 = vadd.f32 %v8704_v19, %v8370_v38  ;;  %v15120_v54 = vpop.f32.mrf.mxu0  ;;  %15617 = vmatmul.mubr.f32.gmra.mxu0 %v18250_v13  ;;  %v10902_v13 = vld [vmem:[#allocation2 + $0xcd] sm:$0xff] }
 0x563   : > { %v15206_v47 = vpop.f32.mrf.mxu1  ;;  %15703 = vmatmul.mubr.f32.gmra.mxu1 %v10900_v52  ;;  %15619 = vmatprep.mubr.f32.mxu0 %v18253_v24  ;;  %v10903_v24 = vld [vmem:[#allocation2 + $0xd5] sm:$0xff]  ;;  %v11327_v19 = vld [vmem:[#allocation8 + $0xd18] sm:$0xff] }
 0x564   : > { %v18376_v39 = vadd.f32 %v15206_v47, %v15120_v54  ;;  %15705 = vmatprep.mubr.f32.mxu1 %v10901_v61  ;;  %v8380_v14 = vpop.f32.mrf.mxu0  ;;  %15748 = vmatpush3.msra.mxu0 %v11330_v35 }
 0x565   : > { %v8714_v26 = vpop.f32.mrf.mxu1  ;;  %15749 = vmatprep.subr.mxu0 %v11329_v30 }
 0x566   : > { %v18378_v6 = vadd.f32 %v8714_v26, %v8380_v14  ;;  %v15123_v17 = vpop.f32.mrf.mxu0  ;;  %15620 = vmatmul.mubr.f32.gmra.mxu0 %v18256_v16  ;;  %v10904_v16 = vld [vmem:[#allocation2 + $0xdd] sm:$0xff] }
 0x567   : > { %v15209_v11 = vpop.f32.mrf.mxu1  ;;  %15706 = vmatmul.mubr.f32.gmra.mxu1 %v10902_v13  ;;  %15622 = vmatprep.mubr.f32.mxu0 %v18259_v45  ;;  %v10905_v45 = vld [vmem:[#allocation2 + $0xe5] sm:$0xff] }
 0x568   : > { %v18382_v23 = vadd.f32 %v15209_v11, %v15123_v17  ;;  %15708 = vmatprep.mubr.f32.mxu1 %v10903_v24  ;;  %v8390_v0 = vpop.f32.mrf.mxu0  ;;  %15750 = vmatpush3.msra.mxu0 %v11329_v30  ;;  %v11326_v26 = vld [vmem:[#allocation8 + $0xd10] sm:$0xff]  ;;  %v8779_v17 = vadd.f32 %v18267_v49, %v18265_v31  ;;  %v10907_v11 = vld [vmem:[#allocation2 + $0xf5] sm:$0xff] }
 0x569   : > { %v8724_v35 = vpop.f32.mrf.mxu1  ;;  %15751 = vmatprep.subr.mxu0 %v11328_v7  ;;  %v11325_v31 = vld [vmem:[#allocation8 + $0xd08] sm:$0xff] }
 0x56a   : > { %v18384_v40 = vadd.f32 %v8724_v35, %v8390_v0  ;;  %v15126_v38 = vpop.f32.mrf.mxu0  ;;  %15623 = vmatmul.mubr.f32.gmra.mxu0 %v18262_v36  ;;  %v10906_v36 = vld [vmem:[#allocation2 + $0xed] sm:$0xff] }
 0x56b   : > { %v15212_v54 = vpop.f32.mrf.mxu1  ;;  %15709 = vmatmul.mubr.f32.gmra.mxu1 %v10904_v16  ;;  %15625 = vmatprep.mubr.f32.mxu0 %v18269_v15 }
 0x56c   : > { %v18388_v52 = vadd.f32 %v15212_v54, %v15126_v38  ;;  %15711 = vmatprep.mubr.f32.mxu1 %v10905_v45  ;;  %v8400_v47 = vpop.f32.mrf.mxu0  ;;  %15752 = vmatpush3.msra.mxu0 %v11328_v7  ;;  %v10908_v38 = vld [vmem:[#allocation2 + $0xfd] sm:$0xff] }
 0x56d   : > { %v8734_v30 = vpop.f32.mrf.mxu1  ;;  %15753 = vmatprep.subr.mxu0 %v11327_v19 }
 0x56e   : > { %v18390_v61 = vadd.f32 %v8734_v30, %v8400_v47  ;;  %v15247_v14 = vpop.f32.mrf.mxu0  ;;  %15626 = vmatmul.mubr.f32.gmra.mxu0 %v18274_v33  ;;  %v10910_v30 = vld [vmem:[#allocation2 + $0x10d] sm:$0xff] }
 0x56f   : > { %v9186_v15 = vadd.f32 %v15247_v14, %v18191_v46  ;;  %v15333_v13 = vpop.f32.mrf.mxu1  ;;  %15712 = vmatmul.mubr.f32.gmra.mxu1 %v10906_v36  ;;  %15628 = vmatprep.mubr.f32.mxu0 %v18277_v58  ;;  %v10909_v58 = vld [vmem:[#allocation2 + $0x105] sm:$0xff]  ;;  %v11324_v14 = vld [vmem:[#allocation8 + $0xd00] sm:$0xff] }
 0x570   : > { %15714 = vmatprep.mubr.f32.mxu1 %v10907_v11  ;;  %v8970_v7 = vpop.f32.mrf.mxu0  ;;  %15754 = vmatpush3.msra.mxu0 %v11327_v19  ;;  %v10912_v11 = vld [vmem:[#allocation2 + $0x11d] sm:$0xff] }
 0x571   : > { %v18397_v24 = vadd.f32 %v15333_v13, %v9186_v15  ;;  %v9185_v0 = vadd.f32 %v8970_v7, %v8779_v17  ;;  %v9376_v35 = vpop.f32.mrf.mxu1  ;;  %15755 = vmatprep.subr.mxu0 %v11326_v26 }
 0x572   : > { %v15250_v33 = vpop.f32.mrf.mxu0  ;;  %15629 = vmatmul.mubr.f32.gmra.mxu0 %v18282_v53 }
 0x573   : > { %v18400_v49 = vadd.f32 %v9376_v35, %v9185_v0  ;;  %v9188_v46 = vadd.f32 %v15250_v33, %v18272_v32  ;;  %v15336_v16 = vpop.f32.mrf.mxu1  ;;  %15715 = vmatmul.mubr.f32.gmra.mxu1 %v10908_v38  ;;  %15631 = vmatprep.mubr.f32.mxu0 %v18287_v37  ;;  %v10509_v33 = vld [vmem:[#allocation2 + $0x134] sm:$0xff] }
 0x574   : > { %15717 = vmatprep.mubr.f32.mxu1 %v10909_v58  ;;  %v8980_v19 = vpop.f32.mrf.mxu0  ;;  %15756 = vmatpush3.msra.mxu0 %v11326_v26  ;;  %v10911_v26 = vld [vmem:[#allocation2 + $0x115] sm:$0xff] }
 0x575   : > { %v18404_v54 = vadd.f32 %v15336_v16, %v9188_v46  ;;  %v9187_v45 = vadd.f32 %v8980_v19, %v18280_v51  ;;  %v9386_v47 = vpop.f32.mrf.mxu1  ;;  %15757 = vmatprep.subr.mxu0 %v11325_v31  ;;  %v10914_v16 = vld [vmem:[#allocation2 + $0x12d] sm:$0xff]  ;;  %v10510_v19 = vld [vmem:[#allocation2 + $0x13c] sm:$0xff] }
 0x576   : > { %v15253_v53 = vpop.f32.mrf.mxu0  ;;  %15632 = vmatmul.mubr.f32.gmra.mxu0 %v18292_v29 }
 0x577   : > { %v18408_v32 = vadd.f32 %v9386_v47, %v9187_v45  ;;  %v9190_v36 = vadd.f32 %v15253_v53, %v18284_v57  ;;  %v15339_v37 = vpop.f32.mrf.mxu1  ;;  %15718 = vmatmul.mubr.f32.gmra.mxu1 %v10910_v30  ;;  %15634 = vmatprep.mubr.f32.mxu0 %v18297_v1  ;;  %v10913_v1 = vld [vmem:[#allocation2 + $0x125] sm:$0xff]  ;;  %v10916_v47 = vld [vmem:[#allocation2 + $0x13d] sm:$0xff] }
 0x578   : > { %15720 = vmatprep.mubr.f32.mxu1 %v10911_v26  ;;  %v8990_v17 = vpop.f32.mrf.mxu0  ;;  %15758 = vmatpush3.msra.mxu0 %v11325_v31 }
 0x579   : > { %v18412_v51 = vadd.f32 %v15339_v37, %v9190_v36  ;;  %v9189_v15 = vadd.f32 %v8990_v17, %v18290_v56  ;;  %v9396_v13 = vpop.f32.mrf.mxu1  ;;  %15759 = vmatprep.subr.mxu0 %v11324_v14 }
 0x57a   : > { %v15256_v29 = vpop.f32.mrf.mxu0  ;;  %15635 = vmatmul.mubr.f32.gmra.mxu0 %v18302_v50  ;;  %v10915_v50 = vld [vmem:[#allocation2 + $0x135] sm:$0xff] }
 0x57b   : > { %v18416_v7 = vadd.f32 %v9396_v13, %v9189_v15  ;;  %v9192_v57 = vadd.f32 %v15256_v29, %v18294_v28  ;;  %v15342_v0 = vpop.f32.mrf.mxu1  ;;  %15721 = vmatmul.mubr.f32.gmra.mxu1 %v10912_v11  ;;  %15637 = vmatprep.mubr.f32.mxu0 %v18307_v18  ;;  %v11288_v29 = vld [vmem:[#allocation2 + $0x2e] sm:$0xff] }
 0x57c   : > { %15723 = vmatprep.mubr.f32.mxu1 %v10913_v1  ;;  %v9000_v35 = vpop.f32.mrf.mxu0  ;;  %15760 = vmatpush3.msra.mxu0 %v11324_v14 }
 0x57d   : > { %v18420_v56 = vadd.f32 %v15342_v0, %v9192_v57  ;;  %v9191_v38 = vadd.f32 %v9000_v35, %v18300_v2  ;;  %v9406_v31 = vpop.f32.mrf.mxu1 }
 0x57e   : > { %v15259_v46 = vpop.f32.mrf.mxu0  ;;  %15638 = vmatmul.mubr.f32.gmra.mxu0 %v18312_v55  ;;  %v11287_v55 = vld [vmem:[#allocation2 + $0x26] sm:$0xff] }
 0x57f   : > { %v18424_v28 = vadd.f32 %v9406_v31, %v9191_v38  ;;  %v9194_v58 = vadd.f32 %v15259_v46, %v18304_v27  ;;  %v15345_v18 = vpop.f32.mrf.mxu1  ;;  %15724 = vmatmul.mubr.f32.gmra.mxu1 %v10914_v16  ;;  %15640 = vmatprep.mubr.f32.mxu0 %v10509_v33  ;;  %v11290_v31 = vld [vmem:[#allocation2 + $0x3e] sm:$0xff] }
 0x580   : > { %v9010_v45 = vpop.f32.mrf.mxu0  ;;  %15726 = vmatprep.mubr.f32.mxu1 %v10915_v50 }
 0x581   : > { %v18427_v53 = vadd.f32 %v15345_v18, %v9194_v58  ;;  %v9193_v2 = vadd.f32 %v9010_v45, %v18310_v20  ;;  %v9416_v30 = vpop.f32.mrf.mxu1  ;;  %v11289_v20 = vld [vmem:[#allocation2 + $0x36] sm:$0xff] }
 0x582   : > { %v15262_v14 = vpop.f32.mrf.mxu0  ;;  %15641 = vmatmul.mubr.f32.gmra.mxu0 %v10510_v19 }
 0x583   : > { %v18430_v36 = vadd.f32 %v9416_v30, %v9193_v2  ;;  %v9196_v37 = vadd.f32 %v15262_v14, %v18314_v41  ;;  %v15348_v27 = vpop.f32.mrf.mxu1  ;;  %15761 = vmatprep.mubr.f32.mxu0 %v11287_v55  ;;  %15727 = vmatmul.mubr.f32.gmra.mxu1 %v10916_v47  ;;  %v11292_v47 = vld [vmem:[#allocation2 + $0x4e] sm:$0xff] }
 0x584   : > { %v9020_v26 = vpop.f32.mrf.mxu0 }
 0x585   : > { %v18433_v17 = vadd.f32 %v15348_v27, %v9196_v37  ;;  %v9195_v15 = vadd.f32 %v9020_v26, %v18318_v21  ;;  %v9426_v13 = vpop.f32.mrf.mxu1  ;;  %v11291_v21 = vld [vmem:[#allocation2 + $0x46] sm:$0xff] }
 0x586   : > { %v15265_v11 = vpop.f32.mrf.mxu0  ;;  %15762 = vmatmul.mubr.f32.vlgmr.msra.gmra.mxu0 %v11288_v29 }
 0x587   : > { %v18436_v57 = vadd.f32 %v9426_v13, %v9195_v15  ;;  %v9198_v0 = vadd.f32 %v15265_v11, %v18321_v8  ;;  %v15351_v1 = vpop.f32.mrf.mxu1  ;;  %15764 = vmatprep.mubr.f32.mxu0 %v11289_v20  ;;  %v11294_v15 = vld [vmem:[#allocation2 + $0x5e] sm:$0xff] }
 0x588   : > { %v9030_v41 = vpop.f32.mrf.mxu0 }
 0x589   : > { %v18439_v35 = vadd.f32 %v15351_v1, %v9198_v0  ;;  %v9197_v33 = vadd.f32 %v9030_v41, %v18324_v12  ;;  %v9436_v38 = vpop.f32.mrf.mxu1  ;;  %v11293_v12 = vld [vmem:[#allocation2 + $0x56] sm:$0xff] }
 0x58a   : > { %v15268_v50 = vpop.f32.mrf.mxu0  ;;  %15765 = vmatmul.mubr.f32.gmra.mxu0 %v11290_v31 }
 0x58b   : > { %v18442_v46 = vadd.f32 %v9436_v38, %v9197_v33  ;;  %v9200_v16 = vadd.f32 %v15268_v50, %v18327_v44  ;;  %v15354_v58 = vpop.f32.mrf.mxu1  ;;  %15767 = vmatprep.mubr.f32.mxu0 %v11291_v21  ;;  %v11296_v33 = vld [vmem:[#allocation2 + $0x6e] sm:$0xff] }
 0x58c   : > { %v9040_v18 = vpop.f32.mrf.mxu0 }
 0x58d   : > { %v18445_v8 = vadd.f32 %v15354_v58, %v9200_v16  ;;  %v9199_v19 = vadd.f32 %v9040_v18, %v18330_v63  ;;  %v9446_v45 = vpop.f32.mrf.mxu1  ;;  %v11295_v63 = vld [vmem:[#allocation2 + $0x66] sm:$0xff] }
 0x58e   : > { %v15271_v2 = vpop.f32.mrf.mxu0  ;;  %15768 = vmatmul.mubr.f32.gmra.mxu0 %v11292_v47 }
 0x58f   : > { %v18448_v30 = vadd.f32 %v9446_v45, %v9199_v19  ;;  %v9202_v14 = vadd.f32 %v15271_v2, %v18333_v10  ;;  %v15357_v55 = vpop.f32.mrf.mxu1  ;;  %15770 = vmatprep.mubr.f32.mxu0 %v11293_v12  ;;  %v11298_v19 = vld [vmem:[#allocation2 + $0x7e] sm:$0xff] }
 0x590   : > { %v9050_v37 = vpop.f32.mrf.mxu0 }
 0x591   : > { %v18451_v44 = vadd.f32 %v15357_v55, %v9202_v14  ;;  %v9201_v27 = vadd.f32 %v9050_v37, %v18336_v22  ;;  %v9456_v26 = vpop.f32.mrf.mxu1  ;;  %v11297_v22 = vld [vmem:[#allocation2 + $0x76] sm:$0xff] }
 0x592   : > { %v15274_v13 = vpop.f32.mrf.mxu0  ;;  %15771 = vmatmul.mubr.f32.gmra.mxu0 %v11294_v15 }
 0x593   : > { %v18454_v29 = vadd.f32 %v9456_v26, %v9201_v27  ;;  %v9204_v11 = vadd.f32 %v15274_v13, %v18340_v60  ;;  %v15360_v20 = vpop.f32.mrf.mxu1  ;;  %15773 = vmatprep.mubr.f32.mxu0 %v11295_v63  ;;  %v11300_v27 = vld [vmem:[#allocation2 + $0x8e] sm:$0xff] }
 0x594   : > { %v9060_v0 = vpop.f32.mrf.mxu0 }
 0x595   : > { %v18457_v10 = vadd.f32 %v15360_v20, %v9204_v11  ;;  %v9203_v1 = vadd.f32 %v9060_v0, %v18342_v59  ;;  %v9466_v41 = vpop.f32.mrf.mxu1  ;;  %v11299_v59 = vld [vmem:[#allocation2 + $0x86] sm:$0xff] }
 0x596   : > { %v15277_v38 = vpop.f32.mrf.mxu0  ;;  %15774 = vmatmul.mubr.f32.gmra.mxu0 %v11296_v33 }
 0x597   : > { %v18460_v31 = vadd.f32 %v9466_v41, %v9203_v1  ;;  %v9206_v50 = vadd.f32 %v15277_v38, %v18346_v48  ;;  %v15363_v21 = vpop.f32.mrf.mxu1  ;;  %15776 = vmatprep.mubr.f32.mxu0 %v11297_v22  ;;  %v11302_v1 = vld [vmem:[#allocation2 + $0x9e] sm:$0xff] }
 0x598   : > { %v9070_v16 = vpop.f32.mrf.mxu0 }
 0x599   : > { %v18463_v60 = vadd.f32 %v15363_v21, %v9206_v50  ;;  %v9205_v58 = vadd.f32 %v9070_v16, %v18348_v34  ;;  %v9476_v18 = vpop.f32.mrf.mxu1  ;;  %v11301_v34 = vld [vmem:[#allocation2 + $0x96] sm:$0xff] }
 0x59a   : > { %v15280_v45 = vpop.f32.mrf.mxu0  ;;  %15777 = vmatmul.mubr.f32.gmra.mxu0 %v11298_v19 }
 0x59b   : > { %v18466_v47 = vadd.f32 %v9476_v18, %v9205_v58  ;;  %v9208_v2 = vadd.f32 %v15280_v45, %v18352_v5  ;;  %v15366_v12 = vpop.f32.mrf.mxu1  ;;  %15779 = vmatprep.mubr.f32.mxu0 %v11299_v59  ;;  %v11304_v58 = vld [vmem:[#allocation2 + $0xae] sm:$0xff] }
 0x59c   : > { %v9080_v14 = vpop.f32.mrf.mxu0 }
 0x59d   : > { %v18469_v48 = vadd.f32 %v15366_v12, %v9208_v2  ;;  %v9207_v55 = vadd.f32 %v9080_v14, %v18354_v3  ;;  %v9486_v37 = vpop.f32.mrf.mxu1  ;;  %v11303_v3 = vld [vmem:[#allocation2 + $0xa6] sm:$0xff] }
 0x59e   : > { %v15283_v26 = vpop.f32.mrf.mxu0  ;;  %15780 = vmatmul.mubr.f32.gmra.mxu0 %v11300_v27 }
 0x59f   : > { %v18472_v15 = vadd.f32 %v9486_v37, %v9207_v55  ;;  %v9210_v13 = vadd.f32 %v15283_v26, %v18358_v62  ;;  %v15369_v63 = vpop.f32.mrf.mxu1  ;;  %15782 = vmatprep.mubr.f32.mxu0 %v11301_v34  ;;  %v11306_v55 = vld [vmem:[#allocation2 + $0xbe] sm:$0xff] }
 0x5a0   : > { %v9090_v11 = vpop.f32.mrf.mxu0 }
 0x5a1   : > { %v18475_v5 = vadd.f32 %v15369_v63, %v9210_v13  ;;  %v9209_v20 = vadd.f32 %v9090_v11, %v18360_v4  ;;  %v9496_v0 = vpop.f32.mrf.mxu1  ;;  %v11305_v4 = vld [vmem:[#allocation2 + $0xb6] sm:$0xff] }
 0x5a2   : > { %v15286_v41 = vpop.f32.mrf.mxu0  ;;  %15783 = vmatmul.mubr.f32.gmra.mxu0 %v11302_v1 }
 0x5a3   : > { %v18478_v33 = vadd.f32 %v9496_v0, %v9209_v20  ;;  %v9212_v38 = vadd.f32 %v15286_v41, %v18364_v43  ;;  %v15372_v22 = vpop.f32.mrf.mxu1  ;;  %15785 = vmatprep.mubr.f32.mxu0 %v11303_v3  ;;  %v11308_v20 = vld [vmem:[#allocation2 + $0xce] sm:$0xff] }
 0x5a4   : > { %v9100_v50 = vpop.f32.mrf.mxu0 }
 0x5a5   : > { %v18481_v62 = vadd.f32 %v15372_v22, %v9212_v38  ;;  %v9211_v21 = vadd.f32 %v9100_v50, %v18366_v9  ;;  %v9506_v16 = vpop.f32.mrf.mxu1  ;;  %v11307_v9 = vld [vmem:[#allocation2 + $0xc6] sm:$0xff] }
 0x5a6   : > { %v15289_v18 = vpop.f32.mrf.mxu0  ;;  %15786 = vmatmul.mubr.f32.gmra.mxu0 %v11304_v58 }
 0x5a7   : > { %v18484_v19 = vadd.f32 %v9506_v16, %v9211_v21  ;;  %v9214_v45 = vadd.f32 %v15289_v18, %v18370_v42  ;;  %v15375_v59 = vpop.f32.mrf.mxu1  ;;  %15788 = vmatprep.mubr.f32.mxu0 %v11305_v4  ;;  %v11310_v21 = vld [vmem:[#allocation2 + $0xde] sm:$0xff] }
 0x5a8   : > { %v9110_v2 = vpop.f32.mrf.mxu0 }
 0x5a9   : > { %v18487_v43 = vadd.f32 %v15375_v59, %v9214_v45  ;;  %v9213_v12 = vadd.f32 %v9110_v2, %v18372_v25  ;;  %v9516_v14 = vpop.f32.mrf.mxu1  ;;  %v11309_v25 = vld [vmem:[#allocation2 + $0xd6] sm:$0xff] }
 0x5aa   : > { %v15292_v37 = vpop.f32.mrf.mxu0  ;;  %15789 = vmatmul.mubr.f32.gmra.mxu0 %v11306_v55 }
 0x5ab   : > { %v18490_v27 = vadd.f32 %v9516_v14, %v9213_v12  ;;  %v9216_v26 = vadd.f32 %v15292_v37, %v18376_v39  ;;  %v15378_v34 = vpop.f32.mrf.mxu1  ;;  %15791 = vmatprep.mubr.f32.mxu0 %v11307_v9  ;;  %v11312_v12 = vld [vmem:[#allocation2 + $0xee] sm:$0xff] }
 0x5ac   : > { %v9120_v13 = vpop.f32.mrf.mxu0 }
 0x5ad   : > { %v18493_v42 = vadd.f32 %v15378_v34, %v9216_v26  ;;  %v9215_v63 = vadd.f32 %v9120_v13, %v18378_v6  ;;  %v9526_v11 = vpop.f32.mrf.mxu1  ;;  %v11311_v6 = vld [vmem:[#allocation2 + $0xe6] sm:$0xff] }
 0x5ae   : > { %v15295_v0 = vpop.f32.mrf.mxu0  ;;  %15792 = vmatmul.mubr.f32.gmra.mxu0 %v11308_v20 }
 0x5af   : > { %v18496_v1 = vadd.f32 %v9526_v11, %v9215_v63  ;;  %v9218_v41 = vadd.f32 %v15295_v0, %v18382_v23  ;;  %v15381_v3 = vpop.f32.mrf.mxu1  ;;  %15794 = vmatprep.mubr.f32.mxu0 %v11309_v25  ;;  %v11314_v63 = vld [vmem:[#allocation2 + $0xfe] sm:$0xff] }
 0x5b0   : > { %v9130_v38 = vpop.f32.mrf.mxu0 }
 0x5b1   : > { %v18499_v39 = vadd.f32 %v15381_v3, %v9218_v41  ;;  %v9217_v22 = vadd.f32 %v9130_v38, %v18384_v40  ;;  %v9536_v50 = vpop.f32.mrf.mxu1  ;;  %v11313_v40 = vld [vmem:[#allocation2 + $0xf6] sm:$0xff] }
 0x5b2   : > { %v15298_v16 = vpop.f32.mrf.mxu0  ;;  %15795 = vmatmul.mubr.f32.gmra.mxu0 %v11310_v21 }
 0x5b3   : > { %v18502_v58 = vadd.f32 %v9536_v50, %v9217_v22  ;;  %v9220_v18 = vadd.f32 %v15298_v16, %v18388_v52  ;;  %v15384_v4 = vpop.f32.mrf.mxu1  ;;  %15797 = vmatprep.mubr.f32.mxu0 %v11311_v6  ;;  %v11316_v22 = vld [vmem:[#allocation2 + $0x10e] sm:$0xff] }
 0x5b4   : > { %v9140_v45 = vpop.f32.mrf.mxu0 }
 0x5b5   : > { %v18505_v23 = vadd.f32 %v15384_v4, %v9220_v18  ;;  %v9219_v59 = vadd.f32 %v9140_v45, %v18390_v61  ;;  %v9546_v2 = vpop.f32.mrf.mxu1  ;;  %v11315_v61 = vld [vmem:[#allocation2 + $0x106] sm:$0xff] }
 0x5b6   : > { %v15419_v14 = vpop.f32.mrf.mxu0  ;;  %15798 = vmatmul.mubr.f32.gmra.mxu0 %v11312_v12 }
 0x5b7   : > { %v18508_v55 = vadd.f32 %v9546_v2, %v9219_v59  ;;  %v9998_v37 = vadd.f32 %v15419_v14, %v18397_v24  ;;  %v15505_v9 = vpop.f32.mrf.mxu1  ;;  %15800 = vmatprep.mubr.f32.mxu0 %v11313_v40  ;;  %v11318_v59 = vld [vmem:[#allocation2 + $0x11e] sm:$0xff] }
 0x5b8   : > { %v9782_v26 = vpop.f32.mrf.mxu0 }
 0x5b9   : > { %v18511_v52 = vadd.f32 %v15505_v9, %v9998_v37  ;;  %v9997_v34 = vadd.f32 %v9782_v26, %v18400_v49  ;;  %v10188_v13 = vpop.f32.mrf.mxu1  ;;  %v11317_v49 = vld [vmem:[#allocation2 + $0x116] sm:$0xff] }
 0x5ba   : > { %v15422_v11 = vpop.f32.mrf.mxu0  ;;  %15801 = vmatmul.mubr.f32.gmra.mxu0 %v11314_v63  ;;  %v11321_v37 = vld [vmem:[#allocation2 + $0x136] sm:$0xff] }
 0x5bb   : > { %v18514_v20 = vadd.f32 %v10188_v13, %v9997_v34  ;;  %v10000_v0 = vadd.f32 %v15422_v11, %v18404_v54  ;;  %v15508_v25 = vpop.f32.mrf.mxu1  ;;  %15803 = vmatprep.mubr.f32.mxu0 %v11315_v61 }
 0x5bc   : > { %v9792_v41 = vpop.f32.mrf.mxu0 }
 0x5bd   : > { %v18517_v24 = vadd.f32 %v15508_v25, %v10000_v0  ;;  %v9999_v3 = vadd.f32 %v9792_v41, %v18408_v32  ;;  %v10198_v38 = vpop.f32.mrf.mxu1  ;;  %v11319_v32 = vld [vmem:[#allocation2 + $0x126] sm:$0xff] }
 0x5be   : > { %v15425_v50 = vpop.f32.mrf.mxu0  ;;  %15804 = vmatmul.mubr.f32.gmra.mxu0 %v11316_v22 }
 0x5bf   : > { %v18520_v21 = vadd.f32 %v10198_v38, %v9999_v3  ;;  %v10002_v16 = vadd.f32 %v15425_v50, %v18412_v51  ;;  %v15511_v6 = vpop.f32.mrf.mxu1  ;;  %15806 = vmatprep.mubr.f32.mxu0 %v11317_v49 }
 0x5c0   : > { %v9802_v18 = vpop.f32.mrf.mxu0 }
 0x5c1   : > { %v18523_v54 = vadd.f32 %v15511_v6, %v10002_v16  ;;  %v10001_v4 = vadd.f32 %v9802_v18, %v18416_v7  ;;  %v10208_v45 = vpop.f32.mrf.mxu1  ;;  %v11320_v7 = vld [vmem:[#allocation2 + $0x12e] sm:$0xff] }
 0x5c2   : > { %v15428_v2 = vpop.f32.mrf.mxu0  ;;  %15807 = vmatmul.mubr.f32.gmra.mxu0 %v11318_v59 }
 0x5c3   : > { %v18526_v12 = vadd.f32 %v10208_v45, %v10001_v4  ;;  %v10004_v14 = vadd.f32 %v15428_v2, %v18420_v56  ;;  %v15514_v40 = vpop.f32.mrf.mxu1  ;;  %15809 = vmatprep.mubr.f32.mxu0 %v11319_v32  ;;  %v11322_v56 = vld [vmem:[#allocation2 + $0x13e] sm:$0xff] }
 0x5c4   : > { %v9812_v51 = vpop.f32.mrf.mxu0 }
 0x5c5   : > { %v18529_v9 = vadd.f32 %v15514_v40, %v10004_v14  ;;  %v10003_v26 = vadd.f32 %v9812_v51, %v18424_v28  ;;  %v10218_v34 = vpop.f32.mrf.mxu1  ;;  %v15976_v28 = vld [vmem:[#allocation2] sm:$0xff] }
 0x5c6   : > { %v15431_v13 = vpop.f32.mrf.mxu0  ;;  %15810 = vmatmul.mubr.f32.gmra.mxu0 %v11320_v7  ;;  %343 = vst [vmem:[%s18539_s23 + $0x18] sm:$0xff] %v15976_v28  ;;  %344 = vst [vmem:[%s18539_s23 + $0x20] sm:$0xff] %v15976_v28 }
 0x5c7   : > { %v18532_v63 = vadd.f32 %v10218_v34, %v10003_v26  ;;  %v10006_v11 = vadd.f32 %v15431_v13, %v18427_v53  ;;  %v15517_v61 = vpop.f32.mrf.mxu1  ;;  %15812 = vmatprep.mubr.f32.mxu0 %v11321_v37  ;;  %340 = vst [vmem:[%s18539_s23] sm:$0xff] %v15976_v28  ;;  %341 = vst [vmem:[%s18539_s23 + $0x8] sm:$0xff] %v15976_v28 }
 0x5c8   : > { %v9822_v0 = vpop.f32.mrf.mxu0  ;;  %342 = vst [vmem:[%s18539_s23 + $0x10] sm:$0xff] %v15976_v28  ;;  %345 = vst [vmem:[%s18539_s23 + $0x28] sm:$0xff] %v15976_v28 }
 0x5c9   : > { %v18536_v25 = vadd.f32 %v15517_v61, %v10006_v11  ;;  %v10005_v41 = vadd.f32 %v9822_v0, %v18430_v36  ;;  %v10228_v3 = vpop.f32.mrf.mxu1  ;;  %346 = vst [vmem:[%s18539_s23 + $0x30] sm:$0xff] %v15976_v28  ;;  %347 = vst [vmem:[%s18539_s23 + $0x38] sm:$0xff] %v15976_v28 }
 0x5ca   : > { %v15434_v38 = vpop.f32.mrf.mxu0  ;;  %15813 = vmatmul.mubr.f32.gmra.mxu0 %v11322_v56  ;;  %348 = vst [vmem:[%s18539_s23 + $0x40] sm:$0xff] %v15976_v28  ;;  %349 = vst [vmem:[%s18539_s23 + $0x48] sm:$0xff] %v15976_v28 }
 0x5cb   : > { %350 = vst [vmem:[%s18539_s23 + $0x50] sm:$0xff] %v15976_v28  ;;  %351 = vst [vmem:[%s18539_s23 + $0x58] sm:$0xff] %v15976_v28  ;;  %v18582_v53 = vadd.f32 %v10228_v3, %v10005_v41  ;;  %v10008_v36 = vadd.f32 %v15434_v38, %v18433_v17  ;;  %v15520_v22 = vpop.f32.mrf.mxu1 }
 0x5cc   : > { %352 = vst [vmem:[%s18539_s23 + $0x60] sm:$0xff] %v15976_v28  ;;  %353 = vst [vmem:[%s18539_s23 + $0x68] sm:$0xff] %v15976_v28  ;;  %v9832_v50 = vpop.f32.mrf.mxu0 }
 0x5cd   : > { %354 = vst [vmem:[%s18539_s23 + $0x70] sm:$0xff] %v15976_v28  ;;  %355 = vst [vmem:[%s18539_s23 + $0x78] sm:$0xff] %v15976_v28  ;;  %v18585_v49 = vadd.f32 %v15520_v22, %v10008_v36  ;;  %v10007_v16 = vadd.f32 %v9832_v50, %v18436_v57  ;;  %v10238_v6 = vpop.f32.mrf.mxu1 }
 0x5ce   : > { %356 = vst [vmem:[%s18539_s23 + $0x80] sm:$0xff] %v15976_v28  ;;  %357 = vst [vmem:[%s18539_s23 + $0x88] sm:$0xff] %v15976_v28  ;;  %v15437_v18 = vpop.f32.mrf.mxu0 }
 0x5cf   : > { %358 = vst [vmem:[%s18539_s23 + $0x90] sm:$0xff] %v15976_v28  ;;  %359 = vst [vmem:[%s18539_s23 + $0x98] sm:$0xff] %v15976_v28  ;;  %v18588_v4 = vadd.f32 %v10238_v6, %v10007_v16  ;;  %v10010_v45 = vadd.f32 %v15437_v18, %v18439_v35  ;;  %v15523_v59 = vpop.f32.mrf.mxu1 }
 0x5d0   : > { %360 = vst [vmem:[%s18539_s23 + $0xa0] sm:$0xff] %v15976_v28  ;;  %361 = vst [vmem:[%s18539_s23 + $0xa8] sm:$0xff] %v15976_v28  ;;  %v9842_v2 = vpop.f32.mrf.mxu0 }
 0x5d1   : > { %362 = vst [vmem:[%s18539_s23 + $0xb0] sm:$0xff] %v15976_v28  ;;  %363 = vst [vmem:[%s18539_s23 + $0xb8] sm:$0xff] %v15976_v28  ;;  %v18591_v32 = vadd.f32 %v15523_v59, %v10010_v45  ;;  %v10009_v14 = vadd.f32 %v9842_v2, %v18442_v46  ;;  %v10248_v40 = vpop.f32.mrf.mxu1 }
 0x5d2   : > { %364 = vst [vmem:[%s18539_s23 + $0xc0] sm:$0xff] %v15976_v28  ;;  %365 = vst [vmem:[%s18539_s23 + $0xc8] sm:$0xff] %v15976_v28  ;;  %v15440_v17 = vpop.f32.mrf.mxu0 }
 0x5d3   : > { %366 = vst [vmem:[%s18539_s23 + $0xd0] sm:$0xff] %v15976_v28  ;;  %367 = vst [vmem:[%s18539_s23 + $0xd8] sm:$0xff] %v15976_v28  ;;  %v18594_v51 = vadd.f32 %v10248_v40, %v10009_v14  ;;  %v10012_v37 = vadd.f32 %v15440_v17, %v18445_v8  ;;  %v15526_v26 = vpop.f32.mrf.mxu1 }
 0x5d4   : > { %368 = vst [vmem:[%s18539_s23 + $0xe0] sm:$0xff] %v15976_v28  ;;  %369 = vst [vmem:[%s18539_s23 + $0xe8] sm:$0xff] %v15976_v28  ;;  %v9852_v57 = vpop.f32.mrf.mxu0 }
 0x5d5   : > { %370 = vst [vmem:[%s18539_s23 + $0xf0] sm:$0xff] %v15976_v28  ;;  %371 = vst [vmem:[%s18539_s23 + $0xf8] sm:$0xff] %v15976_v28  ;;  %v18597_v34 = vadd.f32 %v15526_v26, %v10012_v37  ;;  %v10011_v7 = vadd.f32 %v9852_v57, %v18448_v30  ;;  %v10258_v13 = vpop.f32.mrf.mxu1 }
 0x5d6   : > { %372 = vst [vmem:[%s18539_s23 + $0x100] sm:$0xff] %v15976_v28  ;;  %373 = vst [vmem:[%s18539_s23 + $0x108] sm:$0xff] %v15976_v28  ;;  %v15443_v35 = vpop.f32.mrf.mxu0 }
 0x5d7   : > { %374 = vst [vmem:[%s18539_s23 + $0x110] sm:$0xff] %v15976_v28  ;;  %375 = vst [vmem:[%s18539_s23 + $0x118] sm:$0xff] %v15976_v28  ;;  %v18600_v11 = vadd.f32 %v10258_v13, %v10011_v7  ;;  %v10014_v61 = vadd.f32 %v15443_v35, %v18451_v44  ;;  %v15529_v56 = vpop.f32.mrf.mxu1 }
 0x5d8   : > { %376 = vst [vmem:[%s18539_s23 + $0x120] sm:$0xff] %v15976_v28  ;;  %377 = vst [vmem:[%s18539_s23 + $0x128] sm:$0xff] %v15976_v28  ;;  %v9862_v46 = vpop.f32.mrf.mxu0 }
 0x5d9   : > { %378 = vst [vmem:[%s18539_s23 + $0x130] sm:$0xff] %v15976_v28  ;;  %379 = vst [vmem:[%s18539_s23 + $0x138] sm:$0xff] %v15976_v28  ;;  %v18603_v0 = vadd.f32 %v15529_v56, %v10014_v61  ;;  %v10013_v41 = vadd.f32 %v9862_v46, %v18454_v29  ;;  %v10268_v3 = vpop.f32.mrf.mxu1 }
 0x5da   : > { %380 = vst [vmem:[%s18539_s23 + $0x140] sm:$0xff] %v15976_v28  ;;  %v15446_v8 = vpop.f32.mrf.mxu0 }
 0x5db   : > { %v18606_v38 = vadd.f32 %v10268_v3, %v10013_v41  ;;  %v10016_v28 = vadd.f32 %v15446_v8, %v18457_v10  ;;  %v15532_v36 = vpop.f32.mrf.mxu1 }
 0x5dc   : > { %v9872_v30 = vpop.f32.mrf.mxu0 }
 0x5dd   : > { %v18609_v22 = vadd.f32 %v15532_v36, %v10016_v28  ;;  %v10015_v50 = vadd.f32 %v9872_v30, %v18460_v31  ;;  %v10278_v16 = vpop.f32.mrf.mxu1 }
 0x5de   : > { %v15449_v44 = vpop.f32.mrf.mxu0 }
 0x5df   : > { %v18612_v6 = vadd.f32 %v10278_v16, %v10015_v50  ;;  %v10018_v18 = vadd.f32 %v15449_v44, %v18463_v60  ;;  %v15535_v45 = vpop.f32.mrf.mxu1 }
 0x5e0   : > { %v9882_v29 = vpop.f32.mrf.mxu0 }
 0x5e1   : > { %v18615_v59 = vadd.f32 %v15535_v45, %v10018_v18  ;;  %v10017_v2 = vadd.f32 %v9882_v29, %v18466_v47  ;;  %v10288_v14 = vpop.f32.mrf.mxu1 }
 0x5e2   : > { %v15452_v10 = vpop.f32.mrf.mxu0 }
 0x5e3   : > { %v18618_v40 = vadd.f32 %v10288_v14, %v10017_v2  ;;  %v10020_v17 = vadd.f32 %v15452_v10, %v18469_v48  ;;  %v15538_v37 = vpop.f32.mrf.mxu1 }
 0x5e4   : > { %v9892_v31 = vpop.f32.mrf.mxu0 }
 0x5e5   : > { %v18621_v26 = vadd.f32 %v15538_v37, %v10020_v17  ;;  %v10019_v57 = vadd.f32 %v9892_v31, %v18472_v15  ;;  %v10298_v7 = vpop.f32.mrf.mxu1 }
 0x5e6   : > { %v15455_v60 = vpop.f32.mrf.mxu0 }
 0x5e7   : > { %v18624_v13 = vadd.f32 %v10298_v7, %v10019_v57  ;;  %v10022_v35 = vadd.f32 %v15455_v60, %v18475_v5  ;;  %v15541_v61 = vpop.f32.mrf.mxu1 }
 0x5e8   : > { %v9902_v47 = vpop.f32.mrf.mxu0 }
 0x5e9   : > { %v18627_v56 = vadd.f32 %v15541_v61, %v10022_v35  ;;  %v10021_v46 = vadd.f32 %v9902_v47, %v18478_v33  ;;  %v10308_v41 = vpop.f32.mrf.mxu1 }
 0x5ea   : > { %v15458_v48 = vpop.f32.mrf.mxu0 }
 0x5eb   : > { %v18630_v3 = vadd.f32 %v10308_v41, %v10021_v46  ;;  %v10024_v8 = vadd.f32 %v15458_v48, %v18481_v62  ;;  %v15544_v28 = vpop.f32.mrf.mxu1 }
 0x5ec   : > { %v9912_v15 = vpop.f32.mrf.mxu0 }
 0x5ed   : > { %v18633_v36 = vadd.f32 %v15544_v28, %v10024_v8  ;;  %v10023_v30 = vadd.f32 %v9912_v15, %v18484_v19  ;;  %v10318_v50 = vpop.f32.mrf.mxu1 }
 0x5ee   : > { %v15461_v5 = vpop.f32.mrf.mxu0 }
 0x5ef   : > { %v18636_v16 = vadd.f32 %v10318_v50, %v10023_v30  ;;  %v10026_v44 = vadd.f32 %v15461_v5, %v18487_v43  ;;  %v15547_v18 = vpop.f32.mrf.mxu1 }
 0x5f0   : > { %v9922_v33 = vpop.f32.mrf.mxu0 }
 0x5f1   : > { %v18639_v45 = vadd.f32 %v15547_v18, %v10026_v44  ;;  %v10025_v29 = vadd.f32 %v9922_v33, %v18490_v27  ;;  %v10328_v2 = vpop.f32.mrf.mxu1 }
 0x5f2   : > { %v15464_v62 = vpop.f32.mrf.mxu0 }
 0x5f3   : > { %v18642_v14 = vadd.f32 %v10328_v2, %v10025_v29  ;;  %v10028_v10 = vadd.f32 %v15464_v62, %v18493_v42  ;;  %v15550_v17 = vpop.f32.mrf.mxu1 }
 0x5f4   : > { %v9932_v19 = vpop.f32.mrf.mxu0 }
 0x5f5   : > { %v18645_v37 = vadd.f32 %v15550_v17, %v10028_v10  ;;  %v10027_v31 = vadd.f32 %v9932_v19, %v18496_v1  ;;  %v10338_v57 = vpop.f32.mrf.mxu1 }
 0x5f6   : > { %v15467_v43 = vpop.f32.mrf.mxu0 }
 0x5f7   : > { %v18648_v7 = vadd.f32 %v10338_v57, %v10027_v31  ;;  %v10030_v60 = vadd.f32 %v15467_v43, %v18499_v39  ;;  %v15553_v35 = vpop.f32.mrf.mxu1 }
 0x5f8   : > { %v9942_v27 = vpop.f32.mrf.mxu0 }
 0x5f9   : > { %v18651_v61 = vadd.f32 %v15553_v35, %v10030_v60  ;;  %v10029_v47 = vadd.f32 %v9942_v27, %v18502_v58  ;;  %v10348_v46 = vpop.f32.mrf.mxu1 }
 0x5fa   : > { %v15470_v42 = vpop.f32.mrf.mxu0 }
 0x5fb   : > { %v18654_v41 = vadd.f32 %v10348_v46, %v10029_v47  ;;  %v10032_v48 = vadd.f32 %v15470_v42, %v18505_v23  ;;  %v15556_v8 = vpop.f32.mrf.mxu1 }
 0x5fc   : > { %v9952_v1 = vpop.f32.mrf.mxu0 }
 0x5fd   : > { %v18657_v28 = vadd.f32 %v15556_v8, %v10032_v48  ;;  %v10031_v15 = vadd.f32 %v9952_v1, %v18508_v55  ;;  %v10358_v30 = vpop.f32.mrf.mxu1 }
 0x5fe   : > { %v15591_v39 = vpop.f32.mrf.mxu0 }
 0x5ff   : > { %v18660_v50 = vadd.f32 %v10358_v30, %v10031_v15  ;;  %v18663_v5 = vadd.f32 %v15591_v39, %v18511_v52  ;;  %v18665_v58 = vpop.f32.mrf.mxu1 }
 0x600   : > { %v10594_v44 = vpop.f32.mrf.mxu0 }
 0x601   : > { %v18668_v18 = vadd.f32 %v10594_v44, %v18514_v20  ;;  %v18670_v23 = vpop.f32.mrf.mxu1 }
 0x602   : > { %v15594_v33 = vpop.f32.mrf.mxu0 }
 0x603   : > { %v18673_v29 = vadd.f32 %v15594_v33, %v18517_v24  ;;  %v18675_v2 = vpop.f32.mrf.mxu1 }
 0x604   : > { %v10604_v55 = vpop.f32.mrf.mxu0 }
 0x605   : > { %v18678_v62 = vadd.f32 %v10604_v55, %v18520_v21  ;;  %v18683_v19 = vpop.f32.mrf.mxu1 }
 0x606   : > { %v15597_v52 = vpop.f32.mrf.mxu0 }
 0x607   : > { %v18681_v10 = vadd.f32 %v15597_v52, %v18523_v54  ;;  %v18691_v43 = vpop.f32.mrf.mxu1 }
 0x608   : > { %v10614_v17 = vpop.f32.mrf.mxu0 }
 0x609   : > { %v18686_v20 = vadd.f32 %v10614_v17, %v18526_v12  ;;  %v18699_v27 = vpop.f32.mrf.mxu1 }
 0x60a   : > { %v15600_v31 = vpop.f32.mrf.mxu0 }
 0x60b   : > { %v18689_v24 = vadd.f32 %v15600_v31, %v18529_v9  ;;  %v18707_v42 = vpop.f32.mrf.mxu1 }
 0x60c   : > { %v10624_v57 = vpop.f32.mrf.mxu0 }
 0x60d   : > { %v18694_v21 = vadd.f32 %v10624_v57, %v18532_v63  ;;  %v18715_v1 = vpop.f32.mrf.mxu1 }
 0x60e   : > { %v15603_v60 = vpop.f32.mrf.mxu0 }
 0x60f   : > { %v18697_v54 = vadd.f32 %v15603_v60, %v18536_v25  ;;  %v18723_v39 = vpop.f32.mrf.mxu1 }
 0x610   : > { %v10634_v35 = vpop.f32.mrf.mxu0 }
 0x611   : > { %v18702_v12 = vadd.f32 %v10634_v35, %v18582_v53  ;;  %v18731_v55 = vpop.f32.mrf.mxu1 }
 0x612   : > { %v15606_v47 = vpop.f32.mrf.mxu0 }
 0x613   : > { %v18705_v9 = vadd.f32 %v15606_v47, %v18585_v49  ;;  %v18739_v31 = vpop.f32.mrf.mxu1 }
 0x614   : > { %v10644_v46 = vpop.f32.mrf.mxu0 }
 0x615   : > { %v18710_v63 = vadd.f32 %v10644_v46, %v18588_v4  ;;  %v18747_v35 = vpop.f32.mrf.mxu1 }
 0x616   : > { %v15609_v48 = vpop.f32.mrf.mxu0 }
 0x617   : > { %v18713_v25 = vadd.f32 %v15609_v48, %v18591_v32  ;;  %v18755_v48 = vpop.f32.mrf.mxu1 }
 0x618   : > { %v10654_v8 = vpop.f32.mrf.mxu0 }
 0x619   : > { %v18718_v53 = vadd.f32 %v10654_v8, %v18594_v51 }
 0x61a   : > { %v15612_v15 = vpop.f32.mrf.mxu0 }
 0x61b   : > { %v18721_v49 = vadd.f32 %v15612_v15, %v18597_v34 }
 0x61c   : > { %v10664_v30 = vpop.f32.mrf.mxu0 }
 0x61d   : > { %v18726_v4 = vadd.f32 %v10664_v30, %v18600_v11  ;;  %v18763_v30 = vpop.f32.mrf.mxu1 }
 0x61e   : > { %v15615_v44 = vpop.f32.mrf.mxu0 }
 0x61f   : > { %v18729_v32 = vadd.f32 %v15615_v44, %v18603_v0 }
 0x620   : > { %v10674_v33 = vpop.f32.mrf.mxu0 }
 0x621   : > { %v18734_v51 = vadd.f32 %v10674_v33, %v18606_v38 }
 0x622   : > { %v15618_v52 = vpop.f32.mrf.mxu0 }
 0x623   : > { %v18737_v34 = vadd.f32 %v15618_v52, %v18609_v22  ;;  %v18771_v52 = vpop.f32.mrf.mxu1 }
 0x624   : > { %v10684_v17 = vpop.f32.mrf.mxu0 }
 0x625   : > { %v18742_v11 = vadd.f32 %v10684_v17, %v18612_v6 }
 0x626   : > { %v15621_v57 = vpop.f32.mrf.mxu0 }
 0x627   : > { %v18745_v0 = vadd.f32 %v15621_v57, %v18615_v59 }
 0x628   : > { %v10694_v60 = vpop.f32.mrf.mxu0 }
 0x629   : > { %v18750_v38 = vadd.f32 %v10694_v60, %v18618_v40  ;;  %v18779_v60 = vpop.f32.mrf.mxu1 }
 0x62a   : > { %v15624_v47 = vpop.f32.mrf.mxu0 }
 0x62b   : > { %v18753_v22 = vadd.f32 %v15624_v47, %v18621_v26 }
 0x62c   : > { %v10704_v46 = vpop.f32.mrf.mxu0 }
 0x62d   : > { %v18758_v6 = vadd.f32 %v10704_v46, %v18624_v13 }
 0x62e   : > { %v15627_v8 = vpop.f32.mrf.mxu0 }
 0x62f   : > { %v18761_v59 = vadd.f32 %v15627_v8, %v18627_v56  ;;  %v18787_v8 = vpop.f32.mrf.mxu1 }
 0x630   : > { %v10714_v15 = vpop.f32.mrf.mxu0 }
 0x631   : > { %v18766_v40 = vadd.f32 %v10714_v15, %v18630_v3 }
 0x632   : > { %v15630_v44 = vpop.f32.mrf.mxu0 }
 0x633   : > { %v18769_v26 = vadd.f32 %v15630_v44, %v18633_v36 }
 0x634   : > { %v10724_v33 = vpop.f32.mrf.mxu0 }
 0x635   : > { %v18774_v13 = vadd.f32 %v10724_v33, %v18636_v16  ;;  %v18795_v33 = vpop.f32.mrf.mxu1 }
 0x636   : > { %v15633_v17 = vpop.f32.mrf.mxu0 }
 0x637   : > { %v18777_v56 = vadd.f32 %v15633_v17, %v18639_v45 }
 0x638   : > { %v10734_v57 = vpop.f32.mrf.mxu0 }
 0x639   : > { %v18782_v3 = vadd.f32 %v10734_v57, %v18642_v14 }
 0x63a   : > { %v15636_v47 = vpop.f32.mrf.mxu0 }
 0x63b   : > { %v18785_v36 = vadd.f32 %v15636_v47, %v18645_v37  ;;  %v11216_v47 = vadd.f32 %v18665_v58, %v18663_v5 }
 0x63c   : > { %v10744_v46 = vpop.f32.mrf.mxu0 }
 0x63d   : > { %v18790_v16 = vadd.f32 %v10744_v46, %v18648_v7  ;;  %v18805_v7 = vpop.f32.mrf.mxu1 }
 0x63e   : > { %v15639_v15 = vpop.f32.mrf.mxu0 }
 0x63f   : > { %v18793_v45 = vadd.f32 %v15639_v15, %v18651_v61  ;;  %v18810_v15 = vld [vmem:[#allocation10 + $0x4] ss:$0 sm:$0xff] }
 0x640   : > { %v10754_v44 = vpop.f32.mrf.mxu0 }
 0x641   : > { %19328 = vst [vmem:[#allocation57_spill] sm:$0xff] %v18793_v45  ;;  %v18798_v14 = vadd.f32 %v10754_v44, %v18654_v41  ;;  %v11215_v41 = vadd.f32 %v18670_v23, %v18668_v18 }
 0x642   : > { %v15642_v17 = vpop.f32.mrf.mxu0 }
 0x643   : > { %19329 = vst [vmem:[#allocation35_spill] sm:$0xff] %v18798_v14  ;;  %v18801_v37 = vadd.f32 %v15642_v17, %v18657_v28  ;;  %v18814_v14 = vld [vmem:[#allocation10 + $0x5] ss:$0 sm:$0xff]  ;;  %v11218_v17 = vadd.f32 %v18675_v2, %v18673_v29 }
 0x644   : > { %v10764_v57 = vpop.f32.mrf.mxu0 }
 0x645   : > { %19330 = vst [vmem:[#allocation22_spill] sm:$0xff] %v18801_v37  ;;  %v18808_v46 = vadd.f32 %v10764_v57, %v18660_v50  ;;  %v18818_v37 = vpop.f32.mrf.mxu1  ;;  %v11217_v57 = vadd.f32 %v18683_v19, %v18678_v62  ;;  %v11219_v62 = vadd.f32 %v18699_v27, %v18686_v20 }
 0x646   : > { %v15763_v61 = vpop.f32.mrf.mxu0 }
 0x647   : > { %19331 = vst [vmem:[#allocation45_spill] sm:$0xff] %v18808_v46  ;;  %v11622_v44 = vadd.f32 %v15763_v61, %v11216_v47  ;;  %v18825_v61 = vpop.f32.mrf.mxu1 }
 0x648   : > { %v11406_v28 = vpop.f32.mrf.mxu0 }
 0x649   : > { %v11736_v5 = vmul.f32 %v18810_v15, %v11622_v44  ;;  %v11621_v58 = vadd.f32 %v11406_v28, %v11215_v41  ;;  %v11220_v41 = vadd.f32 %v18691_v43, %v18681_v10  ;;  %v15977_v28 = vld [vmem:[#allocation11 + $0x8] sm:$0xff]  ;;  %v15978_v10 = vld [vmem:[#allocation11] sm:$0xff] }
 0x64a   : > { %v15766_v50 = vpop.f32.mrf.mxu0 }
 0x64b   : > { %v11776_v46 = vadd.f32 %v18814_v14, %v11736_v5  ;;  %v11735_v18 = vmul.f32 %v18810_v15, %v11621_v58  ;;  %v11624_v23 = vadd.f32 %v15766_v50, %v11218_v17  ;;  %v11222_v50 = vadd.f32 %v18707_v42, %v18689_v24  ;;  %v15979_v24 = vld [vmem:[#allocation11 + $0x18] sm:$0xff] }
 0x64c   : > { %v11416_v47 = vpop.f32.mrf.mxu0 }
 0x64d   : > { %v11812_v45 = vmax.f32 %v11776_v46, 0.0  ;;  %v11775_v29 = vadd.f32 %v18814_v14, %v11735_v18  ;;  %v11738_v2 = vmul.f32 %v18810_v15, %v11624_v23  ;;  %v11623_v44 = vadd.f32 %v11416_v47, %v11217_v57  ;;  %v18837_v23 = vpop.f32.mrf.mxu1 }
 0x64e   : > { %v15769_v19 = vpop.f32.mrf.mxu0  ;;  %v11221_v47 = vadd.f32 %v18715_v1, %v18694_v21  ;;  %v15980_v21 = vld [vmem:[#allocation11 + $0x10] sm:$0xff] }
 0x64f   : > { %v11848_v5 = vmul.f32 %v15977_v28, %v11812_v45  ;;  %v11811_v17 = vmax.f32 %v11775_v29, 0.0  ;;  %v11778_v58 = vadd.f32 %v18814_v14, %v11738_v2  ;;  %v11737_v46 = vmul.f32 %v18810_v15, %v11623_v44 }
 0x650   : > { %v11626_v18 = vadd.f32 %v15769_v19, %v11220_v41  ;;  %v11426_v57 = vpop.f32.mrf.mxu0  ;;  %v11224_v28 = vadd.f32 %v18723_v39, %v18697_v54 }
 0x651   : > { %11884 = vst [vmem:[%s18539_s23 + $0x1b] sm:$0xff] %v11848_v5  ;;  %v11847_v43 = vmul.f32 %v15978_v10, %v11811_v17  ;;  %v11814_v20 = vmax.f32 %v11778_v58, 0.0  ;;  %v11777_v27 = vadd.f32 %v18814_v14, %v11737_v46  ;;  %v11625_v45 = vadd.f32 %v11426_v57, %v11219_v62  ;;  %v18849_v17 = vpop.f32.mrf.mxu1 }
 0x652   : > { %v11740_v29 = vmul.f32 %v18810_v15, %v11626_v18  ;;  %v15772_v2 = vpop.f32.mrf.mxu0 }
 0x653   : > { %11883 = vst [vmem:[%s18539_s23 + $0x13] sm:$0xff] %v11847_v43  ;;  %v11850_v42 = vmul.f32 %v15979_v24, %v11814_v20  ;;  %v11813_v44 = vmax.f32 %v11777_v27, 0.0  ;;  %v11739_v41 = vmul.f32 %v18810_v15, %v11625_v45  ;;  %v11628_v19 = vadd.f32 %v15772_v2, %v11222_v50  ;;  %v15981_v45 = vld [vmem:[#allocation11 + $0x28] sm:$0xff]  ;;  %v18861_v2 = vpop.f32.mrf.mxu1  ;;  %v15982_v24 = vld [vmem:[#allocation11 + $0x20] sm:$0xff] }
 0x654   : > { %v11780_v5 = vadd.f32 %v18814_v14, %v11740_v29  ;;  %v11436_v62 = vpop.f32.mrf.mxu0  ;;  %v11223_v20 = vadd.f32 %v18731_v55, %v18702_v12  ;;  %v11226_v27 = vadd.f32 %v18739_v31, %v18705_v9  ;;  %v15983_v9 = vld [vmem:[#allocation11 + $0x38] sm:$0xff] }
 0x655   : > { %11886 = vst [vmem:[%s18539_s23 + $0x2b] sm:$0xff] %v11850_v42  ;;  %v11849_v1 = vmul.f32 %v15980_v21, %v11813_v44  ;;  %v11779_v58 = vadd.f32 %v18814_v14, %v11739_v41  ;;  %v11742_v46 = vmul.f32 %v18810_v15, %v11628_v19  ;;  %v11627_v18 = vadd.f32 %v11436_v62, %v11221_v47 }
 0x656   : > { %v11816_v57 = vmax.f32 %v11780_v5, 0.0  ;;  %v15775_v10 = vpop.f32.mrf.mxu0 }
 0x657   : > { %11885 = vst [vmem:[%s18539_s23 + $0x23] sm:$0xff] %v11849_v1  ;;  %v11815_v50 = vmax.f32 %v11779_v58, 0.0  ;;  %v11782_v54 = vadd.f32 %v18814_v14, %v11742_v46  ;;  %v11741_v39 = vmul.f32 %v18810_v15, %v11627_v18  ;;  %v11630_v43 = vadd.f32 %v15775_v10, %v11224_v28  ;;  %v18873_v18 = vpop.f32.mrf.mxu1 }
 0x658   : > { %v11852_v29 = vmul.f32 %v15981_v45, %v11816_v57  ;;  %v11446_v47 = vpop.f32.mrf.mxu0  ;;  %v11225_v28 = vadd.f32 %v18747_v35, %v18710_v63  ;;  %v11228_v1 = vadd.f32 %v18755_v48, %v18713_v25  ;;  %v15984_v63 = vld [vmem:[#allocation11 + $0x30] sm:$0xff]  ;;  %v15985_v25 = vld [vmem:[#allocation11 + $0x48] sm:$0xff] }
 0x659   : > { %v11851_v42 = vmul.f32 %v15982_v24, %v11815_v50  ;;  %v11818_v44 = vmax.f32 %v11782_v54, 0.0  ;;  %v11781_v41 = vadd.f32 %v18814_v14, %v11741_v39  ;;  %v11744_v19 = vmul.f32 %v18810_v15, %v11630_v43  ;;  %v18883_v24 = vpop.f32.mrf.mxu1 }
 0x65a   : > { %11888 = vst [vmem:[%s18539_s23 + $0x3b] sm:$0xff] %v11852_v29  ;;  %v11629_v12 = vadd.f32 %v11446_v47, %v11223_v20  ;;  %v15778_v55 = vpop.f32.mrf.mxu0  ;;  %v11227_v54 = vadd.f32 %v18763_v30, %v18718_v53 }
 0x65b   : > { %11887 = vst [vmem:[%s18539_s23 + $0x33] sm:$0xff] %v11851_v42  ;;  %v11854_v31 = vmul.f32 %v15983_v9, %v11818_v44  ;;  %v11817_v5 = vmax.f32 %v11781_v41, 0.0  ;;  %v11784_v62 = vadd.f32 %v18814_v14, %v11744_v19  ;;  %v11632_v21 = vadd.f32 %v15778_v55, %v11226_v27  ;;  %v15987_v9 = vld [vmem:[#allocation11 + $0x58] sm:$0xff] }
 0x65c   : > { %v11743_v58 = vmul.f32 %v18810_v15, %v11629_v12  ;;  %v11456_v46 = vpop.f32.mrf.mxu0  ;;  %v11230_v41 = vadd.f32 %v18771_v52, %v18721_v49  ;;  %v11229_v19 = vadd.f32 %v18779_v60, %v18726_v4  ;;  %v18897_v52 = vpop.f32.mrf.mxu1  ;;  %v15988_v4 = vld [vmem:[#allocation11 + $0x50] sm:$0xff] }
 0x65d   : > { %11890 = vst [vmem:[%s18539_s23 + $0x4b] sm:$0xff] %v11854_v31  ;;  %v11853_v35 = vmul.f32 %v15984_v63, %v11817_v5  ;;  %v11820_v57 = vmax.f32 %v11784_v62, 0.0  ;;  %v11746_v10 = vmul.f32 %v18810_v15, %v11632_v21  ;;  %v11631_v50 = vadd.f32 %v11456_v46, %v11225_v28  ;;  %v15986_v28 = vld [vmem:[#allocation11 + $0x40] sm:$0xff] }
 0x65e   : > { %v11783_v39 = vadd.f32 %v18814_v14, %v11743_v58  ;;  %v15781_v43 = vpop.f32.mrf.mxu0 }
 0x65f   : > { %11889 = vst [vmem:[%s18539_s23 + $0x43] sm:$0xff] %v11853_v35  ;;  %v11856_v48 = vmul.f32 %v15985_v25, %v11820_v57  ;;  %v11786_v20 = vadd.f32 %v18814_v14, %v11746_v10  ;;  %v11745_v27 = vmul.f32 %v18810_v15, %v11631_v50  ;;  %v11634_v45 = vadd.f32 %v15781_v43, %v11228_v1 }
 0x660   : > { %v11819_v29 = vmax.f32 %v11783_v39, 0.0  ;;  %v11466_v47 = vpop.f32.mrf.mxu0  ;;  %v11232_v1 = vadd.f32 %v18787_v8, %v18729_v32  ;;  %v11231_v57 = vadd.f32 %v18795_v33, %v18734_v51  ;;  %v15989_v32 = vld [vmem:[#allocation11 + $0x68] sm:$0xff]  ;;  %v11234_v25 = vadd.f32 %v18805_v7, %v18737_v34  ;;  %v15990_v51 = vld [vmem:[#allocation11 + $0x60] sm:$0xff] }
 0x661   : > { %11892 = vst [vmem:[%s18539_s23 + $0x5b] sm:$0xff] %v11856_v48  ;;  %v11822_v42 = vmax.f32 %v11786_v20, 0.0  ;;  %v11785_v53 = vadd.f32 %v18814_v14, %v11745_v27  ;;  %v11748_v30 = vmul.f32 %v18810_v15, %v11634_v45  ;;  %v11633_v44 = vadd.f32 %v11466_v47, %v11227_v54  ;;  %v18909_v27 = vpop.f32.mrf.mxu1 }
 0x662   : > { %v11855_v12 = vmul.f32 %v15986_v28, %v11819_v29  ;;  %v15784_v55 = vpop.f32.mrf.mxu0  ;;  %v15991_v28 = vld [vmem:[#allocation11 + $0x78] sm:$0xff] }
 0x663   : > { %v11858_v31 = vmul.f32 %v15987_v9, %v11822_v42  ;;  %v11821_v5 = vmax.f32 %v11785_v53, 0.0  ;;  %v11788_v62 = vadd.f32 %v18814_v14, %v11748_v30  ;;  %v11747_v21 = vmul.f32 %v18810_v15, %v11633_v44  ;;  %v18921_v9 = vpop.f32.mrf.mxu1 }
 0x664   : > { %11891 = vst [vmem:[%s18539_s23 + $0x53] sm:$0xff] %v11855_v12  ;;  %v11636_v58 = vadd.f32 %v15784_v55, %v11230_v41  ;;  %v11476_v49 = vpop.f32.mrf.mxu0  ;;  %v11233_v41 = vadd.f32 %v18818_v37, %v18742_v11 }
 0x665   : > { %11894 = vst [vmem:[%s18539_s23 + $0x6b] sm:$0xff] %v11858_v31  ;;  %v11857_v60 = vmul.f32 %v15988_v4, %v11821_v5  ;;  %v11824_v46 = vmax.f32 %v11788_v62, 0.0  ;;  %v11787_v63 = vadd.f32 %v18814_v14, %v11747_v21  ;;  %v11635_v35 = vadd.f32 %v11476_v49, %v11229_v19  ;;  %v15992_v31 = vld [vmem:[#allocation11 + $0x70] sm:$0xff] }
 0x666   : > { %v11750_v10 = vmul.f32 %v18810_v15, %v11636_v58  ;;  %v15787_v50 = vpop.f32.mrf.mxu0  ;;  %v11236_v19 = vadd.f32 %v18825_v61, %v18745_v0  ;;  %v11235_v58 = vadd.f32 %v18837_v23, %v18750_v38  ;;  %v15993_v0 = vld [vmem:[#allocation11 + $0x88] sm:$0xff]  ;;  %v15994_v38 = vld [vmem:[#allocation11 + $0x80] sm:$0xff] }
 0x667   : > { %11893 = vst [vmem:[%s18539_s23 + $0x63] sm:$0xff] %v11857_v60  ;;  %v11860_v8 = vmul.f32 %v15989_v32, %v11824_v46  ;;  %v11823_v54 = vmax.f32 %v11787_v63, 0.0  ;;  %v11749_v39 = vmul.f32 %v18810_v15, %v11635_v35  ;;  %v11638_v43 = vadd.f32 %v15787_v50, %v11232_v1 }
 0x668   : > { %v11790_v48 = vadd.f32 %v18814_v14, %v11750_v10  ;;  %v11486_v20 = vpop.f32.mrf.mxu0  ;;  %v11238_v46 = vadd.f32 %v18849_v17, %v18753_v22  ;;  %v15995_v22 = vld [vmem:[#allocation11 + $0x98] sm:$0xff] }
 0x669   : > { %11896 = vst [vmem:[%s18539_s23 + $0x7b] sm:$0xff] %v11860_v8  ;;  %v11859_v33 = vmul.f32 %v15990_v51, %v11823_v54  ;;  %v11789_v45 = vadd.f32 %v18814_v14, %v11749_v39  ;;  %v11752_v29 = vmul.f32 %v18810_v15, %v11638_v43  ;;  %v11637_v47 = vadd.f32 %v11486_v20, %v11231_v57  ;;  %v18933_v57 = vpop.f32.mrf.mxu1 }
 0x66a   : > { %v11826_v42 = vmax.f32 %v11790_v48, 0.0  ;;  %v15790_v53 = vpop.f32.mrf.mxu0  ;;  %v11237_v8 = vadd.f32 %v18861_v2, %v18758_v6 }
 0x66b   : > { %11895 = vst [vmem:[%s18539_s23 + $0x73] sm:$0xff] %v11859_v33  ;;  %v11825_v30 = vmax.f32 %v11789_v45, 0.0  ;;  %v11792_v34 = vadd.f32 %v18814_v14, %v11752_v29  ;;  %v11751_v7 = vmul.f32 %v18810_v15, %v11637_v47  ;;  %v11640_v44 = vadd.f32 %v15790_v53, %v11234_v25  ;;  %v15722_v33 = vpop.f32.mrf.mxu1  ;;  %v15996_v53 = vld [vmem:[#allocation11 + $0x90] sm:$0xff] }
 0x66c   : > { %v11862_v12 = vmul.f32 %v15991_v28, %v11826_v42  ;;  %v11496_v55 = vpop.f32.mrf.mxu0  ;;  %v11240_v47 = vadd.f32 %v18873_v18, %v18761_v59  ;;  %v11239_v42 = vadd.f32 %v18883_v24, %v18766_v40  ;;  %v15998_v40 = vld [vmem:[#allocation11 + $0xa0] sm:$0xff] }
 0x66d   : > { %v11861_v5 = vmul.f32 %v15992_v31, %v11825_v30  ;;  %v11828_v62 = vmax.f32 %v11792_v34, 0.0  ;;  %v11791_v21 = vadd.f32 %v18814_v14, %v11751_v7  ;;  %v11754_v1 = vmul.f32 %v18810_v15, %v11640_v44  ;;  %v15997_v7 = vld [vmem:[#allocation11 + $0xa8] sm:$0xff]  ;;  %v11150_v18 = vpop.f32.mrf.mxu1 }
 0x66e   : > { %11898 = vst [vmem:[%s18539_s23 + $0x8b] sm:$0xff] %v11862_v12  ;;  %v11639_v11 = vadd.f32 %v11496_v55, %v11233_v41  ;;  %v15793_v37 = vpop.f32.mrf.mxu0  ;;  %v11242_v12 = vadd.f32 %v18897_v52, %v18769_v26  ;;  %v15999_v26 = vld [vmem:[#allocation11 + $0xb8] sm:$0xff] }
 0x66f   : > { %11897 = vst [vmem:[%s18539_s23 + $0x83] sm:$0xff] %v11861_v5  ;;  %v11864_v61 = vmul.f32 %v15993_v0, %v11828_v62  ;;  %v11827_v49 = vmax.f32 %v11791_v21, 0.0  ;;  %v11794_v4 = vadd.f32 %v18814_v14, %v11754_v1  ;;  %v11642_v60 = vadd.f32 %v15793_v37, %v11236_v19 }
 0x670   : > { %v11753_v63 = vmul.f32 %v18810_v15, %v11639_v11  ;;  %v11506_v35 = vpop.f32.mrf.mxu0  ;;  %v11241_v21 = vadd.f32 %v18909_v27, %v18774_v13  ;;  %v16000_v13 = vld [vmem:[#allocation11 + $0xb0] sm:$0xff] }
 0x671   : > { %11900 = vst [vmem:[%s18539_s23 + $0x9b] sm:$0xff] %v11864_v61  ;;  %v11863_v23 = vmul.f32 %v15994_v38, %v11827_v49  ;;  %v11830_v10 = vmax.f32 %v11794_v4, 0.0  ;;  %v11756_v50 = vmul.f32 %v18810_v15, %v11642_v60  ;;  %v11641_v32 = vadd.f32 %v11506_v35, %v11235_v58  ;;  %v15725_v60 = vpop.f32.mrf.mxu1 }
 0x672   : > { %v11793_v54 = vadd.f32 %v18814_v14, %v11753_v63  ;;  %v15796_v39 = vpop.f32.mrf.mxu0  ;;  %v11244_v61 = vadd.f32 %v18921_v9, %v18777_v56 }
 0x673   : > { %11899 = vst [vmem:[%s18539_s23 + $0x93] sm:$0xff] %v11863_v23  ;;  %v11866_v17 = vmul.f32 %v15995_v22, %v11830_v10  ;;  %v11796_v43 = vadd.f32 %v18814_v14, %v11756_v50  ;;  %v11755_v25 = vmul.f32 %v18810_v15, %v11641_v32  ;;  %v11644_v48 = vadd.f32 %v15796_v39, %v11238_v46 }
 0x674   : > { %v11829_v20 = vmax.f32 %v11793_v54, 0.0  ;;  %v11516_v51 = vpop.f32.mrf.mxu0  ;;  %v11243_v32 = vadd.f32 %v18933_v57, %v18782_v3  ;;  %v16001_v54 = vld [vmem:[#allocation11 + $0xc8] sm:$0xff] }
 0x675   : > { %11902 = vst [vmem:[%s18539_s23 + $0xab] sm:$0xff] %v11866_v17  ;;  %v11832_v45 = vmax.f32 %v11796_v43, 0.0  ;;  %v11795_v29 = vadd.f32 %v18814_v14, %v11755_v25  ;;  %v11758_v6 = vmul.f32 %v18810_v15, %v11644_v48  ;;  %v11643_v2 = vadd.f32 %v11516_v51, %v11237_v8  ;;  %v11160_v17 = vpop.f32.mrf.mxu1  ;;  %v16002_v43 = vld [vmem:[#allocation11 + $0xc0] sm:$0xff] }
 0x676   : > { %v11865_v30 = vmul.f32 %v15996_v53, %v11829_v20  ;;  %v15799_v34 = vpop.f32.mrf.mxu0  ;;  %v11246_v8 = vadd.f32 %v15722_v33, %v18785_v36  ;;  %v16003_v36 = vld [vmem:[#allocation11 + $0xd8] sm:$0xff] }
 0x677   : > { %v11868_v44 = vmul.f32 %v15997_v7, %v11832_v45  ;;  %v11831_v41 = vmax.f32 %v11795_v29, 0.0  ;;  %v11798_v19 = vadd.f32 %v18814_v14, %v11758_v6  ;;  %v11757_v28 = vmul.f32 %v18810_v15, %v11643_v2  ;;  %v15728_v57 = vpop.f32.mrf.mxu1  ;;  %v16004_v7 = vld [vmem:[#allocation11 + $0xd0] sm:$0xff] }
 0x678   : > { %11901 = vst [vmem:[%s18539_s23 + $0xa3] sm:$0xff] %v11865_v30  ;;  %v11646_v55 = vadd.f32 %v15799_v34, %v11240_v47  ;;  %v11526_v59 = vpop.f32.mrf.mxu0  ;;  %v11245_v45 = vadd.f32 %v11150_v18, %v18790_v16 }
 0x679   : > { %11904 = vst [vmem:[%s18539_s23 + $0xbb] sm:$0xff] %v11868_v44  ;;  %v11867_v24 = vmul.f32 %v15998_v40, %v11831_v41  ;;  %v11834_v31 = vmax.f32 %v11798_v19, 0.0  ;;  %v11797_v5 = vadd.f32 %v18814_v14, %v11757_v28  ;;  %v11645_v62 = vadd.f32 %v11526_v59, %v11239_v42  ;;  %v19332_v42 = vld [vmem:[#allocation57_spill] sm:$0xff]  ;;  %v19333_v28 = vld [vmem:[#allocation35_spill] sm:$0xff]  ;;  %v11170_v18 = vpop.f32.mrf.mxu1 }
 0x67a   : > { %v11760_v1 = vmul.f32 %v18810_v15, %v11646_v55  ;;  %v15802_v58 = vpop.f32.mrf.mxu0  ;;  %v11248_v53 = vadd.f32 %v15725_v60, %v19332_v42  ;;  %v16005_v40 = vld [vmem:[#allocation11 + $0xe8] sm:$0xff] }
 0x67b   : > { %11903 = vst [vmem:[%s18539_s23 + $0xb3] sm:$0xff] %v11867_v24  ;;  %v11870_v52 = vmul.f32 %v15999_v26, %v11834_v31  ;;  %v11833_v11 = vmax.f32 %v11797_v5, 0.0  ;;  %v11759_v37 = vmul.f32 %v18810_v15, %v11645_v62  ;;  %v11648_v0 = vadd.f32 %v15802_v58, %v11242_v12 }
 0x67c   : > { %v11800_v49 = vadd.f32 %v18814_v14, %v11760_v1  ;;  %v11536_v4 = vpop.f32.mrf.mxu0  ;;  %v11247_v12 = vadd.f32 %v11160_v17, %v19333_v28 }
 0x67d   : > { %11906 = vst [vmem:[%s18539_s23 + $0xcb] sm:$0xff] %v11870_v52  ;;  %v11869_v27 = vmul.f32 %v16000_v13, %v11833_v11  ;;  %v11799_v46 = vadd.f32 %v18814_v14, %v11759_v37  ;;  %v11762_v63 = vmul.f32 %v18810_v15, %v11648_v0  ;;  %v11647_v35 = vadd.f32 %v11536_v4, %v11241_v21  ;;  %v19334_v37 = vld [vmem:[#allocation22_spill] sm:$0xff]  ;;  %v16006_v4 = vld [vmem:[#allocation11 + $0xe0] sm:$0xff] }
 0x67e   : > { %v11836_v38 = vmax.f32 %v11800_v49, 0.0  ;;  %v15805_v23 = vpop.f32.mrf.mxu0  ;;  %v11250_v0 = vadd.f32 %v15728_v57, %v19334_v37 }
 0x67f   : > { %11905 = vst [vmem:[%s18539_s23 + $0xc3] sm:$0xff] %v11869_v27  ;;  %v11835_v10 = vmax.f32 %v11799_v46, 0.0  ;;  %v11802_v50 = vadd.f32 %v18814_v14, %v11762_v63  ;;  %v11761_v56 = vmul.f32 %v18810_v15, %v11647_v35  ;;  %v11650_v9 = vadd.f32 %v15805_v23, %v11244_v61  ;;  %v19335_v61 = vld [vmem:[#allocation45_spill] sm:$0xff]  ;;  %v16007_v27 = vld [vmem:[#allocation11 + $0xf8] sm:$0xff] }
 0x680   : > { %v11872_v39 = vmul.f32 %v16001_v54, %v11836_v38  ;;  %v11546_v22 = vpop.f32.mrf.mxu0  ;;  %v11249_v49 = vadd.f32 %v11170_v18, %v19335_v61 }
 0x681   : > { %v11871_v25 = vmul.f32 %v16002_v43, %v11835_v10  ;;  %v11838_v48 = vmax.f32 %v11802_v50, 0.0  ;;  %v11801_v20 = vadd.f32 %v18814_v14, %v11761_v56  ;;  %v11764_v51 = vmul.f32 %v18810_v15, %v11650_v9  ;;  %v16008_v50 = vld [vmem:[#allocation11 + $0xf0] sm:$0xff] }
 0x682   : > { %11908 = vst [vmem:[%s18539_s23 + $0xdb] sm:$0xff] %v11872_v39  ;;  %v11649_v29 = vadd.f32 %v11546_v22, %v11243_v32  ;;  %v15808_v3 = vpop.f32.mrf.mxu0  ;;  %v16009_v39 = vld [vmem:[#allocation11 + $0x108] sm:$0xff] }
 0x683   : > { %11907 = vst [vmem:[%s18539_s23 + $0xd3] sm:$0xff] %v11871_v25  ;;  %v11874_v33 = vmul.f32 %v16003_v36, %v11838_v48  ;;  %v11837_v6 = vmax.f32 %v11801_v20, 0.0  ;;  %v11804_v2 = vadd.f32 %v18814_v14, %v11764_v51  ;;  %v11652_v47 = vadd.f32 %v15808_v3, %v11246_v8  ;;  %v16010_v48 = vld [vmem:[#allocation11 + $0x100] sm:$0xff]  ;;  %v16011_v3 = vld [vmem:[#allocation11 + $0x118] sm:$0xff] }
 0x684   : > { %v11763_v30 = vmul.f32 %v18810_v15, %v11649_v29  ;;  %v11556_v34 = vpop.f32.mrf.mxu0 }
 0x685   : > { %11910 = vst [vmem:[%s18539_s23 + $0xeb] sm:$0xff] %v11874_v33  ;;  %v11873_v16 = vmul.f32 %v16004_v7, %v11837_v6  ;;  %v11840_v44 = vmax.f32 %v11804_v2, 0.0  ;;  %v11766_v41 = vmul.f32 %v18810_v15, %v11652_v47  ;;  %v11651_v19 = vadd.f32 %v11556_v34, %v11245_v45 }
 0x686   : > { %v11803_v55 = vadd.f32 %v18814_v14, %v11763_v30  ;;  %v15811_v59 = vpop.f32.mrf.mxu0 }
 0x687   : > { %11909 = vst [vmem:[%s18539_s23 + $0xe3] sm:$0xff] %v11873_v16  ;;  %v11876_v24 = vmul.f32 %v16005_v40, %v11840_v44  ;;  %v11806_v31 = vadd.f32 %v18814_v14, %v11766_v41  ;;  %v11765_v5 = vmul.f32 %v18810_v15, %v11651_v19  ;;  %v11654_v62 = vadd.f32 %v15811_v59, %v11248_v53 }
 0x688   : > { %v11839_v21 = vmax.f32 %v11803_v55, 0.0  ;;  %v11566_v1 = vpop.f32.mrf.mxu0 }
 0x689   : > { %11912 = vst [vmem:[%s18539_s23 + $0xfb] sm:$0xff] %v11876_v24  ;;  %v11842_v58 = vmax.f32 %v11806_v31, 0.0  ;;  %v11805_v26 = vadd.f32 %v18814_v14, %v11765_v5  ;;  %v11768_v52 = vmul.f32 %v18810_v15, %v11654_v62  ;;  %v11653_v11 = vadd.f32 %v11566_v1, %v11247_v12 }
 0x68a   : > { %v11875_v60 = vmul.f32 %v16006_v4, %v11839_v21  ;;  %v15814_v13 = vpop.f32.mrf.mxu0 }
 0x68b   : > { %v11878_v46 = vmul.f32 %v16007_v27, %v11842_v58  ;;  %v11841_v63 = vmax.f32 %v11805_v26, 0.0  ;;  %v11808_v35 = vadd.f32 %v18814_v14, %v11768_v52  ;;  %v11767_v38 = vmul.f32 %v18810_v15, %v11653_v11 }
 0x68c   : > { %11911 = vst [vmem:[%s18539_s23 + $0xf3] sm:$0xff] %v11875_v60  ;;  %v11656_v23 = vadd.f32 %v15814_v13, %v11250_v0  ;;  %v11576_v10 = vpop.f32.mrf.mxu0 }
 0x68d   : > { %11914 = vst [vmem:[%s18539_s23 + $0x10b] sm:$0xff] %v11878_v46  ;;  %v11877_v56 = vmul.f32 %v16008_v50, %v11841_v63  ;;  %v11844_v9 = vmax.f32 %v11808_v35, 0.0  ;;  %v11807_v32 = vadd.f32 %v18814_v14, %v11767_v38  ;;  %v11655_v8 = vadd.f32 %v11576_v10, %v11249_v49 }
 0x68e   : > { %v11770_v54 = vmul.f32 %v18810_v15, %v11656_v23 }
 0x68f   : > { %11913 = vst [vmem:[%s18539_s23 + $0x103] sm:$0xff] %v11877_v56  ;;  %v11880_v22 = vmul.f32 %v16009_v39, %v11844_v9  ;;  %v11843_v17 = vmax.f32 %v11807_v32, 0.0  ;;  %v11769_v43 = vmul.f32 %v18810_v15, %v11655_v8  ;;  %v16012_v15 = vld [vmem:[#allocation11 + $0x110] sm:$0xff] }
 0x690   : > { %v11810_v25 = vadd.f32 %v18814_v14, %v11770_v54 }
 0x691   : > { %11916 = vst [vmem:[%s18539_s23 + $0x11b] sm:$0xff] %v11880_v22  ;;  %v11879_v20 = vmul.f32 %v16010_v48, %v11843_v17  ;;  %v11809_v51 = vadd.f32 %v18814_v14, %v11769_v43 }
 0x692   : > { %v11846_v45 = vmax.f32 %v11810_v25, 0.0 }
 0x693   : > { %11915 = vst [vmem:[%s18539_s23 + $0x113] sm:$0xff] %v11879_v20  ;;  %v11845_v29 = vmax.f32 %v11809_v51, 0.0 }
 0x694   : > { %v11882_v57 = vmul.f32 %v16011_v3, %v11846_v45 }
 0x695   : > { %v11881_v36 = vmul.f32 %v16012_v15, %v11845_v29 }
 0x696   : > { %11918 = vst [vmem:[%s18539_s23 + $0x12b] sm:$0xff] %v11882_v57 }
 0x697   : > { %11917 = vst [vmem:[%s18539_s23 + $0x123] sm:$0xff] %v11881_v36 }
 0x698   : > { %16132 = shalt.err (!%p16129_p13)
}
 0x699   : > { %s16133_s11 = scalar_lea.hbm %s19011_s13, 5248  ;;  %s16137_s5 = scalar_lea.hbm %s19062_s4, 10496 }
 0x69a   : > { %p16134_p9 = scmp.ne.s32.totalorder %s19011_s13, %s16133_s11  ;;  %p16138_p11 = scmp.lt.s32.totalorder %s19011_s13, %s19062_s4 }
 0x69b   : > { %p16139_p0 = scmp.lt.s32.totalorder %s16137_s5, %s16133_s11 }
 0x69c   : > { %p16135_p8 = pnand %p16134_p9, %p19336_p2 }
 0x69d   : > { %p16140_p3 = por %p16139_p0, %p16138_p11 }
 0x69e   : > { %p16136_p10 = pneg %p16135_p8 }
 0x6a0   : > { %p16141_p1 = pnand %p16140_p3, %p16136_p10 }
 0x6a2   : > { %16144 = shalt.err (!%p16141_p1)
}
 0x6a3   : > { %s16201_s23 = smov 128   ;;  %s16202_s6 = smov 8  }
 0x6a4   : > { %15863 = dma.vmem_to_hbm [thread:$0]  (%p19336_p2), %s19013_s7, 5248, %s19011_s13, %s11920_s19, %s16201_s23, %s16201_s23, %s16202_s6  }
 0x6a5 PF: > { %s11948_s10 = sand.u32 1, %s16179_s15   ;;  %p19337_p4 = scmp.ne.s32.totalorder %s19068_s22, 0 }
 0x6a6   : > { %p19338_p6 = scmp.ge.s32.totalorder %s16191_s18, 2  ;;  %s11949_s12 = scalar_lea.sflag [#allocation7], %s11948_s10 }
 0x6a8   : > { %p15880_p12 = pnand %p19338_p6, %p19337_p4 }
 0x6aa   : > { %p15881_p5 = pneg %p15880_p12 }
 0x6ac   : > { %16174 = dma.done.wait (%p15881_p5), %s11949_s12, 5248  }
 0x6ad   : > { %16176 = vsyncadd (%p15881_p5), %s11949_s12, 4294962048  ;;  %p19_p7 = scmp.ge.s32.totalorder %s16314_s24, 4   ;;  %s19339_s15 = smov %s16183_s16 }
 0x6ae   : > { %s19340_s16 = smov %s16187_s17  ;;  %s19341_s17 = smov %s16324_s27 }
 0x6af   : > { %s19342_s18 = smov %s16314_s24  ;;  %21 = sbr.rel (!%p19_p7) target bundleno = 7 (0x7), region = 134 }
 0x6b4   :  { %11954 = vsyncpa [#allocation6], 1 }
 0x6b5   :  { %11956 = vsyncpa [#allocation6 + $0x1], 1 }
 0x6b6   :  { %11957 = vsyncpa [#allocation9], 1 }
 0x6b7   :  { %11958 = vsyncpa [#allocation12], 1 }
 0x6b8   :  { %11959 = vsyncpa [#allocation7], 1 }
 0x6b9   :  { %11961 = vsyncpa [#allocation7 + $0x1], 1 }

</bundles_post_ra>
